<compile_context>
chip_gen: v7x
topology: tpu7x:2x2x1
jax: 0.10.0
libtpu: 0.0.40
codegen_flags: <defaults>
</compile_context>

<pallas_src>
import functools

import jax
import jax.numpy as jnp
from jax.experimental import pallas as pl
from jax.experimental.pallas import tpu as pltpu

EPS = 1e-5


# ----------------------------- kernel helpers --------------------------------
def _zero_halo(pad_ref, B, H, W, C):
    """Zero only the 1-pixel halo strips of the bf16 padded scratch (interior
    is fully overwritten).  Re-done each grid step so it stays correct when
    the 'parallel' batch axis is sharded across TensorCores."""
    Hp, Wp = H + 2, W + 2
    bf16 = jnp.bfloat16
    pad_ref[:, 0:1, :, :] = jnp.zeros((B, 1, Wp, C), bf16)
    pad_ref[:, Hp - 1:Hp, :, :] = jnp.zeros((B, 1, Wp, C), bf16)
    pad_ref[:, :, 0:1, :] = jnp.zeros((B, Hp, 1, C), bf16)
    pad_ref[:, :, Wp - 1:Wp, :] = jnp.zeros((B, Hp, 1, C), bf16)


def _conv3x3_taps(pad_ref, w_ref, B, H, W):
    """9 per-tap accumulating matmuls (no im2col slab / concat).
    pad_ref: (B, H+2, W+2, Cin) bf16; w_ref: (9, Cin, Cout) bf16.
    Returns the (B*H*W, Cout) f32 accumulator."""
    Cin = pad_ref.shape[-1]
    Cout = w_ref.shape[-1]
    acc = jnp.zeros((B * H * W, Cout), jnp.float32)
    for ky in range(3):                 # fixed 3x3 tap loop, unrolled at trace
        for kx in range(3):
            tap = pad_ref[:, ky:ky + H, kx:kx + W, :].reshape(B * H * W, Cin)
            acc = acc + jnp.dot(tap, w_ref[ky * 3 + kx],
                                preferred_element_type=jnp.float32)
    return acc


def _store_stats(st_ref, acc):
    """Single (2, C) store of the per-step BN partials (sum, sum of squares)."""
    s = jnp.sum(acc, axis=0, keepdims=True)
    sq = jnp.sum(acc * acc, axis=0, keepdims=True)
    st_ref[0] = jnp.concatenate([s, sq], axis=0)


# -------------------------------- kernels -------------------------------------
def _conv_stats_kernel(x_ref, w_ref, out_ref, st_ref, pad_ref, *, H, W):
    """conv1 (3x3, stride 1, pad 1) for a pack of images, halo zeroed
    in-kernel, with per-step BN1 partial statistics fused into the writeback."""
    B, _, _, Cin = x_ref.shape
    Cout = w_ref.shape[-1]
    _zero_halo(pad_ref, B, H, W, Cin)
    pad_ref[:, 1:H + 1, 1:W + 1, :] = x_ref[...]          # already bf16
    acc = _conv3x3_taps(pad_ref, w_ref, B, H, W)
    out_ref[...] = acc.reshape(B, H * W, Cout).astype(jnp.bfloat16)
    _store_stats(st_ref, acc)


def _bn_relu_conv_stats_kernel(scale_ref, shift_ref, h_ref, w_ref,
                               out_ref, st_ref, pad_ref, *, H, W):
    """BN1 apply + ReLU (f32 VPU math), conv2 as per-tap matmuls, plus fused
    per-step BN2 partial statistics."""
    B, HW, C = h_ref.shape
    Cout = w_ref.shape[-1]
    _zero_halo(pad_ref, B, H, W, C)
    # BN1 apply + ReLU in f32; padding is written AFTER ReLU so the halo is a
    # true zero (matches PyTorch conv zero-padding semantics).
    a = jnp.maximum(h_ref[...].astype(jnp.float32) * scale_ref[...]
                    + shift_ref[...], 0.0)
    pad_ref[:, 1:H + 1, 1:W + 1, :] = a.reshape(B, H, W, C).astype(jnp.bfloat16)
    acc = _conv3x3_taps(pad_ref, w_ref, B, H, W)
    out_ref[...] = acc.reshape(B, HW, Cout).astype(jnp.bfloat16)
    _store_stats(st_ref, acc)


def _bn_residual_relu_kernel(scale_ref, shift_ref, h_ref, res_ref, out_ref):
    """BN2 apply + identity residual + ReLU on a lane-dense flattened
    (B, 1, H*W*C) layout (unmasked full-lane stores; C < 128 here)."""
    out_ref[...] = jnp.maximum(
        h_ref[...].astype(jnp.float32) * scale_ref[...] + shift_ref[...]
        + res_ref[...], 0.0)


# ------------------------------- wrapper --------------------------------------
def _vmem_limit_bytes():
    """~75% of physical VMEM: ~96 MiB on v5e/v6e, ~48 MiB on v7x."""
    try:
        cap = getattr(pltpu.get_tpu_info(), "vmem_capacity_bytes", None)
        if cap:
            return int(cap) * 3 // 4
    except Exception:
        pass
    return 48 * 1024 * 1024                       # safe on every generation


def _pick_batch_tile(n, h, w, c, vmem_budget):
    """Small-problem path: largest divisor of n (capped) whose per-step
    working set (bf16 pad scratch + double-buffered in/out blocks) stays well
    under the VMEM budget."""
    per_img = 2 * ((h + 2) * (w + 2) * c + 6 * h * w * c)   # rough bf16 bytes
    for cand in range(min(n, 8), 0, -1):
        if n % cand == 0 and cand * per_img <= vmem_budget // 4:
            return cand
    return 1


def basic_block_forward(x_nchw, w1, w2, g1, b1, g2, b2):
    """x_nchw: (N, C, H, W); w*: (Cout, Cin, 3, 3) [PyTorch layout]."""
    N, Cin, H, W = x_nchw.shape
    C = w1.shape[0]
    assert Cin == C, "identity residual requires inplanes == planes"
    assert w1.shape == (C, Cin, 3, 3) and w2.shape == (C, C, 3, 3)

    f32 = jnp.float32
    bf16 = jnp.bfloat16
    HW = H * W
    cnt = float(N * HW)

    vmem_bytes = _vmem_limit_bytes()
    bt = _pick_batch_tile(N, H, W, C, vmem_bytes)
    nb = N // bt

    x = jnp.transpose(x_nchw, (0, 2, 3, 1)).astype(f32)           # NHWC, f32
    x_bf16 = x.astype(bf16)                                       # conv path
    # (Cout, Cin, KH, KW) -> (KH*KW, Cin, Cout) bf16 for per-tap MXU matmuls.
    w1k = jnp.transpose(w1, (2, 3, 1, 0)).reshape(9, Cin, C).astype(bf16)
    w2k = jnp.transpose(w2, (2, 3, 1, 0)).reshape(9, C, C).astype(bf16)

    cparams = pltpu.CompilerParams(
        dimension_semantics=("parallel",),
        vmem_limit_bytes=vmem_bytes,
    )

    # ---- stage 1: conv1 (in-kernel halo) + fused BN1 partial stats ----------
    h1, st1 = pl.pallas_call(
        functools.partial(_conv_stats_kernel, H=H, W=W),
        grid=(nb,),
        in_specs=[
            pl.BlockSpec((bt, H, W, Cin), lambda n: (n, 0, 0, 0)),
            pl.BlockSpec((9, Cin, C), lambda n: (0, 0, 0)),
        ],
        out_specs=(
            pl.BlockSpec((bt, HW, C), lambda n: (n, 0, 0)),
            pl.BlockSpec((1, 2, C), lambda n: (n, 0, 0)),
        ),
        out_shape=(
            jax.ShapeDtypeStruct((N, HW, C), bf16),
            jax.ShapeDtypeStruct((nb, 2, C), f32),
        ),
        scratch_shapes=[pltpu.VMEM((bt, H + 2, W + 2, Cin), bf16)],
        compiler_params=cparams,
    )(x_bf16, w1k)

    def finish_stats(st, gamma, beta):
        # Tiny per-channel reduction over the per-step partials (sum, sum-sq).
        tot = jnp.sum(st.astype(f32), axis=0)                    # (2, C)
        mean = tot[0] / cnt
        # E[x^2]-E[x]^2 with a clamp: fine for zero-mean conv outputs at these
        # scales (see review note on cancellation for very large N*H*W).
        var = jnp.maximum(tot[1] / cnt - mean * mean, 0.0)       # biased var
        scale = gamma.astype(f32) * jax.lax.rsqrt(var + EPS)
        shift = beta.astype(f32) - mean * scale
        return scale.reshape(1, C), shift.reshape(1, C)

    scale1, shift1 = finish_stats(st1, g1, b1)

    # ---- stage 2: BN1 apply + ReLU + conv2 + fused BN2 partial stats --------
    h2, st2 = pl.pallas_call(
        functools.partial(_bn_relu_conv_stats_kernel, H=H, W=W),
        grid=(nb,),
        in_specs=[
            pl.BlockSpec((1, C), lambda n: (0, 0)),
            pl.BlockSpec((1, C), lambda n: (0, 0)),
            pl.BlockSpec((bt, HW, C), lambda n: (n, 0, 0)),
            pl.BlockSpec((9, C, C), lambda n: (0, 0, 0)),
        ],
        out_specs=(
            pl.BlockSpec((bt, HW, C), lambda n: (n, 0, 0)),
            pl.BlockSpec((1, 2, C), lambda n: (n, 0, 0)),
        ),
        out_shape=(
            jax.ShapeDtypeStruct((N, HW, C), bf16),
            jax.ShapeDtypeStruct((nb, 2, C), f32),
        ),
        scratch_shapes=[pltpu.VMEM((bt, H + 2, W + 2, C), bf16)],
        compiler_params=cparams,
    )(scale1, shift1, h1, w2k)

    scale2, shift2 = finish_stats(st2, g2, b2)

    # ---- stage 3: BN2 apply + identity residual + ReLU ----------------------
    # Flattened (N, 1, H*W*C) layout: lane-dense stores (HW*C % 128 == 0 here).
    K = HW * C
    h2f = h2.reshape(N, 1, K)                                    # bf16
    resf = x.reshape(N, 1, K)                                    # f32 residual
    scale2b = jnp.tile(scale2.reshape(C), HW).reshape(1, 1, K)
    shift2b = jnp.tile(shift2.reshape(C), HW).reshape(1, 1, K)

    yf = pl.pallas_call(
        _bn_residual_relu_kernel,
        grid=(nb,),
        in_specs=[
            pl.BlockSpec((1, 1, K), lambda n: (0, 0, 0)),
            pl.BlockSpec((1, 1, K), lambda n: (0, 0, 0)),
            pl.BlockSpec((bt, 1, K), lambda n: (n, 0, 0)),
            pl.BlockSpec((bt, 1, K), lambda n: (n, 0, 0)),
        ],
        out_specs=pl.BlockSpec((bt, 1, K), lambda n: (n, 0, 0)),
        out_shape=jax.ShapeDtypeStruct((N, 1, K), f32),
        compiler_params=cparams,
    )(scale2b, shift2b, h2f, resf)

    y = yf.reshape(N, H, W, C)
    return jnp.transpose(y, (0, 3, 1, 2))                        # back to NCHW


# ------------------------------ reference -------------------------------------
def reference(x_nchw, w1, w2, g1, b1, g2, b2):
    """Pure-JAX reference of the PyTorch BasicBlock forward (training-mode BN)."""
    def conv(x, w):
        return jax.lax.conv_general_dilated(
            x, w, window_strides=(1, 1), padding=((1, 1), (1, 1)),
            dimension_numbers=('NCHW', 'OIHW', 'NCHW'),
            precision=jax.lax.Precision.HIGHEST)

    def bn(x, g, b):
        mean = jnp.mean(x, axis=(0, 2, 3), keepdims=True)
        var = jnp.mean((x - mean) ** 2, axis=(0, 2, 3), keepdims=True)
        return ((x - mean) * jax.lax.rsqrt(var + EPS)
                * g.reshape(1, -1, 1, 1) + b.reshape(1, -1, 1, 1))

    out = jax.nn.relu(bn(conv(x_nchw, w1), g1, b1))
    out = bn(conv(out, w2), g2, b2) + x_nchw
    return jax.nn.relu(out)


if __name__ == "__main__":
    N, C, H, W = 2, 4, 16, 16                  # inplanes == planes, stride=1
    key = jax.random.PRNGKey(0)
    kx, kw1, kw2 = jax.random.split(key, 3)

    x = jax.random.normal(kx, (N, C, H, W), jnp.float32)
    fan_in = C * 3 * 3
    w1 = jax.random.normal(kw1, (C, C, 3, 3), jnp.float32) * (2.0 / fan_in) ** 0.5
    w2 = jax.random.normal(kw2, (C, C, 3, 3), jnp.float32) * (2.0 / fan_in) ** 0.5
    # PyTorch BatchNorm2d default init: gamma=1, beta=0.
    g1 = jnp.ones((C,), jnp.float32); b1 = jnp.zeros((C,), jnp.float32)
    g2 = jnp.ones((C,), jnp.float32); b2 = jnp.zeros((C,), jnp.float32)

    y = basic_block_forward(x, w1, w2, g1, b1, g2, b2)
    jax.block_until_ready(y)

    y_ref = reference(x, w1, w2, g1, b1, g2, b2)
    max_err = float(jnp.max(jnp.abs(y - y_ref)))
    # Tolerance covers bf16 MXU operands + bf16 h1/h2 intermediates with f32
    # accumulation; BN renormalizes each stage so the error stays small.
    assert jnp.allclose(y, y_ref, rtol=3e-2, atol=3e-2), f"max_err={max_err}"
    print("KERNEL_OK")
</pallas_src>

<mosaic_0001>
module attributes {stable_mosaic.version = 11 : i64} {
  func.func @_conv_stats_kernel(%arg0: i32, %arg1: memref<2x16x16x4xbf16, #tpu.memory_space<vmem>>, %arg2: memref<9x4x4xbf16, #tpu.memory_space<vmem>>, %arg3: memref<2x256x4xbf16, #tpu.memory_space<vmem>>, %arg4: memref<1x2x4xf32, #tpu.memory_space<vmem>>, %arg5: memref<2x18x18x4xbf16, #tpu.memory_space<vmem>>) attributes {dimension_semantics = [#tpu.dimension_semantics<parallel>], iteration_bounds = array<i64: 1>, scalar_prefetch = 0 : i64, scratch_operands = 1 : i64, tpu.core_type = #tpu.core_type<tc>, window_params = [{transform_indices = @transform_0, window_bounds = array<i64: 2, 16, 16, 4>}, {pipeline_mode = #tpu.pipeline_mode<synchronous>, transform_indices = @transform_1, window_bounds = array<i64: 9, 4, 4>}, {transform_indices = @transform_2, window_bounds = array<i64: 2, 256, 4>}, {transform_indices = @transform_3, window_bounds = array<i64: 1, 2, 4>}]} {
    %cst = arith.constant 0.000000e+00 : bf16
    %0 = vector.broadcast %cst : bf16 to vector<2x1x18x4xbf16>
    %c0 = arith.constant 0 : index
    %c0_0 = arith.constant 0 : index
    %c0_1 = arith.constant 0 : index
    %c0_2 = arith.constant 0 : index
    %1 = vector.load %arg5[%c0, %c0_0, %c0_1, %c0_2] : memref<2x18x18x4xbf16, #tpu.memory_space<vmem>>, vector<2x1x18x4xbf16>
    tpu.vector_store %arg5[%c0, %c0_0, %c0_1, %c0_2], %0 {strides = array<i32>} : memref<2x18x18x4xbf16, #tpu.memory_space<vmem>>, vector<2x1x18x4xbf16>,
    %cst_3 = arith.constant 0.000000e+00 : bf16
    %2 = vector.broadcast %cst_3 : bf16 to vector<2x1x18x4xbf16>
    %c0_4 = arith.constant 0 : index
    %c17 = arith.constant 17 : index
    %c0_5 = arith.constant 0 : index
    %c0_6 = arith.constant 0 : index
    %3 = vector.load %arg5[%c0_4, %c17, %c0_5, %c0_6] : memref<2x18x18x4xbf16, #tpu.memory_space<vmem>>, vector<2x1x18x4xbf16>
    tpu.vector_store %arg5[%c0_4, %c17, %c0_5, %c0_6], %2 {strides = array<i32>} : memref<2x18x18x4xbf16, #tpu.memory_space<vmem>>, vector<2x1x18x4xbf16>,
    %cst_7 = arith.constant 0.000000e+00 : bf16
    %4 = vector.broadcast %cst_7 : bf16 to vector<2x18x1x4xbf16>
    %c0_8 = arith.constant 0 : index
    %c0_9 = arith.constant 0 : index
    %c0_10 = arith.constant 0 : index
    %c0_11 = arith.constant 0 : index
    %5 = vector.load %arg5[%c0_8, %c0_9, %c0_10, %c0_11] : memref<2x18x18x4xbf16, #tpu.memory_space<vmem>>, vector<2x18x1x4xbf16>
    tpu.vector_store %arg5[%c0_8, %c0_9, %c0_10, %c0_11], %4 {strides = array<i32>} : memref<2x18x18x4xbf16, #tpu.memory_space<vmem>>, vector<2x18x1x4xbf16>,
    %cst_12 = arith.constant 0.000000e+00 : bf16
    %6 = vector.broadcast %cst_12 : bf16 to vector<2x18x1x4xbf16>
    %c0_13 = arith.constant 0 : index
    %c0_14 = arith.constant 0 : index
    %c17_15 = arith.constant 17 : index
    %c0_16 = arith.constant 0 : index
    %7 = vector.load %arg5[%c0_13, %c0_14, %c17_15, %c0_16] : memref<2x18x18x4xbf16, #tpu.memory_space<vmem>>, vector<2x18x1x4xbf16>
    tpu.vector_store %arg5[%c0_13, %c0_14, %c17_15, %c0_16], %6 {strides = array<i32>} : memref<2x18x18x4xbf16, #tpu.memory_space<vmem>>, vector<2x18x1x4xbf16>,
    %c0_17 = arith.constant 0 : index
    %c0_18 = arith.constant 0 : index
    %c0_19 = arith.constant 0 : index
    %c0_20 = arith.constant 0 : index
    %8 = vector.load %arg1[%c0_17, %c0_18, %c0_19, %c0_20] : memref<2x16x16x4xbf16, #tpu.memory_space<vmem>>, vector<2x16x16x4xbf16>
    %c0_21 = arith.constant 0 : index
    %c1 = arith.constant 1 : index
    %c1_22 = arith.constant 1 : index
    %c0_23 = arith.constant 0 : index
    %9 = vector.load %arg5[%c0_21, %c1, %c1_22, %c0_23] : memref<2x18x18x4xbf16, #tpu.memory_space<vmem>>, vector<2x16x16x4xbf16>
    tpu.vector_store %arg5[%c0_21, %c1, %c1_22, %c0_23], %8 {strides = array<i32>} : memref<2x18x18x4xbf16, #tpu.memory_space<vmem>>, vector<2x16x16x4xbf16>,
    %cst_24 = arith.constant 0.000000e+00 : f32
    %10 = vector.broadcast %cst_24 : f32 to vector<512x4xf32>
    %c0_25 = arith.constant 0 : index
    %c0_26 = arith.constant 0 : index
    %c0_27 = arith.constant 0 : index
    %c0_28 = arith.constant 0 : index
    %11 = vector.load %arg5[%c0_25, %c0_26, %c0_27, %c0_28] : memref<2x18x18x4xbf16, #tpu.memory_space<vmem>>, vector<2x16x16x4xbf16>
    %12 = vector.shape_cast %11 : vector<2x16x16x4xbf16> to vector<512x4xbf16>
    %c0_29 = arith.constant 0 : index
    %c0_30 = arith.constant 0 : index
    %c0_31 = arith.constant 0 : index
    %13 = vector.load %arg2[%c0_29, %c0_30, %c0_31] : memref<9x4x4xbf16, #tpu.memory_space<vmem>>, vector<1x4x4xbf16>
    %14 = vector.shape_cast %13 : vector<1x4x4xbf16> to vector<4x4xbf16>
    %cst_32 = arith.constant dense<0.000000e+00> : vector<512x4xf32>
    %15 = tpu.matmul %12, %14, %cst_32 {dimension_numbers = #tpu.dot_dimension_numbers<[1], [0], [0], [1], [0, 0, 1, 1], [], []>} : vector<512x4xbf16>, vector<4x4xbf16>, vector<512x4xf32> -> vector<512x4xf32>
    %16 = arith.addf %10, %15 : vector<512x4xf32>
    %c0_33 = arith.constant 0 : index
    %c0_34 = arith.constant 0 : index
    %c1_35 = arith.constant 1 : index
    %c0_36 = arith.constant 0 : index
    %17 = vector.load %arg5[%c0_33, %c0_34, %c1_35, %c0_36] : memref<2x18x18x4xbf16, #tpu.memory_space<vmem>>, vector<2x16x16x4xbf16>
    %18 = vector.shape_cast %17 : vector<2x16x16x4xbf16> to vector<512x4xbf16>
    %c1_37 = arith.constant 1 : index
    %c0_38 = arith.constant 0 : index
    %c0_39 = arith.constant 0 : index
    %19 = vector.load %arg2[%c1_37, %c0_38, %c0_39] : memref<9x4x4xbf16, #tpu.memory_space<vmem>>, vector<1x4x4xbf16>
    %20 = vector.shape_cast %19 : vector<1x4x4xbf16> to vector<4x4xbf16>
    %cst_40 = arith.constant dense<0.000000e+00> : vector<512x4xf32>
    %21 = tpu.matmul %18, %20, %cst_40 {dimension_numbers = #tpu.dot_dimension_numbers<[1], [0], [0], [1], [0, 0, 1, 1], [], []>} : vector<512x4xbf16>, vector<4x4xbf16>, vector<512x4xf32> -> vector<512x4xf32>
    %22 = arith.addf %16, %21 : vector<512x4xf32>
    %c0_41 = arith.constant 0 : index
    %c0_42 = arith.constant 0 : index
    %c2 = arith.constant 2 : index
    %c0_43 = arith.constant 0 : index
    %23 = vector.load %arg5[%c0_41, %c0_42, %c2, %c0_43] : memref<2x18x18x4xbf16, #tpu.memory_space<vmem>>, vector<2x16x16x4xbf16>
    %24 = vector.shape_cast %23 : vector<2x16x16x4xbf16> to vector<512x4xbf16>
    %c2_44 = arith.constant 2 : index
    %c0_45 = arith.constant 0 : index
    %c0_46 = arith.constant 0 : index
    %25 = vector.load %arg2[%c2_44, %c0_45, %c0_46] : memref<9x4x4xbf16, #tpu.memory_space<vmem>>, vector<1x4x4xbf16>
    %26 = vector.shape_cast %25 : vector<1x4x4xbf16> to vector<4x4xbf16>
    %cst_47 = arith.constant dense<0.000000e+00> : vector<512x4xf32>
    %27 = tpu.matmul %24, %26, %cst_47 {dimension_numbers = #tpu.dot_dimension_numbers<[1], [0], [0], [1], [0, 0, 1, 1], [], []>} : vector<512x4xbf16>, vector<4x4xbf16>, vector<512x4xf32> -> vector<512x4xf32>
    %28 = arith.addf %22, %27 : vector<512x4xf32>
    %c0_48 = arith.constant 0 : index
    %c1_49 = arith.constant 1 : index
    %c0_50 = arith.constant 0 : index
    %c0_51 = arith.constant 0 : index
    %29 = vector.load %arg5[%c0_48, %c1_49, %c0_50, %c0_51] : memref<2x18x18x4xbf16, #tpu.memory_space<vmem>>, vector<2x16x16x4xbf16>
    %30 = vector.shape_cast %29 : vector<2x16x16x4xbf16> to vector<512x4xbf16>
    %c3 = arith.constant 3 : index
    %c0_52 = arith.constant 0 : index
    %c0_53 = arith.constant 0 : index
    %31 = vector.load %arg2[%c3, %c0_52, %c0_53] : memref<9x4x4xbf16, #tpu.memory_space<vmem>>, vector<1x4x4xbf16>
    %32 = vector.shape_cast %31 : vector<1x4x4xbf16> to vector<4x4xbf16>
    %cst_54 = arith.constant dense<0.000000e+00> : vector<512x4xf32>
    %33 = tpu.matmul %30, %32, %cst_54 {dimension_numbers = #tpu.dot_dimension_numbers<[1], [0], [0], [1], [0, 0, 1, 1], [], []>} : vector<512x4xbf16>, vector<4x4xbf16>, vector<512x4xf32> -> vector<512x4xf32>
    %34 = arith.addf %28, %33 : vector<512x4xf32>
    %c0_55 = arith.constant 0 : index
    %c1_56 = arith.constant 1 : index
    %c1_57 = arith.constant 1 : index
    %c0_58 = arith.constant 0 : index
    %35 = vector.load %arg5[%c0_55, %c1_56, %c1_57, %c0_58] : memref<2x18x18x4xbf16, #tpu.memory_space<vmem>>, vector<2x16x16x4xbf16>
    %36 = vector.shape_cast %35 : vector<2x16x16x4xbf16> to vector<512x4xbf16>
    %c4 = arith.constant 4 : index
    %c0_59 = arith.constant 0 : index
    %c0_60 = arith.constant 0 : index
    %37 = vector.load %arg2[%c4, %c0_59, %c0_60] : memref<9x4x4xbf16, #tpu.memory_space<vmem>>, vector<1x4x4xbf16>
    %38 = vector.shape_cast %37 : vector<1x4x4xbf16> to vector<4x4xbf16>
    %cst_61 = arith.constant dense<0.000000e+00> : vector<512x4xf32>
    %39 = tpu.matmul %36, %38, %cst_61 {dimension_numbers = #tpu.dot_dimension_numbers<[1], [0], [0], [1], [0, 0, 1, 1], [], []>} : vector<512x4xbf16>, vector<4x4xbf16>, vector<512x4xf32> -> vector<512x4xf32>
    %40 = arith.addf %34, %39 : vector<512x4xf32>
    %c0_62 = arith.constant 0 : index
    %c1_63 = arith.constant 1 : index
    %c2_64 = arith.constant 2 : index
    %c0_65 = arith.constant 0 : index
    %41 = vector.load %arg5[%c0_62, %c1_63, %c2_64, %c0_65] : memref<2x18x18x4xbf16, #tpu.memory_space<vmem>>, vector<2x16x16x4xbf16>
    %42 = vector.shape_cast %41 : vector<2x16x16x4xbf16> to vector<512x4xbf16>
    %c5 = arith.constant 5 : index
    %c0_66 = arith.constant 0 : index
    %c0_67 = arith.constant 0 : index
    %43 = vector.load %arg2[%c5, %c0_66, %c0_67] : memref<9x4x4xbf16, #tpu.memory_space<vmem>>, vector<1x4x4xbf16>
    %44 = vector.shape_cast %43 : vector<1x4x4xbf16> to vector<4x4xbf16>
    %cst_68 = arith.constant dense<0.000000e+00> : vector<512x4xf32>
    %45 = tpu.matmul %42, %44, %cst_68 {dimension_numbers = #tpu.dot_dimension_numbers<[1], [0], [0], [1], [0, 0, 1, 1], [], []>} : vector<512x4xbf16>, vector<4x4xbf16>, vector<512x4xf32> -> vector<512x4xf32>
    %46 = arith.addf %40, %45 : vector<512x4xf32>
    %c0_69 = arith.constant 0 : index
    %c2_70 = arith.constant 2 : index
    %c0_71 = arith.constant 0 : index
    %c0_72 = arith.constant 0 : index
    %47 = vector.load %arg5[%c0_69, %c2_70, %c0_71, %c0_72] : memref<2x18x18x4xbf16, #tpu.memory_space<vmem>>, vector<2x16x16x4xbf16>
    %48 = vector.shape_cast %47 : vector<2x16x16x4xbf16> to vector<512x4xbf16>
    %c6 = arith.constant 6 : index
    %c0_73 = arith.constant 0 : index
    %c0_74 = arith.constant 0 : index
    %49 = vector.load %arg2[%c6, %c0_73, %c0_74] : memref<9x4x4xbf16, #tpu.memory_space<vmem>>, vector<1x4x4xbf16>
    %50 = vector.shape_cast %49 : vector<1x4x4xbf16> to vector<4x4xbf16>
    %cst_75 = arith.constant dense<0.000000e+00> : vector<512x4xf32>
    %51 = tpu.matmul %48, %50, %cst_75 {dimension_numbers = #tpu.dot_dimension_numbers<[1], [0], [0], [1], [0, 0, 1, 1], [], []>} : vector<512x4xbf16>, vector<4x4xbf16>, vector<512x4xf32> -> vector<512x4xf32>
    %52 = arith.addf %46, %51 : vector<512x4xf32>
    %c0_76 = arith.constant 0 : index
    %c2_77 = arith.constant 2 : index
    %c1_78 = arith.constant 1 : index
    %c0_79 = arith.constant 0 : index
    %53 = vector.load %arg5[%c0_76, %c2_77, %c1_78, %c0_79] : memref<2x18x18x4xbf16, #tpu.memory_space<vmem>>, vector<2x16x16x4xbf16>
    %54 = vector.shape_cast %53 : vector<2x16x16x4xbf16> to vector<512x4xbf16>
    %c7 = arith.constant 7 : index
    %c0_80 = arith.constant 0 : index
    %c0_81 = arith.constant 0 : index
    %55 = vector.load %arg2[%c7, %c0_80, %c0_81] : memref<9x4x4xbf16, #tpu.memory_space<vmem>>, vector<1x4x4xbf16>
    %56 = vector.shape_cast %55 : vector<1x4x4xbf16> to vector<4x4xbf16>
    %cst_82 = arith.constant dense<0.000000e+00> : vector<512x4xf32>
    %57 = tpu.matmul %54, %56, %cst_82 {dimension_numbers = #tpu.dot_dimension_numbers<[1], [0], [0], [1], [0, 0, 1, 1], [], []>} : vector<512x4xbf16>, vector<4x4xbf16>, vector<512x4xf32> -> vector<512x4xf32>
    %58 = arith.addf %52, %57 : vector<512x4xf32>
    %c0_83 = arith.constant 0 : index
    %c2_84 = arith.constant 2 : index
    %c2_85 = arith.constant 2 : index
    %c0_86 = arith.constant 0 : index
    %59 = vector.load %arg5[%c0_83, %c2_84, %c2_85, %c0_86] : memref<2x18x18x4xbf16, #tpu.memory_space<vmem>>, vector<2x16x16x4xbf16>
    %60 = vector.shape_cast %59 : vector<2x16x16x4xbf16> to vector<512x4xbf16>
    %c8 = arith.constant 8 : index
    %c0_87 = arith.constant 0 : index
    %c0_88 = arith.constant 0 : index
    %61 = vector.load %arg2[%c8, %c0_87, %c0_88] : memref<9x4x4xbf16, #tpu.memory_space<vmem>>, vector<1x4x4xbf16>
    %62 = vector.shape_cast %61 : vector<1x4x4xbf16> to vector<4x4xbf16>
    %cst_89 = arith.constant dense<0.000000e+00> : vector<512x4xf32>
    %63 = tpu.matmul %60, %62, %cst_89 {dimension_numbers = #tpu.dot_dimension_numbers<[1], [0], [0], [1], [0, 0, 1, 1], [], []>} : vector<512x4xbf16>, vector<4x4xbf16>, vector<512x4xf32> -> vector<512x4xf32>
    %64 = arith.addf %58, %63 : vector<512x4xf32>
    %65 = vector.shape_cast %64 : vector<512x4xf32> to vector<2x256x4xf32>
    %66 = arith.truncf %65 : vector<2x256x4xf32> to vector<2x256x4xbf16>
    %c0_90 = arith.constant 0 : index
    %c0_91 = arith.constant 0 : index
    %c0_92 = arith.constant 0 : index
    %67 = vector.load %arg3[%c0_90, %c0_91, %c0_92] : memref<2x256x4xbf16, #tpu.memory_space<vmem>>, vector<2x256x4xbf16>
    tpu.vector_store %arg3[%c0_90, %c0_91, %c0_92], %66 {strides = array<i32>} : memref<2x256x4xbf16, #tpu.memory_space<vmem>>, vector<2x256x4xbf16>,
    %cst_93 = arith.constant dense<0.000000e+00> : vector<4xf32>
    %68 = vector.multi_reduction <add>, %64, %cst_93 [0] : vector<512x4xf32> to vector<4xf32>
    %69 = vector.shape_cast %68 : vector<4xf32> to vector<1x4xf32>
    %70 = arith.mulf %64, %64 : vector<512x4xf32>
    %cst_94 = arith.constant dense<0.000000e+00> : vector<4xf32>
    %71 = vector.multi_reduction <add>, %70, %cst_94 [0] : vector<512x4xf32> to vector<4xf32>
    %72 = vector.shape_cast %71 : vector<4xf32> to vector<1x4xf32>
    %73 = tpu.concatenate %69, %72 in 0 : vector<1x4xf32>, vector<1x4xf32> -> vector<2x4xf32>
    %c0_95 = arith.constant 0 : index
    %c0_96 = arith.constant 0 : index
    %c0_97 = arith.constant 0 : index
    %74 = vector.load %arg4[%c0_95, %c0_96, %c0_97] : memref<1x2x4xf32, #tpu.memory_space<vmem>>, vector<1x2x4xf32>
    %75 = vector.shape_cast %74 : vector<1x2x4xf32> to vector<2x4xf32>
    %76 = vector.shape_cast %73 : vector<2x4xf32> to vector<1x2x4xf32>
    tpu.vector_store %arg4[%c0_95, %c0_96, %c0_97], %76 {strides = array<i32>} : memref<1x2x4xf32, #tpu.memory_space<vmem>>, vector<1x2x4xf32>,
    return
  }
  func.func @transform_0(%arg0: i32) -> (i32, i32, i32, i32) {
    %c0_i32 = arith.constant 0 : i32
    %c0_i32_0 = arith.constant 0 : i32
    %c0_i32_1 = arith.constant 0 : i32
    %c0_i32_2 = arith.constant 0 : i32
    return %arg0, %c0_i32, %c0_i32_0, %c0_i32_1 : i32, i32, i32, i32
  }
  func.func @transform_1(%arg0: i32) -> (i32, i32, i32) {
    %c0_i32 = arith.constant 0 : i32
    %c0_i32_0 = arith.constant 0 : i32
    %c0_i32_1 = arith.constant 0 : i32
    %c0_i32_2 = arith.constant 0 : i32
    return %c0_i32, %c0_i32_0, %c0_i32_1 : i32, i32, i32
  }
  func.func @transform_2(%arg0: i32) -> (i32, i32, i32) {
    %c0_i32 = arith.constant 0 : i32
    %c0_i32_0 = arith.constant 0 : i32
    %c0_i32_1 = arith.constant 0 : i32
    return %arg0, %c0_i32, %c0_i32_0 : i32, i32, i32
  }
  func.func @transform_3(%arg0: i32) -> (i32, i32, i32) {
    %c0_i32 = arith.constant 0 : i32
    %c0_i32_0 = arith.constant 0 : i32
    %c0_i32_1 = arith.constant 0 : i32
    return %arg0, %c0_i32, %c0_i32_0 : i32, i32, i32
  }
}

</mosaic_0001>

<bundles_post_ra>
// kernel: tpu_custom_call.1
= control target key start
LH: loop header
LB: loop body
LE: loop exit
PB: predicated region body
PF: predicated region fallthrough
CT: control target
= control target key end

     0   :  { %vm2247_vm0 = vcmask 1041408   ;;  %vm15_vm1 = vcmask 27648   ;;  %vm18_vm2 = vcmask 24576   ;;  %v36_v4 = vld [vmem:[#allocation2 + $0xc] sm:$0x1]  ;;  %v13155_v5 = vmov 0   ;;  %s16523_s0 = inlined_call_operand.vmem [shape: bf16[2,16,16,4], index: 0, kind: input, shape index: {}]   ;;  %s16524_s1 = inlined_call_operand.vmem [shape: bf16[9,4,4], index: 1, kind: input, shape index: {}]   ;;  %s16525_s2 = inlined_call_operand.vmem [shape: bf16[2,256,4], index: 2, kind: output, shape index: {0}]   ;;  %s16526_s3 = inlined_call_operand.hbm [shape: f32[1,2,4], index: 3, kind: output, shape index: {1}]  }
   0x1   :  { %v10622_v0 = vld [vmem:[%s16524_s1 + $0x2] sm:$0x3]  ;;  %v10913_v1 = vld [vmem:[%s16524_s1 + $0x8] sm:$0x3]  ;;  %16 = vst.msk [vmem:[#allocation2] sm:$0xf] %vm15_vm1, %v13155_v5 }
   0x2   :  { %12835 = vmatprep.subr.msk.bf16.mxu1 %vm2247_vm0, %v10622_v0  ;;  %12839 = vmatprep.subr.msk.bf16.mxu0 %vm2247_vm0, %v10913_v1  ;;  %v2249_v2 = vsel %vm2247_vm0, %v10622_v0, 0  ;;  %v13187_v3 = vsel %vm2247_vm0, %v10913_v1, 0  ;;  %17 = vst.msk [vmem:[#allocation2 + $0x4] sm:$0xf] %vm15_vm1, %v13155_v5  ;;  %vm31_vm3 = vsmask.f32 256 }
   0x3   :  { %16546 = vst [vmem:[#allocation6_spill] sm:$0xff] %v13187_v3  ;;  %11728 = vmatpush3.bf16.msra.mxu1 %v2249_v2  ;;  %11992 = vmatpush3.bf16.msra.mxu0 %v13187_v3  ;;  %19 = vst.msk [vmem:[#allocation2 + $0x8] sm:$0x1] %vm18_vm2, %v13155_v5  ;;  %vm141_vm4 = vsmask.f32 7938  ;;  %v16549_v8 = vmov 0 }
   0x4   :  { %20 = vst.msk [vmem:[#allocation2 + $0xd8] sm:$0xf] %vm15_vm1, %v13155_v5  ;;  %21 = vst.msk [vmem:[#allocation2 + $0xdc] sm:$0xf] %vm15_vm1, %v13155_v5  ;;  %v146_v7 = vld [vmem:[#allocation2 + $0x14] sm:$0x1] }
   0x5   :  { %22 = vst.msk [vmem:[#allocation2 + $0xe0] sm:$0x1] %vm18_vm2, %v13155_v5  ;;  %26 = vst.msk [vmem:[#allocation2 + $0xd4] sm:$0x1] %vm18_vm2, %v13155_v5  ;;  %v251_v10 = vld [vmem:[%s16523_s0] sm:$0xf] }
   0x6   :  { %24 = vst.msk [vmem:[#allocation2 + $0xcc] sm:$0xf] %vm15_vm1, %v13155_v5  ;;  %25 = vst.msk [vmem:[#allocation2 + $0xd0] sm:$0xf] %vm15_vm1, %v13155_v5  ;;  %v252_v11 = vld [vmem:[%s16523_s0 + $0x4] sm:$0xf] }
   0x7   :  { %27 = vst.msk [vmem:[#allocation2 + $0x1a4] sm:$0xf] %vm15_vm1, %v13155_v5  ;;  %28 = vst.msk [vmem:[#allocation2 + $0x1a8] sm:$0xf] %vm15_vm1, %v13155_v5  ;;  %vm315_vm7 = vsmask.f32 4368 }
   0x8   :  { %29 = vst.msk [vmem:[#allocation2 + $0x1ac] sm:$0x1] %vm18_vm2, %v13155_v5  ;;  %vm13204_vm5 = vmand %vm18_vm2, %vm31_vm3  ;;  %v318_v13 = vshrl.u32 %v251_v10, 16  ;;  %v321_v14 = vshll.u32 %v251_v10, 16  ;;  %v326_v15 = vshrl.u32 %v252_v11, 16  ;;  %v329_v19 = vshll.u32 %v252_v11, 16 }
   0x9   :  { %vm13210_vm6 = vmand %vm18_vm2, %vm141_vm4  ;;  %v37_v9 = vsel %vm13204_vm5, 0, %v36_v4  ;;  %v13227_v16 = vld [vmem:[%s16524_s1] sm:$0x3]  ;;  %v13232_v17 = vld [vmem:[%s16524_s1 + $0xa] sm:$0x3]  ;;  %vm2150_vm12 = vcmask 31744  }
   0xa   :  { %v16550_v8 = vsel %vm13210_vm6, 4294967295, %v16549_v8  ;;  %38 = vst [vmem:[#allocation2 + $0xc] sm:$0x1] %v37_v9  ;;  %v147_v12 = vsel %vm13210_vm6, 0, %v146_v7  ;;  %v320_v18 = vrot.slane %v318_v13, 7  ;;  %12836 = vmatprep.subr.msk.bf16.mxu1 %vm2247_vm0, %v13227_v16  ;;  %12841 = vmatprep.subr.msk.bf16.mxu0 %vm2247_vm0, %v13232_v17  ;;  %vm13239_vm8 = vmor %vm31_vm3, %vm315_vm7  ;;  %v328_v23 = vrot.slane %v326_v15, 7 }
   0xb   :  { %16551 = vst [vmem:[#allocation7_spill] sm:$0xff] %v16550_v8  ;;  %148 = vst [vmem:[#allocation2 + $0x14] sm:$0x1] %v147_v12  ;;  %v39_v20 = vld [vmem:[#allocation2 + $0x18] sm:$0x1]  ;;  %vm3184_vm14 = vcmask 1042432  }
   0xc   :  { %v149_v21 = vld [vmem:[#allocation2 + $0x20] sm:$0x1]  ;;  %v40_v24 = vsel %vm13204_vm5, 0, %v39_v20  ;;  %v253_v26 = vld [vmem:[%s16523_s0 + $0x8] sm:$0xf]  ;;  %v323_v30 = vor.u32 %v321_v14, %v320_v18  ;;  %vm13256_vm9 = vmand %vm15_vm1, %vm141_vm4  ;;  %v324_v37 = vrot.slane %v320_v18, 4  ;;  %v331_v38 = vor.u32 %v329_v19, %v328_v23 }
   0xd   :  { %v150_v25 = vsel %vm13210_vm6, 0, %v149_v21  ;;  %v33_v27 = vld [vmem:[#allocation2] sm:$0x1]  ;;  %v143_v28 = vld [vmem:[#allocation2 + $0x8] sm:$0x1]  ;;  %v333_v39 = vrot.slane %v328_v23, 4 }
   0xe   :  { %v1185_v29 = vld [vmem:[#allocation2 + $0x4] sm:$0xf]  ;;  %41 = vst [vmem:[#allocation2 + $0x18] sm:$0x1] %v40_v24  ;;  %151 = vst [vmem:[#allocation2 + $0x20] sm:$0x1] %v150_v25  ;;  %v332_v47 = vsel %vm13239_vm8, %v324_v37, %v331_v38 }
   0xf   :  { %v34_v31 = vsel %vm13204_vm5, 0, %v33_v27  ;;  %v144_v32 = vsel %vm13210_vm6, 0, %v143_v28  ;;  %v1294_v33 = vshll.u32 %v1185_v29, 16  ;;  %v1298_v34 = vshrl.u32 %v1185_v29, 16  ;;  %v254_v36 = vld [vmem:[%s16523_s0 + $0xc] sm:$0xf] }
  0x10   :  { %35 = vst [vmem:[#allocation2] sm:$0x1] %v34_v31  ;;  %145 = vst [vmem:[#allocation2 + $0x8] sm:$0x1] %v144_v32  ;;  %v335_v40 = vshrl.u32 %v253_v26, 16  ;;  %v338_v45 = vshll.u32 %v253_v26, 16 }
  0x11   :  { %v42_v41 = vld [vmem:[#allocation2 + $0x24] sm:$0x1]  ;;  %v13263_v42 = vrot.slane %v1294_v33, 5  ;;  %v1300_v43 = vrot.slane %v1298_v34, 4  ;;  %v960_v44 = vld [vmem:[#allocation2 + $0xc] sm:$0xf] }
  0x12   :  { %v343_v46 = vshrl.u32 %v254_v36, 16  ;;  %v961_v48 = vsel %vm13256_vm9, %v323_v30, %v960_v44  ;;  %v964_v49 = vld [vmem:[#allocation2 + $0x14] sm:$0x1]  ;;  %v337_v50 = vrot.slane %v335_v40, 7  ;;  %v346_v51 = vshll.u32 %v254_v36, 16 }
  0x13   :  { %v152_v52 = vld [vmem:[#allocation2 + $0x2c] sm:$0x1]  ;;  %962 = vst [vmem:[#allocation2 + $0xc] sm:$0xf] %v961_v48  ;;  %963 = vst.msk [vmem:[#allocation2 + $0x10] sm:$0xf] %vm15_vm1, %v332_v47  ;;  %v965_v53 = vsel %vm13204_vm5, %v333_v39, %v964_v49  ;;  %v1301_v61 = vor.u32 %v1300_v43, %v13263_v42 }
  0x14   :  { %v345_v54 = vrot.slane %v343_v46, 7  ;;  %v43_v55 = vsel %vm13204_vm5, 0, %v42_v41  ;;  %v13277_v56 = vld [vmem:[%s16523_s0 + $0x10] sm:$0xf]  ;;  %966 = vst [vmem:[#allocation2 + $0x14] sm:$0x1] %v965_v53  ;;  %v340_v57 = vor.u32 %v338_v45, %v337_v50 }
  0x15   :  { %v341_v58 = vrot.slane %v337_v50, 4  ;;  %44 = vst [vmem:[#allocation2 + $0x24] sm:$0x1] %v43_v55  ;;  %v153_v59 = vsel %vm13210_vm6, 0, %v152_v52  ;;  %v45_v60 = vld [vmem:[#allocation2 + $0x30] sm:$0x1] }
  0x16   :  { %v348_v62 = vor.u32 %v346_v51, %v345_v54  ;;  %v350_v63 = vrot.slane %v345_v54, 4  ;;  %v967_v0 = vld [vmem:[#allocation2 + $0x18] sm:$0xf]  ;;  %v971_v1 = vld [vmem:[#allocation2 + $0x20] sm:$0x1]  ;;  %v352_v2 = vshrl.u32 %v13277_v56, 16 }
  0x17   :  { %154 = vst [vmem:[#allocation2 + $0x2c] sm:$0x1] %v153_v59  ;;  %vm1281_vm10 = vsmask.f32 3328  ;;  %vm1282_vm11 = vsmask.f32 7440  ;;  %v968_v4 = vsel %vm13256_vm9, %v340_v57, %v967_v0 }
  0x18   :  { %v155_v5 = vld [vmem:[#allocation2 + $0x38] sm:$0x1]  ;;  %v1184_v7 = vld [vmem:[#allocation2] sm:$0xf]  ;;  %v1249_v9 = vld [vmem:[#allocation2 + $0x8] sm:$0x1]  ;;  %v349_v10 = vsel %vm13239_vm8, %v341_v58, %v348_v62  ;;  %v972_v11 = vsel %vm13204_vm5, %v350_v63, %v971_v1 }
  0x19   :  { %969 = vst [vmem:[#allocation2 + $0x18] sm:$0xf] %v968_v4  ;;  %v46_v12 = vsel %vm13204_vm5, 0, %v45_v60  ;;  %v1285_v13 = vshrl.u32 %v1184_v7, 16  ;;  %v1288_v14 = vshll.u32 %v1184_v7, 16  ;;  %v1304_v15 = vshll.u32 %v1249_v9, 16  ;;  %vm13312_vm13 = vmor %vm1281_vm10, %vm1282_vm11 }
  0x1a   :  { %v13293_v18 = vsel %vm2247_vm0, %v13227_v16, 0  ;;  %970 = vst.msk [vmem:[#allocation2 + $0x1c] sm:$0xf] %vm15_vm1, %v349_v10  ;;  %973 = vst [vmem:[#allocation2 + $0x20] sm:$0x1] %v972_v11  ;;  %v1302_v19 = vrot.slane %v1301_v61, 4 }
  0x1b   :  { %47 = vst [vmem:[#allocation2 + $0x30] sm:$0x1] %v46_v12  ;;  %v13298_v20 = vsel %vm2247_vm0, %v13232_v17, 0  ;;  %v13303_v21 = vld [vmem:[%s16523_s0 + $0x14] sm:$0xf]  ;;  %v13305_v23 = vrot.slane %v352_v2, 7 }
  0x1c   :  { %v156_v16 = vsel %vm13210_vm6, 0, %v155_v5  ;;  %v1287_v24 = vrot.slane %v1285_v13, 4  ;;  %v1290_v25 = vrot.slane %v1288_v14, 5  ;;  %v1306_v26 = vrot.slane %v1304_v15, 5  ;;  %v1186_v27 = vld [vmem:[#allocation2 + $0xc] sm:$0xf] }
  0x1d   :  { %v355_v28 = vshll.u32 %v13277_v56, 16  ;;  %157 = vst [vmem:[#allocation2 + $0x38] sm:$0x1] %v156_v16  ;;  %v1187_v29 = vld [vmem:[#allocation2 + $0x10] sm:$0xf]  ;;  %v1309_v31 = vshrl.u32 %v1186_v27, 16 }
  0x1e   :  { %v1250_v30 = vld [vmem:[#allocation2 + $0x14] sm:$0x1]  ;;  %v1312_v32 = vshll.u32 %v1186_v27, 16  ;;  %v1291_v33 = vor.u32 %v1290_v25, %v1287_v24  ;;  %v1318_v34 = vshll.u32 %v1187_v29, 16  ;;  %v1322_v36 = vshrl.u32 %v1187_v29, 16 }
  0x1f   :  { %v4639_v37 = vld [vmem:[#allocation2 + $0xc] sm:$0xf]  ;;  %v360_v38 = vshrl.u32 %v13303_v21, 16  ;;  %v1311_v39 = vrot.slane %v1309_v31, 4  ;;  %v1328_v41 = vshll.u32 %v1250_v30, 16  ;;  %v363_v44 = vshll.u32 %v13303_v21, 16 }
  0x20   :  { %v1314_v40 = vrot.slane %v1312_v32, 5  ;;  %v13317_v43 = vld [vmem:[#allocation2 + $0x10] sm:$0xf]  ;;  %v1292_v45 = vrot.slane %v1291_v33, 4  ;;  %v1307_v46 = vsel %vm13312_vm13, %v1302_v19, %v1306_v26  ;;  %v1320_v47 = vrot.slane %v1318_v34, 5 }
  0x21   :  { %v1324_v48 = vrot.slane %v1322_v36, 4  ;;  %v1330_v50 = vrot.slane %v1328_v41, 5  ;;  %v13322_v51 = vld [vmem:[#allocation2 + $0x14] sm:$0x1]  ;;  %v4736_v52 = vshrl.u32 %v4639_v37, 16  ;;  %v4739_v53 = vshll.u32 %v4639_v37, 16 }
  0x22   :  { %v1315_v49 = vor.u32 %v1314_v40, %v1311_v39  ;;  %v1297_v54 = vsel %vm13312_vm13, %v1292_v45, %v13263_v42  ;;  %v4745_v57 = vshll.u32 %v13317_v43, 16  ;;  %v4749_v58 = vshrl.u32 %v13317_v43, 16  ;;  %v4642_v63 = vld [vmem:[#allocation2 + $0x18] sm:$0xf]  ;;  %v4643_v5 = vld [vmem:[#allocation2 + $0x1c] sm:$0xf] }
  0x23   :  { %v1325_v55 = vor.u32 %v1324_v48, %v1320_v47  ;;  %v10623_v59 = vcombine.low %v1297_v54, %v1307_v46  ;;  %v4738_v61 = vrot.slane %v4736_v52, 4  ;;  %v4741_v62 = vrot.slane %v4739_v53, 5  ;;  %v4644_v9 = vld [vmem:[#allocation2 + $0x20] sm:$0x1]  ;;  %v13339_v25 = vld [vmem:[%s16523_s0 + $0x18] sm:$0xf] }
  0x24   :  { %v1316_v60 = vrot.slane %v1315_v49, 4  ;;  %v4747_v1 = vrot.slane %v4745_v57, 5  ;;  %v4751_v2 = vrot.slane %v4749_v58, 4  ;;  %v4755_v4 = vshll.u32 %v13322_v51, 16  ;;  %v1188_v31 = vld [vmem:[#allocation2 + $0x18] sm:$0xf] }
  0x25   :  { %v1326_v0 = vrot.slane %v1325_v55, 4  ;;  %11729 = vmatprep.mubr.msk.bf16.mxu1 %vm2150_vm12, %v10623_v59  ;;  %v4742_v7 = vor.u32 %v4741_v62, %v4738_v61  ;;  %v358_v10 = vrot.slane %v13305_v23, 4  ;;  %v362_v11 = vrot.slane %v360_v38, 7  ;;  %v1189_v36 = vld [vmem:[#allocation2 + $0x1c] sm:$0xf] }
  0x26   :  { %v1321_v42 = vsel %vm13312_vm13, %v1316_v60, %v1320_v47  ;;  %v4752_v13 = vor.u32 %v4751_v2, %v4747_v1  ;;  %v4757_v14 = vrot.slane %v4755_v4, 5  ;;  %v4760_v15 = vshrl.u32 %v4642_v63, 16  ;;  %v1251_v40 = vld [vmem:[#allocation2 + $0x20] sm:$0x1]  ;;  %v974_v54 = vld [vmem:[#allocation2 + $0x24] sm:$0xf] }
  0x27   :  { %v1331_v12 = vsel %vm13312_vm13, %v1326_v0, %v1330_v50  ;;  %v4743_v21 = vrot.slane %v4742_v7, 4  ;;  %v4763_v16 = vshll.u32 %v4642_v63, 16  ;;  %v4769_v24 = vshll.u32 %v4643_v5, 16  ;;  %v978_v61 = vld [vmem:[#allocation2 + $0x2c] sm:$0x1] }
  0x28   :  { %v10624_v19 = vcombine.low %v1321_v42, %v1331_v12  ;;  %v4753_v26 = vrot.slane %v4752_v13, 4  ;;  %v4762_v27 = vrot.slane %v4760_v15, 4  ;;  %v4773_v29 = vshrl.u32 %v4643_v5, 16  ;;  %v48_v7 = vld [vmem:[#allocation2 + $0x3c] sm:$0x1] }
  0x29   :  { %v4779_v30 = vshll.u32 %v4644_v9, 16  ;;  %v4748_v32 = vsel %vm13312_vm13, %v4743_v21, %v4747_v1  ;;  %v4765_v33 = vrot.slane %v4763_v16, 5  ;;  %v4771_v34 = vrot.slane %v4769_v24, 5  ;;  %v158_v9 = vld [vmem:[#allocation2 + $0x44] sm:$0x1] }
  0x2a   :  { %11730 = vmatmul.mubr.msk.bf16.vlgmr.msra.gmra.mrb[0].mxu1 %vm2150_vm12, %v10624_v19  ;;  %v365_v37 = vor.u32 %v363_v44, %v362_v11  ;;  %v4758_v38 = vsel %vm13312_vm13, %v4753_v26, %v4757_v14  ;;  %v4775_v39 = vrot.slane %v4773_v29, 4  ;;  %v357_v41 = vor.u32 %v355_v28, %v13305_v23  ;;  %v258_v23 = vld [vmem:[%s16523_s0 + $0x1c] sm:$0xf]  ;;  %v981_v24 = vld [vmem:[#allocation2 + $0x30] sm:$0xf] }
  0x2b   :  { %11794 = vmatpush3.bf16.msra.mxu1 %v13293_v18  ;;  %v369_v45 = vshrl.u32 %v13339_v25, 16  ;;  %v10914_v46 = vcombine.low %v4748_v32, %v4758_v38  ;;  %v4766_v47 = vor.u32 %v4765_v33, %v4762_v27  ;;  %v4781_v48 = vrot.slane %v4779_v30, 5  ;;  %v985_v32 = vld [vmem:[#allocation2 + $0x38] sm:$0x1]  ;;  %v13383_v33 = vld [vmem:[%s16523_s0 + $0x24] sm:$0xf] }
  0x2c   :  { %v1333_v49 = vshrl.u32 %v1188_v31, 16  ;;  %v4776_v50 = vor.u32 %v4775_v39, %v4771_v34  ;;  %v1336_v52 = vshll.u32 %v1188_v31, 16  ;;  %v1342_v44 = vshll.u32 %v1189_v36, 16 }
  0x2d   :  { %v1346_v53 = vshrl.u32 %v1189_v36, 16  ;;  %11993 = vmatprep.mubr.msk.bf16.mxu0 %vm2150_vm12, %v10914_v46  ;;  %v4767_v18 = vrot.slane %v4766_v47, 4  ;;  %v1352_v57 = vshll.u32 %v1251_v40, 16  ;;  %v366_v56 = vsel %vm13239_vm8, %v358_v10, %v365_v37 }
  0x2e   :  { %v1335_v55 = vrot.slane %v1333_v49, 4  ;;  %v4777_v28 = vrot.slane %v4776_v50, 4  ;;  %v1338_v58 = vrot.slane %v1336_v52, 5  ;;  %v1344_v59 = vrot.slane %v1342_v44, 5  ;;  %977 = vst.msk [vmem:[#allocation2 + $0x28] sm:$0xf] %vm15_vm1, %v366_v56 }
  0x2f   :  { %v1348_v60 = vrot.slane %v1346_v53, 4  ;;  %v4772_v62 = vsel %vm13312_vm13, %v4767_v18, %v4771_v34  ;;  %v1354_v63 = vrot.slane %v1352_v57, 5  ;;  %v367_v0 = vrot.slane %v362_v11, 4  ;;  %v259_v11 = vld [vmem:[%s16523_s0 + $0x20] sm:$0xf] }
  0x30   :  { %v975_v1 = vsel %vm13256_vm9, %v357_v41, %v974_v54  ;;  %v4782_v2 = vsel %vm13312_vm13, %v4777_v28, %v4781_v48  ;;  %v1339_v4 = vor.u32 %v1338_v58, %v1335_v55  ;;  %v371_v42 = vrot.slane %v369_v45, 7 }
  0x31   :  { %v1349_v5 = vor.u32 %v1348_v60, %v1344_v59  ;;  %976 = vst [vmem:[#allocation2 + $0x24] sm:$0xf] %v975_v1  ;;  %v10915_v10 = vcombine.low %v4772_v62, %v4782_v2  ;;  %v979_v12 = vsel %vm13204_vm5, %v367_v0, %v978_v61  ;;  %v372_v13 = vshll.u32 %v13339_v25, 16 }
  0x32   :  { %v377_v14 = vshrl.u32 %v258_v23, 16  ;;  %v1340_v15 = vrot.slane %v1339_v4, 4  ;;  %980 = vst [vmem:[#allocation2 + $0x2c] sm:$0x1] %v979_v12  ;;  %v375_v21 = vrot.slane %v371_v42, 4  ;;  %v380_v16 = vshll.u32 %v258_v23, 16 }
  0x33   :  { %v1350_v19 = vrot.slane %v1349_v5, 4  ;;  %11994 = vmatmul.mubr.msk.bf16.vlgmr.msra.gmra.mrb[0].mxu0 %vm2150_vm12, %v10915_v10  ;;  %v374_v26 = vor.u32 %v372_v13, %v371_v42  ;;  %v49_v29 = vsel %vm13204_vm5, 0, %v48_v7  ;;  %v159_v25 = vsel %vm13210_vm6, 0, %v158_v9 }
  0x34   :  { %v379_v27 = vrot.slane %v377_v14, 7  ;;  %12058 = vmatpush3.bf16.msra.mxu0 %v13298_v20  ;;  %v1345_v30 = vsel %vm13312_vm13, %v1340_v15, %v1344_v59  ;;  %50 = vst [vmem:[#allocation2 + $0x3c] sm:$0x1] %v49_v29  ;;  %160 = vst [vmem:[#allocation2 + $0x44] sm:$0x1] %v159_v25  ;;  %v386_v34 = vshrl.u32 %v259_v11, 16 }
  0x35   :  { %v1355_v31 = vsel %vm13312_vm13, %v1350_v19, %v1354_v63  ;;  %v389_v36 = vshll.u32 %v259_v11, 16  ;;  %v1191_v38 = vld [vmem:[#allocation2 + $0x28] sm:$0xf]  ;;  %v982_v41 = vsel %vm13256_vm9, %v374_v26, %v981_v24  ;;  %v394_v54 = vshrl.u32 %v13383_v33, 16 }
  0x36   :  { %v10625_v37 = vcombine.low %v1345_v30, %v1355_v31  ;;  %v4646_v39 = vld [vmem:[#allocation2 + $0x28] sm:$0xf]  ;;  %v382_v20 = vor.u32 %v380_v16, %v379_v27  ;;  %v384_v40 = vrot.slane %v379_v27, 4  ;;  %v1366_v45 = vshll.u32 %v1191_v38, 16  ;;  %983 = vst [vmem:[#allocation2 + $0x30] sm:$0xf] %v982_v41 }
  0x37   :  { %v1370_v46 = vshrl.u32 %v1191_v38, 16  ;;  %v4793_v47 = vshll.u32 %v4646_v39, 16  ;;  %v4797_v48 = vshrl.u32 %v4646_v39, 16  ;;  %v13392_v53 = vrot.slane %v386_v34, 7 }
  0x38   :  { %11733 = vmatprep.mubr.msk.bf16.mxu1 %vm2150_vm12, %v10625_v37  ;;  %v1190_v49 = vld [vmem:[#allocation2 + $0x24] sm:$0xf]  ;;  %v383_v52 = vsel %vm13239_vm8, %v375_v21, %v382_v20  ;;  %v986_v44 = vsel %vm13204_vm5, %v384_v40, %v985_v32  ;;  %v1368_v57 = vrot.slane %v1366_v45, 5  ;;  %v6183_v13 = vrot.slane %v13317_v43, 5 }
  0x39   :  { %v4645_v50 = vld [vmem:[#allocation2 + $0x24] sm:$0xf]  ;;  %v1357_v18 = vshrl.u32 %v1190_v49, 16  ;;  %v1360_v55 = vshll.u32 %v1190_v49, 16  ;;  %v1372_v56 = vrot.slane %v1370_v46, 4  ;;  %v391_v60 = vor.u32 %v389_v36, %v13392_v53 }
  0x3a   :  { %984 = vst.msk [vmem:[#allocation2 + $0x34] sm:$0xf] %vm15_vm1, %v383_v52  ;;  %987 = vst [vmem:[#allocation2 + $0x38] sm:$0x1] %v986_v44  ;;  %v1252_v23 = vld [vmem:[#allocation2 + $0x2c] sm:$0x1] }
  0x3b   :  { %v4647_v28 = vld [vmem:[#allocation2 + $0x2c] sm:$0x1]  ;;  %v4784_v58 = vshrl.u32 %v4645_v50, 16  ;;  %v4787_v59 = vshll.u32 %v4645_v50, 16  ;;  %v1359_v61 = vrot.slane %v1357_v18, 4  ;;  %v1362_v62 = vrot.slane %v1360_v55, 5 }
  0x3c   :  { %v1373_v63 = vor.u32 %v1372_v56, %v1368_v57  ;;  %v1376_v0 = vshll.u32 %v1252_v23, 16  ;;  %v4795_v4 = vrot.slane %v4793_v47, 5  ;;  %v4799_v5 = vrot.slane %v4797_v48, 4  ;;  %v988_v12 = vld [vmem:[#allocation2 + $0x3c] sm:$0xf] }
  0x3d   :  { %v4786_v1 = vrot.slane %v4784_v58, 4  ;;  %v4789_v2 = vrot.slane %v4787_v59, 5  ;;  %v1363_v42 = vor.u32 %v1362_v62, %v1359_v61  ;;  %v4803_v10 = vshll.u32 %v4647_v28, 16  ;;  %v4648_v15 = vld [vmem:[#allocation2 + $0x30] sm:$0xf] }
  0x3e   :  { %v1374_v7 = vrot.slane %v1373_v63, 4  ;;  %v1378_v9 = vrot.slane %v1376_v0, 5  ;;  %v4800_v11 = vor.u32 %v4799_v5, %v4795_v4  ;;  %v396_v19 = vrot.slane %v394_v54, 7  ;;  %v1192_v27 = vld [vmem:[#allocation2 + $0x30] sm:$0xf] }
  0x3f   :  { %v4790_v14 = vor.u32 %v4789_v2, %v4786_v1  ;;  %v1364_v21 = vrot.slane %v1363_v42, 4  ;;  %v4805_v24 = vrot.slane %v4803_v10, 5  ;;  %v4808_v26 = vshrl.u32 %v4648_v15, 16  ;;  %v992_v1 = vld [vmem:[#allocation2 + $0x44] sm:$0x1] }
  0x40   :  { %v1379_v16 = vsel %vm13312_vm13, %v1374_v7, %v1378_v9  ;;  %v4801_v25 = vrot.slane %v4800_v11, 4  ;;  %v989_v32 = vsel %vm13256_vm9, %v391_v60, %v988_v12  ;;  %v4811_v37 = vshll.u32 %v4648_v15, 16  ;;  %v51_v15 = vld [vmem:[#allocation2 + $0x48] sm:$0x1] }
  0x41   :  { %v4791_v29 = vrot.slane %v4790_v14, 4  ;;  %v4649_v30 = vld [vmem:[#allocation2 + $0x34] sm:$0xf]  ;;  %v4650_v31 = vld [vmem:[#allocation2 + $0x38] sm:$0x1]  ;;  %v1369_v34 = vsel %vm13312_vm13, %v1364_v21, %v1368_v57  ;;  %v4810_v36 = vrot.slane %v4808_v26, 4 }
  0x42   :  { %v4817_v38 = vshll.u32 %v4649_v30, 16  ;;  %v1193_v39 = vld [vmem:[#allocation2 + $0x34] sm:$0xf]  ;;  %990 = vst [vmem:[#allocation2 + $0x3c] sm:$0xf] %v989_v32  ;;  %v10626_v20 = vcombine.low %v1369_v34, %v1379_v16  ;;  %v4806_v41 = vsel %vm13312_vm13, %v4801_v25, %v4805_v24  ;;  %v4821_v45 = vshrl.u32 %v4649_v30, 16 }
  0x43   :  { %v4796_v40 = vsel %vm13312_vm13, %v4791_v29, %v4795_v4  ;;  %v1253_v46 = vld [vmem:[#allocation2 + $0x38] sm:$0x1]  ;;  %v4813_v48 = vrot.slane %v4811_v37, 5  ;;  %v4827_v50 = vshll.u32 %v4650_v31, 16  ;;  %v1381_v44 = vshrl.u32 %v1192_v27, 16 }
  0x44   :  { %v10916_v47 = vcombine.low %v4796_v40, %v4806_v41  ;;  %v4819_v49 = vrot.slane %v4817_v38, 5  ;;  %11734 = vmatmul.mubr.msk.bf16.gmra.mrb[4].mxu1 %vm2150_vm12, %v10626_v20  ;;  %v4823_v52 = vrot.slane %v4821_v45, 4  ;;  %v1384_v54 = vshll.u32 %v1192_v27, 16  ;;  %v161_v24 = vld [vmem:[#allocation2 + $0x50] sm:$0x1] }
  0x45   :  { %v1390_v18 = vshll.u32 %v1193_v39, 16  ;;  %v4814_v55 = vor.u32 %v4813_v48, %v4810_v36  ;;  %v4829_v57 = vrot.slane %v4827_v50, 5  ;;  %v1394_v56 = vshrl.u32 %v1193_v39, 16  ;;  %v261_v26 = vld [vmem:[%s16523_s0 + $0x28] sm:$0xf] }
  0x46   :  { %11997 = vmatprep.mubr.msk.bf16.mxu0 %vm2150_vm12, %v10916_v47  ;;  %v1400_v23 = vshll.u32 %v1253_v46, 16  ;;  %v4824_v28 = vor.u32 %v4823_v52, %v4819_v49  ;;  %v1383_v58 = vrot.slane %v1381_v44, 4  ;;  %v1386_v59 = vrot.slane %v1384_v54, 5  ;;  %v262_v30 = vld [vmem:[%s16523_s0 + $0x2c] sm:$0xf] }
  0x47   :  { %v1392_v60 = vrot.slane %v1390_v18, 5  ;;  %v4815_v61 = vrot.slane %v4814_v55, 4  ;;  %v1396_v62 = vrot.slane %v1394_v56, 4  ;;  %v392_v63 = vrot.slane %v13392_v53, 4  ;;  %v54_v37 = vld [vmem:[#allocation2 + $0x54] sm:$0x1] }
  0x48   :  { %v397_v0 = vshll.u32 %v13383_v33, 16  ;;  %v4825_v2 = vrot.slane %v4824_v28, 4  ;;  %v1387_v4 = vor.u32 %v1386_v59, %v1383_v58  ;;  %v1402_v5 = vrot.slane %v1400_v23, 5  ;;  %v164_v41 = vld [vmem:[#allocation2 + $0x5c] sm:$0x1] }
  0x49   :  { %v401_v42 = vrot.slane %v396_v19, 4  ;;  %v1194_v7 = vld [vmem:[#allocation2 + $0x3c] sm:$0xf]  ;;  %v4820_v9 = vsel %vm13312_vm13, %v4815_v61, %v4819_v49  ;;  %v1397_v10 = vor.u32 %v1396_v62, %v1392_v60  ;;  %v52_v39 = vsel %vm13204_vm5, 0, %v51_v15  ;;  %v263_v49 = vld [vmem:[%s16523_s0 + $0x30] sm:$0xf] }
  0x4a   :  { %v399_v12 = vor.u32 %v397_v0, %v396_v19  ;;  %v1405_v14 = vshrl.u32 %v1194_v7, 16  ;;  %v4651_v11 = vld [vmem:[#allocation2 + $0x3c] sm:$0xf]  ;;  %v4830_v21 = vsel %vm13312_vm13, %v4825_v2, %v4829_v57  ;;  %v1388_v53 = vrot.slane %v1387_v4, 4  ;;  %53 = vst [vmem:[#allocation2 + $0x48] sm:$0x1] %v52_v39 }
  0x4b   :  { %v993_v33 = vsel %vm13204_vm5, %v401_v42, %v992_v1  ;;  %v1408_v16 = vshll.u32 %v1194_v7, 16  ;;  %v10917_v27 = vcombine.low %v4820_v9, %v4830_v21  ;;  %v1398_v29 = vrot.slane %v1397_v10, 4 }
  0x4c   :  { %v400_v19 = vsel %vm13239_vm8, %v392_v63, %v399_v12  ;;  %994 = vst [vmem:[#allocation2 + $0x44] sm:$0x1] %v993_v33  ;;  %v1407_v25 = vrot.slane %v1405_v14, 4  ;;  %v1393_v31 = vsel %vm13312_vm13, %v1388_v53, %v1392_v60  ;;  %v4832_v34 = vshrl.u32 %v4651_v11, 16  ;;  %v264_v14 = vld [vmem:[%s16523_s0 + $0x34] sm:$0xf] }
  0x4d   :  { %991 = vst.msk [vmem:[#allocation2 + $0x40] sm:$0xf] %vm15_vm1, %v400_v19  ;;  %v1410_v32 = vrot.slane %v1408_v16, 5  ;;  %v4835_v36 = vshll.u32 %v4651_v11, 16  ;;  %11998 = vmatmul.mubr.msk.bf16.gmra.mrb[4].mxu0 %vm2150_vm12, %v10917_v27  ;;  %v1403_v38 = vsel %vm13312_vm13, %v1398_v29, %v1402_v5  ;;  %v162_v20 = vsel %vm13210_vm6, 0, %v161_v24 }
  0x4e   :  { %v403_v40 = vshrl.u32 %v261_v26, 16  ;;  %v10627_v45 = vcombine.low %v1393_v31, %v1403_v38  ;;  %v4834_v47 = vrot.slane %v4832_v34, 4  ;;  %163 = vst [vmem:[#allocation2 + $0x50] sm:$0x1] %v162_v20  ;;  %v406_v52 = vshll.u32 %v261_v26, 16 }
  0x4f   :  { %v1411_v46 = vor.u32 %v1410_v32, %v1407_v25  ;;  %v4837_v48 = vrot.slane %v4835_v36, 5  ;;  %v411_v44 = vshrl.u32 %v262_v30, 16  ;;  %v414_v54 = vshll.u32 %v262_v30, 16  ;;  %v57_v32 = vld [vmem:[#allocation2 + $0x60] sm:$0x1] }
  0x50   :  { %v405_v50 = vrot.slane %v403_v40, 7  ;;  %v6186_v18 = vrot.slane %v13322_v51, 5  ;;  %11737 = vmatprep.mubr.msk.bf16.mxu1 %vm2150_vm12, %v10627_v45  ;;  %v55_v57 = vsel %vm13204_vm5, 0, %v54_v37  ;;  %v165_v56 = vsel %vm13210_vm6, 0, %v164_v41  ;;  %v167_v34 = vld [vmem:[#allocation2 + $0x68] sm:$0x1] }
  0x51   :  { %v4838_v55 = vor.u32 %v4837_v48, %v4834_v47  ;;  %v13445_v23 = vrot.slane %v1411_v46, 4  ;;  %v413_v58 = vrot.slane %v411_v44, 7  ;;  %56 = vst [vmem:[#allocation2 + $0x54] sm:$0x1] %v55_v57  ;;  %166 = vst [vmem:[#allocation2 + $0x5c] sm:$0x1] %v165_v56 }
  0x52   :  { %v409_v28 = vrot.slane %v405_v50, 4  ;;  %v420_v59 = vshrl.u32 %v263_v49, 16  ;;  %v423_v63 = vshll.u32 %v263_v49, 16  ;;  %v408_v5 = vor.u32 %v406_v52, %v405_v50  ;;  %v995_v33 = vld [vmem:[#allocation2 + $0x48] sm:$0xf] }
  0x53   :  { %v1254_v60 = vld [vmem:[#allocation2 + $0x44] sm:$0x1]  ;;  %v4839_v62 = vrot.slane %v4838_v55, 4  ;;  %v416_v42 = vor.u32 %v414_v54, %v413_v58  ;;  %v418_v53 = vrot.slane %v413_v58, 4  ;;  %v428_v31 = vshrl.u32 %v264_v14, 16 }
  0x54   :  { %v4653_v61 = vld [vmem:[#allocation2 + $0x44] sm:$0x1]  ;;  %v1195_v0 = vld [vmem:[#allocation2 + $0x40] sm:$0xf]  ;;  %v1424_v1 = vshll.u32 %v1254_v60, 16  ;;  %v996_v19 = vsel %vm13256_vm9, %v408_v5, %v995_v33  ;;  %v422_v30 = vrot.slane %v420_v59, 7 }
  0x55   :  { %v4652_v2 = vld [vmem:[#allocation2 + $0x40] sm:$0xf]  ;;  %v4851_v4 = vshll.u32 %v4653_v61, 16  ;;  %v1414_v7 = vshll.u32 %v1195_v0, 16  ;;  %v1418_v9 = vshrl.u32 %v1195_v0, 16  ;;  %v417_v21 = vsel %vm13239_vm8, %v409_v28, %v416_v42 }
  0x56   :  { %v4841_v10 = vshll.u32 %v4652_v2, 16  ;;  %v4845_v12 = vshrl.u32 %v4652_v2, 16  ;;  %v1426_v11 = vrot.slane %v1424_v1, 5  ;;  %998 = vst.msk [vmem:[#allocation2 + $0x4c] sm:$0xf] %vm15_vm1, %v417_v21  ;;  %v425_v41 = vor.u32 %v423_v63, %v422_v30 }
  0x57   :  { %v4853_v15 = vrot.slane %v4851_v4, 5  ;;  %v1416_v16 = vrot.slane %v1414_v7, 5  ;;  %v1420_v24 = vrot.slane %v1418_v9, 4  ;;  %v999_v29 = vld [vmem:[#allocation2 + $0x50] sm:$0x1]  ;;  %v426_v45 = vrot.slane %v422_v30, 4 }
  0x58   :  { %v4843_v26 = vrot.slane %v4841_v10, 5  ;;  %v4847_v27 = vrot.slane %v4845_v12, 4  ;;  %v1000_v25 = vsel %vm13204_vm5, %v418_v53, %v999_v29  ;;  %997 = vst [vmem:[#allocation2 + $0x48] sm:$0xf] %v996_v19  ;;  %v1002_v20 = vld [vmem:[#allocation2 + $0x54] sm:$0xf] }
  0x59   :  { %v1417_v36 = vsel %vm13312_vm13, %v13445_v23, %v1416_v16  ;;  %v1421_v37 = vor.u32 %v1420_v24, %v1416_v16  ;;  %1001 = vst [vmem:[#allocation2 + $0x50] sm:$0x1] %v1000_v25  ;;  %v13465_v40 = vld [vmem:[%s16523_s0 + $0x38] sm:$0xf]  ;;  %v430_v46 = vrot.slane %v428_v31, 7  ;;  %v431_v47 = vshll.u32 %v264_v14, 16 }
  0x5a   :  { %v4844_v38 = vsel %vm13312_vm13, %v4839_v62, %v4843_v26  ;;  %v4848_v39 = vor.u32 %v4847_v27, %v4843_v26  ;;  %v13470_v48 = vld [vmem:[%s16523_s0 + $0x3c] sm:$0xf]  ;;  %v58_v44 = vsel %vm13204_vm5, 0, %v57_v32  ;;  %v168_v54 = vsel %vm13210_vm6, 0, %v167_v34 }
  0x5b   :  { %v1422_v49 = vrot.slane %v1421_v37, 4  ;;  %v1006_v52 = vld [vmem:[#allocation2 + $0x5c] sm:$0x1]  ;;  %v433_v55 = vor.u32 %v431_v47, %v430_v46  ;;  %v435_v57 = vrot.slane %v430_v46, 4  ;;  %v1003_v56 = vsel %vm13256_vm9, %v425_v41, %v1002_v20  ;;  %59 = vst [vmem:[#allocation2 + $0x60] sm:$0x1] %v58_v44 }
  0x5c   :  { %v4849_v50 = vrot.slane %v4848_v39, 4  ;;  %169 = vst [vmem:[#allocation2 + $0x68] sm:$0x1] %v168_v54  ;;  %v437_v23 = vshrl.u32 %v13465_v40, 16  ;;  %1004 = vst [vmem:[#allocation2 + $0x54] sm:$0xf] %v1003_v56 }
  0x5d   :  { %v1427_v28 = vsel %vm13312_vm13, %v1422_v49, %v1426_v11  ;;  %v440_v59 = vshll.u32 %v13465_v40, 16  ;;  %v445_v60 = vshrl.u32 %v13470_v48, 16  ;;  %v4655_v63 = vld [vmem:[#allocation2 + $0x4c] sm:$0xf]  ;;  %v434_v1 = vsel %vm13239_vm8, %v426_v45, %v433_v55 }
  0x5e   :  { %v4854_v58 = vsel %vm13312_vm13, %v4849_v50, %v4853_v15  ;;  %v10628_v61 = vcombine.low %v1417_v36, %v1427_v28  ;;  %v1197_v0 = vld [vmem:[#allocation2 + $0x4c] sm:$0xf]  ;;  %v1007_v2 = vsel %vm13204_vm5, %v435_v57, %v1006_v52  ;;  %v4865_v4 = vshll.u32 %v4655_v63, 16  ;;  %1005 = vst.msk [vmem:[#allocation2 + $0x58] sm:$0xf] %vm15_vm1, %v434_v1 }
  0x5f   :  { %v10918_v62 = vcombine.low %v4844_v38, %v4854_v58  ;;  %v4869_v5 = vshrl.u32 %v4655_v63, 16  ;;  %v1438_v42 = vshll.u32 %v1197_v0, 16  ;;  %v1442_v7 = vshrl.u32 %v1197_v0, 16  ;;  %1008 = vst [vmem:[#allocation2 + $0x5c] sm:$0x1] %v1007_v2 }
  0x60   :  { %11738 = vmatmul.mubr.msk.bf16.gmra.mrb[8].mxu1 %vm2150_vm12, %v10628_v61  ;;  %v4654_v9 = vld [vmem:[#allocation2 + $0x48] sm:$0xf]  ;;  %v4656_v10 = vld [vmem:[#allocation2 + $0x50] sm:$0x1]  ;;  %v4867_v15 = vrot.slane %v4865_v4, 5  ;;  %vm3185_vm15 = vcmask 1046532  }
  0x61   :  { %12001 = vmatprep.mubr.msk.bf16.mxu0 %vm2150_vm12, %v10918_v62  ;;  %v1196_v12 = vld [vmem:[#allocation2 + $0x48] sm:$0xf]  ;;  %v4856_v14 = vshrl.u32 %v4654_v9, 16  ;;  %v4859_v11 = vshll.u32 %v4654_v9, 16  ;;  %v4871_v21 = vrot.slane %v4869_v5, 4  ;;  %v4875_v33 = vshll.u32 %v4656_v10, 16  ;;  %vm13822_vm2 = vmor %vm3184_vm14, %vm3185_vm15 }
  0x62   :  { %v1255_v53 = vld [vmem:[#allocation2 + $0x50] sm:$0x1]  ;;  %v1429_v16 = vshrl.u32 %v1196_v12, 16  ;;  %v1432_v24 = vshll.u32 %v1196_v12, 16  ;;  %v1440_v26 = vrot.slane %v1438_v42, 5  ;;  %v1444_v25 = vrot.slane %v1442_v7, 4 }
  0x63   :  { %v4858_v27 = vrot.slane %v4856_v14, 4  ;;  %v4861_v29 = vrot.slane %v4859_v11, 5  ;;  %v4872_v19 = vor.u32 %v4871_v21, %v4867_v15  ;;  %v4877_v30 = vrot.slane %v4875_v33, 5  ;;  %v1198_v36 = vld [vmem:[#allocation2 + $0x54] sm:$0xf] }
  0x64   :  { %v1431_v31 = vrot.slane %v1429_v16, 4  ;;  %v1434_v32 = vrot.slane %v1432_v24, 5  ;;  %v1448_v34 = vshll.u32 %v1255_v53, 16  ;;  %v1445_v39 = vor.u32 %v1444_v25, %v1440_v26  ;;  %v4657_v41 = vld [vmem:[#allocation2 + $0x54] sm:$0xf] }
  0x65   :  { %v4862_v37 = vor.u32 %v4861_v29, %v4858_v27  ;;  %v4873_v38 = vrot.slane %v4872_v19, 4  ;;  %v1453_v20 = vshrl.u32 %v1198_v36, 16  ;;  %v1199_v47 = vld [vmem:[#allocation2 + $0x58] sm:$0xf]  ;;  %v1456_v50 = vshll.u32 %v1198_v36, 16 }
  0x66   :  { %v1435_v45 = vor.u32 %v1434_v32, %v1431_v31  ;;  %v1450_v46 = vrot.slane %v1448_v34, 5  ;;  %v1256_v49 = vld [vmem:[#allocation2 + $0x5c] sm:$0x1]  ;;  %v1446_v54 = vrot.slane %v1445_v39, 4  ;;  %v1462_v28 = vshll.u32 %v1199_v47, 16 }
  0x67   :  { %v4863_v52 = vrot.slane %v4862_v37, 4  ;;  %v4878_v44 = vsel %vm13312_vm13, %v4873_v38, %v4877_v30  ;;  %v1455_v55 = vrot.slane %v1453_v20, 4  ;;  %v1458_v56 = vrot.slane %v1456_v50, 5  ;;  %v4658_v0 = vld [vmem:[#allocation2 + $0x58] sm:$0xf] }
  0x68   :  { %v1436_v57 = vrot.slane %v1435_v45, 4  ;;  %v1466_v58 = vshrl.u32 %v1199_v47, 16  ;;  %v1451_v62 = vsel %vm13312_vm13, %v1446_v54, %v1450_v46  ;;  %v1472_v63 = vshll.u32 %v1256_v49, 16  ;;  %v4659_v7 = vld [vmem:[#allocation2 + $0x5c] sm:$0x1] }
  0x69   :  { %v4868_v61 = vsel %vm13312_vm13, %v4863_v52, %v4867_v15  ;;  %v4880_v1 = vshrl.u32 %v4657_v41, 16  ;;  %v1459_v5 = vor.u32 %v1458_v56, %v1455_v55  ;;  %v1464_v42 = vrot.slane %v1462_v28, 5  ;;  %v60_v33 = vld [vmem:[#allocation2 + $0x6c] sm:$0x1]  ;;  %v170_v29 = vld [vmem:[#allocation2 + $0x74] sm:$0x1] }
  0x6a   :  { %v10919_v2 = vcombine.low %v4868_v61, %v4878_v44  ;;  %v1441_v4 = vsel %vm13312_vm13, %v1436_v57, %v1440_v26  ;;  %v1468_v10 = vrot.slane %v1466_v58, 4  ;;  %v1474_v12 = vrot.slane %v1472_v63, 5  ;;  %v1009_v32 = vld [vmem:[#allocation2 + $0x60] sm:$0xf]  ;;  %v268_v36 = vld [vmem:[%s16523_s0 + $0x44] sm:$0xf] }
  0x6b   :  { %v10629_v9 = vcombine.low %v1441_v4, %v1451_v62  ;;  %v4882_v14 = vrot.slane %v4880_v1, 4  ;;  %v1460_v11 = vrot.slane %v1459_v5, 4  ;;  %v4883_v15 = vshll.u32 %v4657_v41, 16  ;;  %v267_v34 = vld [vmem:[%s16523_s0 + $0x40] sm:$0xf] }
  0x6c   :  { %12002 = vmatmul.mubr.msk.bf16.gmra.mrb[8].mxu0 %vm2150_vm12, %v10919_v2  ;;  %v4889_v21 = vshll.u32 %v4658_v0, 16  ;;  %v4893_v53 = vshrl.u32 %v4658_v0, 16  ;;  %v1469_v16 = vor.u32 %v1468_v10, %v1464_v42  ;;  %v4899_v24 = vshll.u32 %v4659_v7, 16  ;;  %v1013_v46 = vld [vmem:[#allocation2 + $0x68] sm:$0x1] }
  0x6d   :  { %11741 = vmatprep.mubr.msk.bf16.mxu1 %vm2150_vm12, %v10629_v9  ;;  %v439_v26 = vrot.slane %v437_v23, 7  ;;  %v447_v27 = vrot.slane %v445_v60, 7  ;;  %v1465_v19 = vsel %vm13312_vm13, %v1460_v11, %v1464_v42  ;;  %v4885_v25 = vrot.slane %v4883_v15, 5  ;;  %v63_v47 = vld [vmem:[#allocation2 + $0x78] sm:$0x1] }
  0x6e   :  { %v4891_v30 = vrot.slane %v4889_v21, 5  ;;  %v4895_v31 = vrot.slane %v4893_v53, 4  ;;  %v1470_v23 = vrot.slane %v1469_v16, 4  ;;  %v4901_v37 = vrot.slane %v4899_v24, 5  ;;  %v13531_v56 = vld [vmem:[%s16523_s0 + $0x4c] sm:$0xf] }
  0x6f   :  { %v442_v60 = vor.u32 %v440_v59, %v439_v26  ;;  %v443_v38 = vrot.slane %v439_v26, 4  ;;  %v4886_v39 = vor.u32 %v4885_v25, %v4882_v14  ;;  %v448_v41 = vshll.u32 %v13470_v48, 16  ;;  %v173_v59 = vld [vmem:[#allocation2 + $0x80] sm:$0x1]  ;;  %v269_v48 = vld [vmem:[%s16523_s0 + $0x48] sm:$0xf] }
  0x70   :  { %v4896_v20 = vor.u32 %v4895_v31, %v4891_v30  ;;  %v452_v45 = vrot.slane %v447_v27, 4  ;;  %v1475_v49 = vsel %vm13312_vm13, %v1470_v23, %v1474_v12  ;;  %v61_v52 = vsel %vm13204_vm5, 0, %v60_v33  ;;  %v66_v63 = vld [vmem:[#allocation2 + $0x84] sm:$0x1] }
  0x71   :  { %v1010_v50 = vsel %vm13256_vm9, %v442_v60, %v1009_v32  ;;  %v171_v40 = vsel %vm13210_vm6, 0, %v170_v29  ;;  %v10630_v44 = vcombine.low %v1465_v19, %v1475_v49  ;;  %v4887_v54 = vrot.slane %v4886_v39, 4  ;;  %62 = vst [vmem:[#allocation2 + $0x6c] sm:$0x1] %v61_v52  ;;  %v11075_v29 = vld [vmem:[%s16524_s1 + $0xc] sm:$0x3] }
  0x72   :  { %v4897_v55 = vrot.slane %v4896_v20, 4  ;;  %v450_v57 = vor.u32 %v448_v41, %v447_v27  ;;  %1011 = vst [vmem:[#allocation2 + $0x60] sm:$0xf] %v1010_v50  ;;  %172 = vst [vmem:[#allocation2 + $0x74] sm:$0x1] %v171_v40  ;;  %v1014_v28 = vsel %vm13204_vm5, %v452_v45, %v1013_v46  ;;  %v454_v58 = vshrl.u32 %v267_v34, 16  ;;  %12842 = vmatprep.subr.msk.bf16.mxu0 %vm2247_vm0, %v11075_v29 }
  0x73   :  { %v457_v61 = vshll.u32 %v267_v34, 16  ;;  %v462_v62 = vshrl.u32 %v268_v36, 16  ;;  %11742 = vmatmul.mubr.msk.bf16.gmra.mrb[12].mxu1 %vm2150_vm12, %v10630_v44  ;;  %v4892_v0 = vsel %vm13312_vm13, %v4887_v54, %v4891_v30  ;;  %1015 = vst [vmem:[#allocation2 + $0x68] sm:$0x1] %v1014_v28  ;;  %v465_v4 = vshll.u32 %v268_v36, 16 }
  0x74   :  { %v4902_v1 = vsel %vm13312_vm13, %v4897_v55, %v4901_v37  ;;  %v451_v2 = vsel %vm13239_vm8, %v443_v38, %v450_v57  ;;  %v456_v42 = vrot.slane %v454_v58, 7  ;;  %v64_v9 = vsel %vm13204_vm5, 0, %v63_v47 }
  0x75   :  { %v10920_v5 = vcombine.low %v4892_v0, %v4902_v1  ;;  %1012 = vst.msk [vmem:[#allocation2 + $0x64] sm:$0xf] %vm15_vm1, %v451_v2  ;;  %v464_v7 = vrot.slane %v462_v62, 7  ;;  %65 = vst [vmem:[#allocation2 + $0x78] sm:$0x1] %v64_v9  ;;  %v174_v10 = vsel %vm13210_vm6, 0, %v173_v59 }
  0x76   :  { %v471_v12 = vshrl.u32 %v269_v48, 16  ;;  %v474_v14 = vshll.u32 %v269_v48, 16  ;;  %v479_v11 = vshrl.u32 %v13531_v56, 16  ;;  %v459_v15 = vor.u32 %v457_v61, %v456_v42  ;;  %175 = vst [vmem:[#allocation2 + $0x80] sm:$0x1] %v174_v10 }
  0x77   :  { %12005 = vmatprep.mubr.msk.bf16.mxu0 %vm2150_vm12, %v10920_v5  ;;  %v460_v21 = vrot.slane %v456_v42, 4  ;;  %v467_v53 = vor.u32 %v465_v4, %v464_v7  ;;  %v469_v33 = vrot.slane %v464_v7, 4  ;;  %v482_v26 = vshll.u32 %v13531_v56, 16 }
  0x78   :  { %v13549_v16 = vrot.slane %v471_v12, 7  ;;  %v13551_v24 = vrot.slane %v479_v11, 7  ;;  %v67_v27 = vsel %vm13204_vm5, 0, %v66_v63  ;;  %v1016_v31 = vld [vmem:[#allocation2 + $0x6c] sm:$0xf] }
  0x79   :  { %v4660_v19 = vld [vmem:[#allocation2 + $0x60] sm:$0xf]  ;;  %v468_v30 = vsel %vm13239_vm8, %v460_v21, %v467_v53  ;;  %68 = vst [vmem:[#allocation2 + $0x84] sm:$0x1] %v67_v27  ;;  %v1020_v37 = vld [vmem:[#allocation2 + $0x74] sm:$0x1]  ;;  %v1017_v39 = vsel %vm13256_vm9, %v459_v15, %v1016_v31 }
  0x7a   :  { %v1200_v25 = vld [vmem:[#allocation2 + $0x60] sm:$0xf]  ;;  %v4904_v32 = vshrl.u32 %v4660_v19, 16  ;;  %v4907_v34 = vshll.u32 %v4660_v19, 16  ;;  %1019 = vst.msk [vmem:[#allocation2 + $0x70] sm:$0xf] %vm15_vm1, %v468_v30  ;;  %v1021_v20 = vsel %vm13204_vm5, %v469_v33, %v1020_v37  ;;  %v476_v41 = vor.u32 %v474_v14, %v13549_v16 }
  0x7b   :  { %v1477_v36 = vshrl.u32 %v1200_v25, 16  ;;  %v1480_v23 = vshll.u32 %v1200_v25, 16  ;;  %v4662_v60 = vld [vmem:[#allocation2 + $0x68] sm:$0x1]  ;;  %v477_v45 = vrot.slane %v13549_v16, 4  ;;  %v484_v5 = vor.u32 %v482_v26, %v13551_v24 }
  0x7c   :  { %v1257_v38 = vld [vmem:[#allocation2 + $0x68] sm:$0x1]  ;;  %v4661_v46 = vld [vmem:[#allocation2 + $0x64] sm:$0xf]  ;;  %v4906_v47 = vrot.slane %v4904_v32, 4  ;;  %v4909_v49 = vrot.slane %v4907_v34, 5 }
  0x7d   :  { %v4923_v50 = vshll.u32 %v4662_v60, 16  ;;  %v1479_v52 = vrot.slane %v1477_v36, 4  ;;  %1018 = vst [vmem:[#allocation2 + $0x6c] sm:$0xf] %v1017_v39  ;;  %1022 = vst [vmem:[#allocation2 + $0x74] sm:$0x1] %v1021_v20 }
  0x7e   :  { %v4913_v40 = vshll.u32 %v4661_v46, 16  ;;  %v4917_v59 = vshrl.u32 %v4661_v46, 16  ;;  %v1201_v48 = vld [vmem:[#allocation2 + $0x64] sm:$0xf]  ;;  %v1482_v44 = vrot.slane %v1480_v23, 5  ;;  %v1496_v54 = vshll.u32 %v1257_v38, 16 }
  0x7f   :  { %v4910_v55 = vor.u32 %v4909_v49, %v4906_v47  ;;  %v4925_v57 = vrot.slane %v4923_v50, 5  ;;  %v1486_v56 = vshll.u32 %v1201_v48, 16  ;;  %v1490_v28 = vshrl.u32 %v1201_v48, 16  ;;  %v1023_v58 = vld [vmem:[#allocation2 + $0x78] sm:$0xf] }
  0x80   :  { %v4915_v61 = vrot.slane %v4913_v40, 5  ;;  %v4919_v62 = vrot.slane %v4917_v59, 4  ;;  %v1483_v63 = vor.u32 %v1482_v44, %v1479_v52  ;;  %v1498_v0 = vrot.slane %v1496_v54, 5  ;;  %v13585_v44 = vld [vmem:[#allocation2 + $0x1c] sm:$0xf] }
  0x81   :  { %v4911_v1 = vrot.slane %v4910_v55, 4  ;;  %v1488_v2 = vrot.slane %v1486_v56, 5  ;;  %v1492_v4 = vrot.slane %v1490_v28, 4  ;;  %v1203_v9 = vld [vmem:[#allocation2 + $0x70] sm:$0xf]  ;;  %v486_v12 = vrot.slane %v13551_v24, 4 }
  0x82   :  { %v4920_v42 = vor.u32 %v4919_v62, %v4915_v61  ;;  %v1484_v7 = vrot.slane %v1483_v63, 4  ;;  %v4664_v10 = vld [vmem:[#allocation2 + $0x70] sm:$0xf]  ;;  %v1024_v14 = vsel %vm13256_vm9, %v476_v41, %v1023_v58  ;;  %v1510_v21 = vshll.u32 %v1203_v9, 16 }
  0x83   :  { %v4916_v11 = vsel %vm13312_vm13, %v4911_v1, %v4915_v61  ;;  %v1493_v15 = vor.u32 %v1492_v4, %v1488_v2  ;;  %v1514_v53 = vshrl.u32 %v1203_v9, 16  ;;  %1025 = vst [vmem:[#allocation2 + $0x78] sm:$0xf] %v1024_v14  ;;  %v4937_v29 = vshll.u32 %v4664_v10, 16 }
  0x84   :  { %v4921_v33 = vrot.slane %v4920_v42, 4  ;;  %v1489_v16 = vsel %vm13312_vm13, %v1484_v7, %v1488_v2  ;;  %v1202_v26 = vld [vmem:[#allocation2 + $0x6c] sm:$0xf]  ;;  %v1258_v27 = vld [vmem:[#allocation2 + $0x74] sm:$0x1]  ;;  %v485_v24 = vsel %vm13239_vm8, %v477_v45, %v484_v5  ;;  %v1512_v31 = vrot.slane %v1510_v21, 5 }
  0x85   :  { %v1494_v19 = vrot.slane %v1493_v15, 4  ;;  %v1501_v25 = vshrl.u32 %v1202_v26, 16  ;;  %v1504_v30 = vshll.u32 %v1202_v26, 16  ;;  %v4663_v32 = vld [vmem:[#allocation2 + $0x6c] sm:$0xf]  ;;  %v1516_v36 = vrot.slane %v1514_v53, 4 }
  0x86   :  { %1026 = vst.msk [vmem:[#allocation2 + $0x7c] sm:$0xf] %vm15_vm1, %v485_v24  ;;  %v4926_v34 = vsel %vm13312_vm13, %v4921_v33, %v4925_v57  ;;  %v1520_v23 = vshll.u32 %v1258_v27, 16  ;;  %v4928_v37 = vshrl.u32 %v4663_v32, 16  ;;  %v4665_v41 = vld [vmem:[#allocation2 + $0x74] sm:$0x1] }
  0x87   :  { %v10921_v60 = vcombine.low %v4916_v11, %v4926_v34  ;;  %v1499_v38 = vsel %vm13312_vm13, %v1494_v19, %v1498_v0  ;;  %v1503_v39 = vrot.slane %v1501_v25, 4  ;;  %v1506_v20 = vrot.slane %v1504_v30, 5  ;;  %v1027_v45 = vld [vmem:[#allocation2 + $0x80] sm:$0x1]  ;;  %v176_v27 = vld [vmem:[#allocation2 + $0x8c] sm:$0x1] }
  0x88   :  { %v10631_v46 = vcombine.low %v1489_v16, %v1499_v38  ;;  %v1517_v47 = vor.u32 %v1516_v36, %v1512_v31  ;;  %v1522_v49 = vrot.slane %v1520_v23, 5  ;;  %v4930_v50 = vrot.slane %v4928_v37, 4  ;;  %v271_v36 = vld [vmem:[%s16523_s0 + $0x50] sm:$0xf]  ;;  %v272_v23 = vld [vmem:[%s16523_s0 + $0x54] sm:$0xf] }
  0x89   :  { %12006 = vmatmul.mubr.msk.bf16.gmra.mrb[12].mxu0 %vm2150_vm12, %v10921_v60  ;;  %v1507_v52 = vor.u32 %v1506_v20, %v1503_v39  ;;  %v4931_v40 = vshll.u32 %v4663_v32, 16  ;;  %v4939_v59 = vrot.slane %v4937_v29, 5  ;;  %v4941_v48 = vshrl.u32 %v4664_v10, 16 }
  0x8a   :  { %v6190_v54 = vrot.slane %v13585_v44, 5  ;;  %11745 = vmatprep.mubr.msk.bf16.mxu1 %vm2150_vm12, %v10631_v46  ;;  %v1518_v55 = vrot.slane %v1517_v47, 4  ;;  %v4947_v57 = vshll.u32 %v4665_v41, 16  ;;  %v1028_v56 = vsel %vm13204_vm5, %v486_v12, %v1027_v45  ;;  %v4666_v28 = vld [vmem:[#allocation2 + $0x78] sm:$0xf] }
  0x8b   :  { %v1508_v58 = vrot.slane %v1507_v52, 4  ;;  %v4933_v61 = vrot.slane %v4931_v40, 5  ;;  %v4943_v62 = vrot.slane %v4941_v48, 4  ;;  %1029 = vst [vmem:[#allocation2 + $0x80] sm:$0x1] %v1028_v56  ;;  %v4952_v63 = vshrl.u32 %v4666_v28, 16 }
  0x8c   :  { %v1523_v0 = vsel %vm13312_vm13, %v1518_v55, %v1522_v49  ;;  %v4949_v1 = vrot.slane %v4947_v57, 5  ;;  %v4955_v4 = vshll.u32 %v4666_v28, 16  ;;  %v1204_v5 = vld [vmem:[#allocation2 + $0x78] sm:$0xf]  ;;  %v488_v48 = vshrl.u32 %v271_v36, 16 }
  0x8d   :  { %v4667_v2 = vld [vmem:[#allocation2 + $0x7c] sm:$0xf]  ;;  %v1513_v42 = vsel %vm13312_vm13, %v1508_v58, %v1512_v31  ;;  %v4934_v7 = vor.u32 %v4933_v61, %v4930_v50  ;;  %v4944_v9 = vor.u32 %v4943_v62, %v4939_v59  ;;  %v4954_v10 = vrot.slane %v4952_v63, 4  ;;  %v69_v50 = vld [vmem:[#allocation2 + $0x90] sm:$0x1] }
  0x8e   :  { %v1205_v12 = vld [vmem:[#allocation2 + $0x7c] sm:$0xf]  ;;  %v10632_v14 = vcombine.low %v1513_v42, %v1523_v0  ;;  %v4957_v11 = vrot.slane %v4955_v4, 5  ;;  %v4961_v15 = vshll.u32 %v4667_v2, 16  ;;  %v4965_v21 = vshrl.u32 %v4667_v2, 16 }
  0x8f   :  { %v4935_v53 = vrot.slane %v4934_v7, 4  ;;  %v4945_v33 = vrot.slane %v4944_v9, 4  ;;  %v1525_v16 = vshrl.u32 %v1204_v5, 16  ;;  %v1528_v26 = vshll.u32 %v1204_v5, 16  ;;  %v179_v55 = vld [vmem:[#allocation2 + $0x98] sm:$0x1] }
  0x90   :  { %11746 = vmatmul.mubr.msk.bf16.gmra.mrb[16].mxu1 %vm2150_vm12, %v10632_v14  ;;  %v4958_v29 = vor.u32 %v4957_v11, %v4954_v10  ;;  %v4963_v24 = vrot.slane %v4961_v15, 5  ;;  %v4967_v19 = vrot.slane %v4965_v21, 4  ;;  %v1534_v25 = vshll.u32 %v1205_v12, 16  ;;  %v273_v57 = vld [vmem:[%s16523_s0 + $0x58] sm:$0xf] }
  0x91   :  { %v4940_v30 = vsel %vm13312_vm13, %v4935_v53, %v4939_v59  ;;  %v4950_v31 = vsel %vm13312_vm13, %v4945_v33, %v4949_v1  ;;  %v1527_v32 = vrot.slane %v1525_v16, 4  ;;  %v1530_v34 = vrot.slane %v1528_v26, 5  ;;  %v1030_v62 = vld [vmem:[#allocation2 + $0x84] sm:$0xf]  ;;  %v274_v63 = vld [vmem:[%s16523_s0 + $0x5c] sm:$0xf] }
  0x92   :  { %v10922_v37 = vcombine.low %v4940_v30, %v4950_v31  ;;  %v4668_v60 = vld [vmem:[#allocation2 + $0x80] sm:$0x1]  ;;  %v4959_v38 = vrot.slane %v4958_v29, 4  ;;  %v4968_v39 = vor.u32 %v4967_v19, %v4963_v24  ;;  %v1536_v41 = vrot.slane %v1534_v25, 5  ;;  %v72_v5 = vld [vmem:[#allocation2 + $0x9c] sm:$0x1] }
  0x93   :  { %v1259_v20 = vld [vmem:[#allocation2 + $0x80] sm:$0x1]  ;;  %v4971_v45 = vshll.u32 %v4668_v60, 16  ;;  %v1531_v46 = vor.u32 %v1530_v34, %v1527_v32  ;;  %v1538_v47 = vshrl.u32 %v1205_v12, 16  ;;  %v177_v59 = vsel %vm13210_vm6, 0, %v176_v27 }
  0x94   :  { %v1544_v49 = vshll.u32 %v1259_v20, 16  ;;  %12009 = vmatprep.mubr.msk.bf16.mxu0 %vm2150_vm12, %v10922_v37  ;;  %v4964_v52 = vsel %vm13312_vm13, %v4959_v38, %v4963_v24  ;;  %v4969_v40 = vrot.slane %v4968_v39, 4  ;;  %178 = vst [vmem:[#allocation2 + $0x8c] sm:$0x1] %v177_v59  ;;  %v490_v0 = vrot.slane %v488_v48, 7 }
  0x95   :  { %v4973_v56 = vrot.slane %v4971_v45, 5  ;;  %v1532_v28 = vrot.slane %v1531_v46, 4  ;;  %v1540_v58 = vrot.slane %v1538_v47, 4  ;;  %v491_v1 = vshll.u32 %v271_v36, 16  ;;  %v182_v12 = vld [vmem:[#allocation2 + $0xa4] sm:$0x1] }
  0x96   :  { %v1546_v61 = vrot.slane %v1544_v49, 5  ;;  %v496_v2 = vshrl.u32 %v272_v23, 16  ;;  %v499_v4 = vshll.u32 %v272_v23, 16  ;;  %v70_v10 = vsel %vm13204_vm5, 0, %v69_v50  ;;  %v275_v53 = vld [vmem:[%s16523_s0 + $0x60] sm:$0xf] }
  0x97   :  { %v4974_v42 = vsel %vm13312_vm13, %v4969_v40, %v4973_v56  ;;  %v1537_v7 = vsel %vm13312_vm13, %v1532_v28, %v1536_v41  ;;  %v1541_v9 = vor.u32 %v1540_v58, %v1536_v41  ;;  %v493_v11 = vor.u32 %v491_v1, %v490_v0  ;;  %71 = vst [vmem:[#allocation2 + $0x90] sm:$0x1] %v70_v10  ;;  %v276_v29 = vld [vmem:[%s16523_s0 + $0x64] sm:$0xf]  ;;  %v75_v31 = vld [vmem:[#allocation2 + $0xa8] sm:$0x1] }
  0x98   :  { %v10923_v14 = vcombine.low %v4964_v52, %v4974_v42  ;;  %v494_v15 = vrot.slane %v490_v0, 4  ;;  %v498_v21 = vrot.slane %v496_v2, 7  ;;  %v180_v16 = vsel %vm13210_vm6, 0, %v179_v55  ;;  %v185_v32 = vld [vmem:[#allocation2 + $0xb0] sm:$0x1] }
  0x99   :  { %v1542_v33 = vrot.slane %v1541_v9, 4  ;;  %v505_v26 = vshrl.u32 %v273_v57, 16  ;;  %v508_v27 = vshll.u32 %v273_v57, 16  ;;  %v1031_v25 = vsel %vm13256_vm9, %v493_v11, %v1030_v62  ;;  %181 = vst [vmem:[#allocation2 + $0x98] sm:$0x1] %v180_v16 }
  0x9a   :  { %12010 = vmatmul.mubr.msk.bf16.gmra.mrb[16].mxu0 %vm2150_vm12, %v10923_v14  ;;  %v501_v24 = vor.u32 %v499_v4, %v498_v21  ;;  %v503_v19 = vrot.slane %v498_v21, 4  ;;  %v513_v30 = vshrl.u32 %v274_v63, 16  ;;  %1032 = vst [vmem:[#allocation2 + $0x84] sm:$0xf] %v1031_v25  ;;  %v516_v23 = vshll.u32 %v274_v63, 16 }
  0x9b   :  { %v1547_v34 = vsel %vm13312_vm13, %v1542_v33, %v1546_v61  ;;  %v507_v36 = vrot.slane %v505_v26, 7  ;;  %v73_v37 = vsel %vm13204_vm5, 0, %v72_v5  ;;  %v1034_v39 = vld [vmem:[#allocation2 + $0x8c] sm:$0x1]  ;;  %v183_v41 = vsel %vm13210_vm6, 0, %v182_v12 }
  0x9c   :  { %v10633_v60 = vcombine.low %v1537_v7, %v1547_v34  ;;  %v502_v38 = vsel %vm13239_vm8, %v494_v15, %v501_v24  ;;  %v515_v20 = vrot.slane %v513_v30, 7  ;;  %74 = vst [vmem:[#allocation2 + $0x9c] sm:$0x1] %v73_v37  ;;  %v277_v45 = vld [vmem:[%s16523_s0 + $0x68] sm:$0xf]  ;;  %v1035_v46 = vsel %vm13204_vm5, %v503_v19, %v1034_v39 }
  0x9d   :  { %1033 = vst.msk [vmem:[#allocation2 + $0x88] sm:$0xf] %vm15_vm1, %v502_v38  ;;  %v510_v47 = vor.u32 %v508_v27, %v507_v36  ;;  %v511_v49 = vrot.slane %v507_v36, 4  ;;  %184 = vst [vmem:[#allocation2 + $0xa4] sm:$0x1] %v183_v41  ;;  %v522_v50 = vshrl.u32 %v275_v53, 16 }
  0x9e   :  { %v13651_v52 = vld [vmem:[%s16523_s0 + $0x6c] sm:$0xf]  ;;  %11749 = vmatprep.mubr.msk.bf16.mxu1 %vm2150_vm12, %v10633_v60  ;;  %1036 = vst [vmem:[#allocation2 + $0x8c] sm:$0x1] %v1035_v46  ;;  %v518_v40 = vor.u32 %v516_v23, %v515_v20  ;;  %v520_v59 = vrot.slane %v515_v20, 4  ;;  %v525_v48 = vshll.u32 %v275_v53, 16 }
  0x9f   :  { %v530_v55 = vshrl.u32 %v276_v29, 16  ;;  %v1037_v57 = vld [vmem:[#allocation2 + $0x90] sm:$0xf]  ;;  %v524_v56 = vrot.slane %v522_v50, 7  ;;  %v533_v28 = vshll.u32 %v276_v29, 16  ;;  %v76_v58 = vsel %vm13204_vm5, 0, %v75_v31 }
  0xa0   :  { %v186_v61 = vsel %vm13210_vm6, 0, %v185_v32  ;;  %v519_v62 = vsel %vm13239_vm8, %v511_v49, %v518_v40  ;;  %v1038_v63 = vsel %vm13256_vm9, %v510_v47, %v1037_v57  ;;  %77 = vst [vmem:[#allocation2 + $0xa8] sm:$0x1] %v76_v58  ;;  %v539_v1 = vshrl.u32 %v277_v45, 16  ;;  %v13664_v2 = vld [vmem:[#allocation2 + $0x20] sm:$0x1] }
  0xa1   :  { %v13662_v0 = vrot.slane %v530_v55, 7  ;;  %187 = vst [vmem:[#allocation2 + $0xb0] sm:$0x1] %v186_v61  ;;  %v6193_v4 = vrot.slane %v13664_v2, 5  ;;  %1039 = vst [vmem:[#allocation2 + $0x90] sm:$0xf] %v1038_v63  ;;  %v527_v42 = vor.u32 %v525_v48, %v524_v56 }
  0xa2   :  { %1040 = vst.msk [vmem:[#allocation2 + $0x94] sm:$0xf] %vm15_vm1, %v519_v62  ;;  %v1041_v5 = vld [vmem:[#allocation2 + $0x98] sm:$0x1]  ;;  %v528_v7 = vrot.slane %v524_v56, 4  ;;  %v542_v9 = vshll.u32 %v277_v45, 16 }
  0xa3   :  { %v1206_v10 = vld [vmem:[#allocation2 + $0x84] sm:$0xf]  ;;  %v1042_v14 = vsel %vm13204_vm5, %v520_v59, %v1041_v5  ;;  %v535_v11 = vor.u32 %v533_v28, %v13662_v0  ;;  %v13671_v15 = vrot.slane %v539_v1, 7  ;;  %v547_v21 = vshrl.u32 %v13651_v52, 16  ;;  %v1044_v27 = vld [vmem:[#allocation2 + $0x9c] sm:$0xf] }
  0xa4   :  { %v4669_v12 = vld [vmem:[#allocation2 + $0x84] sm:$0xf]  ;;  %v1549_v53 = vshrl.u32 %v1206_v10, 16  ;;  %v1552_v33 = vshll.u32 %v1206_v10, 16  ;;  %1043 = vst [vmem:[#allocation2 + $0x98] sm:$0x1] %v1042_v14  ;;  %v1045_v30 = vsel %vm13256_vm9, %v527_v42, %v1044_v27 }
  0xa5   :  { %v4976_v16 = vshrl.u32 %v4669_v12, 16  ;;  %v4979_v26 = vshll.u32 %v4669_v12, 16  ;;  %v1207_v29 = vld [vmem:[#allocation2 + $0x88] sm:$0xf]  ;;  %v536_v19 = vsel %vm13239_vm8, %v528_v7, %v535_v11  ;;  %v537_v25 = vrot.slane %v13662_v0, 4 }
  0xa6   :  { %v4670_v24 = vld [vmem:[#allocation2 + $0x88] sm:$0xf]  ;;  %v13680_v31 = vor.u32 %v542_v9, %v13671_v15  ;;  %v1260_v32 = vld [vmem:[#allocation2 + $0x8c] sm:$0x1]  ;;  %v1551_v34 = vrot.slane %v1549_v53, 4  ;;  %v1554_v36 = vrot.slane %v1552_v33, 5 }
  0xa7   :  { %v1558_v23 = vshll.u32 %v1207_v29, 16  ;;  %v1562_v37 = vshrl.u32 %v1207_v29, 16  ;;  %1046 = vst [vmem:[#allocation2 + $0x9c] sm:$0xf] %v1045_v30  ;;  %1047 = vst.msk [vmem:[#allocation2 + $0xa0] sm:$0xf] %vm15_vm1, %v536_v19 }
  0xa8   :  { %v1568_v60 = vshll.u32 %v1260_v32, 16  ;;  %v4671_v38 = vld [vmem:[#allocation2 + $0x8c] sm:$0x1]  ;;  %v4978_v39 = vrot.slane %v4976_v16, 4  ;;  %v4981_v20 = vrot.slane %v4979_v26, 5  ;;  %v4985_v41 = vshll.u32 %v4670_v24, 16 }
  0xa9   :  { %v1555_v45 = vor.u32 %v1554_v36, %v1551_v34  ;;  %v1560_v46 = vrot.slane %v1558_v23, 5  ;;  %v1564_v47 = vrot.slane %v1562_v37, 4  ;;  %v4989_v49 = vshrl.u32 %v4670_v24, 16  ;;  %v4672_v55 = vld [vmem:[#allocation2 + $0x90] sm:$0xf] }
  0xaa   :  { %v1570_v50 = vrot.slane %v1568_v60, 5  ;;  %v4982_v40 = vor.u32 %v4981_v20, %v4978_v39  ;;  %v4987_v59 = vrot.slane %v4985_v41, 5  ;;  %v4995_v48 = vshll.u32 %v4671_v38, 16  ;;  %v4673_v58 = vld [vmem:[#allocation2 + $0x94] sm:$0xf] }
  0xab   :  { %v1556_v57 = vrot.slane %v1555_v45, 4  ;;  %v1565_v56 = vor.u32 %v1564_v47, %v1560_v46  ;;  %v4991_v28 = vrot.slane %v4989_v49, 4  ;;  %v5000_v61 = vshrl.u32 %v4672_v55, 16  ;;  %v4674_v1 = vld [vmem:[#allocation2 + $0x98] sm:$0x1] }
  0xac   :  { %v4983_v62 = vrot.slane %v4982_v40, 4  ;;  %v4997_v63 = vrot.slane %v4995_v48, 5  ;;  %v5003_v5 = vshll.u32 %v4672_v55, 16  ;;  %v5009_v42 = vshll.u32 %v4673_v58, 16  ;;  %v1208_v14 = vld [vmem:[#allocation2 + $0x90] sm:$0xf] }
  0xad   :  { %v1561_v7 = vsel %vm13312_vm13, %v1556_v57, %v1560_v46  ;;  %v1566_v9 = vrot.slane %v1565_v56, 4  ;;  %v4992_v10 = vor.u32 %v4991_v28, %v4987_v59  ;;  %v5002_v12 = vrot.slane %v5000_v61, 4  ;;  %v1209_v26 = vld [vmem:[#allocation2 + $0x94] sm:$0xf]  ;;  %v1261_v36 = vld [vmem:[#allocation2 + $0x98] sm:$0x1] }
  0xae   :  { %v4988_v11 = vsel %vm13312_vm13, %v4983_v62, %v4987_v59  ;;  %v5005_v53 = vrot.slane %v5003_v5, 5  ;;  %v5011_v33 = vrot.slane %v5009_v42, 5  ;;  %v5013_v16 = vshrl.u32 %v4673_v58, 16  ;;  %v1048_v37 = vld [vmem:[#allocation2 + $0xa4] sm:$0x1] }
  0xaf   :  { %v1571_v27 = vsel %vm13312_vm13, %v1566_v9, %v1570_v50  ;;  %v4993_v29 = vrot.slane %v4992_v10, 4  ;;  %v5019_v24 = vshll.u32 %v4674_v1, 16  ;;  %v1573_v19 = vshrl.u32 %v1208_v14, 16  ;;  %v1210_v41 = vld [vmem:[#allocation2 + $0x9c] sm:$0xf] }
  0xb0   :  { %v10634_v30 = vcombine.low %v1561_v7, %v1571_v27  ;;  %v5006_v32 = vor.u32 %v5005_v53, %v5002_v12  ;;  %v5015_v34 = vrot.slane %v5013_v16, 4  ;;  %v1576_v23 = vshll.u32 %v1208_v14, 16  ;;  %v1211_v50 = vld [vmem:[#allocation2 + $0xa0] sm:$0xf]  ;;  %v4675_v5 = vld [vmem:[#allocation2 + $0x9c] sm:$0xf] }
  0xb1   :  { %v4998_v60 = vsel %vm13312_vm13, %v4993_v29, %v4997_v63  ;;  %v5021_v38 = vrot.slane %v5019_v24, 5  ;;  %v1575_v39 = vrot.slane %v1573_v19, 4  ;;  %v1582_v20 = vshll.u32 %v1209_v26, 16  ;;  %v4676_v9 = vld [vmem:[#allocation2 + $0xa0] sm:$0xf] }
  0xb2   :  { %11750 = vmatmul.mubr.msk.bf16.gmra.mrb[20].mxu1 %vm2150_vm12, %v10634_v30  ;;  %v10924_v45 = vcombine.low %v4988_v11, %v4998_v60  ;;  %v5007_v46 = vrot.slane %v5006_v32, 4  ;;  %v5016_v47 = vor.u32 %v5015_v34, %v5011_v33  ;;  %v1578_v49 = vrot.slane %v1576_v23, 5  ;;  %v1051_v27 = vld [vmem:[#allocation2 + $0xa8] sm:$0xf]  ;;  %v12913_v2 = vld [vmem:[%s16524_s1 + $0xc] sm:$0x3] }
  0xb3   :  { %v1584_v40 = vrot.slane %v1582_v20, 5  ;;  %v1586_v59 = vshrl.u32 %v1209_v26, 16  ;;  %v1592_v48 = vshll.u32 %v1261_v36, 16  ;;  %v1049_v55 = vsel %vm13204_vm5, %v537_v25, %v1048_v37  ;;  %v78_v37 = vld [vmem:[#allocation2 + $0xb4] sm:$0x1] }
  0xb4   :  { %12013 = vmatprep.mubr.msk.bf16.mxu0 %vm2150_vm12, %v10924_v45  ;;  %v5012_v57 = vsel %vm13312_vm13, %v5007_v46, %v5011_v33  ;;  %v5017_v56 = vrot.slane %v5016_v47, 4  ;;  %v1579_v28 = vor.u32 %v1578_v49, %v1575_v39  ;;  %1050 = vst [vmem:[#allocation2 + $0xa4] sm:$0x1] %v1049_v55  ;;  %v1597_v58 = vshrl.u32 %v1210_v41, 16 }
  0xb5   :  { %v1588_v61 = vrot.slane %v1586_v59, 4  ;;  %v1594_v62 = vrot.slane %v1592_v48, 5  ;;  %v1600_v63 = vshll.u32 %v1210_v41, 16  ;;  %v1606_v1 = vshll.u32 %v1211_v50, 16 }
  0xb6   :  { %v5022_v0 = vsel %vm13312_vm13, %v5017_v56, %v5021_v38  ;;  %v1580_v42 = vrot.slane %v1579_v28, 4  ;;  %v1599_v7 = vrot.slane %v1597_v58, 4  ;;  %v1610_v25 = vshrl.u32 %v1211_v50, 16  ;;  %v1055_v56 = vld [vmem:[#allocation2 + $0xb0] sm:$0x1] }
  0xb7   :  { %v10925_v10 = vcombine.low %v5012_v57, %v5022_v0  ;;  %v1589_v12 = vor.u32 %v1588_v61, %v1584_v40  ;;  %v1602_v14 = vrot.slane %v1600_v63, 5  ;;  %v1608_v11 = vrot.slane %v1606_v1, 5  ;;  %v81_v63 = vld [vmem:[#allocation2 + $0xc0] sm:$0x1]  ;;  %v191_v1 = vld [vmem:[#allocation2 + $0xc8] sm:$0x1] }
  0xb8   :  { %v1585_v53 = vsel %vm13312_vm13, %v1580_v42, %v1584_v40  ;;  %v1612_v33 = vrot.slane %v1610_v25, 4  ;;  %v5024_v16 = vshrl.u32 %v4675_v5, 16  ;;  %v5027_v26 = vshll.u32 %v4675_v5, 16  ;;  %v188_v40 = vld [vmem:[#allocation2 + $0xbc] sm:$0x1] }
  0xb9   :  { %12014 = vmatmul.mubr.msk.bf16.gmra.mrb[20].mxu0 %vm2150_vm12, %v10925_v10  ;;  %v1590_v29 = vrot.slane %v1589_v12, 4  ;;  %v1603_v24 = vor.u32 %v1602_v14, %v1599_v7  ;;  %v5033_v19 = vshll.u32 %v4676_v9, 16  ;;  %v5037_v30 = vshrl.u32 %v4676_v9, 16 }
  0xba   :  { %v1613_v32 = vor.u32 %v1612_v33, %v1608_v11  ;;  %v5026_v34 = vrot.slane %v5024_v16, 4  ;;  %v5029_v36 = vrot.slane %v5027_v26, 5  ;;  %v545_v23 = vrot.slane %v13671_v15, 4  ;;  %v279_v15 = vld [vmem:[%s16523_s0 + $0x70] sm:$0xf] }
  0xbb   :  { %v1595_v60 = vsel %vm13312_vm13, %v1590_v29, %v1594_v62  ;;  %v1262_v38 = vld [vmem:[#allocation2 + $0xa4] sm:$0x1]  ;;  %v1604_v39 = vrot.slane %v1603_v24, 4  ;;  %v5035_v41 = vrot.slane %v5033_v19, 5  ;;  %v1052_v45 = vsel %vm13256_vm9, %v13680_v31, %v1051_v27  ;;  %v280_v31 = vld [vmem:[%s16523_s0 + $0x74] sm:$0xf] }
  0xbc   :  { %v4677_v20 = vld [vmem:[#allocation2 + $0xa4] sm:$0x1]  ;;  %v10635_v46 = vcombine.low %v1585_v53, %v1595_v60  ;;  %v1614_v47 = vrot.slane %v1613_v32, 4  ;;  %v1616_v49 = vshll.u32 %v1262_v38, 16  ;;  %v5030_v50 = vor.u32 %v5029_v36, %v5026_v34  ;;  %1053 = vst [vmem:[#allocation2 + $0xa8] sm:$0xf] %v1052_v45 }
  0xbd   :  { %v1609_v59 = vsel %vm13312_vm13, %v1604_v39, %v1608_v11  ;;  %v5039_v48 = vrot.slane %v5037_v30, 4  ;;  %v5043_v55 = vshll.u32 %v4677_v20, 16  ;;  %v549_v57 = vrot.slane %v547_v21, 7  ;;  %v281_v27 = vld [vmem:[%s16523_s0 + $0x78] sm:$0xf] }
  0xbe   :  { %11753 = vmatprep.mubr.msk.bf16.mxu1 %vm2150_vm12, %v10635_v46  ;;  %v1618_v28 = vrot.slane %v1616_v49, 5  ;;  %v5031_v58 = vrot.slane %v5030_v50, 4  ;;  %v550_v61 = vshll.u32 %v13651_v52, 16  ;;  %v79_v62 = vsel %vm13204_vm5, 0, %v78_v37 }
  0xbf   :  { %v5040_v5 = vor.u32 %v5039_v48, %v5035_v41  ;;  %v5045_v0 = vrot.slane %v5043_v55, 5  ;;  %v554_v42 = vrot.slane %v549_v57, 4  ;;  %80 = vst [vmem:[#allocation2 + $0xb4] sm:$0x1] %v79_v62  ;;  %v189_v21 = vsel %vm13210_vm6, 0, %v188_v40 }
  0xc0   :  { %v1619_v7 = vsel %vm13312_vm13, %v1614_v47, %v1618_v28  ;;  %v5036_v25 = vsel %vm13312_vm13, %v5031_v58, %v5035_v41  ;;  %v552_v9 = vor.u32 %v550_v61, %v549_v57  ;;  %190 = vst [vmem:[#allocation2 + $0xbc] sm:$0x1] %v189_v21  ;;  %v556_v52 = vshrl.u32 %v279_v15, 16  ;;  %v282_v41 = vld [vmem:[%s16523_s0 + $0x7c] sm:$0xf] }
  0xc1   :  { %v10636_v10 = vcombine.low %v1609_v59, %v1619_v7  ;;  %v5041_v12 = vrot.slane %v5040_v5, 4  ;;  %v1056_v14 = vsel %vm13204_vm5, %v554_v42, %v1055_v56  ;;  %v559_v11 = vshll.u32 %v279_v15, 16 }
  0xc2   :  { %v553_v53 = vsel %vm13239_vm8, %v545_v23, %v552_v9  ;;  %1057 = vst [vmem:[#allocation2 + $0xb0] sm:$0x1] %v1056_v14  ;;  %v558_v33 = vrot.slane %v556_v52, 7  ;;  %v564_v16 = vshrl.u32 %v280_v31, 16  ;;  %v567_v26 = vshll.u32 %v280_v31, 16 }
  0xc3   :  { %11754 = vmatmul.mubr.msk.bf16.gmra.mrb[24].mxu1 %vm2150_vm12, %v10636_v10  ;;  %v5046_v29 = vsel %vm13312_vm13, %v5041_v12, %v5045_v0  ;;  %1054 = vst.msk [vmem:[#allocation2 + $0xac] sm:$0xf] %vm15_vm1, %v553_v53  ;;  %v4678_v24 = vld [vmem:[#allocation2 + $0xa8] sm:$0xf]  ;;  %v82_v30 = vsel %vm13204_vm5, 0, %v81_v63  ;;  %v192_v32 = vsel %vm13210_vm6, 0, %v191_v1 }
  0xc4   :  { %v1212_v19 = vld [vmem:[#allocation2 + $0xa8] sm:$0xf]  ;;  %v10926_v34 = vcombine.low %v5036_v25, %v5046_v29  ;;  %v5048_v36 = vshrl.u32 %v4678_v24, 16  ;;  %v5051_v23 = vshll.u32 %v4678_v24, 16  ;;  %83 = vst [vmem:[#allocation2 + $0xc0] sm:$0x1] %v82_v30  ;;  %v561_v38 = vor.u32 %v559_v11, %v558_v33 }
  0xc5   :  { %v1621_v37 = vshrl.u32 %v1212_v19, 16  ;;  %193 = vst [vmem:[#allocation2 + $0xc8] sm:$0x1] %v192_v32  ;;  %v1624_v60 = vshll.u32 %v1212_v19, 16  ;;  %v562_v39 = vrot.slane %v558_v33, 4  ;;  %v566_v20 = vrot.slane %v564_v16, 7 }
  0xc6   :  { %12017 = vmatprep.mubr.msk.bf16.mxu0 %vm2150_vm12, %v10926_v34  ;;  %v5050_v45 = vrot.slane %v5048_v36, 4  ;;  %v5053_v46 = vrot.slane %v5051_v23, 5  ;;  %v1058_v49 = vld [vmem:[#allocation2 + $0xb4] sm:$0xf]  ;;  %v573_v50 = vshrl.u32 %v281_v27, 16  ;;  %v13753_v57 = vrot.slane %v6190_v54, 4 }
  0xc7   :  { %v1623_v47 = vrot.slane %v1621_v37, 4  ;;  %v1626_v40 = vrot.slane %v1624_v60, 5  ;;  %v569_v15 = vor.u32 %v567_v26, %v566_v20  ;;  %v571_v59 = vrot.slane %v566_v20, 4  ;;  %v1062_v55 = vld [vmem:[#allocation2 + $0xbc] sm:$0x1] }
  0xc8   :  { %v1059_v48 = vsel %vm13256_vm9, %v561_v38, %v1058_v49  ;;  %v5054_v56 = vor.u32 %v5053_v46, %v5050_v45  ;;  %v575_v31 = vrot.slane %v573_v50, 7  ;;  %v576_v28 = vshll.u32 %v281_v27, 16  ;;  %v87_v0 = vld [vmem:[#allocation2 + $0xd8] sm:$0x1] }
  0xc9   :  { %1060 = vst [vmem:[#allocation2 + $0xb4] sm:$0xf] %v1059_v48  ;;  %v4680_v58 = vld [vmem:[#allocation2 + $0xb0] sm:$0x1]  ;;  %v1627_v62 = vor.u32 %v1626_v40, %v1623_v47  ;;  %v570_v63 = vsel %vm13239_vm8, %v562_v39, %v569_v15  ;;  %v1063_v1 = vsel %vm13204_vm5, %v571_v59, %v1062_v55  ;;  %v581_v5 = vshrl.u32 %v282_v41, 16 }
  0xca   :  { %v1263_v61 = vld [vmem:[#allocation2 + $0xb0] sm:$0x1]  ;;  %v4679_v42 = vld [vmem:[#allocation2 + $0xac] sm:$0xf]  ;;  %v5067_v21 = vshll.u32 %v4680_v58, 16  ;;  %v578_v25 = vor.u32 %v576_v28, %v575_v31  ;;  %v584_v9 = vshll.u32 %v282_v41, 16 }
  0xcb   :  { %v1213_v7 = vld [vmem:[#allocation2 + $0xac] sm:$0xf]  ;;  %1061 = vst.msk [vmem:[#allocation2 + $0xb8] sm:$0xf] %vm15_vm1, %v570_v63  ;;  %1064 = vst [vmem:[#allocation2 + $0xbc] sm:$0x1] %v1063_v1 }
  0xcc   :  { %v5055_v52 = vrot.slane %v5054_v56, 4  ;;  %v5057_v10 = vshll.u32 %v4679_v42, 16  ;;  %v5061_v12 = vshrl.u32 %v4679_v42, 16  ;;  %v1630_v14 = vshll.u32 %v1213_v7, 16  ;;  %v1065_v11 = vld [vmem:[#allocation2 + $0xc0] sm:$0xf] }
  0xcd   :  { %v1628_v53 = vrot.slane %v1627_v62, 4  ;;  %v1634_v33 = vshrl.u32 %v1213_v7, 16  ;;  %v1640_v16 = vshll.u32 %v1263_v61, 16  ;;  %v579_v26 = vrot.slane %v575_v31, 4 }
  0xce   :  { %v5059_v27 = vrot.slane %v5057_v10, 5  ;;  %v5063_v29 = vrot.slane %v5061_v12, 4  ;;  %v1632_v24 = vrot.slane %v1630_v14, 5  ;;  %v13760_v19 = vrot.slane %v581_v5, 7  ;;  %v1069_v12 = vld [vmem:[#allocation2 + $0xc8] sm:$0x1] }
  0xcf   :  { %v5069_v30 = vrot.slane %v5067_v21, 5  ;;  %v1636_v32 = vrot.slane %v1634_v33, 4  ;;  %v1066_v34 = vsel %vm13256_vm9, %v578_v25, %v1065_v11  ;;  %v88_v36 = vsel %vm13204_vm5, 0, %v87_v0 }
  0xd0   :  { %v5060_v23 = vsel %vm13312_vm13, %v5055_v52, %v5059_v27  ;;  %v5064_v37 = vor.u32 %v5063_v29, %v5059_v27  ;;  %v1642_v60 = vrot.slane %v1640_v16, 5  ;;  %v1214_v38 = vld [vmem:[#allocation2 + $0xb4] sm:$0xf]  ;;  %v586_v20 = vor.u32 %v584_v9, %v13760_v19  ;;  %1067 = vst [vmem:[#allocation2 + $0xc0] sm:$0xf] %v1066_v34 }
  0xd1   :  { %v4681_v39 = vld [vmem:[#allocation2 + $0xb4] sm:$0xf]  ;;  %89 = vst [vmem:[#allocation2 + $0xd8] sm:$0x1] %v88_v36  ;;  %v1637_v41 = vor.u32 %v1636_v32, %v1632_v24  ;;  %v1645_v45 = vshrl.u32 %v1214_v38, 16  ;;  %v1648_v46 = vshll.u32 %v1214_v38, 16  ;;  %v1633_v50 = vsel %vm13312_vm13, %v1628_v53, %v1632_v24 }
  0xd2   :  { %v5072_v47 = vshrl.u32 %v4681_v39, 16  ;;  %v5065_v49 = vrot.slane %v5064_v37, 4  ;;  %v1215_v40 = vld [vmem:[#allocation2 + $0xb8] sm:$0xf]  ;;  %v1264_v15 = vld [vmem:[#allocation2 + $0xbc] sm:$0x1]  ;;  %v587_v48 = vsel %vm13239_vm8, %v579_v26, %v586_v20 }
  0xd3   :  { %v5075_v59 = vshll.u32 %v4681_v39, 16  ;;  %v1638_v55 = vrot.slane %v1637_v41, 4  ;;  %v1647_v56 = vrot.slane %v1645_v45, 4  ;;  %v1650_v31 = vrot.slane %v1648_v46, 5  ;;  %v4682_v58 = vld [vmem:[#allocation2 + $0xb8] sm:$0xf] }
  0xd4   :  { %v1654_v28 = vshll.u32 %v1215_v40, 16  ;;  %1068 = vst.msk [vmem:[#allocation2 + $0xc4] sm:$0xf] %vm15_vm1, %v587_v48  ;;  %v5070_v61 = vsel %vm13312_vm13, %v5065_v49, %v5069_v30  ;;  %v1658_v62 = vshrl.u32 %v1215_v40, 16  ;;  %v1664_v63 = vshll.u32 %v1264_v15, 16 }
  0xd5   :  { %v4683_v1 = vld [vmem:[#allocation2 + $0xbc] sm:$0x1]  ;;  %v5074_v5 = vrot.slane %v5072_v47, 4  ;;  %v10927_v0 = vcombine.low %v5060_v23, %v5070_v61  ;;  %v1643_v42 = vsel %vm13312_vm13, %v1638_v55, %v1642_v60  ;;  %v1651_v21 = vor.u32 %v1650_v31, %v1647_v56  ;;  %v197_v30 = vld [vmem:[#allocation2 + $0xe0] sm:$0x1] }
  0xd6   :  { %v1656_v7 = vrot.slane %v1654_v28, 5  ;;  %v10637_v25 = vcombine.low %v1633_v50, %v1643_v42  ;;  %v1660_v9 = vrot.slane %v1658_v62, 4  ;;  %v1666_v52 = vrot.slane %v1664_v63, 5  ;;  %v90_v45 = vld [vmem:[#allocation2 + $0xe4] sm:$0x1] }
  0xd7   :  { %v5077_v10 = vrot.slane %v5075_v59, 5  ;;  %12018 = vmatmul.mubr.msk.bf16.gmra.mrb[24].mxu0 %vm2150_vm12, %v10927_v0  ;;  %v1652_v14 = vrot.slane %v1651_v21, 4  ;;  %v5081_v11 = vshll.u32 %v4682_v58, 16  ;;  %v5085_v53 = vshrl.u32 %v4682_v58, 16  ;;  %v4684_v16 = vld [vmem:[#allocation2 + $0xc0] sm:$0xf] }
  0xd8   :  { %v5091_v33 = vshll.u32 %v4683_v1, 16  ;;  %11757 = vmatprep.mubr.msk.bf16.mxu1 %vm2150_vm12, %v10637_v25  ;;  %v1661_v26 = vor.u32 %v1660_v9, %v1656_v7  ;;  %v588_v29 = vrot.slane %v13760_v19, 4  ;;  %v5096_v24 = vshrl.u32 %v4684_v16, 16  ;;  %v1216_v37 = vld [vmem:[#allocation2 + $0xd8] sm:$0xf] }
  0xd9   :  { %v5078_v27 = vor.u32 %v5077_v10, %v5074_v5  ;;  %v1657_v32 = vsel %vm13312_vm13, %v1652_v14, %v1656_v7  ;;  %v5083_v34 = vrot.slane %v5081_v11, 5  ;;  %v5087_v36 = vrot.slane %v5085_v53, 4  ;;  %v1217_v50 = vld [vmem:[#allocation2 + $0xdc] sm:$0xf]  ;;  %v200_v55 = vld [vmem:[#allocation2 + $0xec] sm:$0x1] }
  0xda   :  { %v5093_v23 = vrot.slane %v5091_v33, 5  ;;  %v1662_v60 = vrot.slane %v1661_v26, 4  ;;  %v1070_v39 = vsel %vm13204_vm5, %v588_v29, %v1069_v12  ;;  %v5098_v41 = vrot.slane %v5096_v24, 4  ;;  %v283_v56 = vld [vmem:[%s16523_s0 + $0x80] sm:$0xf] }
  0xdb   :  { %v5079_v38 = vrot.slane %v5078_v27, 4  ;;  %v4685_v20 = vld [vmem:[#allocation2 + $0xc4] sm:$0xf]  ;;  %v5088_v46 = vor.u32 %v5087_v36, %v5083_v34  ;;  %1071 = vst [vmem:[#allocation2 + $0xc8] sm:$0x1] %v1070_v39  ;;  %v5099_v19 = vshll.u32 %v4684_v16, 16 }
  0xdc   :  { %v5105_v47 = vshll.u32 %v4685_v20, 16  ;;  %v5109_v49 = vshrl.u32 %v4685_v20, 16  ;;  %v1667_v40 = vsel %vm13312_vm13, %v1662_v60, %v1666_v52  ;;  %v198_v59 = vsel %vm13210_vm6, 0, %v197_v30  ;;  %v284_v62 = vld [vmem:[%s16523_s0 + $0x84] sm:$0xf] }
  0xdd   :  { %v5084_v15 = vsel %vm13312_vm13, %v5079_v38, %v5083_v34  ;;  %v1669_v48 = vshrl.u32 %v1216_v37, 16  ;;  %v10638_v31 = vcombine.low %v1657_v32, %v1667_v40  ;;  %v5089_v28 = vrot.slane %v5088_v46, 4  ;;  %199 = vst [vmem:[#allocation2 + $0xe0] sm:$0x1] %v198_v59  ;;  %v6054_v20 = vld [vmem:[#allocation2 + $0x18] sm:$0xe] }
  0xde   :  { %v5101_v58 = vrot.slane %v5099_v19, 5  ;;  %v5107_v61 = vrot.slane %v5105_v47, 5  ;;  %v5111_v63 = vrot.slane %v5109_v49, 4  ;;  %v1672_v5 = vshll.u32 %v1216_v37, 16  ;;  %v203_v59 = vld [vmem:[#allocation2 + $0xf8] sm:$0x1] }
  0xdf   :  { %v1671_v1 = vrot.slane %v1669_v48, 4  ;;  %v1678_v0 = vshll.u32 %v1217_v50, 16  ;;  %11758 = vmatmul.mubr.msk.bf16.gmra.mrb[28].mxu1 %vm2150_vm12, %v10638_v31  ;;  %v5094_v42 = vsel %vm13312_vm13, %v5089_v28, %v5093_v23  ;;  %v1682_v7 = vshrl.u32 %v1217_v50, 16  ;;  %v6053_v23 = vld [vmem:[#allocation2 + $0xc] sm:$0xe] }
  0xe0   :  { %v5102_v21 = vor.u32 %v5101_v58, %v5098_v41  ;;  %v91_v25 = vsel %vm13204_vm5, 0, %v90_v45  ;;  %v10928_v9 = vcombine.low %v5084_v15, %v5094_v42  ;;  %v5112_v52 = vor.u32 %v5111_v63, %v5107_v61  ;;  %v93_v15 = vld [vmem:[#allocation2 + $0xf0] sm:$0x1]  ;;  %v285_v28 = vld [vmem:[%s16523_s0 + $0x88] sm:$0xf] }
  0xe1   :  { %v1674_v10 = vrot.slane %v1672_v5, 5  ;;  %v1680_v12 = vrot.slane %v1678_v0, 5  ;;  %92 = vst [vmem:[#allocation2 + $0xe4] sm:$0x1] %v91_v25  ;;  %v1684_v11 = vrot.slane %v1682_v7, 4  ;;  %v201_v53 = vsel %vm13210_vm6, 0, %v200_v55 }
  0xe2   :  { %v5103_v14 = vrot.slane %v5102_v21, 4  ;;  %v590_v33 = vshrl.u32 %v283_v56, 16  ;;  %12021 = vmatprep.mubr.msk.bf16.mxu0 %vm2150_vm12, %v10928_v9  ;;  %v4686_v16 = vld [vmem:[#allocation2 + $0xc8] sm:$0x1]  ;;  %v5113_v26 = vrot.slane %v5112_v52, 4  ;;  %v593_v29 = vshll.u32 %v283_v56, 16 }
  0xe3   :  { %v1675_v27 = vor.u32 %v1674_v10, %v1671_v1  ;;  %202 = vst [vmem:[#allocation2 + $0xec] sm:$0x1] %v201_v53  ;;  %v598_v24 = vshrl.u32 %v284_v62, 16  ;;  %v5115_v32 = vshll.u32 %v4686_v16, 16  ;;  %v1685_v34 = vor.u32 %v1684_v11, %v1680_v12  ;;  %v286_v58 = vld [vmem:[%s16523_s0 + $0x8c] sm:$0xf] }
  0xe4   :  { %v5108_v30 = vsel %vm13312_vm13, %v5103_v14, %v5107_v61  ;;  %v592_v36 = vrot.slane %v590_v33, 7  ;;  %v1265_v37 = vld [vmem:[#allocation2 + $0xe0] sm:$0x1]  ;;  %v601_v39 = vshll.u32 %v284_v62, 16  ;;  %v10978_v31 = vrot.slane %v6053_v23, 9 }
  0xe5   :  { %v1676_v60 = vrot.slane %v1675_v27, 4  ;;  %v600_v38 = vrot.slane %v598_v24, 7  ;;  %v5117_v41 = vrot.slane %v5115_v32, 5  ;;  %v1686_v45 = vrot.slane %v1685_v34, 4  ;;  %v96_v0 = vld [vmem:[#allocation2 + $0xfc] sm:$0x1] }
  0xe6   :  { %v1688_v46 = vshll.u32 %v1265_v37, 16  ;;  %v595_v19 = vor.u32 %v593_v29, %v592_v36  ;;  %v596_v49 = vrot.slane %v592_v36, 4  ;;  %v6185_v5 = vrot.slane %v6183_v13, 4  ;;  %v206_v42 = vld [vmem:[#allocation2 + $0x104] sm:$0x1] }
  0xe7   :  { %v1681_v47 = vsel %vm13312_vm13, %v1676_v60, %v1680_v12  ;;  %v603_v50 = vor.u32 %v601_v39, %v600_v38  ;;  %v605_v40 = vrot.slane %v600_v38, 4  ;;  %v5118_v48 = vsel %vm13312_vm13, %v5113_v26, %v5117_v41  ;;  %v287_v10 = vld [vmem:[%s16523_s0 + $0x90] sm:$0xf]  ;;  %v6055_v26 = vld [vmem:[#allocation2 + $0x24] sm:$0xe] }
  0xe8   :  { %v1690_v55 = vrot.slane %v1688_v46, 5  ;;  %v1072_v56 = vld [vmem:[#allocation2 + $0xe4] sm:$0xf]  ;;  %v10929_v61 = vcombine.low %v5108_v30, %v5118_v48  ;;  %v6184_v25 = vsel %vm13822_vm2, %v10978_v31, %v6183_v13  ;;  %v10979_v9 = vrot.slane %v6054_v20, 9  ;;  %v12914_v38 = vld [vmem:[#allocation2 + $0x28] sm:$0xf] }
  0xe9   :  { %v604_v62 = vsel %vm13239_vm8, %v596_v49, %v603_v50  ;;  %v1073_v63 = vsel %vm13256_vm9, %v595_v19, %v1072_v56  ;;  %v6194_v52 = vsel %vm13822_vm2, %v13753_v57, %v6193_v4  ;;  %v6187_v13 = vsel %vm13822_vm2, %v6185_v5, %v6186_v18  ;;  %v288_v18 = vld [vmem:[%s16523_s0 + $0x94] sm:$0xf]  ;;  %v6056_v5 = vld [vmem:[#allocation2 + $0x30] sm:$0xe] }
  0xea   :  { %v1691_v21 = vsel %vm13312_vm13, %v1686_v45, %v1690_v55  ;;  %1074 = vst [vmem:[#allocation2 + $0xe4] sm:$0xf] %v1073_v63  ;;  %1075 = vst.msk [vmem:[#allocation2 + $0xe8] sm:$0xf] %vm15_vm1, %v604_v62  ;;  %v1076_v7 = vld [vmem:[#allocation2 + $0xec] sm:$0x1]  ;;  %12022 = vmatmul.mubr.msk.bf16.gmra.mrb[28].mxu0 %vm2150_vm12, %v10929_v61  ;;  %v11011_v57 = vcombine.low %v6184_v25, %v6187_v13  ;;  %v6191_v14 = vsel %vm13822_vm2, %v10979_v9, %v6190_v54 }
  0xeb   :  { %v10639_v12 = vcombine.low %v1681_v47, %v1691_v21  ;;  %v1077_v43 = vsel %vm13204_vm5, %v605_v40, %v1076_v7  ;;  %v7279_v4 = vsel %vm2247_vm0, %v12913_v2, 0  ;;  %v94_v11 = vsel %vm13204_vm5, 0, %v93_v15 }
  0xec   :  { %1078 = vst [vmem:[#allocation2 + $0xec] sm:$0x1] %v1077_v43  ;;  %v204_v51 = vsel %vm13210_vm6, 0, %v203_v59  ;;  %v11012_v53 = vcombine.low %v6191_v14, %v6194_v52  ;;  %95 = vst [vmem:[#allocation2 + $0xf0] sm:$0x1] %v94_v11  ;;  %v607_v33 = vshrl.u32 %v285_v28, 16  ;;  %12059 = vmatprep.mubr.msk.bf16.mxu0 %vm2150_vm12, %v11011_v57 }
  0xed   :  { %11761 = vmatprep.mubr.msk.bf16.mxu1 %vm2150_vm12, %v10639_v12  ;;  %205 = vst [vmem:[#allocation2 + $0xf8] sm:$0x1] %v204_v51  ;;  %v610_v44 = vshll.u32 %v285_v28, 16  ;;  %v615_v16 = vshrl.u32 %v286_v58, 16  ;;  %v618_v54 = vshll.u32 %v286_v58, 16  ;;  %v97_v27 = vsel %vm13204_vm5, 0, %v96_v0 }
  0xee   :  { %v207_v29 = vsel %vm13210_vm6, 0, %v206_v42  ;;  %v624_v24 = vshrl.u32 %v287_v10, 16  ;;  %v609_v30 = vrot.slane %v607_v33, 7  ;;  %98 = vst [vmem:[#allocation2 + $0xfc] sm:$0x1] %v97_v27  ;;  %v627_v34 = vshll.u32 %v287_v10, 16 }
  0xef   :  { %v617_v32 = vrot.slane %v615_v16, 7  ;;  %208 = vst [vmem:[#allocation2 + $0x104] sm:$0x1] %v207_v29  ;;  %v632_v36 = vshrl.u32 %v288_v18, 16  ;;  %v635_v37 = vshll.u32 %v288_v18, 16  ;;  %v10980_v60 = vrot.slane %v6055_v26, 9 }
  0xf0   :  { %v626_v23 = vrot.slane %v624_v24, 7  ;;  %v6197_v39 = vrot.slane %v12914_v38, 5  ;;  %v612_v45 = vor.u32 %v610_v44, %v609_v30  ;;  %v613_v46 = vrot.slane %v609_v30, 4  ;;  %v99_v0 = vld [vmem:[#allocation2 + $0x108] sm:$0x1] }
  0xf1   :  { %v1218_v20 = vld [vmem:[#allocation2 + $0xe4] sm:$0xf]  ;;  %v1219_v41 = vld [vmem:[#allocation2 + $0xe8] sm:$0xf]  ;;  %v620_v19 = vor.u32 %v618_v54, %v617_v32  ;;  %v622_v47 = vrot.slane %v617_v32, 4  ;;  %v634_v31 = vrot.slane %v632_v36, 7 }
  0xf2   :  { %v1693_v49 = vshrl.u32 %v1218_v20, 16  ;;  %v1696_v50 = vshll.u32 %v1218_v20, 16  ;;  %v1702_v40 = vshll.u32 %v1219_v41, 16  ;;  %v1706_v15 = vshrl.u32 %v1219_v41, 16  ;;  %12060 = vmatmul.mubr.msk.bf16.vlgmr.msra.gmra.mrb[0].mxu0 %vm2150_vm12, %v11012_v53  ;;  %v209_v52 = vld [vmem:[#allocation2 + $0x110] sm:$0x1] }
  0xf3   :  { %v1266_v59 = vld [vmem:[#allocation2 + $0xec] sm:$0x1]  ;;  %v621_v48 = vsel %vm13239_vm8, %v613_v46, %v620_v19  ;;  %v629_v55 = vor.u32 %v627_v34, %v626_v23  ;;  %v630_v56 = vrot.slane %v626_v23, 4  ;;  %12124 = vmatpush3.bf16.msra.mxu0 %v7279_v4  ;;  %v1079_v63 = vld [vmem:[#allocation2 + $0xf0] sm:$0xf]  ;;  %v637_v25 = vor.u32 %v635_v37, %v634_v31 }
  0xf4   :  { %v1695_v28 = vrot.slane %v1693_v49, 4  ;;  %v1698_v58 = vrot.slane %v1696_v50, 5  ;;  %v1704_v61 = vrot.slane %v1702_v40, 5  ;;  %v1708_v62 = vrot.slane %v1706_v15, 4  ;;  %1082 = vst.msk [vmem:[#allocation2 + $0xf4] sm:$0xf] %vm15_vm1, %v621_v48 }
  0xf5   :  { %v1712_v42 = vshll.u32 %v1266_v59, 16  ;;  %v1080_v21 = vsel %vm13256_vm9, %v612_v45, %v1079_v63  ;;  %v1083_v7 = vld [vmem:[#allocation2 + $0xf8] sm:$0x1]  ;;  %v639_v9 = vrot.slane %v634_v31, 4  ;;  %v1086_v13 = vld [vmem:[#allocation2 + $0xfc] sm:$0xf]  ;;  %v6198_v4 = vsel %vm13822_vm2, %v10980_v60, %v6197_v39 }
  0xf6   :  { %v1699_v10 = vor.u32 %v1698_v58, %v1695_v28  ;;  %v1709_v12 = vor.u32 %v1708_v62, %v1704_v61  ;;  %1081 = vst [vmem:[#allocation2 + $0xf0] sm:$0xf] %v1080_v21  ;;  %v1084_v43 = vsel %vm13204_vm5, %v622_v47, %v1083_v7  ;;  %v1090_v2 = vld [vmem:[#allocation2 + $0x104] sm:$0x1]  ;;  %v638_v14 = vsel %vm13239_vm8, %v630_v56, %v637_v25  ;;  %v13890_v18 = vld [vmem:[%s16523_s0 + $0x98] sm:$0xf] }
  0xf7   :  { %v1714_v57 = vrot.slane %v1712_v42, 5  ;;  %1085 = vst [vmem:[#allocation2 + $0xf8] sm:$0x1] %v1084_v43  ;;  %v1087_v11 = vsel %vm13256_vm9, %v629_v55, %v1086_v13  ;;  %v1091_v51 = vsel %vm13204_vm5, %v639_v9, %v1090_v2  ;;  %1089 = vst.msk [vmem:[#allocation2 + $0x100] sm:$0xf] %vm15_vm1, %v638_v14  ;;  %v6199_v44 = vrot.slane %v6197_v39, 4 }
  0xf8   :  { %v1700_v53 = vrot.slane %v1699_v10, 4  ;;  %v1710_v33 = vrot.slane %v1709_v12, 4  ;;  %1088 = vst [vmem:[#allocation2 + $0xfc] sm:$0xf] %v1087_v11  ;;  %1092 = vst [vmem:[#allocation2 + $0x104] sm:$0x1] %v1091_v51 }
  0xf9   :  { %v12915_v16 = vld [vmem:[#allocation2 + $0x2c] sm:$0x1]  ;;  %v13896_v54 = vld [vmem:[%s16523_s0 + $0x9c] sm:$0xf]  ;;  %v102_v27 = vld [vmem:[#allocation2 + $0x114] sm:$0x1] }
  0xfa   :  { %v6200_v26 = vrot.slane %v12915_v16, 5  ;;  %v10981_v29 = vrot.slane %v6056_v5, 9  ;;  %v12916_v24 = vld [vmem:[#allocation2 + $0x34] sm:$0xf]  ;;  %v12917_v32 = vld [vmem:[#allocation2 + $0x38] sm:$0x1]  ;;  %v1705_v23 = vsel %vm13312_vm13, %v1700_v53, %v1704_v61  ;;  %v1715_v37 = vsel %vm13312_vm13, %v1710_v33, %v1714_v57 }
  0xfb   :  { %v6204_v30 = vrot.slane %v12916_v24, 5  ;;  %v6207_v34 = vrot.slane %v12917_v32, 5  ;;  %v100_v36 = vsel %vm13204_vm5, 0, %v99_v0  ;;  %v210_v38 = vsel %vm13210_vm6, 0, %v209_v52  ;;  %v1221_v20 = vld [vmem:[#allocation2 + $0xf4] sm:$0xf] }
  0xfc   :  { %v6201_v60 = vsel %vm13822_vm2, %v6199_v44, %v6200_v26  ;;  %101 = vst [vmem:[#allocation2 + $0x108] sm:$0x1] %v100_v36  ;;  %v10640_v39 = vcombine.low %v1705_v23, %v1715_v37  ;;  %211 = vst [vmem:[#allocation2 + $0x110] sm:$0x1] %v210_v38  ;;  %v1726_v19 = vshll.u32 %v1221_v20, 16  ;;  %v1730_v47 = vshrl.u32 %v1221_v20, 16 }
  0xfd   :  { %v11013_v41 = vcombine.low %v6198_v4, %v6201_v60  ;;  %v6205_v45 = vsel %vm13822_vm2, %v10981_v29, %v6204_v30  ;;  %v6206_v46 = vrot.slane %v6204_v30, 4  ;;  %v641_v49 = vshrl.u32 %v13890_v18, 16  ;;  %v1220_v40 = vld [vmem:[#allocation2 + $0xf0] sm:$0xf]  ;;  %v212_v2 = vld [vmem:[#allocation2 + $0x11c] sm:$0x1] }
  0xfe   :  { %v644_v50 = vshll.u32 %v13890_v18, 16  ;;  %11762 = vmatmul.mubr.msk.bf16.gmra.mrb[32].mxu1 %vm2150_vm12, %v10640_v39  ;;  %v649_v59 = vshrl.u32 %v13896_v54, 16  ;;  %v652_v48 = vshll.u32 %v13896_v54, 16  ;;  %v103_v55 = vsel %vm13204_vm5, 0, %v102_v27  ;;  %v1267_v56 = vld [vmem:[#allocation2 + $0xf8] sm:$0x1] }
  0xff   :  { %12063 = vmatprep.mubr.msk.bf16.mxu0 %vm2150_vm12, %v11013_v41  ;;  %v6208_v15 = vsel %vm13822_vm2, %v6206_v46, %v6207_v34  ;;  %v1717_v31 = vshrl.u32 %v1220_v40, 16  ;;  %v1720_v28 = vshll.u32 %v1220_v40, 16  ;;  %v1728_v58 = vrot.slane %v1726_v19, 5  ;;  %104 = vst [vmem:[#allocation2 + $0x114] sm:$0x1] %v103_v55 }
 0x100   :  { %v1732_v61 = vrot.slane %v1730_v47, 4  ;;  %v1736_v62 = vshll.u32 %v1267_v56, 16  ;;  %v1222_v63 = vld [vmem:[#allocation2 + $0xfc] sm:$0xf]  ;;  %v1223_v5 = vld [vmem:[#allocation2 + $0x100] sm:$0xf]  ;;  %v11014_v0 = vcombine.low %v6205_v45, %v6208_v15 }
 0x101   :  { %v643_v42 = vrot.slane %v641_v49, 7  ;;  %v1719_v21 = vrot.slane %v1717_v31, 4  ;;  %v1722_v7 = vrot.slane %v1720_v28, 5  ;;  %v1268_v9 = vld [vmem:[#allocation2 + $0x104] sm:$0x1]  ;;  %v1741_v52 = vshrl.u32 %v1222_v63, 16 }
 0x102   :  { %v1733_v25 = vor.u32 %v1732_v61, %v1728_v58  ;;  %v1738_v10 = vrot.slane %v1736_v62, 5  ;;  %v1744_v12 = vshll.u32 %v1222_v63, 16  ;;  %v1750_v43 = vshll.u32 %v1223_v5, 16  ;;  %12064 = vmatmul.mubr.msk.bf16.gmra.mrb[4].mxu0 %vm2150_vm12, %v11014_v0  ;;  %v291_v16 = vld [vmem:[%s16523_s0 + $0xa0] sm:$0xf] }
 0x103   :  { %v1754_v13 = vshrl.u32 %v1223_v5, 16  ;;  %v1723_v4 = vor.u32 %v1722_v7, %v1719_v21  ;;  %v1743_v14 = vrot.slane %v1741_v52, 4  ;;  %v1760_v11 = vshll.u32 %v1268_v9, 16  ;;  %v1093_v51 = vld [vmem:[#allocation2 + $0x108] sm:$0xf] }
 0x104   :  { %v1734_v57 = vrot.slane %v1733_v25, 4  ;;  %v1746_v18 = vrot.slane %v1744_v12, 5  ;;  %v1752_v53 = vrot.slane %v1750_v43, 5  ;;  %v646_v44 = vor.u32 %v644_v50, %v643_v42  ;;  %v292_v36 = vld [vmem:[%s16523_s0 + $0xa4] sm:$0xf] }
 0x105   :  { %v1756_v33 = vrot.slane %v1754_v13, 4  ;;  %v1724_v26 = vrot.slane %v1723_v4, 4  ;;  %v1762_v27 = vrot.slane %v1760_v11, 5  ;;  %v647_v29 = vrot.slane %v643_v42, 4  ;;  %v6057_v39 = vld [vmem:[#allocation2 + $0x3c] sm:$0xe] }
 0x106   :  { %v1739_v54 = vsel %vm13312_vm13, %v1734_v57, %v1738_v10  ;;  %v1747_v24 = vor.u32 %v1746_v18, %v1743_v14  ;;  %v651_v32 = vrot.slane %v649_v59, 7  ;;  %v1094_v34 = vsel %vm13256_vm9, %v646_v44, %v1093_v51  ;;  %v1097_v19 = vld [vmem:[#allocation2 + $0x110] sm:$0x1]  ;;  %v105_v47 = vld [vmem:[#allocation2 + $0x120] sm:$0x1] }
 0x107   :  { %v1757_v30 = vor.u32 %v1756_v33, %v1752_v53  ;;  %v1729_v23 = vsel %vm13312_vm13, %v1724_v26, %v1728_v58  ;;  %1095 = vst [vmem:[#allocation2 + $0x108] sm:$0xf] %v1094_v34  ;;  %v213_v37 = vsel %vm13210_vm6, 0, %v212_v2  ;;  %v658_v60 = vshrl.u32 %v291_v16, 16  ;;  %v6058_v59 = vld [vmem:[#allocation2 + $0x48] sm:$0xe] }
 0x108   :  { %v661_v38 = vshll.u32 %v291_v16, 16  ;;  %v10641_v20 = vcombine.low %v1729_v23, %v1739_v54  ;;  %v1748_v41 = vrot.slane %v1747_v24, 4  ;;  %v654_v46 = vor.u32 %v652_v48, %v651_v32  ;;  %214 = vst [vmem:[#allocation2 + $0x11c] sm:$0x1] %v213_v37  ;;  %v1100_v48 = vld [vmem:[#allocation2 + $0x114] sm:$0xf] }
 0x109   :  { %v1758_v45 = vrot.slane %v1757_v30, 4  ;;  %v656_v49 = vrot.slane %v651_v32, 4  ;;  %v660_v50 = vrot.slane %v658_v60, 7  ;;  %v666_v40 = vshrl.u32 %v292_v36, 16  ;;  %v215_v5 = vld [vmem:[#allocation2 + $0x128] sm:$0x1] }
 0x10a   :  { %v669_v15 = vshll.u32 %v292_v36, 16  ;;  %11765 = vmatprep.mubr.msk.bf16.mxu1 %vm2150_vm12, %v10641_v20  ;;  %v1753_v55 = vsel %vm13312_vm13, %v1748_v41, %v1752_v53  ;;  %v655_v31 = vsel %vm13239_vm8, %v647_v29, %v654_v46  ;;  %v10982_v28 = vrot.slane %v6057_v39, 9  ;;  %v12918_v42 = vld [vmem:[#allocation2 + $0x40] sm:$0xf]  ;;  %v12919_v7 = vld [vmem:[#allocation2 + $0x44] sm:$0x1] }
 0x10b   :  { %v1763_v56 = vsel %vm13312_vm13, %v1758_v45, %v1762_v27  ;;  %1096 = vst.msk [vmem:[#allocation2 + $0x10c] sm:$0xf] %vm15_vm1, %v655_v31  ;;  %v1098_v61 = vsel %vm13204_vm5, %v656_v49, %v1097_v19  ;;  %v663_v62 = vor.u32 %v661_v38, %v660_v50  ;;  %v664_v63 = vrot.slane %v660_v50, 4  ;;  %v12920_v10 = vld [vmem:[#allocation2 + $0x4c] sm:$0xf] }
 0x10c   :  { %v10642_v58 = vcombine.low %v1753_v55, %v1763_v56  ;;  %1099 = vst [vmem:[#allocation2 + $0x110] sm:$0x1] %v1098_v61  ;;  %v668_v0 = vrot.slane %v666_v40, 7  ;;  %v6211_v21 = vrot.slane %v12918_v42, 5  ;;  %v6214_v25 = vrot.slane %v12919_v7, 5 }
 0x10d   :  { %v10983_v9 = vrot.slane %v6058_v59, 9  ;;  %v1101_v52 = vsel %vm13256_vm9, %v663_v62, %v1100_v48  ;;  %v6218_v12 = vrot.slane %v12920_v10, 5  ;;  %v12921_v43 = vld [vmem:[#allocation2 + $0x50] sm:$0x1]  ;;  %v106_v2 = vsel %vm13204_vm5, 0, %v105_v47 }
 0x10e   :  { %11766 = vmatmul.mubr.msk.bf16.gmra.mrb[36].mxu1 %vm2150_vm12, %v10642_v58  ;;  %v6221_v13 = vrot.slane %v12921_v43, 5  ;;  %v293_v4 = vld [vmem:[%s16523_s0 + $0xa8] sm:$0xf]  ;;  %v294_v57 = vld [vmem:[%s16523_s0 + $0xac] sm:$0xf]  ;;  %v671_v11 = vor.u32 %v669_v15, %v668_v0  ;;  %v673_v51 = vrot.slane %v668_v0, 4  ;;  %v6212_v18 = vsel %vm13822_vm2, %v10982_v28, %v6211_v21 }
 0x10f   :  { %v1224_v14 = vld [vmem:[#allocation2 + $0x108] sm:$0xf]  ;;  %1102 = vst [vmem:[#allocation2 + $0x114] sm:$0xf] %v1101_v52  ;;  %v6213_v53 = vrot.slane %v6211_v21, 4  ;;  %v6219_v54 = vsel %vm13822_vm2, %v10983_v9, %v6218_v12  ;;  %v6220_v27 = vrot.slane %v6218_v12, 4 }
 0x110   :  { %107 = vst [vmem:[#allocation2 + $0x120] sm:$0x1] %v106_v2  ;;  %v10783_v33 = vld [vmem:[%s16524_s1 + $0x4] sm:$0x3]  ;;  %v1765_v44 = vshrl.u32 %v1224_v14, 16  ;;  %v1768_v16 = vshll.u32 %v1224_v14, 16  ;;  %v672_v29 = vsel %vm13239_vm8, %v664_v63, %v671_v11 }
 0x111   :  { %v1104_v26 = vld [vmem:[#allocation2 + $0x11c] sm:$0x1]  ;;  %12837 = vmatprep.subr.msk.bf16.mxu1 %vm2247_vm0, %v10783_v33  ;;  %v6215_v30 = vsel %vm13822_vm2, %v6213_v53, %v6214_v25  ;;  %v216_v32 = vsel %vm13210_vm6, 0, %v215_v5  ;;  %1103 = vst.msk [vmem:[#allocation2 + $0x118] sm:$0xf] %vm15_vm1, %v672_v29  ;;  %v6222_v37 = vsel %vm13822_vm2, %v6220_v27, %v6221_v13  ;;  %v675_v41 = vshrl.u32 %v293_v4, 16 }
 0x112   :  { %v1105_v24 = vsel %vm13204_vm5, %v673_v51, %v1104_v26  ;;  %v1767_v34 = vrot.slane %v1765_v44, 4  ;;  %v1770_v36 = vrot.slane %v1768_v16, 5  ;;  %v11015_v23 = vcombine.low %v6212_v18, %v6215_v30  ;;  %217 = vst [vmem:[#allocation2 + $0x128] sm:$0x1] %v216_v32  ;;  %v108_v60 = vld [vmem:[#allocation2 + $0x12c] sm:$0x1] }
 0x113   :  { %1106 = vst [vmem:[#allocation2 + $0x11c] sm:$0x1] %v1105_v24  ;;  %v218_v38 = vld [vmem:[#allocation2 + $0x134] sm:$0x1]  ;;  %v1225_v39 = vld [vmem:[#allocation2 + $0x10c] sm:$0xf]  ;;  %v11016_v20 = vcombine.low %v6219_v54, %v6222_v37 }
 0x114   :  { %v678_v45 = vshll.u32 %v293_v4, 16  ;;  %v683_v46 = vshrl.u32 %v294_v57, 16  ;;  %v1269_v19 = vld [vmem:[#allocation2 + $0x110] sm:$0x1]  ;;  %v1771_v47 = vor.u32 %v1770_v36, %v1767_v34  ;;  %v1774_v49 = vshll.u32 %v1225_v39, 16  ;;  %12067 = vmatprep.mubr.msk.bf16.mxu0 %vm2150_vm12, %v11015_v23 }
 0x115   :  { %v1778_v50 = vshrl.u32 %v1225_v39, 16  ;;  %v686_v40 = vshll.u32 %v294_v57, 16  ;;  %v1784_v15 = vshll.u32 %v1269_v19, 16  ;;  %12068 = vmatmul.mubr.msk.bf16.gmra.mrb[8].mxu0 %vm2150_vm12, %v11016_v20  ;;  %v677_v59 = vrot.slane %v675_v41, 7  ;;  %v295_v9 = vld [vmem:[%s16523_s0 + $0xb0] sm:$0xf] }
 0x116   :  { %v685_v55 = vrot.slane %v683_v46, 7  ;;  %v109_v56 = vsel %vm13204_vm5, 0, %v108_v60  ;;  %v1772_v31 = vrot.slane %v1771_v47, 4  ;;  %v1776_v48 = vrot.slane %v1774_v49, 5  ;;  %v1226_v58 = vld [vmem:[#allocation2 + $0x114] sm:$0xf] }
 0x117   :  { %v1780_v28 = vrot.slane %v1778_v50, 4  ;;  %110 = vst [vmem:[#allocation2 + $0x12c] sm:$0x1] %v109_v56  ;;  %v219_v61 = vsel %vm13210_vm6, 0, %v218_v38  ;;  %v1789_v62 = vshrl.u32 %v1226_v58, 16  ;;  %v1792_v63 = vshll.u32 %v1226_v58, 16 }
 0x118   :  { %v680_v5 = vor.u32 %v678_v45, %v677_v59  ;;  %v1107_v0 = vld [vmem:[#allocation2 + $0x120] sm:$0xf]  ;;  %220 = vst [vmem:[#allocation2 + $0x134] sm:$0x1] %v219_v61  ;;  %v1786_v21 = vrot.slane %v1784_v15, 5  ;;  %v681_v7 = vrot.slane %v677_v59, 4  ;;  %v688_v25 = vor.u32 %v686_v40, %v685_v55 }
 0x119   :  { %v1781_v42 = vor.u32 %v1780_v28, %v1776_v48  ;;  %v1777_v52 = vsel %vm13312_vm13, %v1772_v31, %v1776_v48  ;;  %v1227_v10 = vld [vmem:[#allocation2 + $0x118] sm:$0xf]  ;;  %v1791_v43 = vrot.slane %v1789_v62, 4  ;;  %v1794_v13 = vrot.slane %v1792_v63, 5  ;;  %v1111_v51 = vld [vmem:[#allocation2 + $0x128] sm:$0x1] }
 0x11a   :  { %v1270_v12 = vld [vmem:[#allocation2 + $0x11c] sm:$0x1]  ;;  %v1108_v2 = vsel %vm13256_vm9, %v680_v5, %v1107_v0  ;;  %v1798_v57 = vshll.u32 %v1227_v10, 16  ;;  %v1802_v14 = vshrl.u32 %v1227_v10, 16  ;;  %v689_v53 = vsel %vm13239_vm8, %v681_v7, %v688_v25  ;;  %v296_v44 = vld [vmem:[%s16523_s0 + $0xb4] sm:$0xf] }
 0x11b   :  { %v1782_v4 = vrot.slane %v1781_v42, 4  ;;  %v1808_v11 = vshll.u32 %v1270_v12, 16  ;;  %1109 = vst [vmem:[#allocation2 + $0x120] sm:$0xf] %v1108_v2  ;;  %v1795_v18 = vor.u32 %v1794_v13, %v1791_v43  ;;  %v690_v33 = vrot.slane %v685_v55, 4 }
 0x11c   :  { %v692_v16 = vshrl.u32 %v295_v9, 16  ;;  %v1800_v54 = vrot.slane %v1798_v57, 5  ;;  %v1804_v27 = vrot.slane %v1802_v14, 4  ;;  %1110 = vst.msk [vmem:[#allocation2 + $0x124] sm:$0xf] %vm15_vm1, %v689_v53  ;;  %v695_v60 = vshll.u32 %v295_v9, 16 }
 0x11d   :  { %v1787_v26 = vsel %vm13312_vm13, %v1782_v4, %v1786_v21  ;;  %v1810_v29 = vrot.slane %v1808_v11, 5  ;;  %v6059_v24 = vld [vmem:[#allocation2 + $0x54] sm:$0xe]  ;;  %v1796_v32 = vrot.slane %v1795_v18, 4  ;;  %v1112_v34 = vsel %vm13204_vm5, %v690_v33, %v1111_v51  ;;  %v6060_v23 = vld [vmem:[#allocation2 + $0x60] sm:$0xe] }
 0x11e   :  { %v10643_v30 = vcombine.low %v1777_v52, %v1787_v26  ;;  %v694_v36 = vrot.slane %v692_v16, 7  ;;  %v1805_v37 = vor.u32 %v1804_v27, %v1800_v54  ;;  %1113 = vst [vmem:[#allocation2 + $0x128] sm:$0x1] %v1112_v34  ;;  %v700_v38 = vshrl.u32 %v296_v44, 16  ;;  %v1114_v20 = vld [vmem:[#allocation2 + $0x12c] sm:$0xf] }
 0x11f   :  { %v703_v39 = vshll.u32 %v296_v44, 16  ;;  %v1801_v41 = vsel %vm13312_vm13, %v1796_v32, %v1800_v54  ;;  %v10984_v46 = vrot.slane %v6059_v24, 9  ;;  %v12922_v19 = vld [vmem:[#allocation2 + $0x58] sm:$0xf]  ;;  %v12923_v15 = vld [vmem:[#allocation2 + $0x5c] sm:$0x1] }
 0x120   :  { %11769 = vmatprep.mubr.msk.bf16.mxu1 %vm2150_vm12, %v10643_v30  ;;  %v698_v45 = vrot.slane %v694_v36, 4  ;;  %v6225_v47 = vrot.slane %v12922_v19, 5  ;;  %v1806_v49 = vrot.slane %v1805_v37, 4  ;;  %v697_v50 = vor.u32 %v695_v60, %v694_v36  ;;  %v12924_v28 = vld [vmem:[#allocation2 + $0x64] sm:$0xf] }
 0x121   :  { %v702_v40 = vrot.slane %v700_v38, 7  ;;  %v6228_v59 = vrot.slane %v12923_v15, 5  ;;  %v10985_v48 = vrot.slane %v6060_v23, 9  ;;  %v6232_v58 = vrot.slane %v12924_v28, 5  ;;  %v1118_v0 = vld [vmem:[#allocation2 + $0x134] sm:$0x1] }
 0x122   :  { %v1228_v55 = vld [vmem:[#allocation2 + $0x120] sm:$0xf]  ;;  %v6226_v56 = vsel %vm13822_vm2, %v10984_v46, %v6225_v47  ;;  %v6227_v31 = vrot.slane %v6225_v47, 4  ;;  %v1811_v61 = vsel %vm13312_vm13, %v1806_v49, %v1810_v29  ;;  %v111_v42 = vld [vmem:[#allocation2 + $0x138] sm:$0x1]  ;;  %v1115_v52 = vsel %vm13256_vm9, %v697_v50, %v1114_v20 }
 0x123   :  { %v1813_v62 = vshrl.u32 %v1228_v55, 16  ;;  %v1816_v63 = vshll.u32 %v1228_v55, 16  ;;  %v705_v5 = vor.u32 %v703_v39, %v702_v40  ;;  %v221_v21 = vld [vmem:[#allocation2 + $0x140] sm:$0x1]  ;;  %v10644_v7 = vcombine.low %v1801_v41, %v1811_v61  ;;  %v1229_v25 = vld [vmem:[#allocation2 + $0x124] sm:$0xf] }
 0x124   :  { %v707_v9 = vrot.slane %v702_v40, 4  ;;  %v6229_v10 = vsel %vm13822_vm2, %v6227_v31, %v6228_v59  ;;  %v297_v12 = vld [vmem:[%s16523_s0 + $0xb8] sm:$0xf]  ;;  %v1822_v2 = vshll.u32 %v1229_v25, 16  ;;  %v1826_v4 = vshrl.u32 %v1229_v25, 16 }
 0x125   :  { %v1815_v43 = vrot.slane %v1813_v62, 4  ;;  %v1818_v13 = vrot.slane %v1816_v63, 5  ;;  %1116 = vst [vmem:[#allocation2 + $0x12c] sm:$0xf] %v1115_v52  ;;  %11770 = vmatmul.mubr.msk.bf16.gmra.mrb[40].mxu1 %vm2150_vm12, %v10644_v7  ;;  %v1271_v57 = vld [vmem:[#allocation2 + $0x128] sm:$0x1]  ;;  %v706_v14 = vsel %vm13239_vm8, %v698_v45, %v705_v5  ;;  %v11017_v51 = vcombine.low %v6226_v56, %v6229_v10 }
 0x126   :  { %v1119_v11 = vsel %vm13204_vm5, %v707_v9, %v1118_v0  ;;  %v6233_v18 = vsel %vm13822_vm2, %v10985_v48, %v6232_v58  ;;  %v298_v53 = vld [vmem:[%s16523_s0 + $0xbc] sm:$0xf]  ;;  %v1824_v44 = vrot.slane %v1822_v2, 5  ;;  %v1828_v16 = vrot.slane %v1826_v4, 4  ;;  %1117 = vst.msk [vmem:[#allocation2 + $0x130] sm:$0xf] %vm15_vm1, %v706_v14 }
 0x127   :  { %v1819_v33 = vor.u32 %v1818_v13, %v1815_v43  ;;  %v1832_v26 = vshll.u32 %v1271_v57, 16  ;;  %1120 = vst [vmem:[#allocation2 + $0x134] sm:$0x1] %v1119_v11  ;;  %v114_v54 = vld [vmem:[#allocation2 + $0x144] sm:$0x1]  ;;  %12071 = vmatprep.mubr.msk.bf16.mxu0 %vm2150_vm12, %v11017_v51  ;;  %v6234_v24 = vrot.slane %v6232_v58, 4 }
 0x128   :  { %v224_v27 = vld [vmem:[#allocation2 + $0x14c] sm:$0x1]  ;;  %v14026_v29 = vld [vmem:[%s16523_s0 + $0xc0] sm:$0xf]  ;;  %v12925_v30 = vld [vmem:[#allocation2 + $0x68] sm:$0x1]  ;;  %v1829_v37 = vor.u32 %v1828_v16, %v1824_v44 }
 0x129   :  { %v6235_v32 = vrot.slane %v12925_v30, 5  ;;  %v112_v34 = vsel %vm13204_vm5, 0, %v111_v42  ;;  %v222_v36 = vsel %vm13210_vm6, 0, %v221_v21  ;;  %v1820_v23 = vrot.slane %v1819_v33, 4  ;;  %v300_v9 = vld [vmem:[%s16523_s0 + $0xc4] sm:$0xf] }
 0x12a   :  { %v1834_v60 = vrot.slane %v1832_v26, 5  ;;  %113 = vst [vmem:[#allocation2 + $0x138] sm:$0x1] %v112_v34  ;;  %223 = vst [vmem:[#allocation2 + $0x140] sm:$0x1] %v222_v36  ;;  %v709_v38 = vshrl.u32 %v297_v12, 16 }
 0x12b   :  { %v6236_v39 = vsel %vm13822_vm2, %v6234_v24, %v6235_v32  ;;  %v712_v20 = vshll.u32 %v297_v12, 16  ;;  %v717_v41 = vshrl.u32 %v298_v53, 16  ;;  %v720_v45 = vshll.u32 %v298_v53, 16  ;;  %v6061_v11 = vld [vmem:[#allocation2 + $0x6c] sm:$0xe] }
 0x12c   :  { %v1825_v46 = vsel %vm13312_vm13, %v1820_v23, %v1824_v44  ;;  %v1830_v19 = vrot.slane %v1829_v37, 4  ;;  %v11018_v47 = vcombine.low %v6233_v18, %v6236_v39  ;;  %v711_v49 = vrot.slane %v709_v38, 7  ;;  %v1230_v50 = vld [vmem:[#allocation2 + $0x12c] sm:$0xf]  ;;  %v12926_v36 = vld [vmem:[#allocation2 + $0x70] sm:$0xf] }
 0x12d   :  { %v719_v40 = vrot.slane %v717_v41, 7  ;;  %v115_v15 = vsel %vm13204_vm5, 0, %v114_v54  ;;  %v225_v59 = vsel %vm13210_vm6, 0, %v224_v27  ;;  %v726_v55 = vshrl.u32 %v14026_v29, 16  ;;  %v1231_v61 = vld [vmem:[#allocation2 + $0x130] sm:$0xf] }
 0x12e   :  { %v1835_v56 = vsel %vm13312_vm13, %v1830_v19, %v1834_v60  ;;  %v1837_v31 = vshrl.u32 %v1230_v50, 16  ;;  %v1840_v48 = vshll.u32 %v1230_v50, 16  ;;  %12072 = vmatmul.mubr.msk.bf16.gmra.mrb[12].mxu0 %vm2150_vm12, %v11018_v47  ;;  %v714_v28 = vor.u32 %v712_v20, %v711_v49  ;;  %116 = vst [vmem:[#allocation2 + $0x144] sm:$0x1] %v115_v15  ;;  %226 = vst [vmem:[#allocation2 + $0x14c] sm:$0x1] %v225_v59 }
 0x12f   :  { %v10645_v58 = vcombine.low %v1825_v46, %v1835_v56  ;;  %v1272_v62 = vld [vmem:[#allocation2 + $0x134] sm:$0x1]  ;;  %v715_v63 = vrot.slane %v711_v49, 4  ;;  %v722_v5 = vor.u32 %v720_v45, %v719_v40  ;;  %v724_v0 = vrot.slane %v719_v40, 4  ;;  %v6062_v54 = vld [vmem:[#allocation2 + $0x78] sm:$0xe] }
 0x130   :  { %v1839_v42 = vrot.slane %v1837_v31, 4  ;;  %v1842_v21 = vrot.slane %v1840_v48, 5  ;;  %v1846_v7 = vshll.u32 %v1231_v61, 16  ;;  %v1850_v25 = vshrl.u32 %v1231_v61, 16  ;;  %v117_v27 = vld [vmem:[#allocation2 + $0x150] sm:$0x1] }
 0x131   :  { %11773 = vmatprep.mubr.msk.bf16.mxu1 %vm2150_vm12, %v10645_v58  ;;  %v1856_v52 = vshll.u32 %v1272_v62, 16  ;;  %v723_v10 = vsel %vm13239_vm8, %v715_v63, %v722_v5  ;;  %v1121_v12 = vld [vmem:[#allocation2 + $0x138] sm:$0xf]  ;;  %v1125_v43 = vld [vmem:[#allocation2 + $0x140] sm:$0x1]  ;;  %v728_v13 = vrot.slane %v726_v55, 7 }
 0x132   :  { %v1843_v2 = vor.u32 %v1842_v21, %v1839_v42  ;;  %v1848_v4 = vrot.slane %v1846_v7, 5  ;;  %v1852_v57 = vrot.slane %v1850_v25, 4  ;;  %v1122_v14 = vsel %vm13256_vm9, %v714_v28, %v1121_v12  ;;  %1124 = vst.msk [vmem:[#allocation2 + $0x13c] sm:$0xf] %vm15_vm1, %v723_v10  ;;  %v12928_v40 = vld [vmem:[#allocation2 + $0x7c] sm:$0xf] }
 0x133   :  { %v1858_v51 = vrot.slane %v1856_v52, 5  ;;  %1123 = vst [vmem:[#allocation2 + $0x138] sm:$0xf] %v1122_v14  ;;  %v1126_v18 = vsel %vm13204_vm5, %v724_v0, %v1125_v43  ;;  %v729_v53 = vshll.u32 %v14026_v29, 16  ;;  %v734_v16 = vshrl.u32 %v300_v9, 16 }
 0x134   :  { %v1844_v33 = vrot.slane %v1843_v2, 4  ;;  %v1853_v44 = vor.u32 %v1852_v57, %v1848_v4  ;;  %1127 = vst [vmem:[#allocation2 + $0x140] sm:$0x1] %v1126_v18  ;;  %v737_v26 = vshll.u32 %v300_v9, 16  ;;  %v732_v30 = vrot.slane %v728_v13, 4 }
 0x135   :  { %v731_v24 = vor.u32 %v729_v53, %v728_v13  ;;  %v1128_v32 = vld [vmem:[#allocation2 + $0x144] sm:$0xf]  ;;  %v10986_v34 = vrot.slane %v6061_v11, 9  ;;  %v6239_v23 = vrot.slane %v12926_v36, 5  ;;  %v736_v38 = vrot.slane %v734_v16, 7 }
 0x136   :  { %v1849_v37 = vsel %vm13312_vm13, %v1844_v33, %v1848_v4  ;;  %v1854_v60 = vrot.slane %v1853_v44, 4  ;;  %v1132_v39 = vld [vmem:[#allocation2 + $0x14c] sm:$0x1]  ;;  %v12927_v29 = vld [vmem:[#allocation2 + $0x74] sm:$0x1]  ;;  %v10987_v19 = vrot.slane %v6062_v54, 9 }
 0x137   :  { %v6242_v20 = vrot.slane %v12927_v29, 5  ;;  %v1129_v41 = vsel %vm13256_vm9, %v731_v24, %v1128_v32  ;;  %v6240_v45 = vsel %vm13822_vm2, %v10986_v34, %v6239_v23  ;;  %v6241_v46 = vrot.slane %v6239_v23, 4  ;;  %v12929_v31 = vld [vmem:[#allocation2 + $0x80] sm:$0x1]  ;;  %v227_v58 = vld [vmem:[#allocation2 + $0x158] sm:$0x1] }
 0x138   :  { %v1859_v47 = vsel %vm13312_vm13, %v1854_v60, %v1858_v51  ;;  %v739_v49 = vor.u32 %v737_v26, %v736_v38  ;;  %v741_v50 = vrot.slane %v736_v38, 4  ;;  %1130 = vst [vmem:[#allocation2 + $0x144] sm:$0xf] %v1129_v41  ;;  %v6246_v15 = vrot.slane %v12928_v40, 5  ;;  %v301_v42 = vld [vmem:[%s16523_s0 + $0xc8] sm:$0xf] }
 0x139   :  { %v10646_v59 = vcombine.low %v1849_v37, %v1859_v47  ;;  %v1233_v55 = vld [vmem:[#allocation2 + $0x13c] sm:$0xf]  ;;  %v6243_v56 = vsel %vm13822_vm2, %v6241_v46, %v6242_v20  ;;  %v6249_v48 = vrot.slane %v12929_v31, 5  ;;  %v118_v28 = vsel %vm13204_vm5, 0, %v117_v27  ;;  %v302_v10 = vld [vmem:[%s16523_s0 + $0xcc] sm:$0xf] }
 0x13a   :  { %v1232_v61 = vld [vmem:[#allocation2 + $0x138] sm:$0xf]  ;;  %v1870_v62 = vshll.u32 %v1233_v55, 16  ;;  %v1874_v63 = vshrl.u32 %v1233_v55, 16  ;;  %v740_v5 = vsel %vm13239_vm8, %v732_v30, %v739_v49  ;;  %v1133_v0 = vsel %vm13204_vm5, %v741_v50, %v1132_v39  ;;  %119 = vst [vmem:[#allocation2 + $0x150] sm:$0x1] %v118_v28 }
 0x13b   :  { %11774 = vmatmul.mubr.msk.bf16.gmra.mrb[44].mxu1 %vm2150_vm12, %v10646_v59  ;;  %v1273_v21 = vld [vmem:[#allocation2 + $0x140] sm:$0x1]  ;;  %v1861_v7 = vshrl.u32 %v1232_v61, 16  ;;  %v1864_v25 = vshll.u32 %v1232_v61, 16  ;;  %1131 = vst.msk [vmem:[#allocation2 + $0x148] sm:$0xf] %vm15_vm1, %v740_v5  ;;  %v11019_v9 = vcombine.low %v6240_v45, %v6243_v56  ;;  %v6247_v52 = vsel %vm13822_vm2, %v10987_v19, %v6246_v15 }
 0x13c   :  { %1134 = vst [vmem:[#allocation2 + $0x14c] sm:$0x1] %v1133_v0  ;;  %v1872_v12 = vrot.slane %v1870_v62, 5  ;;  %v1876_v43 = vrot.slane %v1874_v63, 4  ;;  %v1880_v13 = vshll.u32 %v1273_v21, 16  ;;  %v6248_v2 = vrot.slane %v6246_v15, 4 }
 0x13d   :  { %v1863_v4 = vrot.slane %v1861_v7, 4  ;;  %v1866_v57 = vrot.slane %v1864_v25, 5  ;;  %12075 = vmatprep.mubr.msk.bf16.mxu0 %vm2150_vm12, %v11019_v9  ;;  %v228_v14 = vsel %vm13210_vm6, 0, %v227_v58  ;;  %v743_v11 = vshrl.u32 %v301_v42, 16  ;;  %v120_v39 = vld [vmem:[#allocation2 + $0x15c] sm:$0x1] }
 0x13e   :  { %v1877_v51 = vor.u32 %v1876_v43, %v1872_v12  ;;  %v1882_v18 = vrot.slane %v1880_v13, 5  ;;  %v6250_v53 = vsel %vm13822_vm2, %v6248_v2, %v6249_v48  ;;  %229 = vst [vmem:[#allocation2 + $0x158] sm:$0x1] %v228_v14  ;;  %v746_v33 = vshll.u32 %v301_v42, 16  ;;  %v230_v19 = vld [vmem:[#allocation2 + $0x164] sm:$0x1] }
 0x13f   :  { %v1867_v44 = vor.u32 %v1866_v57, %v1863_v4  ;;  %v1234_v16 = vld [vmem:[#allocation2 + $0x144] sm:$0xf]  ;;  %v11020_v26 = vcombine.low %v6247_v52, %v6250_v53  ;;  %v745_v54 = vrot.slane %v743_v11, 7  ;;  %v751_v27 = vshrl.u32 %v302_v10, 16  ;;  %v303_v47 = vld [vmem:[%s16523_s0 + $0xd0] sm:$0xf] }
 0x140   :  { %v1878_v24 = vrot.slane %v1877_v51, 4  ;;  %v1885_v30 = vshrl.u32 %v1234_v16, 16  ;;  %v1888_v32 = vshll.u32 %v1234_v16, 16  ;;  %v754_v34 = vshll.u32 %v302_v10, 16  ;;  %v304_v59 = vld [vmem:[%s16523_s0 + $0xd4] sm:$0xf] }
 0x141   :  { %v1868_v36 = vrot.slane %v1867_v44, 4  ;;  %12076 = vmatmul.mubr.msk.bf16.gmra.mrb[16].mxu0 %vm2150_vm12, %v11020_v26  ;;  %v748_v23 = vor.u32 %v746_v33, %v745_v54  ;;  %v749_v37 = vrot.slane %v745_v54, 4  ;;  %v753_v60 = vrot.slane %v751_v27, 7  ;;  %v1135_v38 = vld [vmem:[#allocation2 + $0x150] sm:$0xf] }
 0x142   :  { %v1883_v29 = vsel %vm13312_vm13, %v1878_v24, %v1882_v18  ;;  %v1235_v20 = vld [vmem:[#allocation2 + $0x148] sm:$0xf]  ;;  %v1887_v45 = vrot.slane %v1885_v30, 4  ;;  %v1890_v46 = vrot.slane %v1888_v32, 5  ;;  %v6063_v28 = vld [vmem:[#allocation2 + $0x84] sm:$0xe] }
 0x143   :  { %v1274_v41 = vld [vmem:[#allocation2 + $0x14c] sm:$0x1]  ;;  %v1873_v49 = vsel %vm13312_vm13, %v1868_v36, %v1872_v12  ;;  %v1894_v50 = vshll.u32 %v1235_v20, 16  ;;  %v1898_v40 = vshrl.u32 %v1235_v20, 16  ;;  %v756_v31 = vor.u32 %v754_v34, %v753_v60  ;;  %v6064_v0 = vld [vmem:[#allocation2 + $0x90] sm:$0xe] }
 0x144   :  { %v1904_v15 = vshll.u32 %v1274_v41, 16  ;;  %v10647_v55 = vcombine.low %v1873_v49, %v1883_v29  ;;  %v1891_v56 = vor.u32 %v1890_v46, %v1887_v45  ;;  %v758_v48 = vrot.slane %v753_v60, 4  ;;  %v123_v57 = vld [vmem:[#allocation2 + $0x168] sm:$0x1]  ;;  %v233_v14 = vld [vmem:[#allocation2 + $0x170] sm:$0x1] }
 0x145   :  { %v1896_v58 = vrot.slane %v1894_v50, 5  ;;  %v1900_v61 = vrot.slane %v1898_v40, 4  ;;  %v1136_v63 = vsel %vm13256_vm9, %v748_v23, %v1135_v38  ;;  %v1139_v5 = vld [vmem:[#allocation2 + $0x158] sm:$0x1]  ;;  %v757_v21 = vsel %vm13239_vm8, %v749_v37, %v756_v31  ;;  %v12930_v18 = vld [vmem:[#allocation2 + $0x88] sm:$0xf] }
 0x146   :  { %v1906_v62 = vrot.slane %v1904_v15, 5  ;;  %11777 = vmatprep.mubr.msk.bf16.mxu1 %vm2150_vm12, %v10647_v55  ;;  %v1892_v42 = vrot.slane %v1891_v56, 4  ;;  %1137 = vst [vmem:[#allocation2 + $0x150] sm:$0xf] %v1136_v63  ;;  %v1140_v7 = vsel %vm13204_vm5, %v758_v48, %v1139_v5  ;;  %v121_v25 = vsel %vm13204_vm5, 0, %v120_v39 }
 0x147   :  { %v1901_v9 = vor.u32 %v1900_v61, %v1896_v58  ;;  %1138 = vst.msk [vmem:[#allocation2 + $0x154] sm:$0xf] %vm15_vm1, %v757_v21  ;;  %1141 = vst [vmem:[#allocation2 + $0x158] sm:$0x1] %v1140_v7  ;;  %v231_v52 = vsel %vm13210_vm6, 0, %v230_v19  ;;  %v760_v10 = vshrl.u32 %v303_v47, 16 }
 0x148   :  { %122 = vst [vmem:[#allocation2 + $0x15c] sm:$0x1] %v121_v25  ;;  %v763_v12 = vshll.u32 %v303_v47, 16  ;;  %v1897_v43 = vsel %vm13312_vm13, %v1892_v42, %v1896_v58  ;;  %232 = vst [vmem:[#allocation2 + $0x164] sm:$0x1] %v231_v52  ;;  %v768_v13 = vshrl.u32 %v304_v59, 16 }
 0x149   :  { %v771_v2 = vshll.u32 %v304_v59, 16  ;;  %v10988_v4 = vrot.slane %v6063_v28, 9  ;;  %v1902_v11 = vrot.slane %v1901_v9, 4  ;;  %v762_v51 = vrot.slane %v760_v10, 7  ;;  %v12931_v33 = vld [vmem:[#allocation2 + $0x8c] sm:$0x1] }
 0x14a   :  { %v6253_v53 = vrot.slane %v12930_v18, 5  ;;  %v6256_v44 = vrot.slane %v12931_v33, 5  ;;  %v770_v16 = vrot.slane %v768_v13, 7  ;;  %v10989_v26 = vrot.slane %v6064_v0, 9  ;;  %v12932_v54 = vld [vmem:[#allocation2 + $0x94] sm:$0xf] }
 0x14b   :  { %v6260_v27 = vrot.slane %v12932_v54, 5  ;;  %v12933_v24 = vld [vmem:[#allocation2 + $0x98] sm:$0x1]  ;;  %v1907_v32 = vsel %vm13312_vm13, %v1902_v11, %v1906_v62  ;;  %v765_v34 = vor.u32 %v763_v12, %v762_v51  ;;  %v766_v36 = vrot.slane %v762_v51, 4  ;;  %v306_v55 = vld [vmem:[%s16523_s0 + $0xdc] sm:$0xf] }
 0x14c   :  { %v6263_v30 = vrot.slane %v12933_v24, 5  ;;  %v6254_v23 = vsel %vm13822_vm2, %v10988_v4, %v6253_v53  ;;  %v10648_v37 = vcombine.low %v1897_v43, %v1907_v32  ;;  %v773_v60 = vor.u32 %v771_v2, %v770_v16  ;;  %v305_v19 = vld [vmem:[%s16523_s0 + $0xd8] sm:$0xf]  ;;  %v126_v56 = vld [vmem:[#allocation2 + $0x174] sm:$0x1] }
 0x14d   :  { %v775_v38 = vrot.slane %v770_v16, 4  ;;  %v6255_v39 = vrot.slane %v6253_v53, 4  ;;  %v1236_v29 = vld [vmem:[#allocation2 + $0x150] sm:$0xf]  ;;  %v6261_v20 = vsel %vm13822_vm2, %v10989_v26, %v6260_v27  ;;  %v6262_v41 = vrot.slane %v6260_v27, 4 }
 0x14e   :  { %v124_v45 = vsel %vm13204_vm5, 0, %v123_v57  ;;  %v234_v46 = vsel %vm13210_vm6, 0, %v233_v14  ;;  %11778 = vmatmul.mubr.msk.bf16.gmra.mrb[48].mxu1 %vm2150_vm12, %v10648_v37  ;;  %v1237_v47 = vld [vmem:[#allocation2 + $0x154] sm:$0xf]  ;;  %v1275_v49 = vld [vmem:[#allocation2 + $0x158] sm:$0x1]  ;;  %v774_v15 = vsel %vm13239_vm8, %v766_v36, %v773_v60 }
 0x14f   :  { %v1909_v50 = vshrl.u32 %v1236_v29, 16  ;;  %v1912_v40 = vshll.u32 %v1236_v29, 16  ;;  %v6257_v59 = vsel %vm13822_vm2, %v6255_v39, %v6256_v44  ;;  %125 = vst [vmem:[#allocation2 + $0x168] sm:$0x1] %v124_v45  ;;  %235 = vst [vmem:[#allocation2 + $0x170] sm:$0x1] %v234_v46  ;;  %v6264_v42 = vsel %vm13822_vm2, %v6262_v41, %v6263_v30 }
 0x150   :  { %v1918_v31 = vshll.u32 %v1237_v47, 16  ;;  %v1922_v48 = vshrl.u32 %v1237_v47, 16  ;;  %v1928_v28 = vshll.u32 %v1275_v49, 16  ;;  %v1142_v58 = vld [vmem:[#allocation2 + $0x15c] sm:$0xf]  ;;  %v11021_v61 = vcombine.low %v6254_v23, %v6257_v59 }
 0x151   :  { %1145 = vst.msk [vmem:[#allocation2 + $0x160] sm:$0xf] %vm15_vm1, %v774_v15  ;;  %v1911_v62 = vrot.slane %v1909_v50, 4  ;;  %v1914_v63 = vrot.slane %v1912_v40, 5  ;;  %v1143_v5 = vsel %vm13256_vm9, %v765_v34, %v1142_v58  ;;  %v1146_v0 = vld [vmem:[#allocation2 + $0x164] sm:$0x1]  ;;  %v11022_v43 = vcombine.low %v6261_v20, %v6264_v42 }
 0x152   :  { %v236_v21 = vld [vmem:[#allocation2 + $0x17c] sm:$0x1]  ;;  %v1920_v7 = vrot.slane %v1918_v31, 5  ;;  %v1924_v25 = vrot.slane %v1922_v48, 4  ;;  %v1930_v9 = vrot.slane %v1928_v28, 5  ;;  %v1147_v52 = vsel %vm13204_vm5, %v775_v38, %v1146_v0  ;;  %12079 = vmatprep.mubr.msk.bf16.mxu0 %vm2150_vm12, %v11021_v61 }
 0x153   :  { %1144 = vst [vmem:[#allocation2 + $0x15c] sm:$0xf] %v1143_v5  ;;  %v307_v10 = vld [vmem:[%s16523_s0 + $0xe0] sm:$0xf]  ;;  %v1915_v12 = vor.u32 %v1914_v63, %v1911_v62  ;;  %1148 = vst [vmem:[#allocation2 + $0x164] sm:$0x1] %v1147_v52  ;;  %12080 = vmatmul.mubr.msk.bf16.gmra.mrb[20].mxu0 %vm2150_vm12, %v11022_v43 }
 0x154   :  { %v777_v13 = vshrl.u32 %v305_v19, 16  ;;  %v780_v2 = vshll.u32 %v305_v19, 16  ;;  %v11140_v4 = vld [vmem:[%s16524_s1 + $0xe] sm:$0x3]  ;;  %v1925_v57 = vor.u32 %v1924_v25, %v1920_v7  ;;  %v785_v14 = vshrl.u32 %v306_v55, 16 }
 0x155   :  { %v788_v11 = vshll.u32 %v306_v55, 16  ;;  %v127_v51 = vsel %vm13204_vm5, 0, %v126_v56  ;;  %12843 = vmatprep.subr.msk.bf16.mxu0 %vm2247_vm0, %v11140_v4  ;;  %v1916_v18 = vrot.slane %v1915_v12, 4  ;;  %v237_v33 = vsel %vm13210_vm6, 0, %v236_v21  ;;  %v308_v39 = vld [vmem:[%s16523_s0 + $0xe4] sm:$0xf] }
 0x156   :  { %v779_v53 = vrot.slane %v777_v13, 7  ;;  %128 = vst [vmem:[#allocation2 + $0x174] sm:$0x1] %v127_v51  ;;  %v794_v44 = vshrl.u32 %v307_v10, 16  ;;  %v1926_v16 = vrot.slane %v1925_v57, 4  ;;  %v787_v26 = vrot.slane %v785_v14, 7 }
 0x157   :  { %v1149_v54 = vld [vmem:[#allocation2 + $0x168] sm:$0xf]  ;;  %238 = vst [vmem:[#allocation2 + $0x17c] sm:$0x1] %v237_v33  ;;  %v1921_v27 = vsel %vm13312_vm13, %v1916_v18, %v1920_v7  ;;  %v1153_v38 = vld [vmem:[#allocation2 + $0x170] sm:$0x1] }
 0x158   :  { %v1239_v24 = vld [vmem:[#allocation2 + $0x160] sm:$0xf]  ;;  %v782_v30 = vor.u32 %v780_v2, %v779_v53  ;;  %v783_v32 = vrot.slane %v779_v53, 4  ;;  %v14156_v34 = vrot.slane %v794_v44, 7  ;;  %v1931_v36 = vsel %vm13312_vm13, %v1926_v16, %v1930_v9  ;;  %v6065_v19 = vld [vmem:[#allocation2 + $0x9c] sm:$0xe] }
 0x159   :  { %v1942_v23 = vshll.u32 %v1239_v24, 16  ;;  %v1946_v37 = vshrl.u32 %v1239_v24, 16  ;;  %v790_v60 = vor.u32 %v788_v11, %v787_v26  ;;  %v10649_v29 = vcombine.low %v1921_v27, %v1931_v36  ;;  %v6066_v48 = vld [vmem:[#allocation2 + $0xa8] sm:$0xe]  ;;  %v12934_v52 = vld [vmem:[#allocation2 + $0xa0] sm:$0xf] }
 0x15a   :  { %v1238_v20 = vld [vmem:[#allocation2 + $0x15c] sm:$0xf]  ;;  %v792_v41 = vrot.slane %v787_v26, 4  ;;  %v1150_v45 = vsel %vm13256_vm9, %v782_v30, %v1149_v54  ;;  %v797_v46 = vshll.u32 %v307_v10, 16  ;;  %v1276_v47 = vld [vmem:[#allocation2 + $0x164] sm:$0x1] }
 0x15b   :  { %v1933_v49 = vshrl.u32 %v1238_v20, 16  ;;  %v1936_v50 = vshll.u32 %v1238_v20, 16  ;;  %v1944_v40 = vrot.slane %v1942_v23, 5  ;;  %v1948_v15 = vrot.slane %v1946_v37, 4  ;;  %1151 = vst [vmem:[#allocation2 + $0x168] sm:$0xf] %v1150_v45  ;;  %11781 = vmatprep.mubr.msk.bf16.mxu1 %vm2150_vm12, %v10649_v29 }
 0x15c   :  { %v1952_v59 = vshll.u32 %v1276_v47, 16  ;;  %v791_v55 = vsel %vm13239_vm8, %v783_v32, %v790_v60  ;;  %v1154_v56 = vsel %vm13204_vm5, %v792_v41, %v1153_v38  ;;  %v799_v31 = vor.u32 %v797_v46, %v14156_v34  ;;  %v12935_v43 = vld [vmem:[#allocation2 + $0xa4] sm:$0x1]  ;;  %v12936_v4 = vld [vmem:[#allocation2 + $0xac] sm:$0xf] }
 0x15d   :  { %v1935_v28 = vrot.slane %v1933_v49, 4  ;;  %v1938_v58 = vrot.slane %v1936_v50, 5  ;;  %v1949_v61 = vor.u32 %v1948_v15, %v1944_v40  ;;  %1152 = vst.msk [vmem:[#allocation2 + $0x16c] sm:$0xf] %vm15_vm1, %v791_v55  ;;  %1155 = vst [vmem:[#allocation2 + $0x170] sm:$0x1] %v1154_v56 }
 0x15e   :  { %v800_v62 = vrot.slane %v14156_v34, 4  ;;  %v1156_v63 = vld [vmem:[#allocation2 + $0x174] sm:$0xf]  ;;  %v1954_v5 = vrot.slane %v1952_v59, 5  ;;  %v802_v0 = vshrl.u32 %v308_v39, 16  ;;  %v805_v42 = vshll.u32 %v308_v39, 16 }
 0x15f   :  { %v1157_v21 = vsel %vm13256_vm9, %v799_v31, %v1156_v63  ;;  %v1939_v7 = vor.u32 %v1938_v58, %v1935_v28  ;;  %v1950_v25 = vrot.slane %v1949_v61, 4  ;;  %v10990_v9 = vrot.slane %v6065_v19, 9  ;;  %v1160_v51 = vld [vmem:[#allocation2 + $0x17c] sm:$0x1]  ;;  %v129_v27 = vld [vmem:[#allocation2 + $0x180] sm:$0x1] }
 0x160   :  { %1158 = vst [vmem:[#allocation2 + $0x174] sm:$0xf] %v1157_v21  ;;  %v6267_v10 = vrot.slane %v12934_v52, 5  ;;  %v804_v12 = vrot.slane %v802_v0, 7  ;;  %v6270_v13 = vrot.slane %v12935_v43, 5  ;;  %v10991_v2 = vrot.slane %v6066_v48, 9 }
 0x161   :  { %v6274_v57 = vrot.slane %v12936_v4, 5  ;;  %v1940_v14 = vrot.slane %v1939_v7, 4  ;;  %v1955_v11 = vsel %vm13312_vm13, %v1950_v25, %v1954_v5  ;;  %v239_v36 = vld [vmem:[#allocation2 + $0x188] sm:$0x1]  ;;  %v12937_v50 = vld [vmem:[#allocation2 + $0xb0] sm:$0x1] }
 0x162   :  { %v6268_v18 = vsel %vm13822_vm2, %v10990_v9, %v6267_v10  ;;  %v6269_v53 = vrot.slane %v6267_v10, 4  ;;  %v14179_v33 = vld [vmem:[#allocation2 + $0x168] sm:$0xf]  ;;  %v807_v44 = vor.u32 %v805_v42, %v804_v12  ;;  %v809_v16 = vrot.slane %v804_v12, 4  ;;  %v132_v55 = vld [vmem:[#allocation2 + $0x18c] sm:$0x1] }
 0x163   :  { %v6275_v26 = vsel %vm13822_vm2, %v10991_v2, %v6274_v57  ;;  %v6276_v54 = vrot.slane %v6274_v57, 4  ;;  %v1945_v24 = vsel %vm13312_vm13, %v1940_v14, %v1944_v40  ;;  %v1957_v30 = vshrl.u32 %v14179_v33, 16  ;;  %v309_v19 = vld [vmem:[%s16523_s0 + $0xe8] sm:$0xf]  ;;  %v310_v58 = vld [vmem:[%s16523_s0 + $0xec] sm:$0xf] }
 0x164   :  { %v1960_v32 = vshll.u32 %v14179_v33, 16  ;;  %v6271_v34 = vsel %vm13822_vm2, %v6269_v53, %v6270_v13  ;;  %v10650_v23 = vcombine.low %v1945_v24, %v1955_v11  ;;  %v14189_v37 = vld [vmem:[#allocation2 + $0x16c] sm:$0xf]  ;;  %v1277_v60 = vld [vmem:[#allocation2 + $0x170] sm:$0x1]  ;;  %v808_v38 = vsel %vm13239_vm8, %v800_v62, %v807_v44 }
 0x165   :  { %v1161_v39 = vsel %vm13204_vm5, %v809_v16, %v1160_v51  ;;  %v11023_v29 = vcombine.low %v6268_v18, %v6271_v34  ;;  %v1959_v20 = vrot.slane %v1957_v30, 4  ;;  %v1966_v45 = vshll.u32 %v14189_v37, 16  ;;  %1159 = vst.msk [vmem:[#allocation2 + $0x178] sm:$0xf] %vm15_vm1, %v808_v38  ;;  %v242_v4 = vld [vmem:[#allocation2 + $0x194] sm:$0x1] }
 0x166   :  { %v1962_v41 = vrot.slane %v1960_v32, 5  ;;  %v1970_v46 = vshrl.u32 %v14189_v37, 16  ;;  %1162 = vst [vmem:[#allocation2 + $0x17c] sm:$0x1] %v1161_v39  ;;  %11782 = vmatmul.mubr.msk.bf16.gmra.mrb[52].mxu1 %vm2150_vm12, %v10650_v23  ;;  %v1976_v47 = vshll.u32 %v1277_v60, 16  ;;  %v6277_v40 = vrot.slane %v12937_v50, 5 }
 0x167   :  { %v14202_v49 = vld [vmem:[#allocation2 + $0x174] sm:$0xf]  ;;  %12083 = vmatprep.mubr.msk.bf16.mxu0 %vm2150_vm12, %v11023_v29  ;;  %v130_v15 = vsel %vm13204_vm5, 0, %v129_v27  ;;  %v240_v59 = vsel %vm13210_vm6, 0, %v239_v36  ;;  %v1968_v31 = vrot.slane %v1966_v45, 5  ;;  %v811_v5 = vshrl.u32 %v309_v19, 16 }
 0x168   :  { %v1963_v56 = vor.u32 %v1962_v41, %v1959_v20  ;;  %v1972_v48 = vrot.slane %v1970_v46, 4  ;;  %v1981_v28 = vshrl.u32 %v14202_v49, 16  ;;  %131 = vst [vmem:[#allocation2 + $0x180] sm:$0x1] %v130_v15  ;;  %241 = vst [vmem:[#allocation2 + $0x188] sm:$0x1] %v240_v59  ;;  %v6278_v63 = vsel %vm13822_vm2, %v6276_v54, %v6277_v40 }
 0x169   :  { %v1978_v61 = vrot.slane %v1976_v47, 5  ;;  %v1984_v62 = vshll.u32 %v14202_v49, 16  ;;  %v11024_v7 = vcombine.low %v6275_v26, %v6278_v63  ;;  %v813_v9 = vrot.slane %v811_v5, 7  ;;  %v311_v57 = vld [vmem:[%s16523_s0 + $0xf0] sm:$0xf] }
 0x16a   :  { %v1964_v0 = vrot.slane %v1963_v56, 4  ;;  %v1973_v42 = vor.u32 %v1972_v48, %v1968_v31  ;;  %v1983_v21 = vrot.slane %v1981_v28, 4  ;;  %v814_v52 = vshll.u32 %v309_v19, 16  ;;  %v312_v16 = vld [vmem:[%s16523_s0 + $0xf4] sm:$0xf] }
 0x16b   :  { %v1986_v25 = vrot.slane %v1984_v62, 5  ;;  %v819_v10 = vshrl.u32 %v310_v58, 16  ;;  %12084 = vmatmul.mubr.msk.bf16.gmra.mrb[24].mxu0 %vm2150_vm12, %v11024_v7  ;;  %v822_v13 = vshll.u32 %v310_v58, 16  ;;  %v133_v2 = vsel %vm13204_vm5, 0, %v132_v55  ;;  %v6067_v30 = vld [vmem:[#allocation2 + $0xb4] sm:$0xe] }
 0x16c   :  { %v1969_v12 = vsel %vm13312_vm13, %v1964_v0, %v1968_v31  ;;  %v1974_v43 = vrot.slane %v1973_v42, 4  ;;  %v14224_v14 = vld [vmem:[#allocation2 + $0x178] sm:$0xf]  ;;  %v816_v18 = vor.u32 %v814_v52, %v813_v9  ;;  %v817_v53 = vrot.slane %v813_v9, 4  ;;  %134 = vst [vmem:[#allocation2 + $0x18c] sm:$0x1] %v133_v2 }
 0x16d   :  { %v1278_v11 = vld [vmem:[#allocation2 + $0x17c] sm:$0x1]  ;;  %v1987_v51 = vor.u32 %v1986_v25, %v1983_v21  ;;  %v821_v44 = vrot.slane %v819_v10, 7  ;;  %v1990_v54 = vshll.u32 %v14224_v14, 16  ;;  %v1994_v27 = vshrl.u32 %v14224_v14, 16 }
 0x16e   :  { %v1979_v26 = vsel %vm13312_vm13, %v1974_v43, %v1978_v61  ;;  %v2000_v24 = vshll.u32 %v1278_v11, 16  ;;  %v6068_v45 = vld [vmem:[#allocation2 + $0xc0] sm:$0xe]  ;;  %v243_v47 = vsel %vm13210_vm6, 0, %v242_v4  ;;  %v828_v50 = vshrl.u32 %v311_v57, 16 }
 0x16f   :  { %v10651_v32 = vcombine.low %v1969_v12, %v1979_v26  ;;  %v1988_v34 = vrot.slane %v1987_v51, 4  ;;  %v824_v36 = vor.u32 %v822_v13, %v821_v44  ;;  %v826_v23 = vrot.slane %v821_v44, 4  ;;  %v1163_v60 = vld [vmem:[#allocation2 + $0x180] sm:$0xf]  ;;  %v1167_v38 = vld [vmem:[#allocation2 + $0x188] sm:$0x1] }
 0x170   :  { %v1992_v39 = vrot.slane %v1990_v54, 5  ;;  %v1996_v29 = vrot.slane %v1994_v27, 4  ;;  %v2002_v20 = vrot.slane %v2000_v24, 5  ;;  %v1164_v41 = vsel %vm13256_vm9, %v816_v18, %v1163_v60  ;;  %244 = vst [vmem:[#allocation2 + $0x194] sm:$0x1] %v243_v47 }
 0x171   :  { %11785 = vmatprep.mubr.msk.bf16.mxu1 %vm2150_vm12, %v10651_v32  ;;  %v825_v46 = vsel %vm13239_vm8, %v817_v53, %v824_v36  ;;  %1165 = vst [vmem:[#allocation2 + $0x180] sm:$0xf] %v1164_v41  ;;  %v1168_v19 = vsel %vm13204_vm5, %v826_v23, %v1167_v38  ;;  %v831_v59 = vshll.u32 %v311_v57, 16  ;;  %v836_v55 = vshrl.u32 %v312_v16, 16  ;;  %v12938_v28 = vld [vmem:[#allocation2 + $0xb8] sm:$0xf] }
 0x172   :  { %v1993_v40 = vsel %vm13312_vm13, %v1988_v34, %v1992_v39  ;;  %v1997_v15 = vor.u32 %v1996_v29, %v1992_v39  ;;  %1166 = vst.msk [vmem:[#allocation2 + $0x184] sm:$0xf] %vm15_vm1, %v825_v46  ;;  %1169 = vst [vmem:[#allocation2 + $0x188] sm:$0x1] %v1168_v19  ;;  %v830_v56 = vrot.slane %v828_v50, 7  ;;  %v839_v31 = vshll.u32 %v312_v16, 16 }
 0x173   :  { %v10992_v48 = vrot.slane %v6067_v30, 9  ;;  %v6281_v58 = vrot.slane %v12938_v28, 5  ;;  %v838_v62 = vrot.slane %v836_v55, 7  ;;  %v1170_v63 = vld [vmem:[#allocation2 + $0x18c] sm:$0xf]  ;;  %v10993_v42 = vrot.slane %v6068_v45, 9 }
 0x174   :  { %v1998_v61 = vrot.slane %v1997_v15, 4  ;;  %v12939_v5 = vld [vmem:[#allocation2 + $0xbc] sm:$0x1]  ;;  %v833_v21 = vor.u32 %v831_v59, %v830_v56  ;;  %v834_v7 = vrot.slane %v830_v56, 4  ;;  %v12940_v43 = vld [vmem:[#allocation2 + $0xc4] sm:$0xf] }
 0x175   :  { %v6284_v0 = vrot.slane %v12939_v5, 5  ;;  %v6282_v25 = vsel %vm13822_vm2, %v10992_v48, %v6281_v58  ;;  %v6283_v9 = vrot.slane %v6281_v58, 4  ;;  %v841_v10 = vor.u32 %v839_v31, %v838_v62  ;;  %v12941_v11 = vld [vmem:[#allocation2 + $0xc8] sm:$0x1] }
 0x176   :  { %v2003_v52 = vsel %vm13312_vm13, %v1998_v61, %v2002_v20  ;;  %v843_v12 = vrot.slane %v838_v62, 4  ;;  %v6288_v13 = vrot.slane %v12940_v43, 5  ;;  %v1171_v4 = vsel %vm13256_vm9, %v833_v21, %v1170_v63 }
 0x177   :  { %v10652_v2 = vcombine.low %v1993_v40, %v2003_v52  ;;  %v6285_v57 = vsel %vm13822_vm2, %v6283_v9, %v6284_v0  ;;  %v6291_v51 = vrot.slane %v12941_v11, 5 }
 0x178   :  { %9 = vsyncpa [#allocation4], 0  ;;  %v14253_v18 = vld [vmem:[#allocation2 + $0x180] sm:$0xf]  ;;  %v842_v53 = vsel %vm13239_vm8, %v834_v7, %v841_v10  ;;  %1172 = vst [vmem:[#allocation2 + $0x18c] sm:$0xf] %v1171_v4  ;;  %v11025_v44 = vcombine.low %v6282_v25, %v6285_v57  ;;  %v6289_v16 = vsel %vm13822_vm2, %v10993_v42, %v6288_v13 }
 0x179   :  { %v6290_v26 = vrot.slane %v6288_v13, 4  ;;  %v4688_v54 = vld [vmem:[#allocation2 + $0xe8] sm:$0xf]  ;;  %v4689_v27 = vld [vmem:[#allocation2 + $0xec] sm:$0x1]  ;;  %11786 = vmatmul.mubr.msk.bf16.gmra.mrb[56].mxu1 %vm2150_vm12, %v10652_v2  ;;  %v2005_v34 = vshrl.u32 %v14253_v18, 16 }
 0x17a   :  { %v6069_v24 = vld [vmem:[#allocation2 + $0xe4] sm:$0xe]  ;;  %v1279_v32 = vld [vmem:[#allocation2 + $0x188] sm:$0x1]  ;;  %v2008_v36 = vshll.u32 %v14253_v18, 16  ;;  %12087 = vmatprep.mubr.msk.bf16.mxu0 %vm2150_vm12, %v11025_v44  ;;  %v6295_v15 = vrot.slane %v4688_v54, 5 }
 0x17b   :  { %v14260_v30 = vld [vmem:[#allocation2 + $0x184] sm:$0xf]  ;;  %1173 = vst.msk [vmem:[#allocation2 + $0x190] sm:$0xf] %vm15_vm1, %v842_v53  ;;  %v2024_v38 = vshll.u32 %v1279_v32, 16  ;;  %v6292_v29 = vsel %vm13822_vm2, %v6290_v26, %v6291_v51  ;;  %v2007_v20 = vrot.slane %v2005_v34, 4 }
 0x17c   :  { %v2014_v23 = vshll.u32 %v14260_v30, 16  ;;  %v2018_v60 = vshrl.u32 %v14260_v30, 16  ;;  %v1174_v39 = vld [vmem:[#allocation2 + $0x194] sm:$0x1]  ;;  %v2010_v41 = vrot.slane %v2008_v36, 5  ;;  %v11026_v46 = vcombine.low %v6289_v16, %v6292_v29 }
 0x17d   :  { %v1175_v45 = vsel %vm13204_vm5, %v843_v12, %v1174_v39  ;;  %v10994_v50 = vrot.slane %v6069_v24, 9  ;;  %v6298_v59 = vrot.slane %v4689_v27, 5  ;;  %v6070_v55 = vld [vmem:[#allocation2 + $0xf0] sm:$0xe]  ;;  %v2026_v31 = vrot.slane %v2024_v38, 5 }
 0x17e   :  { %v2016_v19 = vrot.slane %v2014_v23, 5  ;;  %v2020_v47 = vrot.slane %v2018_v60, 4  ;;  %1176 = vst [vmem:[#allocation2 + $0x194] sm:$0x1] %v1175_v45  ;;  %v2011_v40 = vor.u32 %v2010_v41, %v2007_v20  ;;  %12088 = vmatmul.mubr.msk.bf16.gmra.mrb[28].mxu0 %vm2150_vm12, %v11026_v46  ;;  %v6297_v61 = vrot.slane %v6295_v15, 4 }
 0x17f   :  { %v14273_v28 = vld [vmem:[#allocation2 + $0x18c] sm:$0xf]  ;;  %v6296_v58 = vsel %vm13822_vm2, %v10994_v50, %v6295_v15  ;;  %v10995_v42 = vrot.slane %v6070_v55, 9  ;;  %v14287_v52 = vld [vmem:[#allocation2 + $0xf4] sm:$0xf] }
 0x180   :  { %v2021_v56 = vor.u32 %v2020_v47, %v2016_v19  ;;  %v2012_v48 = vrot.slane %v2011_v40, 4  ;;  %v2029_v5 = vshrl.u32 %v14273_v28, 16  ;;  %v2032_v0 = vshll.u32 %v14273_v28, 16  ;;  %v14289_v10 = vld [vmem:[#allocation2 + $0xf8] sm:$0x1] }
 0x181   :  { %v6299_v9 = vsel %vm13822_vm2, %v6297_v61, %v6298_v59  ;;  %v4694_v4 = vld [vmem:[#allocation2 + $0x100] sm:$0xf]  ;;  %v6071_v57 = vld [vmem:[#allocation2 + $0xfc] sm:$0xe]  ;;  %v4695_v16 = vld [vmem:[#allocation2 + $0x104] sm:$0x1] }
 0x182   :  { %v2022_v62 = vrot.slane %v2021_v56, 4  ;;  %v14277_v63 = vld [vmem:[#allocation2 + $0x190] sm:$0xf]  ;;  %v2017_v21 = vsel %vm13312_vm13, %v2012_v48, %v2016_v19  ;;  %v2031_v43 = vrot.slane %v2029_v5, 4  ;;  %v2034_v13 = vrot.slane %v2032_v0, 5 }
 0x183   :  { %v2038_v7 = vshll.u32 %v14277_v63, 16  ;;  %v2042_v25 = vshrl.u32 %v14277_v63, 16  ;;  %v11027_v2 = vcombine.low %v6296_v58, %v6299_v9  ;;  %v6302_v27 = vrot.slane %v14287_v52, 5  ;;  %v4697_v24 = vld [vmem:[#allocation2 + $0x10c] sm:$0xf] }
 0x184   :  { %v2027_v12 = vsel %vm13312_vm13, %v2022_v62, %v2026_v31  ;;  %v2035_v26 = vor.u32 %v2034_v13, %v2031_v43  ;;  %v6072_v32 = vld [vmem:[#allocation2 + $0x108] sm:$0xe]  ;;  %v6305_v36 = vrot.slane %v14289_v10, 5  ;;  %v10996_v23 = vrot.slane %v6071_v57, 9  ;;  %v4698_v60 = vld [vmem:[#allocation2 + $0x110] sm:$0x1] }
 0x185   :  { %v10653_v11 = vcombine.low %v2017_v21, %v2027_v12  ;;  %v1280_v51 = vld [vmem:[#allocation2 + $0x194] sm:$0x1]  ;;  %v2040_v53 = vrot.slane %v2038_v7, 5  ;;  %v2044_v44 = vrot.slane %v2042_v25, 4  ;;  %12091 = vmatprep.mubr.msk.bf16.mxu0 %vm2150_vm12, %v11027_v2  ;;  %v6303_v29 = vsel %vm13822_vm2, %v10995_v42, %v6302_v27  ;;  %v4700_v41 = vld [vmem:[#allocation2 + $0x118] sm:$0xf] }
 0x186   :  { %v2048_v54 = vshll.u32 %v1280_v51, 16  ;;  %v2036_v38 = vrot.slane %v2035_v26, 4  ;;  %v6304_v20 = vrot.slane %v6302_v27, 4  ;;  %v4701_v45 = vld [vmem:[#allocation2 + $0x11c] sm:$0x1]  ;;  %v6309_v15 = vrot.slane %v4694_v4, 5 }
 0x187   :  { %11789 = vmatprep.mubr.msk.bf16.mxu1 %vm2150_vm12, %v10653_v11  ;;  %v2045_v34 = vor.u32 %v2044_v44, %v2040_v53  ;;  %v6073_v46 = vld [vmem:[#allocation2 + $0x114] sm:$0xe]  ;;  %v14299_v47 = vld [vmem:[#allocation2 + $0x4] sm:$0xf]  ;;  %v12943_v50 = vld [vmem:[#allocation2] sm:$0xf] }
 0x188   :  { %v2050_v39 = vrot.slane %v2048_v54, 5  ;;  %v10687_v40 = vcombine.low %v12943_v50, %v14299_v47  ;;  %v6312_v59 = vrot.slane %v4695_v16, 5  ;;  %v2041_v55 = vsel %vm13312_vm13, %v2036_v38, %v2040_v53  ;;  %v4703_v0 = vld [vmem:[#allocation2 + $0x124] sm:$0xf]  ;;  %v4706_v13 = vld [vmem:[#allocation2 + $0x130] sm:$0xf] }
 0x189   :  { %v2046_v19 = vrot.slane %v2045_v34, 4  ;;  %v6306_v56 = vsel %vm13822_vm2, %v6304_v20, %v6305_v36  ;;  %v10997_v31 = vrot.slane %v6072_v32, 9  ;;  %v6316_v48 = vrot.slane %v4697_v24, 5  ;;  %v4704_v44 = vld [vmem:[#allocation2 + $0x128] sm:$0x1] }
 0x18a   :  { %v11028_v61 = vcombine.low %v6303_v29, %v6306_v56  ;;  %v6310_v62 = vsel %vm13822_vm2, %v10996_v23, %v6309_v15  ;;  %v6311_v5 = vrot.slane %v6309_v15, 4  ;;  %v6319_v7 = vrot.slane %v4698_v60, 5  ;;  %v6074_v16 = vld [vmem:[#allocation2 + $0x120] sm:$0xe]  ;;  %v4707_v26 = vld [vmem:[#allocation2 + $0x134] sm:$0x1] }
 0x18b   :  { %v2051_v58 = vsel %vm13312_vm13, %v2046_v19, %v2050_v39  ;;  %v6318_v21 = vrot.slane %v6316_v48, 4  ;;  %v10998_v9 = vrot.slane %v6073_v46, 9  ;;  %v6323_v12 = vrot.slane %v4700_v41, 5  ;;  %v6075_v54 = vld [vmem:[#allocation2 + $0x12c] sm:$0xe] }
 0x18c   :  { %v10654_v42 = vcombine.low %v2041_v55, %v2051_v58  ;;  %12092 = vmatmul.mubr.msk.bf16.gmra.mrb[32].mxu0 %vm2150_vm12, %v11028_v61  ;;  %v6313_v25 = vsel %vm13822_vm2, %v6311_v5, %v6312_v59  ;;  %v6326_v43 = vrot.slane %v4701_v45, 5  ;;  %v6317_v4 = vsel %vm13822_vm2, %v10997_v31, %v6316_v48  ;;  %v12944_v24 = vld [vmem:[#allocation2 + $0xc] sm:$0xf]  ;;  %v14322_v32 = vld [vmem:[#allocation2 + $0x10] sm:$0xf] }
 0x18d   :  { %v11029_v2 = vcombine.low %v6310_v62, %v6313_v25  ;;  %v6320_v57 = vsel %vm13822_vm2, %v6318_v21, %v6319_v7  ;;  %v6330_v11 = vrot.slane %v4703_v0, 5  ;;  %v6324_v51 = vsel %vm13822_vm2, %v10998_v9, %v6323_v12  ;;  %v4709_v20 = vld [vmem:[#allocation2 + $0x13c] sm:$0xf]  ;;  %v12946_v41 = vld [vmem:[#allocation2 + $0x18] sm:$0xf] }
 0x18e   :  { %11790 = vmatmul.mubr.msk.bf16.gmra.mrb[60].mxu1 %vm2150_vm12, %v10654_v42  ;;  %v6325_v53 = vrot.slane %v6323_v12, 4  ;;  %v6337_v27 = vrot.slane %v4706_v13, 5  ;;  %v10688_v34 = vcombine.low %v12944_v24, %v14322_v32  ;;  %v11030_v36 = vcombine.low %v6317_v4, %v6320_v57  ;;  %v14327_v45 = vld [vmem:[#allocation2 + $0x1c] sm:$0xf]  ;;  %v12948_v15 = vld [vmem:[%s16524_s1 + $0x4] sm:$0x3] }
 0x18f   :  { %11795 = vmatprep.mubr.msk.bf16.mxu1 %vm2150_vm12, %v10687_v40  ;;  %12095 = vmatprep.mubr.msk.bf16.mxu0 %vm2150_vm12, %v11029_v2  ;;  %v10999_v38 = vrot.slane %v6074_v16, 9  ;;  %v6332_v39 = vrot.slane %v6330_v11, 4  ;;  %v6333_v29 = vrot.slane %v4704_v44, 5  ;;  %v10689_v46 = vcombine.low %v12946_v41, %v14327_v45  ;;  %v4712_v55 = vld [vmem:[#allocation2 + $0x148] sm:$0xf] }
 0x190   :  { %v6327_v23 = vsel %vm13822_vm2, %v6325_v53, %v6326_v43  ;;  %v11000_v19 = vrot.slane %v6075_v54, 9  ;;  %v6339_v50 = vrot.slane %v6337_v27, 4  ;;  %v6340_v40 = vrot.slane %v4707_v26, 5  ;;  %v4710_v58 = vld [vmem:[#allocation2 + $0x140] sm:$0x1] }
 0x191   :  { %v11031_v60 = vcombine.low %v6324_v51, %v6327_v23  ;;  %v3606_v59 = vsel %vm2247_vm0, %v12948_v15, 0  ;;  %v6344_v56 = vrot.slane %v4709_v20, 5  ;;  %v6331_v31 = vsel %vm13822_vm2, %v10999_v38, %v6330_v11  ;;  %v6076_v61 = vld [vmem:[#allocation2 + $0x138] sm:$0xe]  ;;  %v14344_v62 = vld [vmem:[%s16524_s1 + $0x6] sm:$0x3] }
 0x192   :  { %v6334_v48 = vsel %vm13822_vm2, %v6332_v39, %v6333_v29  ;;  %v6338_v5 = vsel %vm13822_vm2, %v11000_v19, %v6337_v27  ;;  %v6341_v0 = vsel %vm13822_vm2, %v6339_v50, %v6340_v40  ;;  %v6351_v42 = vrot.slane %v4712_v55, 5  ;;  %v4713_v21 = vld [vmem:[#allocation2 + $0x14c] sm:$0x1]  ;;  %v6077_v7 = vld [vmem:[#allocation2 + $0x144] sm:$0xe] }
 0x193   :  { %v11032_v25 = vcombine.low %v6331_v31, %v6334_v48  ;;  %v11001_v9 = vrot.slane %v6076_v61, 9  ;;  %v6346_v12 = vrot.slane %v6344_v56, 4  ;;  %v6347_v43 = vrot.slane %v4710_v58, 5  ;;  %v14353_v13 = vld [vmem:[#allocation2 + $0x28] sm:$0xf] }
 0x194   :  { %12096 = vmatmul.mubr.msk.bf16.gmra.mrb[36].mxu0 %vm2150_vm12, %v11030_v36  ;;  %v12950_v2 = vld [vmem:[#allocation2 + $0x24] sm:$0xf]  ;;  %v11033_v57 = vcombine.low %v6338_v5, %v6341_v0  ;;  %v4715_v11 = vld [vmem:[#allocation2 + $0x154] sm:$0xf]  ;;  %v12951_v51 = vld [vmem:[#allocation2 + $0x30] sm:$0xf] }
 0x195   :  { %12099 = vmatprep.mubr.msk.bf16.mxu0 %vm2150_vm12, %v11031_v60  ;;  %v10690_v4 = vcombine.low %v12950_v2, %v14353_v13  ;;  %v14356_v53 = vld [vmem:[#allocation2 + $0x34] sm:$0xf]  ;;  %v11002_v16 = vrot.slane %v6077_v7, 9  ;;  %v6353_v26 = vrot.slane %v6351_v42, 4  ;;  %v6354_v54 = vrot.slane %v4713_v21, 5 }
 0x196   :  { %11796 = vmatmul.mubr.msk.bf16.vlgmr.msra.gmra.mrb[0].mxu1 %vm2150_vm12, %v10688_v34  ;;  %v10691_v44 = vcombine.low %v12951_v51, %v14356_v53  ;;  %v4718_v27 = vld [vmem:[#allocation2 + $0x160] sm:$0xf]  ;;  %v6345_v24 = vsel %vm13822_vm2, %v11001_v9, %v6344_v56  ;;  %v6348_v34 = vsel %vm13822_vm2, %v6346_v12, %v6347_v43  ;;  %v6078_v36 = vld [vmem:[#allocation2 + $0x150] sm:$0xe]  ;;  %v6358_v23 = vrot.slane %v4715_v11, 5 }
 0x197   :  { %11860 = vmatpush3.bf16.msra.mxu1 %v3606_v59  ;;  %11799 = vmatprep.mubr.msk.bf16.mxu1 %vm2150_vm12, %v10689_v46  ;;  %v135_v60 = vld [vmem:[#allocation2 + $0x198] sm:$0x1]  ;;  %v6365_v39 = vrot.slane %v4718_v27, 5  ;;  %v245_v29 = vld [vmem:[#allocation2 + $0x1a0] sm:$0x1]  ;;  %v6352_v20 = vsel %vm13822_vm2, %v11002_v16, %v6351_v42  ;;  %v6355_v41 = vsel %vm13822_vm2, %v6353_v26, %v6354_v54  ;;  %v11034_v59 = vcombine.low %v6345_v24, %v6348_v34 }
 0x198   :  { %12838 = vmatprep.subr.msk.bf16.mxu1 %vm2247_vm0, %v14344_v62  ;;  %v4716_v38 = vld [vmem:[#allocation2 + $0x158] sm:$0x1]  ;;  %v4719_v46 = vld [vmem:[#allocation2 + $0x164] sm:$0x1]  ;;  %v6079_v19 = vld [vmem:[#allocation2 + $0x15c] sm:$0xe]  ;;  %v11035_v42 = vcombine.low %v6352_v20, %v6355_v41 }
 0x199   :  { %v12953_v50 = vld [vmem:[#allocation2 + $0x3c] sm:$0xf]  ;;  %v14371_v40 = vld [vmem:[#allocation2 + $0x40] sm:$0xf]  ;;  %v11003_v55 = vrot.slane %v6078_v36, 9  ;;  %v6360_v48 = vrot.slane %v6358_v23, 4 }
 0x19a   :  { %v10692_v15 = vcombine.low %v12953_v50, %v14371_v40  ;;  %v313_v56 = vld [vmem:[%s16523_s0 + $0xf8] sm:$0xf]  ;;  %v314_v31 = vld [vmem:[%s16523_s0 + $0xfc] sm:$0xf]  ;;  %v6361_v58 = vrot.slane %v4716_v38, 5  ;;  %v136_v5 = vsel %vm13204_vm5, 0, %v135_v60 }
 0x19b   :  { %v14380_v61 = vld [vmem:[#allocation2 + $0x16c] sm:$0xf]  ;;  %v246_v0 = vsel %vm13210_vm6, 0, %v245_v29  ;;  %v11004_v21 = vrot.slane %v6079_v19, 9  ;;  %v6367_v7 = vrot.slane %v6365_v39, 4  ;;  %v853_v11 = vshrl.u32 %v314_v31, 16 }
 0x19c   :  { %12100 = vmatmul.mubr.msk.bf16.gmra.mrb[40].mxu0 %vm2150_vm12, %v11032_v25  ;;  %v6368_v25 = vrot.slane %v4719_v46, 5  ;;  %v14386_v9 = vld [vmem:[#allocation2 + $0x178] sm:$0xf]  ;;  %137 = vst [vmem:[#allocation2 + $0x198] sm:$0x1] %v136_v5  ;;  %v856_v16 = vshll.u32 %v314_v31, 16  ;;  %v6362_v26 = vsel %vm13822_vm2, %v6360_v48, %v6361_v58 }
 0x19d   :  { %12103 = vmatprep.mubr.msk.bf16.mxu0 %vm2150_vm12, %v11033_v57  ;;  %247 = vst [vmem:[#allocation2 + $0x1a0] sm:$0x1] %v246_v0  ;;  %v14388_v12 = vld [vmem:[#allocation2 + $0x4c] sm:$0xf]  ;;  %v12956_v43 = vld [vmem:[#allocation2 + $0x48] sm:$0xf]  ;;  %v6366_v34 = vsel %vm13822_vm2, %v11004_v21, %v6365_v39 }
 0x19e   :  { %11800 = vmatmul.mubr.msk.bf16.gmra.mrb[4].mxu1 %vm2150_vm12, %v10690_v4  ;;  %v10693_v2 = vcombine.low %v12956_v43, %v14388_v12  ;;  %v845_v4 = vshrl.u32 %v313_v56, 16  ;;  %v848_v57 = vshll.u32 %v313_v56, 16  ;;  %v84_v51 = vld [vmem:[#allocation2 + $0xcc] sm:$0x1]  ;;  %v6372_v54 = vrot.slane %v14380_v61, 5 }
 0x19f   :  { %11803 = vmatprep.mubr.msk.bf16.mxu1 %vm2150_vm12, %v10691_v44  ;;  %v6359_v44 = vsel %vm13822_vm2, %v11003_v55, %v6358_v23  ;;  %v855_v24 = vrot.slane %v853_v11, 7  ;;  %v6369_v36 = vsel %vm13822_vm2, %v6367_v7, %v6368_v25  ;;  %v6080_v23 = vld [vmem:[#allocation2 + $0x168] sm:$0xe]  ;;  %v6379_v60 = vrot.slane %v14386_v9, 5  ;;  %v4722_v29 = vld [vmem:[#allocation2 + $0x170] sm:$0x1] }
 0x1a0   :  { %v847_v27 = vrot.slane %v845_v4, 7  ;;  %v85_v38 = vsel %vm13204_vm5, 0, %v84_v51  ;;  %v12957_v50 = vld [vmem:[#allocation2 + $0x54] sm:$0xf]  ;;  %v11036_v56 = vcombine.low %v6359_v44, %v6362_v26  ;;  %v11005_v31 = vrot.slane %v6080_v23, 9 }
 0x1a1   :  { %v858_v46 = vor.u32 %v856_v16, %v855_v24  ;;  %v860_v19 = vrot.slane %v855_v24, 4  ;;  %86 = vst [vmem:[#allocation2 + $0xcc] sm:$0x1] %v85_v38  ;;  %v6081_v55 = vld [vmem:[#allocation2 + $0x174] sm:$0xe]  ;;  %v6374_v48 = vrot.slane %v6372_v54, 4  ;;  %v11037_v0 = vcombine.low %v6366_v34, %v6369_v36 }
 0x1a2   :  { %v850_v20 = vor.u32 %v848_v57, %v847_v27  ;;  %v851_v41 = vrot.slane %v847_v27, 4  ;;  %v4727_v21 = vld [vmem:[#allocation2 + $0x184] sm:$0xf]  ;;  %v12959_v9 = vld [vmem:[#allocation2 + $0x60] sm:$0xf]  ;;  %v11006_v22 = vrot.slane %v6081_v55, 9  ;;  %v6373_v44 = vsel %vm13822_vm2, %v11005_v31, %v6372_v54 }
 0x1a3   :  { %v1177_v61 = vld [vmem:[#allocation2 + $0x198] sm:$0xf]  ;;  %v14417_v43 = vld [vmem:[#allocation2 + $0x64] sm:$0xf]  ;;  %v6381_v4 = vrot.slane %v6379_v60, 4  ;;  %v6386_v51 = vrot.slane %v4727_v21, 5 }
 0x1a4   :  { %12104 = vmatmul.mubr.msk.bf16.gmra.mrb[44].mxu0 %vm2150_vm12, %v11034_v59  ;;  %v4725_v59 = vld [vmem:[#allocation2 + $0x17c] sm:$0x1]  ;;  %v859_v58 = vsel %vm13239_vm8, %v851_v41, %v858_v46  ;;  %v1181_v5 = vld [vmem:[#allocation2 + $0x1a0] sm:$0x1]  ;;  %v1178_v7 = vsel %vm13256_vm9, %v850_v20, %v1177_v61  ;;  %v4730_v11 = vld [vmem:[#allocation2 + $0x190] sm:$0xf]  ;;  %v6380_v24 = vsel %vm13822_vm2, %v11006_v22, %v6379_v60 }
 0x1a5   :  { %12107 = vmatprep.mubr.msk.bf16.mxu0 %vm2150_vm12, %v11035_v42  ;;  %v6375_v42 = vrot.slane %v4722_v29, 5  ;;  %1180 = vst.msk [vmem:[#allocation2 + $0x19c] sm:$0xf] %vm15_vm1, %v859_v58  ;;  %v1182_v25 = vsel %vm13204_vm5, %v860_v19, %v1181_v5  ;;  %v6382_v57 = vrot.slane %v4725_v59, 5  ;;  %1179 = vst [vmem:[#allocation2 + $0x198] sm:$0xf] %v1178_v7 }
 0x1a6   :  { %11804 = vmatmul.mubr.msk.bf16.gmra.mrb[8].mxu1 %vm2150_vm12, %v10692_v15  ;;  %v14407_v15 = vld [vmem:[#allocation2 + $0x58] sm:$0xf]  ;;  %1183 = vst [vmem:[#allocation2 + $0x1a0] sm:$0x1] %v1182_v25  ;;  %v6082_v35 = vld [vmem:[#allocation2 + $0x180] sm:$0xe] }
 0x1a7   :  { %11807 = vmatprep.mubr.msk.bf16.mxu1 %vm2150_vm12, %v10693_v2  ;;  %v10694_v39 = vcombine.low %v12957_v50, %v14407_v15  ;;  %v10695_v2 = vcombine.low %v12959_v9, %v14417_v43  ;;  %v6376_v16 = vsel %vm13822_vm2, %v6374_v48, %v6375_v42  ;;  %v4728_v26 = vld [vmem:[#allocation2 + $0x188] sm:$0x1]  ;;  %v6393_v27 = vrot.slane %v4730_v11, 5  ;;  %v4731_v36 = vld [vmem:[#allocation2 + $0x194] sm:$0x1] }
 0x1a8   :  { %v6383_v34 = vsel %vm13822_vm2, %v6381_v4, %v6382_v57  ;;  %v6083_v23 = vld [vmem:[#allocation2 + $0x18c] sm:$0xe]  ;;  %v14432_v38 = vld [vmem:[#allocation2 + $0x70] sm:$0xf]  ;;  %v11038_v20 = vcombine.low %v6373_v44, %v6376_v16  ;;  %v11007_v41 = vrot.slane %v6082_v35, 9  ;;  %v6388_v46 = vrot.slane %v6386_v51, 4 }
 0x1a9   :  { %v12962_v29 = vld [vmem:[#allocation2 + $0x6c] sm:$0xf]  ;;  %v6389_v19 = vrot.slane %v4728_v26, 5  ;;  %v11039_v50 = vcombine.low %v6380_v24, %v6383_v34  ;;  %v6395_v59 = vrot.slane %v6393_v27, 4  ;;  %v6396_v55 = vrot.slane %v4731_v36, 5 }
 0x1aa   :  { %v10696_v54 = vcombine.low %v12962_v29, %v14432_v38  ;;  %v14435_v60 = vld [vmem:[#allocation2 + $0x7c] sm:$0xf]  ;;  %v6387_v58 = vsel %vm13822_vm2, %v11007_v41, %v6386_v51  ;;  %v12965_v25 = vld [vmem:[#allocation2 + $0x84] sm:$0xf]  ;;  %v14450_v9 = vld [vmem:[#allocation2 + $0x88] sm:$0xf] }
 0x1ab   :  { %v6390_v61 = vsel %vm13822_vm2, %v6388_v46, %v6389_v19  ;;  %v6397_v42 = vsel %vm13822_vm2, %v6395_v59, %v6396_v55  ;;  %v12967_v51 = vld [vmem:[#allocation2 + $0x90] sm:$0xf]  ;;  %v14453_v44 = vld [vmem:[#allocation2 + $0x94] sm:$0xf]  ;;  %v12969_v34 = vld [vmem:[#allocation2 + $0x9c] sm:$0xf] }
 0x1ac   :  { %12108 = vmatmul.mubr.msk.bf16.gmra.mrb[48].mxu0 %vm2150_vm12, %v11036_v56  ;;  %v12963_v56 = vld [vmem:[#allocation2 + $0x78] sm:$0xf]  ;;  %v4733_v48 = vld [vmem:[#allocation2 + $0x19c] sm:$0xf]  ;;  %v11040_v22 = vcombine.low %v6387_v58, %v6390_v61  ;;  %v10699_v16 = vcombine.low %v12967_v51, %v14453_v44  ;;  %v14464_v36 = vld [vmem:[#allocation2 + $0xa0] sm:$0xf] }
 0x1ad   :  { %12111 = vmatprep.mubr.msk.bf16.mxu0 %vm2150_vm12, %v11037_v0  ;;  %v10697_v31 = vcombine.low %v12963_v56, %v14435_v60  ;;  %v6400_v5 = vrot.slane %v4733_v48, 5  ;;  %v4734_v21 = vld [vmem:[#allocation2 + $0x1a0] sm:$0x1]  ;;  %v6084_v7 = vld [vmem:[#allocation2 + $0x198] sm:$0xe]  ;;  %v12849_v61 = vld [vmem:[#allocation2 + $0x30] sm:$0xff]  }
 0x1ae   :  { %11808 = vmatmul.mubr.msk.bf16.gmra.mrb[12].mxu1 %vm2150_vm12, %v10694_v39  ;;  %v11008_v39 = vrot.slane %v6083_v23, 9  ;;  %v11009_v57 = vrot.slane %v6084_v7, 9  ;;  %v6403_v35 = vrot.slane %v4734_v21, 5  ;;  %v10700_v23 = vcombine.low %v12969_v34, %v14464_v36  ;;  %v12847_v29 = vld [vmem:[#allocation2 + $0x18] sm:$0xff]   ;;  %v138_v46 = vld [vmem:[#allocation2 + $0x1a4] sm:$0x1] }
 0x1af   :  { %11811 = vmatprep.mubr.msk.bf16.mxu1 %vm2150_vm12, %v10695_v2  ;;  %v10698_v2 = vcombine.low %v12965_v25, %v14450_v9  ;;  %v6402_v11 = vrot.slane %v6400_v5, 4  ;;  %v139_v19 = vsel %vm13204_vm5, 0, %v138_v46  ;;  %v14476_v59 = vld [vmem:[#allocation2 + $0xb8] sm:$0xf]  ;;  %v12977_v6 = vld [vmem:[%s16524_s1 + $0xe] sm:$0x3] }
 0x1b0   :  { %v6394_v0 = vsel %vm13822_vm2, %v11008_v39, %v6393_v27  ;;  %v6401_v26 = vsel %vm13822_vm2, %v11009_v57, %v6400_v5  ;;  %140 = vst [vmem:[#allocation2 + $0x1a4] sm:$0x1] %v139_v19  ;;  %v12973_v39 = vld [vmem:[#allocation2 + $0xb4] sm:$0xf]  ;;  %v12975_v56 = vld [vmem:[#allocation2 + $0xd8] sm:$0xf] }
 0x1b1   :  { %v11041_v4 = vcombine.low %v6394_v0, %v6397_v42  ;;  %v6404_v27 = vsel %vm13822_vm2, %v6402_v11, %v6403_v35  ;;  %v10702_v55 = vcombine.low %v12973_v39, %v14476_v59  ;;  %v8693_v58 = vsel %vm2247_vm0, %v12977_v6, 0  ;;  %v12850_v5 = vld [vmem:[#allocation2 + $0x3c] sm:$0xff]   ;;  %v12978_v0 = vld [vmem:[#allocation2 + $0xe4] sm:$0xf]  ;;  %v14490_v42 = vld [vmem:[#allocation2 + $0xe8] sm:$0xf] }
 0x1b2   :  { %v11042_v24 = vcombine.low %v6401_v26, %v6404_v27  ;;  %v10704_v21 = vcombine.low %v12978_v0, %v14490_v42  ;;  %v12851_v7 = vld [vmem:[#allocation2 + $0x48] sm:$0xff]   ;;  %v14493_v25 = vld [vmem:[#allocation2 + $0xf4] sm:$0xf]  ;;  %v12982_v11 = vld [vmem:[#allocation2 + $0xfc] sm:$0xf]  ;;  %v5153_v39 = vshll.u32 %v14287_v52, 16 }
 0x1b3   :  { %v12852_v57 = vld [vmem:[#allocation2 + $0x54] sm:$0xff]   ;;  %v14507_v35 = vld [vmem:[#allocation2 + $0x100] sm:$0xf]  ;;  %v12984_v26 = vld [vmem:[#allocation2 + $0x108] sm:$0xf] }
 0x1b4   :  { %12112 = vmatmul.mubr.msk.bf16.gmra.mrb[52].mxu0 %vm2150_vm12, %v11038_v20  ;;  %v14467_v20 = vld [vmem:[#allocation2 + $0xac] sm:$0xf]  ;;  %v10706_v51 = vcombine.low %v12982_v11, %v14507_v35  ;;  %v12988_v46 = vld [vmem:[#allocation2 + $0x120] sm:$0xf]  ;;  %v14520_v19 = vld [vmem:[#allocation2 + $0x124] sm:$0xf] }
 0x1b5   :  { %12115 = vmatprep.mubr.msk.bf16.mxu0 %vm2150_vm12, %v11039_v50  ;;  %v12848_v50 = vld [vmem:[#allocation2 + $0x24] sm:$0xff]   ;;  %v14510_v27 = vld [vmem:[#allocation2 + $0x10c] sm:$0xf]  ;;  %16563 = vst [vmem:[#allocation11_spill] sm:$0xff] %v14520_v19  ;;  %v12857_v0 = vld [vmem:[#allocation2 + $0x90] sm:$0xff]  }
 0x1b6   :  { %11812 = vmatmul.mubr.msk.bf16.gmra.mrb[16].mxu1 %vm2150_vm12, %v10696_v54  ;;  %v12971_v54 = vld [vmem:[#allocation2 + $0xa8] sm:$0xf]  ;;  %16561 = vst [vmem:[#allocation9_spill] sm:$0xff] %v14510_v27  ;;  %v12854_v34 = vld [vmem:[#allocation2 + $0x6c] sm:$0xff]   ;;  %v3088_v11 = vld [vmem:[#allocation2] sm:$0xe] }
 0x1b7   :  { %11815 = vmatprep.mubr.msk.bf16.mxu1 %vm2150_vm12, %v10697_v31  ;;  %v10701_v41 = vcombine.low %v12971_v54, %v14467_v20  ;;  %v14479_v31 = vld [vmem:[#allocation2 + $0xdc] sm:$0xf]  ;;  %v12856_v6 = vld [vmem:[#allocation2 + $0x84] sm:$0xff]  }
 0x1b8   :  { %v10703_v48 = vcombine.low %v12975_v56, %v14479_v31  ;;  %v14529_v56 = vrot.slane %v5153_v39, 5  ;;  %v12996_v39 = vld [vmem:[#allocation2 + $0x144] sm:$0xf] }
 0x1ba   :  { %16564 = vst [vmem:[#allocation12_spill] sm:$0xff] %v14529_v56 }
 0x1bc   :  { %12116 = vmatmul.mubr.msk.bf16.gmra.mrb[56].mxu0 %vm2150_vm12, %v11040_v22 }
 0x1bd   :  { %12119 = vmatprep.mubr.msk.bf16.mxu0 %vm2150_vm12, %v11041_v4  ;;  %v14502_v4 = vld [vmem:[%s16524_s1 + $0x10] sm:$0x3] }
 0x1be   :  { %11816 = vmatmul.mubr.msk.bf16.gmra.mrb[20].mxu1 %vm2150_vm12, %v10698_v2  ;;  %v12981_v2 = vld [vmem:[#allocation2 + $0xf0] sm:$0xf]  ;;  %16560 = vst [vmem:[#allocation8_spill] sm:$0xff] %v14502_v4 }
 0x1bf   :  { %11819 = vmatprep.mubr.msk.bf16.mxu1 %vm2150_vm12, %v10699_v16  ;;  %v10705_v22 = vcombine.low %v12981_v2, %v14493_v25  ;;  %v12853_v16 = vld [vmem:[#allocation2 + $0x60] sm:$0xff]  }
 0x1c4   :  { %12120 = vmatmul.mubr.msk.bf16.gmra.mrb[60].mxu0 %vm2150_vm12, %v11042_v24  ;;  %v10707_v24 = vcombine.low %v12984_v26, %v14510_v27  ;;  %v12995_v26 = vld [vmem:[#allocation2 + $0x14] sm:$0x1]  ;;  %v13012_v27 = vld [vmem:[#allocation2 + $0x98] sm:$0x1] }
 0x1c5   :  { %12125 = vmatprep.mubr.msk.bf16.mxu0 %vm2150_vm12, %v12847_v29  ;;  %v14517_v29 = vld [vmem:[#allocation2 + $0x118] sm:$0xf] }
 0x1c6   :  { %11820 = vmatmul.mubr.msk.bf16.gmra.mrb[24].mxu1 %vm2150_vm12, %v10700_v23  ;;  %v12986_v23 = vld [vmem:[#allocation2 + $0x114] sm:$0xf]  ;;  %16562 = vst [vmem:[#allocation10_spill] sm:$0xff] %v14517_v29 }
 0x1c7   :  { %11823 = vmatprep.mubr.msk.bf16.mxu1 %vm2150_vm12, %v10701_v41  ;;  %v10708_v54 = vcombine.low %v12986_v23, %v14517_v29  ;;  %v12855_v41 = vld [vmem:[#allocation2 + $0x78] sm:$0xff]   ;;  %v3089_v23 = vld [vmem:[#allocation2 + $0xc] sm:$0xe] }
 0x1cc   :  { %12126 = vmatmul.mubr.msk.bf16.vlgmr.msra.gmra.mrb[0].mxu0 %vm2150_vm12, %v12848_v50  ;;  %v10709_v50 = vcombine.low %v12988_v46, %v14520_v19  ;;  %v3091_v46 = vld [vmem:[#allocation2 + $0x24] sm:$0xe] }
 0x1cd   :  { %12190 = vmatpush3.bf16.msra.mxu0 %v8693_v58  ;;  %12129 = vmatprep.mubr.msk.bf16.mxu0 %vm2150_vm12, %v12849_v61  ;;  %v12990_v58 = vld [vmem:[#allocation2 + $0x12c] sm:$0xf]  ;;  %v14531_v61 = vld [vmem:[#allocation2 + $0x130] sm:$0xf] }
 0x1ce   :  { %11824 = vmatmul.mubr.msk.bf16.gmra.mrb[28].mxu1 %vm2150_vm12, %v10702_v55  ;;  %12844 = vmatprep.subr.msk.bf16.mxu0 %vm2247_vm0, %v14502_v4  ;;  %v5157_v55 = vshrl.u32 %v14287_v52, 16  ;;  %16565 = vst [vmem:[#allocation13_spill] sm:$0xff] %v14531_v61  ;;  %v5163_v52 = vshll.u32 %v14289_v10, 16 }
 0x1cf   :  { %11827 = vmatprep.mubr.msk.bf16.mxu1 %vm2150_vm12, %v10703_v48 }
 0x1d0   :  { %v5159_v48 = vrot.slane %v5157_v55, 4  ;;  %v14551_v55 = vld [vmem:[#allocation2 + $0x148] sm:$0xf] }
 0x1d1   :  { %16569 = vst [vmem:[#allocation17_spill] sm:$0xff] %v14551_v55 }
 0x1d4   :  { %12130 = vmatmul.mubr.msk.bf16.gmra.mrb[4].mxu0 %vm2150_vm12, %v12850_v5  ;;  %v10710_v5 = vcombine.low %v12990_v58, %v14531_v61  ;;  %v3100_v61 = vld [vmem:[#allocation2 + $0x90] sm:$0xe] }
 0x1d5   :  { %12133 = vmatprep.mubr.msk.bf16.mxu0 %vm2150_vm12, %v12851_v7  ;;  %v12993_v7 = vld [vmem:[#allocation2 + $0x138] sm:$0xf] }
 0x1d6   :  { %11828 = vmatmul.mubr.msk.bf16.gmra.mrb[32].mxu1 %vm2150_vm12, %v10704_v21  ;;  %v14535_v21 = vld [vmem:[#allocation2 + $0x13c] sm:$0xf] }
 0x1d7   :  { %11831 = vmatprep.mubr.msk.bf16.mxu1 %vm2150_vm12, %v10705_v22  ;;  %16566 = vst [vmem:[#allocation14_spill] sm:$0xff] %v14535_v21  ;;  %v10711_v2 = vcombine.low %v12993_v7, %v14535_v21  ;;  %v5160_v22 = vor.u32 %v5159_v48, %v14529_v56  ;;  %v12998_v48 = vld [vmem:[#allocation2 + $0x150] sm:$0xf]  ;;  %v10751_v7 = vrot.slane %v3088_v11, 9  ;;  %v13002_v56 = vld [vmem:[#allocation2 + $0x20] sm:$0x1] }
 0x1d8   :  { %v3092_v21 = vld [vmem:[#allocation2 + $0x30] sm:$0xe]  ;;  %v3217_v11 = vrot.slane %v14356_v53, 5 }
 0x1dc   :  { %12134 = vmatmul.mubr.msk.bf16.gmra.mrb[8].mxu0 %vm2150_vm12, %v12852_v57  ;;  %v3196_v57 = vrot.slane %v14322_v32, 5  ;;  %v3090_v32 = vld [vmem:[#allocation2 + $0x18] sm:$0xe] }
 0x1dd   :  { %12137 = vmatprep.mubr.msk.bf16.mxu0 %vm2150_vm12, %v12853_v16  ;;  %v12994_v16 = vld [vmem:[#allocation2 + $0x8] sm:$0x1] }
 0x1de   :  { %11832 = vmatmul.mubr.msk.bf16.gmra.mrb[36].mxu1 %vm2150_vm12, %v10706_v51  ;;  %v3189_v51 = vrot.slane %v14299_v47, 5  ;;  %v3192_v10 = vrot.slane %v12994_v16, 5  ;;  %v10712_v47 = vcombine.low %v12996_v39, %v14551_v55  ;;  %v10752_v16 = vrot.slane %v3089_v23, 9  ;;  %v13003_v55 = vld [vmem:[#allocation2 + $0x2c] sm:$0x1] }
 0x1df   :  { %11835 = vmatprep.mubr.msk.bf16.mxu1 %vm2150_vm12, %v10707_v24  ;;  %v3199_v24 = vrot.slane %v12995_v26, 5  ;;  %v3198_v26 = vrot.slane %v3196_v57, 4  ;;  %v10753_v39 = vrot.slane %v3090_v32, 9 }
 0x1e4   :  { %12138 = vmatmul.mubr.msk.bf16.gmra.mrb[12].mxu0 %vm2150_vm12, %v12854_v34  ;;  %v14544_v34 = vrot.slane %v5163_v52, 5  ;;  %v12858_v52 = vld [vmem:[#allocation2 + $0x9c] sm:$0xff]  }
 0x1e5   :  { %12141 = vmatprep.mubr.msk.bf16.mxu0 %vm2150_vm12, %v12855_v41  ;;  %v14548_v41 = vrot.slane %v5160_v22, 4  ;;  %v3191_v22 = vrot.slane %v3189_v51, 4 }
 0x1e6   :  { %11836 = vmatmul.mubr.msk.bf16.gmra.mrb[40].mxu1 %vm2150_vm12, %v10708_v54  ;;  %16567 = vst [vmem:[#allocation15_spill] sm:$0xff] %v14544_v34  ;;  %v3203_v54 = vrot.slane %v14327_v45, 5  ;;  %v3213_v45 = vrot.slane %v13003_v55, 5  ;;  %v3224_v34 = vrot.slane %v14371_v40, 5  ;;  %v14586_v55 = vsel %vm13822_vm2, %v10752_v16, %v3196_v57  ;;  %v3094_v40 = vld [vmem:[#allocation2 + $0x48] sm:$0xe] }
 0x1e7   :  { %11839 = vmatprep.mubr.msk.bf16.mxu1 %vm2150_vm12, %v10709_v50  ;;  %16568 = vst [vmem:[#allocation16_spill] sm:$0xff] %v14548_v41  ;;  %v3210_v50 = vrot.slane %v14353_v13, 5  ;;  %v10715_v13 = vcombine.low %v14179_v33, %v14189_v37  ;;  %v10754_v41 = vrot.slane %v3091_v46, 9  ;;  %v3093_v46 = vld [vmem:[#allocation2 + $0x3c] sm:$0xe]  ;;  %v14582_v53 = vsel %vm13822_vm2, %v3191_v22, %v3192_v10  ;;  %v12860_v16 = vld [vmem:[#allocation2 + $0xb4] sm:$0xff]  }
 0x1e8   :  { %v3205_v3 = vrot.slane %v3203_v54, 4  ;;  %v10756_v22 = vrot.slane %v3093_v46, 9  ;;  %v10757_v32 = vrot.slane %v3094_v40, 9  ;;  %v13011_v33 = vld [vmem:[#allocation2 + $0x8c] sm:$0x1] }
 0x1e9   :  { %v14607_v57 = vsel %vm13822_vm2, %v10754_v41, %v3210_v50  ;;  %v3245_v41 = vrot.slane %v14417_v43, 5  ;;  %v3269_v37 = vrot.slane %v13011_v33, 5 }
 0x1ec   :  { %12142 = vmatmul.mubr.msk.bf16.gmra.mrb[16].mxu0 %vm2150_vm12, %v12856_v6  ;;  %v14554_v6 = vld [vmem:[#allocation2 + $0x154] sm:$0xf] }
 0x1ed   :  { %12145 = vmatprep.mubr.msk.bf16.mxu0 %vm2150_vm12, %v12857_v0  ;;  %16570 = vst [vmem:[#allocation18_spill] sm:$0xff] %v14554_v6  ;;  %v10713_v58 = vcombine.low %v12998_v48, %v14554_v6  ;;  %v14559_v0 = vld [vmem:[#allocation2 + $0x15c] sm:$0xf]  ;;  %v3206_v48 = vrot.slane %v13002_v56, 5  ;;  %v3212_v6 = vrot.slane %v3210_v50, 4  ;;  %v14575_v56 = vsel %vm13822_vm2, %v10751_v7, %v3189_v51 }
 0x1ee   :  { %11840 = vmatmul.mubr.msk.bf16.gmra.mrb[44].mxu1 %vm2150_vm12, %v10710_v5  ;;  %v14557_v5 = vld [vmem:[#allocation2 + $0x160] sm:$0xf]  ;;  %v14594_v51 = vsel %vm2247_vm0, %v14344_v62, 0  ;;  %v3219_v7 = vrot.slane %v3217_v11, 4  ;;  %v3097_v50 = vld [vmem:[#allocation2 + $0x6c] sm:$0xe] }
 0x1ef   :  { %11843 = vmatprep.mubr.msk.bf16.mxu1 %vm2150_vm12, %v10711_v2  ;;  %16571 = vst [vmem:[#allocation19_spill] sm:$0xff] %v14557_v5  ;;  %v12859_v2 = vld [vmem:[#allocation2 + $0xa8] sm:$0xff]   ;;  %v14603_v10 = vsel %vm13822_vm2, %v3205_v3, %v3206_v48  ;;  %v14611_v62 = vsel %vm13822_vm2, %v3212_v6, %v3213_v45  ;;  %v3231_v3 = vrot.slane %v14388_v12, 5  ;;  %v12861_v48 = vld [vmem:[#allocation2 + $0xc0] sm:$0xff]   ;;  %v3238_v6 = vrot.slane %v14407_v15, 5 }
 0x1f0   :  { %v13006_v12 = vld [vmem:[#allocation2 + $0x50] sm:$0x1]  ;;  %v14634_v15 = vsel %vm13822_vm2, %v10756_v22, %v3224_v34  ;;  %v3252_v45 = vrot.slane %v14432_v38, 5  ;;  %v16572_v22 = vcombine.low %v14559_v0, %v14557_v5  ;;  %v10760_v23 = vrot.slane %v3097_v50, 9  ;;  %v13009_v5 = vld [vmem:[#allocation2 + $0x74] sm:$0x1] }
 0x1f1   :  { %v3234_v40 = vrot.slane %v13006_v12, 5  ;;  %v14645_v43 = vsel %vm13822_vm2, %v10757_v32, %v3231_v3  ;;  %v3099_v12 = vld [vmem:[#allocation2 + $0x84] sm:$0xe]  ;;  %v3247_v32 = vrot.slane %v3245_v41, 4  ;;  %v3273_v0 = vrot.slane %v14453_v44, 5 }
 0x1f2   :  { %v10762_v8 = vrot.slane %v3099_v12, 9  ;;  %v3101_v50 = vld [vmem:[#allocation2 + $0x9c] sm:$0xe] }
 0x1f3   :  { %v3275_v33 = vrot.slane %v3273_v0, 4 }
 0x1f4   :  { %12146 = vmatmul.mubr.msk.bf16.gmra.mrb[20].mxu0 %vm2150_vm12, %v12858_v52  ;;  %v14590_v52 = vsel %vm13822_vm2, %v3198_v26, %v3199_v24  ;;  %v10755_v24 = vrot.slane %v3092_v21, 9  ;;  %v13005_v26 = vld [vmem:[#allocation2 + $0x44] sm:$0x1] }
 0x1f5   :  { %12149 = vmatprep.mubr.msk.bf16.mxu0 %vm2150_vm12, %v12859_v2  ;;  %v13004_v2 = vld [vmem:[#allocation2 + $0x38] sm:$0x1] }
 0x1f6   :  { %11844 = vmatmul.mubr.msk.bf16.gmra.mrb[48].mxu1 %vm2150_vm12, %v10712_v47  ;;  %v14599_v47 = vsel %vm13822_vm2, %v10753_v39, %v3203_v54  ;;  %v3226_v54 = vrot.slane %v3224_v34, 4  ;;  %v3227_v39 = vrot.slane %v13005_v26, 5  ;;  %v14625_v46 = vsel %vm13822_vm2, %v10755_v24, %v3217_v11  ;;  %v3096_v26 = vld [vmem:[#allocation2 + $0x60] sm:$0xe] }
 0x1f7   :  { %11847 = vmatprep.mubr.msk.bf16.mxu1 %vm2150_vm12, %v10713_v58  ;;  %v3220_v58 = vrot.slane %v13004_v2, 5  ;;  %v3095_v2 = vld [vmem:[#allocation2 + $0x54] sm:$0xe]  ;;  %v3259_v11 = vrot.slane %v14435_v60, 5  ;;  %v3266_v34 = vrot.slane %v14450_v9, 5  ;;  %v3240_v60 = vrot.slane %v3238_v6, 4 }
 0x1f8   :  { %v14641_v24 = vsel %vm13822_vm2, %v3226_v54, %v3227_v39  ;;  %v10758_v38 = vrot.slane %v3095_v2, 9  ;;  %v10759_v39 = vrot.slane %v3096_v26, 9  ;;  %v13008_v9 = vld [vmem:[#allocation2 + $0x68] sm:$0x1]  ;;  %v13010_v26 = vld [vmem:[#allocation2 + $0x80] sm:$0x1] }
 0x1f9   :  { %v14630_v21 = vsel %vm13822_vm2, %v3219_v7, %v3220_v58  ;;  %v3233_v7 = vrot.slane %v3231_v3, 4  ;;  %v3098_v58 = vld [vmem:[#allocation2 + $0x78] sm:$0xe]  ;;  %v3248_v3 = vrot.slane %v13008_v9, 5  ;;  %v3261_v4 = vrot.slane %v3259_v11, 4 }
 0x1fa   :  { %v10761_v2 = vrot.slane %v3098_v58, 9  ;;  %v3262_v19 = vrot.slane %v13010_v26, 5  ;;  %v3268_v29 = vrot.slane %v3266_v34, 4  ;;  %v14664_v44 = vsel %vm13822_vm2, %v10758_v38, %v3238_v6 }
 0x1fb   :  { %v14660_v9 = vsel %vm13822_vm2, %v3233_v7, %v3234_v40  ;;  %v3280_v58 = vrot.slane %v14464_v36, 5  ;;  %v10763_v26 = vrot.slane %v3100_v61, 9  ;;  %v3276_v40 = vrot.slane %v13012_v27, 5  ;;  %v7634_v7 = vld [vmem:[#allocation2 + $0x18] sm:$0xf] }
 0x1fc   :  { %12150 = vmatmul.mubr.msk.bf16.gmra.mrb[24].mxu0 %vm2150_vm12, %v12860_v16  ;;  %v13007_v16 = vld [vmem:[#allocation2 + $0x5c] sm:$0x1]  ;;  %v14677_v6 = vsel %vm13822_vm2, %v3247_v32, %v3248_v3  ;;  %v14689_v38 = vsel %vm13822_vm2, %v10761_v2, %v3259_v11  ;;  %v14694_v27 = vsel %vm13822_vm2, %v3261_v4, %v3262_v19  ;;  %v14698_v61 = vsel %vm13822_vm2, %v10762_v8, %v3266_v34  ;;  %v13014_v2 = vld [vmem:[#allocation2 + $0xb0] sm:$0x1] }
 0x1fd   :  { %12153 = vmatprep.mubr.msk.bf16.mxu0 %vm2150_vm12, %v12861_v48  ;;  %v3241_v54 = vrot.slane %v13007_v16, 5  ;;  %v3255_v48 = vrot.slane %v13009_v5, 5  ;;  %v12862_v16 = vld [vmem:[#allocation2 + $0xcc] sm:$0xff]   ;;  %v14668_v5 = vsel %vm13822_vm2, %v10759_v39, %v3245_v41  ;;  %v14681_v41 = vsel %vm13822_vm2, %v10760_v23, %v3252_v45 }
 0x1fe   :  { %11848 = vmatmul.mubr.msk.bf16.gmra.mrb[52].mxu1 %vm2150_vm12, %v16572_v22  ;;  %v3254_v22 = vrot.slane %v3252_v45, 4  ;;  %v14702_v23 = vsel %vm13822_vm2, %v3268_v29, %v3269_v37  ;;  %v10764_v45 = vrot.slane %v3101_v50, 9  ;;  %v3282_v11 = vrot.slane %v3280_v58, 4  ;;  %v7635_v37 = vld [vmem:[#allocation2 + $0x1c] sm:$0xf]  ;;  %v12865_v50 = vld [vmem:[#allocation2 + $0x108] sm:$0xff]  }
 0x1ff   :  { %11851 = vmatprep.mubr.msk.bf16.mxu1 %vm2150_vm12, %v10715_v13  ;;  %v12863_v13 = vld [vmem:[#allocation2 + $0xf0] sm:$0xff]   ;;  %v14673_v12 = vsel %vm13822_vm2, %v3240_v60, %v3241_v54  ;;  %v16573_v60 = vcombine.low %v14202_v49, %v14224_v14  ;;  %v13013_v54 = vld [vmem:[#allocation2 + $0xa4] sm:$0x1]  ;;  %v7731_v19 = vshrl.u32 %v7634_v7, 16  ;;  %v7734_v39 = vshll.u32 %v7634_v7, 16 }
 0x200   :  { %v14685_v36 = vsel %vm13822_vm2, %v3254_v22, %v3255_v48  ;;  %v3283_v4 = vrot.slane %v13013_v54, 5  ;;  %v16574_v8 = vcombine.low %v14253_v18, %v14260_v30  ;;  %v14717_v49 = vsel %vm13822_vm2, %v10763_v26, %v3273_v0  ;;  %v3102_v0 = vld [vmem:[#allocation2 + $0xa8] sm:$0xe]  ;;  %v12864_v22 = vld [vmem:[#allocation2 + $0xfc] sm:$0xff]   ;;  %v13017_v29 = vld [vmem:[#allocation2 + $0xec] sm:$0x1] }
 0x201   :  { %v14721_v14 = vsel %vm13822_vm2, %v3275_v33, %v3276_v40  ;;  %v3287_v34 = vrot.slane %v14467_v20, 5  ;;  %v3103_v40 = vld [vmem:[#allocation2 + $0xb4] sm:$0xe]  ;;  %v7733_v7 = vrot.slane %v7731_v19, 4  ;;  %v10765_v54 = vrot.slane %v3102_v0, 9 }
 0x202   :  { %16575 = vst [vmem:[#allocation20_spill] sm:$0xff] %v14721_v14  ;;  %v14746_v33 = vsel %vm13822_vm2, %v3282_v11, %v3283_v4  ;;  %v3290_v20 = vrot.slane %v13014_v2, 5  ;;  %v7740_v48 = vshll.u32 %v7635_v37, 16  ;;  %v7744_v3 = vshrl.u32 %v7635_v37, 16  ;;  %v13015_v26 = vld [vmem:[#allocation2 + $0xbc] sm:$0x1] }
 0x203   :  { %16577 = vst [vmem:[#allocation22_spill] sm:$0xff] %v14746_v33  ;;  %v10766_v4 = vrot.slane %v3103_v40, 9  ;;  %v3297_v19 = vrot.slane %v13015_v26, 5  ;;  %v3301_v0 = vrot.slane %v14479_v31, 5  ;;  %v16578_v2 = vcombine.low %v14273_v28, %v14277_v63  ;;  %v12866_v26 = vld [vmem:[#allocation2 + $0x114] sm:$0xff]  }
 0x204   :  { %12154 = vmatmul.mubr.msk.bf16.gmra.mrb[28].mxu0 %vm2150_vm12, %v12862_v16  ;;  %v14740_v16 = vsel %vm13822_vm2, %v10764_v45, %v3280_v58  ;;  %v3294_v58 = vrot.slane %v14476_v59, 5  ;;  %v7638_v45 = vld [vmem:[#allocation2 + $0x28] sm:$0xf]  ;;  %v3105_v59 = vld [vmem:[#allocation2 + $0xe4] sm:$0xe]  ;;  %v3308_v37 = vrot.slane %v14490_v42, 5  ;;  %v16579_v40 = vcombine.low %v14575_v56, %v14582_v53 }
 0x205   :  { %12157 = vmatprep.mubr.msk.bf16.mxu0 %vm2150_vm12, %v12863_v13  ;;  %16576 = vst [vmem:[#allocation21_spill] sm:$0xff] %v14740_v16  ;;  %v7637_v13 = vld [vmem:[#allocation2 + $0x24] sm:$0xf]  ;;  %v7768_v32 = vshrl.u32 %v7638_v45, 16  ;;  %v14765_v31 = vsel %vm13822_vm2, %v10765_v54, %v3287_v34  ;;  %v7640_v56 = vld [vmem:[#allocation2 + $0x30] sm:$0xf] }
 0x206   :  { %11852 = vmatmul.mubr.msk.bf16.gmra.mrb[56].mxu1 %vm2150_vm12, %v16573_v60  ;;  %v7736_v60 = vrot.slane %v7734_v39, 5  ;;  %v7755_v30 = vshrl.u32 %v7637_v13, 16  ;;  %v7758_v18 = vshll.u32 %v7637_v13, 16  ;;  %v3104_v39 = vld [vmem:[#allocation2 + $0xd8] sm:$0xe]  ;;  %v7764_v13 = vshll.u32 %v7638_v45, 16 }
 0x207   :  { %11855 = vmatprep.mubr.msk.bf16.mxu1 %vm2150_vm12, %v16574_v8  ;;  %v3289_v8 = vrot.slane %v3287_v34, 4  ;;  %v3296_v63 = vrot.slane %v3294_v58, 4  ;;  %v10767_v53 = vrot.slane %v3104_v39, 9  ;;  %v10768_v11 = vrot.slane %v3105_v59, 9  ;;  %v7636_v34 = vld [vmem:[#allocation2 + $0x20] sm:$0x1] }
 0x208   :  { %v7757_v45 = vrot.slane %v7755_v30, 4  ;;  %v3311_v33 = vrot.slane %v13017_v29, 5  ;;  %v12867_v54 = vld [vmem:[#allocation2 + $0x120] sm:$0xff]   ;;  %v3310_v16 = vrot.slane %v3308_v37, 4  ;;  %v7639_v30 = vld [vmem:[#allocation2 + $0x2c] sm:$0x1] }
 0x209   :  { %v14769_v28 = vsel %vm13822_vm2, %v3289_v8, %v3290_v20  ;;  %v14775_v20 = vrot.slane %v7764_v13, 5  ;;  %v7770_v8 = vrot.slane %v7768_v32, 4  ;;  %v7782_v39 = vshll.u32 %v7640_v56, 16 }
 0x20a   :  { %16580 = vst [vmem:[#allocation23_spill] sm:$0xff] %v14769_v28  ;;  %v14785_v29 = vsel %vm13822_vm2, %v3296_v63, %v3297_v19  ;;  %v14791_v32 = vsel %vm13822_vm2, %v10767_v53, %v3301_v0  ;;  %v3106_v19 = vld [vmem:[#allocation2 + $0xf0] sm:$0xe]  ;;  %v3315_v63 = vrot.slane %v14493_v25, 5  ;;  %v7643_v25 = vld [vmem:[#allocation2 + $0x3c] sm:$0xf] }
 0x20b   :  { %v7645_v28 = vld [vmem:[#allocation2 + $0x44] sm:$0x1] }
 0x20c   :  { %12158 = vmatmul.mubr.msk.bf16.gmra.mrb[32].mxu0 %vm2150_vm12, %v12864_v22  ;;  %v7737_v22 = vor.u32 %v7736_v60, %v7733_v7  ;;  %v14771_v7 = vrot.slane %v7740_v48, 5  ;;  %v7746_v60 = vrot.slane %v7744_v3, 4  ;;  %v7779_v3 = vshrl.u32 %v7640_v56, 16  ;;  %v13020_v48 = vld [vmem:[#allocation2 + $0x104] sm:$0x1] }
 0x20d   :  { %12161 = vmatprep.mubr.msk.bf16.mxu0 %vm2150_vm12, %v12865_v50  ;;  %v13016_v50 = vld [vmem:[#allocation2 + $0xe0] sm:$0x1] }
 0x20e   :  { %11856 = vmatmul.mubr.msk.bf16.gmra.mrb[60].mxu1 %vm2150_vm12, %v16578_v2  ;;  %v3304_v42 = vrot.slane %v13016_v50, 5  ;;  %v7760_v2 = vrot.slane %v7758_v18, 5  ;;  %v14773_v14 = vrot.slane %v7737_v22, 4  ;;  %v14781_v18 = vsel %vm13822_vm2, %v10766_v4, %v3294_v58  ;;  %v7641_v50 = vld [vmem:[#allocation2 + $0x34] sm:$0xf] }
 0x20f   :  { %11861 = vmatprep.mubr.msk.bf16.mxu1 %vm2150_vm12, %v16579_v40  ;;  %v3303_v40 = vrot.slane %v3301_v0, 4  ;;  %v7747_v59 = vor.u32 %v7746_v60, %v14771_v7  ;;  %v7750_v22 = vshll.u32 %v7636_v34, 16  ;;  %v14799_v4 = vsel %vm13822_vm2, %v10768_v11, %v3308_v37  ;;  %v3107_v34 = vld [vmem:[#allocation2 + $0xfc] sm:$0xe] }
 0x210   :  { %v7761_v13 = vor.u32 %v7760_v2, %v7757_v45  ;;  %v16581_v60 = vcombine.low %v14586_v55, %v14590_v52  ;;  %v14809_v0 = vsel %vm13822_vm2, %v3310_v16, %v3311_v33  ;;  %v7743_v11 = vsel %vm13312_vm13, %v14773_v14, %v14771_v7  ;;  %v7644_v45 = vld [vmem:[#allocation2 + $0x40] sm:$0xf]  ;;  %v12868_v2 = vld [vmem:[#allocation2 + $0x12c] sm:$0xff]  }
 0x211   :  { %v14795_v58 = vsel %vm13822_vm2, %v3303_v40, %v3304_v42  ;;  %v7771_v37 = vor.u32 %v7770_v8, %v14775_v20  ;;  %v16582_v55 = vcombine.low %v14599_v47, %v14603_v10  ;;  %v7781_v52 = vrot.slane %v7779_v3, 4  ;;  %v13018_v40 = vld [vmem:[%s16524_s1 + $0x8] sm:$0x3]  ;;  %v13019_v47 = vld [vmem:[#allocation2 + $0xf8] sm:$0x1] }
 0x212   :  { %v7784_v42 = vrot.slane %v7782_v39, 5  ;;  %v7788_v16 = vshll.u32 %v7641_v50, 16  ;;  %v7792_v33 = vshrl.u32 %v7641_v50, 16  ;;  %v7748_v56 = vrot.slane %v7747_v59, 4  ;;  %v7642_v50 = vld [vmem:[#allocation2 + $0x38] sm:$0x1] }
 0x213   :  { %v7752_v53 = vrot.slane %v7750_v22, 5  ;;  %v7762_v14 = vrot.slane %v7761_v13, 4  ;;  %v10769_v7 = vrot.slane %v3106_v19, 9  ;;  %v3318_v10 = vrot.slane %v13019_v47, 5 }
 0x214   :  { %12162 = vmatmul.mubr.msk.bf16.gmra.mrb[36].mxu0 %vm2150_vm12, %v12866_v26  ;;  %v7774_v26 = vshll.u32 %v7639_v30, 16  ;;  %v7806_v8 = vshll.u32 %v7643_v25, 16  ;;  %v12869_v30 = vld [vmem:[#allocation2 + $0x138] sm:$0xff]   ;;  %v3322_v39 = vrot.slane %v14507_v35, 5  ;;  %v7812_v59 = vshll.u32 %v7644_v45, 16 }
 0x215   :  { %12165 = vmatprep.mubr.msk.bf16.mxu0 %vm2150_vm12, %v12867_v54  ;;  %v7803_v54 = vshrl.u32 %v7643_v25, 16  ;;  %v7816_v22 = vshrl.u32 %v7644_v45, 16  ;;  %v7772_v13 = vrot.slane %v7771_v37, 4  ;;  %v7785_v19 = vor.u32 %v7784_v42, %v7781_v52 }
 0x216   :  { %11862 = vmatmul.mubr.msk.bf16.vlgmr.msra.gmra.mrb[0].mxu1 %vm2150_vm12, %v16581_v60  ;;  %v7776_v3 = vrot.slane %v7774_v26, 5  ;;  %v14826_v60 = vrot.slane %v7788_v16, 5  ;;  %v7767_v47 = vsel %vm13312_vm13, %v7762_v14, %v14775_v20  ;;  %v10770_v25 = vrot.slane %v3107_v34, 9  ;;  %v13024_v14 = vld [vmem:[#allocation2 + $0x134] sm:$0x1] }
 0x217   :  { %11926 = vmatpush3.bf16.msra.mxu1 %v14594_v51  ;;  %11865 = vmatprep.mubr.msk.bf16.mxu1 %vm2150_vm12, %v16582_v55  ;;  %v3317_v51 = vrot.slane %v3315_v63, 4  ;;  %v7794_v55 = vrot.slane %v7792_v33, 4  ;;  %v3325_v26 = vrot.slane %v13020_v48, 5  ;;  %v14836_v35 = vsel %vm13822_vm2, %v10769_v7, %v3315_v63 }
 0x218   :  { %12840 = vmatprep.subr.msk.bf16.mxu1 %vm2247_vm0, %v13018_v40  ;;  %v7753_v40 = vsel %vm13312_vm13, %v7748_v56, %v7752_v53  ;;  %v7805_v52 = vrot.slane %v7803_v54, 4  ;;  %v7808_v42 = vrot.slane %v7806_v8, 5  ;;  %v16583_v16 = vcombine.low %v14607_v57, %v14611_v62  ;;  %v16585_v54 = vld [vmem:[#allocation9_spill] sm:$0xff] }
 0x219   :  { %v14840_v37 = vsel %vm13822_vm2, %v3317_v51, %v3318_v10  ;;  %v3324_v20 = vrot.slane %v3322_v39, 4  ;;  %v7798_v48 = vshll.u32 %v7642_v50, 16  ;;  %v14847_v33 = vrot.slane %v7812_v59, 5  ;;  %v12870_v51 = vld [vmem:[#allocation2 + $0x144] sm:$0xff]   ;;  %v12871_v59 = vld [vmem:[#allocation2 + $0x150] sm:$0xff]  }
 0x21a   :  { %v7818_v45 = vrot.slane %v7816_v22, 4  ;;  %v16584_v63 = vcombine.low %v14625_v46, %v14630_v21  ;;  %v14855_v56 = vrot.slane %v7785_v19, 4  ;;  %v7795_v57 = vor.u32 %v7794_v55, %v14826_v60  ;;  %v3108_v46 = vld [vmem:[#allocation2 + $0x108] sm:$0xe]  ;;  %v7649_v19 = vld [vmem:[#allocation2 + $0x54] sm:$0xf] }
 0x21b   :  { %v7822_v62 = vshll.u32 %v7645_v28, 16  ;;  %v14864_v21 = vcombine.low %v7743_v11, %v7753_v40  ;;  %v14870_v34 = vsel %vm13822_vm2, %v10770_v25, %v3322_v39  ;;  %v7809_v28 = vor.u32 %v7808_v42, %v7805_v52  ;;  %v7650_v55 = vld [vmem:[#allocation2 + $0x58] sm:$0xf]  ;;  %v194_v42 = vld [vmem:[#allocation2 + $0xd4] sm:$0x1] }
 0x21c   :  { %12166 = vmatmul.mubr.msk.bf16.gmra.mrb[40].mxu0 %vm2150_vm12, %v12868_v2  ;;  %v7777_v2 = vsel %vm13312_vm13, %v7772_v13, %v7776_v3  ;;  %v3329_v8 = vrot.slane %v16585_v54, 5  ;;  %v7647_v3 = vld [vmem:[#allocation2 + $0x4c] sm:$0xf]  ;;  %v14877_v11 = vsel %vm13822_vm2, %v3324_v20, %v3325_v26  ;;  %v7800_v13 = vrot.slane %v7798_v48, 5  ;;  %v16586_v10 = vld [vmem:[#allocation10_spill] sm:$0xff] }
 0x21d   :  { %12169 = vmatprep.mubr.msk.bf16.mxu0 %vm2150_vm12, %v12869_v30  ;;  %v7646_v30 = vld [vmem:[#allocation2 + $0x48] sm:$0xf]  ;;  %v14873_v22 = vcombine.low %v7767_v47, %v7777_v2  ;;  %v7819_v50 = vor.u32 %v7818_v45, %v14847_v33  ;;  %v7791_v39 = vsel %vm13312_vm13, %v14855_v56, %v14826_v60  ;;  %v7796_v40 = vrot.slane %v7795_v57, 4  ;;  %v3109_v47 = vld [vmem:[#allocation2 + $0x114] sm:$0xe] }
 0x21e   :  { %11866 = vmatmul.mubr.msk.bf16.gmra.mrb[4].mxu1 %vm2150_vm12, %v16583_v16  ;;  %v7824_v25 = vrot.slane %v7822_v62, 5  ;;  %v10771_v52 = vrot.slane %v3108_v46, 9  ;;  %v7827_v16 = vshrl.u32 %v7646_v30, 16  ;;  %v7836_v2 = vshll.u32 %v7647_v3, 16  ;;  %v13021_v45 = vld [vmem:[#allocation2 + $0x110] sm:$0x1] }
 0x21f   :  { %11869 = vmatprep.mubr.msk.bf16.mxu1 %vm2150_vm12, %v16584_v63  ;;  %v7830_v63 = vshll.u32 %v7646_v30, 16  ;;  %v7840_v26 = vshrl.u32 %v7647_v3, 16  ;;  %v7810_v20 = vrot.slane %v7809_v28, 4  ;;  %v3331_v48 = vrot.slane %v3329_v8, 4 }
 0x220   :  { %v3332_v54 = vrot.slane %v13021_v45, 5  ;;  %v3336_v7 = vrot.slane %v16586_v10, 5  ;;  %v16587_v60 = vcombine.low %v14634_v15, %v14641_v24  ;;  %v7820_v56 = vrot.slane %v7819_v50, 4  ;;  %v12872_v45 = vld [vmem:[#allocation2 + $0x15c] sm:$0xff]  }
 0x221   :  { %v7851_v57 = vshrl.u32 %v7649_v19, 16  ;;  %v7854_v62 = vshll.u32 %v7649_v19, 16  ;;  %v195_v30 = vsel %vm13210_vm6, 0, %v194_v42  ;;  %v7801_v10 = vsel %vm13312_vm13, %v7796_v40, %v7800_v13  ;;  %v13022_v13 = vld [vmem:[#allocation2 + $0x11c] sm:$0x1] }
 0x222   :  { %v10772_v28 = vrot.slane %v3109_v47, 9  ;;  %v7860_v15 = vshll.u32 %v7650_v55, 16  ;;  %v7864_v24 = vshrl.u32 %v7650_v55, 16  ;;  %196 = vst [vmem:[#allocation2 + $0xd4] sm:$0x1] %v195_v30  ;;  %v7829_v3 = vrot.slane %v7827_v16, 4 }
 0x223   :  { %v14899_v50 = vrot.slane %v7836_v2, 5  ;;  %v7842_v19 = vrot.slane %v7840_v26, 4  ;;  %v7815_v42 = vsel %vm13312_vm13, %v7810_v20, %v14847_v33  ;;  %v3339_v55 = vrot.slane %v13022_v13, 5  ;;  %v7648_v40 = vld [vmem:[#allocation2 + $0x50] sm:$0x1]  ;;  %v12873_v47 = vld [vmem:[#allocation2 + $0x168] sm:$0xff]  }
 0x224   :  { %12170 = vmatmul.mubr.msk.bf16.gmra.mrb[44].mxu0 %vm2150_vm12, %v12870_v51  ;;  %v16589_v51 = vcombine.low %v14645_v43, %v14660_v9  ;;  %v14906_v43 = vsel %vm13822_vm2, %v10771_v52, %v3329_v8  ;;  %v14910_v9 = vsel %vm13822_vm2, %v3331_v48, %v3332_v54  ;;  %v7825_v16 = vsel %vm13312_vm13, %v7820_v56, %v7824_v25  ;;  %v7651_v2 = vld [vmem:[#allocation2 + $0x5c] sm:$0x1]  ;;  %v7652_v48 = vld [vmem:[#allocation2 + $0x60] sm:$0xf]  ;;  %v12874_v13 = vld [vmem:[#allocation2 + $0x174] sm:$0xff]  }
 0x225   :  { %12173 = vmatprep.mubr.msk.bf16.mxu0 %vm2150_vm12, %v12871_v59  ;;  %v7832_v59 = vrot.slane %v7830_v63, 5  ;;  %16590 = vst [vmem:[#allocation9_spill] sm:$0xff] %v14906_v43  ;;  %16591 = vst [vmem:[#allocation10_spill] sm:$0xff] %v14910_v9  ;;  %v3338_v63 = vrot.slane %v3336_v7, 4  ;;  %v7853_v26 = vrot.slane %v7851_v57, 4  ;;  %v14916_v8 = vcombine.low %v7791_v39, %v7801_v10 }
 0x226   :  { %11870 = vmatmul.mubr.msk.bf16.gmra.mrb[8].mxu1 %vm2150_vm12, %v16587_v60  ;;  %v7856_v60 = vrot.slane %v7854_v62, 5  ;;  %v14918_v52 = vrot.slane %v7860_v15, 5  ;;  %v7866_v20 = vrot.slane %v7864_v24, 4  ;;  %v14922_v54 = vsel %vm13822_vm2, %v10772_v28, %v3336_v7  ;;  %v3110_v10 = vld [vmem:[#allocation2 + $0x120] sm:$0xe] }
 0x227   :  { %11873 = vmatprep.mubr.msk.bf16.mxu1 %vm2150_vm12, %v16589_v51  ;;  %v7833_v30 = vor.u32 %v7832_v59, %v7829_v3  ;;  %v7843_v25 = vor.u32 %v7842_v19, %v14899_v50  ;;  %v7846_v56 = vshll.u32 %v7648_v40, 16  ;;  %v7653_v51 = vld [vmem:[#allocation2 + $0x64] sm:$0xf]  ;;  %v14926_v57 = vcombine.low %v7815_v42, %v7825_v16  ;;  %v16592_v15 = vld [vmem:[#allocation11_spill] sm:$0xff]  ;;  %v3111_v59 = vld [vmem:[#allocation2 + $0x12c] sm:$0xe] }
 0x228   :  { %v7870_v62 = vshll.u32 %v7651_v2, 16  ;;  %v3343_v24 = vrot.slane %v16592_v15, 5  ;;  %v16593_v7 = vcombine.low %v14664_v44, %v14673_v12  ;;  %v14938_v28 = vsel %vm13822_vm2, %v3338_v63, %v3339_v55  ;;  %v16595_v12 = vld [vmem:[#allocation13_spill] sm:$0xff] }
 0x229   :  { %v7857_v3 = vor.u32 %v7856_v60, %v7853_v26  ;;  %v7875_v19 = vshrl.u32 %v7652_v48, 16  ;;  %v16594_v42 = vcombine.low %v14668_v5, %v14677_v6  ;;  %v7867_v44 = vor.u32 %v7866_v20, %v14918_v52  ;;  %v7655_v26 = vld [vmem:[#allocation2 + $0x6c] sm:$0xf]  ;;  %v7656_v5 = vld [vmem:[#allocation2 + $0x70] sm:$0xf]  ;;  %v12875_v6 = vld [vmem:[#allocation2 + $0x180] sm:$0xff]  }
 0x22a   :  { %v3350_v40 = vrot.slane %v16595_v12, 5  ;;  %v7884_v16 = vshll.u32 %v7653_v51, 16  ;;  %v7834_v2 = vrot.slane %v7833_v30, 4  ;;  %v7844_v15 = vrot.slane %v7843_v25, 4  ;;  %v7654_v25 = vld [vmem:[#allocation2 + $0x68] sm:$0x1] }
 0x22b   :  { %v7848_v55 = vrot.slane %v7846_v56, 5  ;;  %v10773_v63 = vrot.slane %v3110_v10, 9  ;;  %v7872_v60 = vrot.slane %v7870_v62, 5  ;;  %v10774_v33 = vrot.slane %v3111_v59, 9 }
 0x22c   :  { %12174 = vmatmul.mubr.msk.bf16.gmra.mrb[48].mxu0 %vm2150_vm12, %v12872_v45  ;;  %v7878_v45 = vshll.u32 %v7652_v48, 16  ;;  %v13023_v48 = vld [vmem:[#allocation2 + $0x128] sm:$0x1]  ;;  %v3353_v53 = vrot.slane %v13024_v14, 5  ;;  %v7877_v20 = vrot.slane %v7875_v19, 4  ;;  %v7868_v12 = vrot.slane %v7867_v44, 4 }
 0x22d   :  { %12177 = vmatprep.mubr.msk.bf16.mxu0 %vm2150_vm12, %v12873_v47  ;;  %v7888_v47 = vshrl.u32 %v7653_v51, 16  ;;  %v3346_v39 = vrot.slane %v13023_v48, 5  ;;  %v3352_v9 = vrot.slane %v3350_v40, 4  ;;  %v14946_v51 = vrot.slane %v7884_v16, 5  ;;  %v7657_v16 = vld [vmem:[#allocation2 + $0x74] sm:$0x1] }
 0x22e   :  { %11874 = vmatmul.mubr.msk.bf16.gmra.mrb[12].mxu1 %vm2150_vm12, %v16593_v7  ;;  %v3345_v7 = vrot.slane %v3343_v24, 4  ;;  %v7880_v46 = vrot.slane %v7878_v45, 5  ;;  %v7899_v56 = vshrl.u32 %v7655_v26, 16  ;;  %v7902_v10 = vshll.u32 %v7655_v26, 16  ;;  %v12876_v26 = vld [vmem:[#allocation2 + $0x18c] sm:$0xff]   ;;  %v12877_v48 = vld [vmem:[#allocation2 + $0x198] sm:$0xff]  }
 0x22f   :  { %11877 = vmatprep.mubr.msk.bf16.mxu1 %vm2150_vm12, %v16594_v42  ;;  %v7858_v42 = vrot.slane %v7857_v3, 4  ;;  %v7890_v30 = vrot.slane %v7888_v47, 4  ;;  %v7908_v62 = vshll.u32 %v7656_v5, 16  ;;  %v7912_v43 = vshrl.u32 %v7656_v5, 16  ;;  %v7658_v47 = vld [vmem:[#allocation2 + $0x78] sm:$0xf] }
 0x230   :  { %v7839_v3 = vsel %vm13312_vm13, %v7834_v2, %v14899_v50  ;;  %v7849_v14 = vsel %vm13312_vm13, %v7844_v15, %v7848_v55  ;;  %v14956_v59 = vsel %vm13822_vm2, %v10773_v63, %v3343_v24  ;;  %v14960_v19 = vsel %vm13822_vm2, %v3345_v7, %v3346_v39  ;;  %v7659_v63 = vld [vmem:[#allocation2 + $0x7c] sm:$0xf] }
 0x231   :  { %v16596_v45 = vcombine.low %v14681_v41, %v14685_v36  ;;  %v7863_v24 = vsel %vm13312_vm13, %v7858_v42, %v14918_v52  ;;  %v14976_v44 = vsel %vm13822_vm2, %v10774_v33, %v3350_v40  ;;  %v7881_v39 = vor.u32 %v7880_v46, %v7877_v20  ;;  %v16599_v42 = vld [vmem:[#allocation14_spill] sm:$0xff] }
 0x232   :  { %v16598_v41 = vcombine.low %v14689_v38, %v14694_v27  ;;  %v7873_v36 = vsel %vm13312_vm13, %v7868_v12, %v7872_v60  ;;  %v14986_v2 = vsel %vm13822_vm2, %v3352_v9, %v3353_v53  ;;  %v7891_v52 = vor.u32 %v7890_v30, %v14946_v51 }
 0x233   :  { %v7894_v15 = vshll.u32 %v7654_v25, 16  ;;  %v7901_v33 = vrot.slane %v7899_v56, 4  ;;  %v7904_v40 = vrot.slane %v7902_v10, 5  ;;  %v14989_v46 = vrot.slane %v7908_v62, 5 }
 0x234   :  { %12178 = vmatmul.mubr.msk.bf16.gmra.mrb[52].mxu0 %vm2150_vm12, %v12874_v13  ;;  %v16597_v13 = vld [vmem:[#allocation8_spill] sm:$0xff]  ;;  %v7914_v55 = vrot.slane %v7912_v43, 4  ;;  %v7918_v27 = vshll.u32 %v7657_v16, 16  ;;  %v7923_v7 = vshrl.u32 %v7658_v47, 16  ;;  %v7926_v60 = vshll.u32 %v7658_v47, 16 }
 0x235   :  { %12181 = vmatprep.mubr.msk.bf16.mxu0 %vm2150_vm12, %v12875_v6  ;;  %v14969_v50 = vsel %vm2247_vm0, %v16597_v13, 0  ;;  %v14993_v5 = vcombine.low %v7839_v3, %v7849_v14  ;;  %v7882_v9 = vrot.slane %v7881_v39, 4  ;;  %v3112_v6 = vld [vmem:[#allocation2 + $0x138] sm:$0xe]  ;;  %v3357_v20 = vrot.slane %v16599_v42, 5 }
 0x236   :  { %11878 = vmatmul.mubr.msk.bf16.gmra.mrb[16].mxu1 %vm2150_vm12, %v16596_v45  ;;  %v14998_v12 = vcombine.low %v7863_v24, %v7873_v36  ;;  %v7932_v30 = vshll.u32 %v7659_v63, 16  ;;  %v7936_v25 = vshrl.u32 %v7659_v63, 16  ;;  %v7892_v56 = vrot.slane %v7891_v52, 4  ;;  %v7661_v14 = vld [vmem:[#allocation2 + $0x84] sm:$0xf] }
 0x237   :  { %11881 = vmatprep.mubr.msk.bf16.mxu1 %vm2150_vm12, %v16598_v41  ;;  %v7896_v10 = vrot.slane %v7894_v15, 5  ;;  %v7905_v62 = vor.u32 %v7904_v40, %v7901_v33  ;;  %v7915_v3 = vor.u32 %v7914_v55, %v14989_v46  ;;  %v15004_v45 = vrot.slane %v7918_v27, 5  ;;  %v3113_v39 = vld [vmem:[#allocation2 + $0x144] sm:$0xe]  ;;  %v13025_v52 = vld [vmem:[#allocation2 + $0x140] sm:$0x1] }
 0x238   :  { %v10775_v13 = vrot.slane %v3112_v6, 9  ;;  %v7925_v16 = vrot.slane %v7923_v7, 4  ;;  %v7928_v24 = vrot.slane %v7926_v60, 5  ;;  %v16600_v47 = vcombine.low %v14698_v61, %v14702_v23  ;;  %v16601_v33 = vld [vmem:[#allocation17_spill] sm:$0xff]  ;;  %v16602_v63 = vld [vmem:[#allocation20_spill] sm:$0xff] }
 0x239   :  { %v7887_v41 = vsel %vm13312_vm13, %v7882_v9, %v14946_v51  ;;  %v3359_v36 = vrot.slane %v3357_v20, 4  ;;  %v3360_v15 = vrot.slane %v13025_v52, 5  ;;  %v3364_v40 = vrot.slane %v16601_v33, 5  ;;  %v7662_v55 = vld [vmem:[#allocation2 + $0x88] sm:$0xf] }
 0x23a   :  { %v7660_v61 = vld [vmem:[#allocation2 + $0x80] sm:$0x1]  ;;  %v15019_v23 = vrot.slane %v7932_v30, 5  ;;  %v7938_v27 = vrot.slane %v7936_v25, 4  ;;  %v7947_v7 = vshrl.u32 %v7661_v14, 16  ;;  %v7950_v60 = vshll.u32 %v7661_v14, 16 }
 0x23b   :  { %v7897_v51 = vsel %vm13312_vm13, %v7892_v56, %v7896_v10  ;;  %v15025_v9 = vrot.slane %v7915_v3, 4  ;;  %v10776_v6 = vrot.slane %v3113_v39, 9  ;;  %v7663_v42 = vld [vmem:[#allocation2 + $0x8c] sm:$0x1]  ;;  %v7929_v52 = vor.u32 %v7928_v24, %v7925_v16  ;;  %v3114_v43 = vld [vmem:[#allocation2 + $0x150] sm:$0xe] }
 0x23c   :  { %12182 = vmatmul.mubr.msk.bf16.gmra.mrb[56].mxu0 %vm2150_vm12, %v12876_v26  ;;  %v16603_v26 = vcombine.low %v14717_v49, %v16602_v63  ;;  %v15029_v49 = vsel %vm13822_vm2, %v10775_v13, %v3357_v20  ;;  %v7956_v30 = vshll.u32 %v7662_v55, 16  ;;  %v7960_v33 = vshrl.u32 %v7662_v55, 16  ;;  %v13026_v56 = vld [vmem:[#allocation2 + $0x14c] sm:$0x1]  ;;  %v7664_v24 = vld [vmem:[#allocation2 + $0x90] sm:$0xf] }
 0x23d   :  { %12185 = vmatprep.mubr.msk.bf16.mxu0 %vm2150_vm12, %v12877_v48  ;;  %v15023_v48 = vrot.slane %v7905_v62, 4  ;;  %v15033_v25 = vsel %vm13822_vm2, %v3359_v36, %v3360_v15  ;;  %v3366_v14 = vrot.slane %v3364_v40, 4  ;;  %v3367_v10 = vrot.slane %v13026_v56, 5  ;;  %v7668_v56 = vld [vmem:[#allocation2 + $0xa0] sm:$0xf] }
 0x23e   :  { %11882 = vmatmul.mubr.msk.bf16.gmra.mrb[20].mxu1 %vm2150_vm12, %v16600_v47  ;;  %v12878_v47 = vld [vmem:[#allocation2 + $0x1a4] sm:$0xff]   ;;  %v7942_v62 = vshll.u32 %v7660_v61, 16  ;;  %v7939_v3 = vor.u32 %v7938_v27, %v15019_v23  ;;  %v7949_v39 = vrot.slane %v7947_v7, 4  ;;  %v7952_v63 = vrot.slane %v7950_v60, 5  ;;  %v16605_v27 = vld [vmem:[#allocation22_spill] sm:$0xff] }
 0x23f   :  { %11885 = vmatprep.mubr.msk.bf16.mxu1 %vm2150_vm12, %v16603_v26  ;;  %v7966_v26 = vshll.u32 %v7663_v42, 16  ;;  %v15036_v53 = vcombine.low %v7887_v41, %v7897_v51  ;;  %v7911_v20 = vsel %vm13312_vm13, %v15023_v48, %v14989_v46  ;;  %v7921_v13 = vsel %vm13312_vm13, %v15025_v9, %v15004_v45  ;;  %v7665_v46 = vld [vmem:[#allocation2 + $0x94] sm:$0xf]  ;;  %v16604_v61 = vld [vmem:[#allocation21_spill] sm:$0xff]  ;;  %v7667_v9 = vld [vmem:[#allocation2 + $0x9c] sm:$0xf] }
 0x240   :  { %v15048_v16 = vsel %vm13822_vm2, %v10776_v6, %v3364_v40  ;;  %v7930_v36 = vrot.slane %v7929_v52, 4  ;;  %v15053_v15 = vrot.slane %v7956_v30, 5  ;;  %v7962_v55 = vrot.slane %v7960_v33, 4  ;;  %v16607_v51 = vld [vmem:[#allocation18_spill] sm:$0xff]  ;;  %v16608_v6 = vld [vmem:[#allocation23_spill] sm:$0xff] }
 0x241   :  { %v16606_v7 = vcombine.low %v16604_v61, %v16605_v27  ;;  %v15063_v45 = vsel %vm13822_vm2, %v3366_v14, %v3367_v10  ;;  %v7944_v40 = vrot.slane %v7942_v62, 5  ;;  %v10777_v60 = vrot.slane %v3114_v43, 9  ;;  %v13027_v33 = vld [vmem:[#allocation2 + $0x158] sm:$0x1]  ;;  %v3115_v61 = vld [vmem:[#allocation2 + $0x15c] sm:$0xe] }
 0x242   :  { %v3371_v48 = vrot.slane %v16607_v51, 5  ;;  %v16609_v42 = vcombine.low %v14765_v31, %v16608_v6  ;;  %v7953_v52 = vor.u32 %v7952_v63, %v7949_v39  ;;  %v15070_v30 = vrot.slane %v7966_v26, 5  ;;  %v16610_v39 = vld [vmem:[#allocation19_spill] sm:$0xff] }
 0x243   :  { %v7971_v14 = vshrl.u32 %v7664_v24, 16  ;;  %v7974_v10 = vshll.u32 %v7664_v24, 16  ;;  %v7980_v62 = vshll.u32 %v7665_v46, 16  ;;  %v7984_v43 = vshrl.u32 %v7665_v46, 16 }
 0x244   :  { %12186 = vmatmul.mubr.msk.bf16.gmra.mrb[60].mxu0 %vm2150_vm12, %v12878_v47  ;;  %v7940_v47 = vrot.slane %v7939_v3, 4  ;;  %v7935_v27 = vsel %vm13312_vm13, %v7930_v36, %v15019_v23  ;;  %v7963_v31 = vor.u32 %v7962_v55, %v15053_v15  ;;  %v7998_v51 = vshll.u32 %v7667_v9, 16  ;;  %v7666_v23 = vld [vmem:[#allocation2 + $0x98] sm:$0x1] }
 0x245   :  { %12191 = vmatprep.mubr.msk.bf16.mxu0 %vm2150_vm12, %v14864_v21  ;;  %v3374_v21 = vrot.slane %v13027_v33, 5  ;;  %v3373_v3 = vrot.slane %v3371_v48, 4  ;;  %v3378_v63 = vrot.slane %v16610_v39, 5  ;;  %v8004_v26 = vshll.u32 %v7668_v56, 16  ;;  %v13028_v39 = vld [vmem:[#allocation2 + $0x164] sm:$0x1] }
 0x246   :  { %11886 = vmatmul.mubr.msk.bf16.gmra.mrb[24].mxu1 %vm2150_vm12, %v16606_v7  ;;  %v7995_v7 = vshrl.u32 %v7667_v9, 16  ;;  %v8008_v6 = vshrl.u32 %v7668_v56, 16  ;;  %v15079_v33 = vrot.slane %v7953_v52, 4  ;;  %v15083_v24 = vsel %vm13822_vm2, %v10777_v60, %v3371_v48 }
 0x247   :  { %11889 = vmatprep.mubr.msk.bf16.mxu1 %vm2150_vm12, %v16609_v42  ;;  %v7945_v42 = vsel %vm13312_vm13, %v7940_v47, %v7944_v40  ;;  %v10778_v46 = vrot.slane %v3115_v61, 9  ;;  %v7973_v36 = vrot.slane %v7971_v14, 4  ;;  %v7976_v55 = vrot.slane %v7974_v10, 5  ;;  %v7669_v10 = vld [vmem:[#allocation2 + $0xa4] sm:$0x1] }
 0x248   :  { %v15085_v41 = vrot.slane %v7980_v62, 5  ;;  %v7986_v9 = vrot.slane %v7984_v43, 4  ;;  %v7964_v56 = vrot.slane %v7963_v31, 4  ;;  %v3381_v38 = vrot.slane %v13028_v39, 5 }
 0x249   :  { %v7997_v40 = vrot.slane %v7995_v7, 4  ;;  %v8000_v47 = vrot.slane %v7998_v51, 5  ;;  %v16611_v52 = vcombine.low %v14781_v18, %v14785_v29  ;;  %v15096_v60 = vsel %vm13822_vm2, %v3373_v3, %v3374_v21  ;;  %v13029_v7 = vld [vmem:[#allocation2 + $0x16c] sm:$0xf] }
 0x24a   :  { %v3380_v48 = vrot.slane %v3378_v63, 4  ;;  %v15098_v61 = vrot.slane %v8004_v26, 5  ;;  %v16612_v14 = vcombine.low %v14791_v32, %v14795_v58  ;;  %v15106_v18 = vcombine.low %v7911_v20, %v7921_v13  ;;  %v3116_v20 = vld [vmem:[#allocation2 + $0x168] sm:$0xe] }
 0x24b   :  { %v10809_v29 = vcombine.low %v15048_v16, %v15063_v45  ;;  %v7990_v21 = vshll.u32 %v7666_v23, 16  ;;  %v7959_v62 = vsel %vm13312_vm13, %v15079_v33, %v15053_v15  ;;  %v15118_v32 = vsel %vm13822_vm2, %v10778_v46, %v3378_v63  ;;  %v7670_v13 = vld [vmem:[#allocation2 + $0xa8] sm:$0xf]  ;;  %v7671_v15 = vld [vmem:[#allocation2 + $0xac] sm:$0xf] }
 0x24c   :  { %12192 = vmatmul.mubr.msk.bf16.vlgmr.msra.gmra.mrb[0].mxu0 %vm2150_vm12, %v14873_v22  ;;  %v8010_v22 = vrot.slane %v8008_v6, 4  ;;  %v7977_v58 = vor.u32 %v7976_v55, %v7973_v36  ;;  %v7969_v43 = vsel %vm13312_vm13, %v7964_v56, %v15070_v30  ;;  %v8001_v31 = vor.u32 %v8000_v47, %v7997_v40  ;;  %v3117_v6 = vld [vmem:[#allocation2 + $0x174] sm:$0xe]  ;;  %v13031_v47 = vld [vmem:[#allocation2 + $0x170] sm:$0x1] }
 0x24d   :  { %12256 = vmatpush3.bf16.msra.mxu0 %v14969_v50  ;;  %12195 = vmatprep.mubr.msk.bf16.mxu0 %vm2150_vm12, %v14916_v8  ;;  %v15110_v50 = vcombine.low %v7935_v27, %v7945_v42  ;;  %v7987_v8 = vor.u32 %v7986_v9, %v15085_v41  ;;  %v10810_v27 = vcombine.low %v15083_v24, %v15096_v60  ;;  %v3385_v51 = vrot.slane %v13029_v7, 5  ;;  %v13030_v42 = vld [vmem:[#allocation2 + $0x178] sm:$0xf]  ;;  %v7673_v7 = vld [vmem:[#allocation2 + $0xb4] sm:$0xf] }
 0x24e   :  { %11890 = vmatmul.mubr.msk.bf16.gmra.mrb[28].mxu1 %vm2150_vm12, %v16611_v52  ;;  %v15128_v3 = vsel %vm13822_vm2, %v3380_v48, %v3381_v38  ;;  %v8011_v63 = vor.u32 %v8010_v22, %v15098_v61  ;;  %v8014_v26 = vshll.u32 %v7669_v10, 16  ;;  %v3392_v33 = vrot.slane %v13030_v42, 5  ;;  %v7697_v45 = vld [vmem:[#allocation2 + $0x12c] sm:$0xf] }
 0x24f   :  { %11893 = vmatprep.mubr.msk.bf16.mxu1 %vm2150_vm12, %v16612_v14  ;;  %v7992_v46 = vrot.slane %v7990_v21, 5  ;;  %v10779_v23 = vrot.slane %v3116_v20, 9  ;;  %v8019_v30 = vshrl.u32 %v7670_v13, 16  ;;  %v8022_v36 = vshll.u32 %v7670_v13, 16 }
 0x250   :  { %v7978_v55 = vrot.slane %v7977_v58, 4  ;;  %v7988_v9 = vrot.slane %v7987_v8, 4  ;;  %v8028_v56 = vshll.u32 %v7671_v15, 16  ;;  %v8032_v39 = vshrl.u32 %v7671_v15, 16  ;;  %v13032_v58 = vld [vmem:[#allocation2 + $0x17c] sm:$0x1] }
 0x251   :  { %v8002_v40 = vrot.slane %v8001_v31, 4  ;;  %v3387_v38 = vrot.slane %v3385_v51, 4  ;;  %v3388_v52 = vrot.slane %v13031_v47, 5  ;;  %v10780_v48 = vrot.slane %v3117_v6, 9 }
 0x252   :  { %v16613_v22 = vcombine.low %v14799_v4, %v14809_v0  ;;  %v8012_v14 = vrot.slane %v8011_v63, 4  ;;  %v8016_v21 = vrot.slane %v8014_v26, 5  ;;  %v3394_v10 = vrot.slane %v3392_v33, 4  ;;  %v7672_v0 = vld [vmem:[#allocation2 + $0xb0] sm:$0x1] }
 0x253   :  { %v3395_v8 = vrot.slane %v13032_v58, 5  ;;  %v15143_v20 = vcombine.low %v7959_v62, %v7969_v43  ;;  %v10811_v4 = vcombine.low %v15118_v32, %v15128_v3  ;;  %v8021_v13 = vrot.slane %v8019_v30, 4  ;;  %v7674_v62 = vld [vmem:[#allocation2 + $0xb8] sm:$0xf]  ;;  %v7677_v30 = vld [vmem:[#allocation2 + $0xc4] sm:$0xf] }
 0x254   :  { %12196 = vmatmul.mubr.msk.bf16.gmra.mrb[4].mxu0 %vm2150_vm12, %v14926_v57  ;;  %v16614_v57 = vcombine.low %v14836_v35, %v14840_v37  ;;  %v8024_v31 = vrot.slane %v8022_v36, 5  ;;  %v15152_v15 = vsel %vm13822_vm2, %v10779_v23, %v3385_v51  ;;  %v15154_v35 = vrot.slane %v8028_v56, 5  ;;  %v7676_v51 = vld [vmem:[#allocation2 + $0xc0] sm:$0xf]  ;;  %v7675_v36 = vld [vmem:[#allocation2 + $0xbc] sm:$0x1] }
 0x255   :  { %12199 = vmatprep.mubr.msk.bf16.mxu0 %vm2150_vm12, %v14993_v5  ;;  %v7983_v5 = vsel %vm13312_vm13, %v7978_v55, %v15085_v41  ;;  %v8034_v37 = vrot.slane %v8032_v39, 4  ;;  %v7993_v43 = vsel %vm13312_vm13, %v7988_v9, %v7992_v46  ;;  %v8007_v63 = vsel %vm13312_vm13, %v8002_v40, %v15098_v61 }
 0x256   :  { %11894 = vmatmul.mubr.msk.bf16.gmra.mrb[32].mxu1 %vm2150_vm12, %v16613_v22  ;;  %v15163_v26 = vsel %vm13822_vm2, %v3387_v38, %v3388_v52  ;;  %v15167_v41 = vsel %vm13822_vm2, %v10780_v48, %v3392_v33  ;;  %v8017_v6 = vsel %vm13312_vm13, %v8012_v14, %v8016_v21  ;;  %v15173_v42 = vsel %vm13822_vm2, %v3394_v10, %v3395_v8  ;;  %v3118_v48 = vld [vmem:[#allocation2 + $0x180] sm:$0xe] }
 0x257   :  { %11897 = vmatprep.mubr.msk.bf16.mxu1 %vm2150_vm12, %v16614_v57  ;;  %v8038_v46 = vshll.u32 %v7672_v0, 16  ;;  %v8043_v23 = vshrl.u32 %v7673_v7, 16  ;;  %v8025_v61 = vor.u32 %v8024_v31, %v8021_v13  ;;  %v8046_v55 = vshll.u32 %v7673_v7, 16  ;;  %v7679_v57 = vld [vmem:[#allocation2 + $0xcc] sm:$0xf]  ;;  %v16617_v13 = vld [vmem:[#allocation10_spill] sm:$0xff] }
 0x258   :  { %v8052_v9 = vshll.u32 %v7674_v62, 16  ;;  %v8056_v56 = vshrl.u32 %v7674_v62, 16  ;;  %v15175_v39 = vcombine.low %v7983_v5, %v7993_v43  ;;  %v8035_v33 = vor.u32 %v8034_v37, %v15154_v35  ;;  %v16616_v0 = vld [vmem:[#allocation9_spill] sm:$0xff] }
 0x259   :  { %v8067_v40 = vshrl.u32 %v7676_v51, 16  ;;  %v8070_v38 = vshll.u32 %v7676_v51, 16  ;;  %v15180_v47 = vcombine.low %v8007_v63, %v8017_v6  ;;  %v8076_v22 = vshll.u32 %v7677_v30, 16  ;;  %v7682_v37 = vld [vmem:[#allocation2 + $0xf0] sm:$0xf] }
 0x25a   :  { %v8080_v14 = vshrl.u32 %v7677_v30, 16  ;;  %v16615_v21 = vcombine.low %v14870_v34, %v14877_v11  ;;  %v8045_v58 = vrot.slane %v8043_v23, 4  ;;  %v8062_v8 = vshll.u32 %v7675_v36, 16  ;;  %v3119_v63 = vld [vmem:[#allocation2 + $0x18c] sm:$0xe] }
 0x25b   :  { %v16618_v31 = vcombine.low %v16616_v0, %v16617_v13  ;;  %v15198_v7 = vrot.slane %v8025_v61, 4  ;;  %v8048_v34 = vrot.slane %v8046_v55, 5  ;;  %v15200_v11 = vrot.slane %v8052_v9, 5  ;;  %v13033_v61 = vld [vmem:[#allocation2 + $0x184] sm:$0xf] }
 0x25c   :  { %12200 = vmatmul.mubr.msk.bf16.gmra.mrb[8].mxu0 %vm2150_vm12, %v14998_v12  ;;  %v15192_v12 = vrot.slane %v8038_v46, 5  ;;  %v8058_v5 = vrot.slane %v8056_v56, 4  ;;  %v8036_v62 = vrot.slane %v8035_v33, 4  ;;  %v10781_v43 = vrot.slane %v3118_v48, 9  ;;  %v7678_v46 = vld [vmem:[#allocation2 + $0xc8] sm:$0x1] }
 0x25d   :  { %12203 = vmatprep.mubr.msk.bf16.mxu0 %vm2150_vm12, %v15036_v53  ;;  %v7680_v53 = vld [vmem:[#allocation2 + $0xd0] sm:$0xf]  ;;  %v8069_v51 = vrot.slane %v8067_v40, 4  ;;  %v8072_v6 = vrot.slane %v8070_v38, 5  ;;  %v15202_v23 = vrot.slane %v8076_v22, 5  ;;  %v8082_v30 = vrot.slane %v8080_v14, 4 }
 0x25e   :  { %11898 = vmatmul.mubr.msk.bf16.gmra.mrb[36].mxu1 %vm2150_vm12, %v16615_v21  ;;  %v8091_v36 = vshrl.u32 %v7679_v57, 16  ;;  %v8094_v21 = vshll.u32 %v7679_v57, 16  ;;  %v15204_v0 = vrot.slane %v8062_v8, 5  ;;  %v3399_v55 = vrot.slane %v13033_v61, 5  ;;  %v13034_v38 = vld [vmem:[#allocation2 + $0x188] sm:$0x1] }
 0x25f   :  { %11901 = vmatprep.mubr.msk.bf16.mxu1 %vm2150_vm12, %v16618_v31  ;;  %v8115_v9 = vshrl.u32 %v7682_v37, 16  ;;  %v8118_v13 = vshll.u32 %v7682_v37, 16  ;;  %v8031_v56 = vsel %vm13312_vm13, %v15198_v7, %v15154_v35  ;;  %v8049_v33 = vor.u32 %v8048_v34, %v8045_v58  ;;  %v7683_v22 = vld [vmem:[#allocation2 + $0xf4] sm:$0xf] }
 0x260   :  { %v8059_v40 = vor.u32 %v8058_v5, %v15200_v11  ;;  %v3402_v48 = vrot.slane %v13034_v38, 5  ;;  %v10782_v14 = vrot.slane %v3119_v63, 9  ;;  %v8086_v31 = vshll.u32 %v7678_v46, 16 }
 0x261   :  { %v8100_v57 = vshll.u32 %v7680_v53, 16  ;;  %v8104_v8 = vshrl.u32 %v7680_v53, 16  ;;  %v8073_v61 = vor.u32 %v8072_v6, %v8069_v51  ;;  %v8083_v37 = vor.u32 %v8082_v30, %v15202_v23  ;;  %v248_v53 = vld [vmem:[#allocation2 + $0x1ac] sm:$0x1] }
 0x262   :  { %v8093_v10 = vrot.slane %v8091_v36, 4  ;;  %v8096_v52 = vrot.slane %v8094_v21, 5  ;;  %v16619_v35 = vcombine.low %v14922_v54, %v14938_v28  ;;  %v8117_v58 = vrot.slane %v8115_v9, 4 }
 0x263   :  { %v8120_v7 = vrot.slane %v8118_v13, 5  ;;  %v8124_v34 = vshll.u32 %v7683_v22, 16  ;;  %v8128_v5 = vshrl.u32 %v7683_v22, 16  ;;  %v8041_v63 = vsel %vm13312_vm13, %v8036_v62, %v15192_v12  ;;  %v7684_v62 = vld [vmem:[#allocation2 + $0xf8] sm:$0x1] }
 0x264   :  { %12204 = vmatmul.mubr.msk.bf16.gmra.mrb[12].mxu0 %vm2150_vm12, %v15106_v18  ;;  %v16620_v18 = vcombine.low %v14956_v59, %v14960_v19  ;;  %v15229_v54 = vsel %vm13822_vm2, %v10781_v43, %v3399_v55  ;;  %v3401_v28 = vrot.slane %v3399_v55, 4  ;;  %v8050_v6 = vrot.slane %v8049_v33, 4  ;;  %v7681_v19 = vld [vmem:[#allocation2 + $0xd4] sm:$0x1] }
 0x265   :  { %12207 = vmatprep.mubr.msk.bf16.mxu0 %vm2150_vm12, %v15110_v50  ;;  %v13035_v50 = vld [vmem:[#allocation2 + $0x190] sm:$0xf]  ;;  %v8060_v46 = vrot.slane %v8059_v40, 4  ;;  %v15231_v30 = vrot.slane %v8100_v57, 5  ;;  %v8106_v36 = vrot.slane %v8104_v8, 4  ;;  %v8074_v21 = vrot.slane %v8073_v61, 4 }
 0x266   :  { %11902 = vmatmul.mubr.msk.bf16.gmra.mrb[40].mxu1 %vm2150_vm12, %v16619_v35  ;;  %v3406_v51 = vrot.slane %v13035_v50, 5  ;;  %v8088_v59 = vrot.slane %v8086_v31, 5  ;;  %v8097_v9 = vor.u32 %v8096_v52, %v8093_v10  ;;  %v249_v38 = vsel %vm13210_vm6, 0, %v248_v53  ;;  %v13036_v52 = vld [vmem:[#allocation2 + $0x194] sm:$0x1] }
 0x267   :  { %11905 = vmatprep.mubr.msk.bf16.mxu1 %vm2150_vm12, %v16620_v18  ;;  %v8084_v12 = vrot.slane %v8083_v37, 4  ;;  %v8121_v22 = vor.u32 %v8120_v7, %v8117_v58  ;;  %v15235_v43 = vrot.slane %v8124_v34, 5  ;;  %v8130_v55 = vrot.slane %v8128_v5, 4  ;;  %250 = vst [vmem:[#allocation2 + $0x1ac] sm:$0x1] %v249_v38 }
 0x268   :  { %v11153_v35 = vcombine.low %v8031_v56, %v8041_v63  ;;  %v15239_v33 = vsel %vm13822_vm2, %v3401_v28, %v3402_v48  ;;  %v15243_v40 = vsel %vm13822_vm2, %v10782_v14, %v3406_v51  ;;  %v3409_v10 = vrot.slane %v13036_v52, 5  ;;  %v7685_v31 = vld [vmem:[#allocation2 + $0xfc] sm:$0xf]  ;;  %v7686_v56 = vld [vmem:[#allocation2 + $0x100] sm:$0xf] }
 0x269   :  { %v8055_v57 = vsel %vm13312_vm13, %v8050_v6, %v15200_v11  ;;  %v3408_v8 = vrot.slane %v3406_v51, 4  ;;  %v8107_v61 = vor.u32 %v8106_v36, %v15231_v30  ;;  %v8110_v37 = vshll.u32 %v7681_v19, 16  ;;  %v7687_v58 = vld [vmem:[#allocation2 + $0x104] sm:$0x1]  ;;  %v7688_v28 = vld [vmem:[#allocation2 + $0x108] sm:$0xf] }
 0x26a   :  { %v8065_v48 = vsel %vm13312_vm13, %v8060_v46, %v15204_v0  ;;  %v8079_v14 = vsel %vm13312_vm13, %v8074_v21, %v15202_v23  ;;  %v8098_v7 = vrot.slane %v8097_v9, 4  ;;  %v8134_v34 = vshll.u32 %v7684_v62, 16  ;;  %v7689_v46 = vld [vmem:[#allocation2 + $0x10c] sm:$0xf]  ;;  %v7692_v19 = vld [vmem:[#allocation2 + $0x118] sm:$0xf] }
 0x26b   :  { %v16622_v11 = vcombine.low %v14976_v44, %v14986_v2  ;;  %v15265_v5 = vrot.slane %v8121_v22, 4  ;;  %v8131_v0 = vor.u32 %v8130_v55, %v15235_v43  ;;  %v8139_v53 = vshrl.u32 %v7685_v31, 16  ;;  %v7694_v62 = vld [vmem:[#allocation2 + $0x120] sm:$0xf] }
 0x26c   :  { %12208 = vmatmul.mubr.msk.bf16.gmra.mrb[16].mxu0 %vm2150_vm12, %v15143_v20  ;;  %v8089_v20 = vsel %vm13312_vm13, %v8084_v12, %v8088_v59  ;;  %v16623_v23 = vcombine.low %v15029_v49, %v15033_v25  ;;  %v8142_v18 = vshll.u32 %v7685_v31, 16  ;;  %v8148_v44 = vshll.u32 %v7686_v56, 16  ;;  %v7691_v59 = vld [vmem:[#allocation2 + $0x114] sm:$0xf]  ;;  %v7695_v31 = vld [vmem:[#allocation2 + $0x124] sm:$0xf] }
 0x26d   :  { %12211 = vmatprep.mubr.msk.bf16.mxu0 %vm2150_vm12, %v15175_v39  ;;  %v8152_v2 = vshrl.u32 %v7686_v56, 16  ;;  %v8158_v63 = vshll.u32 %v7687_v58, 16  ;;  %v15272_v50 = vcombine.low %v8055_v57, %v8065_v48  ;;  %v10814_v39 = vcombine.low %v15229_v54, %v15239_v33 }
 0x26e   :  { %11906 = vmatmul.mubr.msk.bf16.gmra.mrb[44].mxu1 %vm2150_vm12, %v16622_v11  ;;  %v8108_v51 = vrot.slane %v8107_v61, 4  ;;  %v8112_v6 = vrot.slane %v8110_v37, 5  ;;  %v15278_v36 = vsel %vm13822_vm2, %v3408_v8, %v3409_v10  ;;  %v15280_v49 = vcombine.low %v8079_v14, %v8089_v20 }
 0x26f   :  { %11909 = vmatprep.mubr.msk.bf16.mxu1 %vm2150_vm12, %v16623_v23  ;;  %v8103_v25 = vsel %vm13312_vm13, %v8098_v7, %v15231_v30  ;;  %v8136_v21 = vrot.slane %v8134_v34, 5  ;;  %v8127_v9 = vsel %vm13312_vm13, %v15265_v5, %v15235_v43  ;;  %v8132_v13 = vrot.slane %v8131_v0, 4  ;;  %v7690_v23 = vld [vmem:[#allocation2 + $0x110] sm:$0x1] }
 0x270   :  { %v8141_v38 = vrot.slane %v8139_v53, 4  ;;  %v8163_v12 = vshrl.u32 %v7688_v28, 16  ;;  %v8144_v22 = vrot.slane %v8142_v18, 5  ;;  %v15289_v55 = vrot.slane %v8148_v44, 5  ;;  %v7698_v53 = vld [vmem:[#allocation2 + $0x130] sm:$0xf] }
 0x271   :  { %v8154_v52 = vrot.slane %v8152_v2, 4  ;;  %v15291_v10 = vrot.slane %v8158_v63, 5  ;;  %v8113_v30 = vsel %vm13312_vm13, %v8108_v51, %v8112_v6  ;;  %v8166_v57 = vshll.u32 %v7688_v28, 16  ;;  %v7693_v44 = vld [vmem:[#allocation2 + $0x11c] sm:$0x1] }
 0x272   :  { %v8172_v8 = vshll.u32 %v7689_v46, 16  ;;  %v8176_v61 = vshrl.u32 %v7689_v46, 16  ;;  %v8187_v43 = vshrl.u32 %v7691_v59, 16  ;;  %v8190_v37 = vshll.u32 %v7691_v59, 16  ;;  %v7696_v6 = vld [vmem:[#allocation2 + $0x128] sm:$0x1] }
 0x273   :  { %v8196_v56 = vshll.u32 %v7692_v19, 16  ;;  %v8200_v58 = vshrl.u32 %v7692_v19, 16  ;;  %v8211_v48 = vshrl.u32 %v7694_v62, 16  ;;  %v8214_v14 = vshll.u32 %v7694_v62, 16 }
 0x274   :  { %12212 = vmatmul.mubr.msk.bf16.gmra.mrb[20].mxu0 %vm2150_vm12, %v15180_v47  ;;  %v8220_v7 = vshll.u32 %v7695_v31, 16  ;;  %v8224_v34 = vshrl.u32 %v7695_v31, 16  ;;  %v15306_v47 = vcombine.low %v8103_v25, %v8113_v30  ;;  %v8137_v11 = vsel %vm13312_vm13, %v8132_v13, %v8136_v21  ;;  %v7700_v30 = vld [vmem:[#allocation2 + $0x138] sm:$0xf] }
 0x275   :  { %12215 = vmatprep.mubr.msk.bf16.mxu0 %vm2150_vm12, %v11153_v35  ;;  %v8145_v20 = vor.u32 %v8144_v22, %v8141_v38  ;;  %v8165_v16 = vrot.slane %v8163_v12, 4  ;;  %v8168_v35 = vrot.slane %v8166_v57, 5  ;;  %v15311_v5 = vrot.slane %v8172_v8, 5  ;;  %v7701_v57 = vld [vmem:[#allocation2 + $0x13c] sm:$0xf] }
 0x276   :  { %11910 = vmatmul.mubr.msk.bf16.gmra.mrb[48].mxu1 %vm2150_vm12, %v10809_v29  ;;  %v8155_v29 = vor.u32 %v8154_v52, %v15289_v55  ;;  %v8178_v0 = vrot.slane %v8176_v61, 4  ;;  %v8189_v18 = vrot.slane %v8187_v43, 4  ;;  %v8192_v24 = vrot.slane %v8190_v37, 5  ;;  %v7699_v37 = vld [vmem:[#allocation2 + $0x134] sm:$0x1] }
 0x277   :  { %11913 = vmatprep.mubr.msk.bf16.mxu1 %vm2150_vm12, %v10810_v27  ;;  %v15313_v60 = vrot.slane %v8196_v56, 5  ;;  %v8202_v27 = vrot.slane %v8200_v58, 4  ;;  %v8213_v2 = vrot.slane %v8211_v48, 4  ;;  %v8216_v63 = vrot.slane %v8214_v14, 5 }
 0x278   :  { %v15315_v28 = vrot.slane %v8220_v7, 5  ;;  %v8226_v51 = vrot.slane %v8224_v34, 4  ;;  %v8235_v46 = vshrl.u32 %v7697_v45, 16  ;;  %v8238_v25 = vshll.u32 %v7697_v45, 16 }
 0x279   :  { %v8244_v21 = vshll.u32 %v7698_v53, 16  ;;  %v8248_v59 = vshrl.u32 %v7698_v53, 16  ;;  %v11157_v19 = vcombine.low %v8127_v9, %v8137_v11  ;;  %v15317_v13 = vrot.slane %v8145_v20, 4 }
 0x27a   :  { %v15319_v38 = vrot.slane %v8155_v29, 4  ;;  %v8182_v12 = vshll.u32 %v7690_v23, 16  ;;  %v8169_v62 = vor.u32 %v8168_v35, %v8165_v16  ;;  %v8179_v22 = vor.u32 %v8178_v0, %v15311_v5  ;;  %v7702_v23 = vld [vmem:[#allocation2 + $0x140] sm:$0x1] }
 0x27b   :  { %v8193_v52 = vor.u32 %v8192_v24, %v8189_v18  ;;  %v8206_v31 = vshll.u32 %v7693_v44, 16  ;;  %v8203_v9 = vor.u32 %v8202_v27, %v15313_v60  ;;  %v8217_v8 = vor.u32 %v8216_v63, %v8213_v2 }
 0x27c   :  { %12216 = vmatmul.mubr.msk.bf16.gmra.mrb[24].mxu0 %vm2150_vm12, %v15272_v50  ;;  %v8227_v50 = vor.u32 %v8226_v51, %v15315_v28  ;;  %v8230_v61 = vshll.u32 %v7696_v6, 16  ;;  %v16624_v43 = vcombine.low %v15152_v15, %v15163_v26  ;;  %v8237_v56 = vrot.slane %v8235_v46, 4  ;;  %v7703_v46 = vld [vmem:[#allocation2 + $0x144] sm:$0xf] }
 0x27d   :  { %12219 = vmatprep.mubr.msk.bf16.mxu0 %vm2150_vm12, %v15280_v49  ;;  %v8240_v58 = vrot.slane %v8238_v25, 5  ;;  %v15336_v32 = vrot.slane %v8244_v21, 5  ;;  %v8250_v3 = vrot.slane %v8248_v59, 4  ;;  %v8262_v48 = vshll.u32 %v7700_v30, 16  ;;  %v7704_v21 = vld [vmem:[#allocation2 + $0x148] sm:$0xf] }
 0x27e   :  { %11914 = vmatmul.mubr.msk.bf16.gmra.mrb[52].mxu1 %vm2150_vm12, %v10811_v4  ;;  %v8259_v4 = vshrl.u32 %v7700_v30, 16  ;;  %v8268_v49 = vshll.u32 %v7701_v57, 16  ;;  %v8272_v14 = vshrl.u32 %v7701_v57, 16  ;;  %v8170_v7 = vrot.slane %v8169_v62, 4 }
 0x27f   :  { %11917 = vmatprep.mubr.msk.bf16.mxu1 %vm2150_vm12, %v16624_v43  ;;  %v8180_v34 = vrot.slane %v8179_v22, 4  ;;  %v8184_v11 = vrot.slane %v8182_v12, 5  ;;  %v8194_v20 = vrot.slane %v8193_v52, 4  ;;  %v8204_v16 = vrot.slane %v8203_v9, 4  ;;  %v12879_v9 = vld [vmem:[#allocation2 + $0xc] sm:$0xff]  }
 0x280   :  { %v8208_v45 = vrot.slane %v8206_v31, 5  ;;  %v8218_v29 = vrot.slane %v8217_v8, 4  ;;  %v8254_v15 = vshll.u32 %v7699_v37, 16  ;;  %v8228_v26 = vrot.slane %v8227_v50, 4  ;;  %v7707_v31 = vld [vmem:[#allocation2 + $0x154] sm:$0xf] }
 0x281   :  { %v8232_v35 = vrot.slane %v8230_v61, 5  ;;  %v8241_v0 = vor.u32 %v8240_v58, %v8237_v56  ;;  %v8251_v53 = vor.u32 %v8250_v3, %v15336_v32  ;;  %v8261_v18 = vrot.slane %v8259_v4, 4  ;;  %v7709_v61 = vld [vmem:[#allocation2 + $0x15c] sm:$0xf]  ;;  %v4690_v43 = vld [vmem:[#allocation2 + $0xf0] sm:$0xf] }
 0x282   :  { %v8264_v24 = vrot.slane %v8262_v48, 5  ;;  %v15339_v27 = vrot.slane %v8268_v49, 5  ;;  %v8274_v44 = vrot.slane %v8272_v14, 4  ;;  %v8151_v2 = vsel %vm13312_vm13, %v15317_v13, %v15289_v55  ;;  %v7710_v4 = vld [vmem:[#allocation2 + $0x160] sm:$0xf] }
 0x283   :  { %v8161_v63 = vsel %vm13312_vm13, %v15319_v38, %v15291_v10  ;;  %v8175_v51 = vsel %vm13312_vm13, %v8170_v7, %v15311_v5  ;;  %v8185_v6 = vsel %vm13312_vm13, %v8180_v34, %v8184_v11  ;;  %v8199_v55 = vsel %vm13312_vm13, %v8194_v20, %v15313_v60  ;;  %v7705_v48 = vld [vmem:[#allocation2 + $0x14c] sm:$0x1] }
 0x284   :  { %12220 = vmatmul.mubr.msk.bf16.gmra.mrb[28].mxu0 %vm2150_vm12, %v15306_v47  ;;  %v16625_v47 = vcombine.low %v15167_v41, %v15173_v42  ;;  %v8209_v10 = vsel %vm13312_vm13, %v8204_v16, %v8208_v45  ;;  %v8223_v5 = vsel %vm13312_vm13, %v8218_v29, %v15315_v28  ;;  %v15369_v25 = vrot.slane %v8254_v15, 5 }
 0x285   :  { %12223 = vmatprep.mubr.msk.bf16.mxu0 %vm2150_vm12, %v11157_v19  ;;  %v8233_v41 = vsel %vm13312_vm13, %v8228_v26, %v8232_v35  ;;  %v15377_v42 = vrot.slane %v8241_v0, 4  ;;  %v15379_v60 = vrot.slane %v8251_v53, 4  ;;  %v8278_v59 = vshll.u32 %v7702_v23, 16  ;;  %v7706_v19 = vld [vmem:[#allocation2 + $0x150] sm:$0xf] }
 0x286   :  { %11918 = vmatmul.mubr.msk.bf16.gmra.mrb[56].mxu1 %vm2150_vm12, %v16625_v47  ;;  %v8265_v13 = vor.u32 %v8264_v24, %v8261_v18  ;;  %v8275_v28 = vor.u32 %v8274_v44, %v15339_v27  ;;  %v8283_v38 = vshrl.u32 %v7703_v46, 16  ;;  %v8286_v12 = vshll.u32 %v7703_v46, 16  ;;  %v7708_v44 = vld [vmem:[#allocation2 + $0x158] sm:$0x1] }
 0x287   :  { %11921 = vmatprep.mubr.msk.bf16.mxu1 %vm2150_vm12, %v10814_v39  ;;  %v10815_v62 = vcombine.low %v15243_v40, %v15278_v36  ;;  %v11158_v54 = vcombine.low %v8151_v2, %v8161_v63  ;;  %v8292_v33 = vshll.u32 %v7704_v21, 16  ;;  %v8296_v39 = vshrl.u32 %v7704_v21, 16  ;;  %v12880_v47 = vld [vmem:[#allocation2 + $0x18] sm:$0xff]  }
 0x288   :  { %v11159_v22 = vcombine.low %v8175_v51, %v8185_v6  ;;  %v11160_v52 = vcombine.low %v8199_v55, %v8209_v10  ;;  %v8307_v30 = vshrl.u32 %v7706_v19, 16  ;;  %v8310_v57 = vshll.u32 %v7706_v19, 16  ;;  %v16626_v51 = vld [vmem:[#allocation15_spill] sm:$0xff]  ;;  %v16627_v6 = vld [vmem:[#allocation16_spill] sm:$0xff] }
 0x289   :  { %v11161_v8 = vcombine.low %v8223_v5, %v8233_v41  ;;  %v8247_v50 = vsel %vm13312_vm13, %v15377_v42, %v15336_v32  ;;  %v8257_v40 = vsel %vm13312_vm13, %v15379_v60, %v15369_v25  ;;  %v15392_v36 = vrot.slane %v8278_v59, 5  ;;  %v12881_v55 = vld [vmem:[#allocation2 + $0x24] sm:$0xff]  }
 0x28a   :  { %v15394_v37 = vrot.slane %v8265_v13, 4  ;;  %v15396_v56 = vrot.slane %v8275_v28, 4  ;;  %v8285_v58 = vrot.slane %v8283_v38, 4  ;;  %v8288_v3 = vrot.slane %v8286_v12, 5  ;;  %v7712_v41 = vld [vmem:[#allocation2 + $0x168] sm:$0xf] }
 0x28b   :  { %v15399_v49 = vrot.slane %v8292_v33, 5  ;;  %v8298_v14 = vrot.slane %v8296_v39, 4  ;;  %v8316_v7 = vshll.u32 %v7707_v31, 16  ;;  %v8320_v34 = vshrl.u32 %v7707_v31, 16  ;;  %v7713_v12 = vld [vmem:[#allocation2 + $0x16c] sm:$0xf] }
 0x28c   :  { %12224 = vmatmul.mubr.msk.bf16.gmra.mrb[32].mxu0 %vm2150_vm12, %v11158_v54  ;;  %v8309_v11 = vrot.slane %v8307_v30, 4  ;;  %v8312_v20 = vrot.slane %v8310_v57, 5  ;;  %v5144_v16 = vshrl.u32 %v4690_v43, 16  ;;  %v5147_v45 = vshll.u32 %v4690_v43, 16  ;;  %v7711_v39 = vld [vmem:[#allocation2 + $0x164] sm:$0x1] }
 0x28d   :  { %12227 = vmatprep.mubr.msk.bf16.mxu0 %vm2150_vm12, %v11159_v22  ;;  %v8331_v29 = vshrl.u32 %v7709_v61, 16  ;;  %v8334_v15 = vshll.u32 %v7709_v61, 16  ;;  %v8340_v26 = vshll.u32 %v7710_v4, 16  ;;  %v8344_v35 = vshrl.u32 %v7710_v4, 16  ;;  %v16628_v43 = vld [vmem:[#allocation12_spill] sm:$0xff] }
 0x28e   :  { %11922 = vmatmul.mubr.msk.bf16.gmra.mrb[60].mxu1 %vm2150_vm12, %v10815_v62  ;;  %v8289_v0 = vor.u32 %v8288_v3, %v8285_v58  ;;  %v8302_v53 = vshll.u32 %v7705_v48, 16  ;;  %v5146_v23 = vrot.slane %v5144_v16, 4  ;;  %v5149_v18 = vrot.slane %v5147_v45, 5  ;;  %v7715_v4 = vld [vmem:[#allocation2 + $0x174] sm:$0xf] }
 0x28f   :  { %11927 = vmatprep.mubr.msk.bf16.mxu1 %vm2150_vm12, %v12879_v9  ;;  %v8299_v24 = vor.u32 %v8298_v14, %v15399_v49  ;;  %v15405_v2 = vrot.slane %v8316_v7, 5  ;;  %v8322_v63 = vrot.slane %v8320_v34, 4  ;;  %v5166_v46 = vsel %vm13312_vm13, %v16627_v6, %v16626_v51  ;;  %v12882_v16 = vld [vmem:[#allocation2 + $0x30] sm:$0xff]  }
 0x290   :  { %v8271_v10 = vsel %vm13312_vm13, %v15394_v37, %v15339_v27  ;;  %v8281_v5 = vsel %vm13312_vm13, %v15396_v56, %v15392_v36  ;;  %v8313_v21 = vor.u32 %v8312_v20, %v8309_v11  ;;  %v5150_v59 = vor.u32 %v5149_v18, %v5146_v23  ;;  %v16629_v56 = vld [vmem:[#allocation6_spill] sm:$0xff]  ;;  %v7714_v11 = vld [vmem:[#allocation2 + $0x170] sm:$0x1] }
 0x291   :  { %v8333_v19 = vrot.slane %v8331_v29, 4  ;;  %v8336_v13 = vrot.slane %v8334_v15, 5  ;;  %v15419_v28 = vrot.slane %v8340_v26, 5  ;;  %v8346_v38 = vrot.slane %v8344_v35, 4  ;;  %v7716_v20 = vld [vmem:[#allocation2 + $0x178] sm:$0xf] }
 0x292   :  { %v8290_v62 = vrot.slane %v8289_v0, 4  ;;  %v8304_v54 = vrot.slane %v8302_v53, 5  ;;  %v8326_v33 = vshll.u32 %v7708_v44, 16  ;;  %v5151_v22 = vrot.slane %v5150_v59, 4  ;;  %v7718_v15 = vld [vmem:[#allocation2 + $0x180] sm:$0xf] }
 0x293   :  { %v8300_v27 = vrot.slane %v8299_v24, 4  ;;  %v8323_v31 = vor.u32 %v8322_v63, %v15405_v2  ;;  %v8355_v30 = vshrl.u32 %v7712_v41, 16  ;;  %v8358_v57 = vshll.u32 %v7712_v41, 16  ;;  %v12883_v35 = vld [vmem:[#allocation2 + $0x3c] sm:$0xff]  }
 0x294   :  { %12228 = vmatmul.mubr.msk.bf16.gmra.mrb[36].mxu0 %vm2150_vm12, %v11160_v52  ;;  %v8314_v9 = vrot.slane %v8313_v21, 4  ;;  %v8364_v36 = vshll.u32 %v7713_v12, 16  ;;  %v8368_v61 = vshrl.u32 %v7713_v12, 16  ;;  %v5156_v37 = vsel %vm13312_vm13, %v5151_v22, %v16628_v43  ;;  %v7720_v22 = vld [vmem:[#allocation2 + $0x188] sm:$0x1]  ;;  %v12885_v43 = vld [vmem:[#allocation2 + $0x54] sm:$0xff]  }
 0x295   :  { %12231 = vmatprep.mubr.msk.bf16.mxu0 %vm2150_vm12, %v11161_v8  ;;  %v8337_v52 = vor.u32 %v8336_v13, %v8333_v19  ;;  %v8347_v58 = vor.u32 %v8346_v38, %v15419_v28  ;;  %v8350_v3 = vshll.u32 %v7711_v39, 16  ;;  %v15431_v48 = vcombine.low %v5156_v37, %v5166_v46  ;;  %v7717_v19 = vld [vmem:[#allocation2 + $0x17c] sm:$0x1] }
 0x296   :  { %11928 = vmatmul.mubr.msk.bf16.vlgmr.msra.gmra.mrb[0].mxu1 %vm2150_vm12, %v12880_v47  ;;  %v11162_v8 = vcombine.low %v8247_v50, %v8257_v40  ;;  %v11163_v14 = vcombine.low %v8271_v10, %v8281_v5  ;;  %v8295_v7 = vsel %vm13312_vm13, %v8290_v62, %v15399_v49  ;;  %v8328_v34 = vrot.slane %v8326_v33, 5  ;;  %v7719_v40 = vld [vmem:[#allocation2 + $0x184] sm:$0xf] }
 0x297   :  { %12322 = vmatpush3.bf16.msra.mxu1 %v16629_v56  ;;  %11931 = vmatprep.mubr.msk.bf16.mxu1 %vm2150_vm12, %v12881_v55  ;;  %v8305_v45 = vsel %vm13312_vm13, %v8300_v27, %v8304_v54  ;;  %v8324_v29 = vrot.slane %v8323_v31, 4  ;;  %v8357_v25 = vrot.slane %v8355_v30, 4  ;;  %v8360_v60 = vrot.slane %v8358_v57, 5  ;;  %v7721_v54 = vld [vmem:[#allocation2 + $0x18c] sm:$0xf] }
 0x298   :  { %v15448_v26 = vrot.slane %v8364_v36, 5  ;;  %v8370_v32 = vrot.slane %v8368_v61, 4  ;;  %v8379_v42 = vshrl.u32 %v7715_v4, 16  ;;  %v8382_v50 = vshll.u32 %v7715_v4, 16  ;;  %v12884_v30 = vld [vmem:[#allocation2 + $0x48] sm:$0xff]  }
 0x299   :  { %v8319_v49 = vsel %vm13312_vm13, %v8314_v9, %v15405_v2  ;;  %v8338_v0 = vrot.slane %v8337_v52, 4  ;;  %v8348_v53 = vrot.slane %v8347_v58, 4  ;;  %v8352_v23 = vrot.slane %v8350_v3, 5  ;;  %v7722_v61 = vld [vmem:[#allocation2 + $0x190] sm:$0xf] }
 0x29a   :  { %v8388_v18 = vshll.u32 %v7716_v20, 16  ;;  %v8392_v24 = vshrl.u32 %v7716_v20, 16  ;;  %v8403_v44 = vshrl.u32 %v7718_v15, 16  ;;  %v8406_v63 = vshll.u32 %v7718_v15, 16  ;;  %v7724_v4 = vld [vmem:[#allocation2 + $0x198] sm:$0xf] }
 0x29b   :  { %v8329_v51 = vsel %vm13312_vm13, %v8324_v29, %v8328_v34  ;;  %v8374_v6 = vshll.u32 %v7714_v11, 16  ;;  %v8412_v46 = vshll.u32 %v7719_v40, 16  ;;  %v8416_v47 = vshrl.u32 %v7719_v40, 16 }
 0x29c   :  { %12232 = vmatmul.mubr.msk.bf16.gmra.mrb[40].mxu0 %vm2150_vm12, %v11162_v8  ;;  %v8361_v2 = vor.u32 %v8360_v60, %v8357_v25  ;;  %v8371_v55 = vor.u32 %v8370_v32, %v15448_v26  ;;  %v8381_v10 = vrot.slane %v8379_v42, 4  ;;  %v8384_v5 = vrot.slane %v8382_v50, 5  ;;  %v7725_v8 = vld [vmem:[#allocation2 + $0x19c] sm:$0xf] }
 0x29d   :  { %12235 = vmatprep.mubr.msk.bf16.mxu0 %vm2150_vm12, %v11163_v14  ;;  %v11164_v21 = vcombine.low %v8295_v7, %v8305_v45  ;;  %v8343_v41 = vsel %vm13312_vm13, %v8338_v0, %v15419_v28  ;;  %v8353_v59 = vsel %vm13312_vm13, %v8348_v53, %v8352_v23  ;;  %v15465_v13 = vrot.slane %v8388_v18, 5  ;;  %v12887_v18 = vld [vmem:[#allocation2 + $0x6c] sm:$0xff]  }
 0x29e   :  { %11932 = vmatmul.mubr.msk.bf16.gmra.mrb[4].mxu1 %vm2150_vm12, %v12882_v16  ;;  %v8394_v38 = vrot.slane %v8392_v24, 4  ;;  %v8405_v12 = vrot.slane %v8403_v44, 4  ;;  %v8408_v62 = vrot.slane %v8406_v63, 5  ;;  %v11165_v33 = vcombine.low %v8319_v49, %v8329_v51  ;;  %v12886_v49 = vld [vmem:[#allocation2 + $0x60] sm:$0xff]   ;;  %v7723_v44 = vld [vmem:[#allocation2 + $0x194] sm:$0x1] }
 0x29f   :  { %11935 = vmatprep.mubr.msk.bf16.mxu1 %vm2150_vm12, %v12883_v35  ;;  %v8376_v39 = vrot.slane %v8374_v6, 5  ;;  %v15467_v27 = vrot.slane %v8412_v46, 5  ;;  %v8418_v31 = vrot.slane %v8416_v47, 4  ;;  %v8362_v57 = vrot.slane %v8361_v2, 4  ;;  %v7727_v63 = vld [vmem:[#allocation2 + $0x1a4] sm:$0xf] }
 0x2a0   :  { %v8372_v9 = vrot.slane %v8371_v55, 4  ;;  %v8385_v28 = vor.u32 %v8384_v5, %v8381_v10  ;;  %v8398_v36 = vshll.u32 %v7717_v19, 16  ;;  %v11166_v37 = vcombine.low %v8343_v41, %v8353_v59  ;;  %v7728_v2 = vld [vmem:[#allocation2 + $0x1a8] sm:$0xf] }
 0x2a1   :  { %v8395_v56 = vor.u32 %v8394_v38, %v15465_v13  ;;  %v8409_v52 = vor.u32 %v8408_v62, %v8405_v12  ;;  %v8422_v58 = vshll.u32 %v7720_v22, 16  ;;  %v8427_v3 = vshrl.u32 %v7721_v54, 16 }
 0x2a2   :  { %v8419_v14 = vor.u32 %v8418_v31, %v15467_v27  ;;  %v8430_v7 = vshll.u32 %v7721_v54, 16  ;;  %v8436_v34 = vshll.u32 %v7722_v61, 16  ;;  %v8440_v11 = vshrl.u32 %v7722_v61, 16 }
 0x2a3   :  { %v8367_v20 = vsel %vm13312_vm13, %v8362_v57, %v15448_v26  ;;  %v8377_v16 = vsel %vm13312_vm13, %v8372_v9, %v8376_v39  ;;  %v8386_v45 = vrot.slane %v8385_v28, 4  ;;  %v8400_v29 = vrot.slane %v8398_v36, 5  ;;  %v12888_v28 = vld [vmem:[#allocation2 + $0x78] sm:$0xff]  }
 0x2a4   :  { %12236 = vmatmul.mubr.msk.bf16.gmra.mrb[44].mxu0 %vm2150_vm12, %v11164_v21  ;;  %v8451_v25 = vshrl.u32 %v7724_v4, 16  ;;  %v8454_v60 = vshll.u32 %v7724_v4, 16  ;;  %v8460_v15 = vshll.u32 %v7725_v8, 16  ;;  %v8464_v32 = vshrl.u32 %v7725_v8, 16  ;;  %v7726_v21 = vld [vmem:[#allocation2 + $0x1a0] sm:$0x1] }
 0x2a5   :  { %12239 = vmatprep.mubr.msk.bf16.mxu0 %vm2150_vm12, %v11165_v33  ;;  %v8396_v42 = vrot.slane %v8395_v56, 4  ;;  %v8410_v50 = vrot.slane %v8409_v52, 4  ;;  %v8424_v40 = vrot.slane %v8422_v58, 5  ;;  %v8429_v35 = vrot.slane %v8427_v3, 4  ;;  %v12889_v56 = vld [vmem:[#allocation2 + $0x84] sm:$0xff]  }
 0x2a6   :  { %11936 = vmatmul.mubr.msk.bf16.gmra.mrb[8].mxu1 %vm2150_vm12, %v12884_v30  ;;  %v8420_v0 = vrot.slane %v8419_v14, 4  ;;  %v8432_v53 = vrot.slane %v8430_v7, 5  ;;  %v8438_v23 = vrot.slane %v8436_v34, 5  ;;  %v8442_v26 = vrot.slane %v8440_v11, 4  ;;  %v7729_v4 = vld [vmem:[#allocation2 + $0x1ac] sm:$0x1] }
 0x2a7   :  { %11939 = vmatprep.mubr.msk.bf16.mxu1 %vm2150_vm12, %v12885_v43  ;;  %v11167_v24 = vcombine.low %v8367_v20, %v8377_v16  ;;  %v8453_v51 = vrot.slane %v8451_v25, 4  ;;  %v8456_v6 = vrot.slane %v8454_v60, 5  ;;  %v8462_v46 = vrot.slane %v8460_v15, 5  ;;  %v9048_v25 = vld [vmem:[#allocation2 + $0x18] sm:$0xe]  ;;  %v12890_v15 = vld [vmem:[#allocation2 + $0x90] sm:$0xff]  }
 0x2a8   :  { %v8466_v47 = vrot.slane %v8464_v32, 4  ;;  %v8391_v55 = vsel %vm13312_vm13, %v8386_v45, %v15465_v13  ;;  %v8401_v10 = vsel %vm13312_vm13, %v8396_v42, %v8400_v29  ;;  %v8415_v5 = vsel %vm13312_vm13, %v8410_v50, %v15467_v27  ;;  %v13037_v45 = vld [vmem:[#allocation2 + $0x1c] sm:$0xf] }
 0x2a9   :  { %v8425_v41 = vsel %vm13312_vm13, %v8420_v0, %v8424_v40  ;;  %v8433_v59 = vor.u32 %v8432_v53, %v8429_v35  ;;  %v8443_v19 = vor.u32 %v8442_v26, %v8438_v23  ;;  %v8446_v38 = vshll.u32 %v7723_v44, 16  ;;  %v12891_v35 = vld [vmem:[#allocation2 + $0x9c] sm:$0xff]  }
 0x2aa   :  { %v8475_v13 = vshrl.u32 %v7727_v63, 16  ;;  %v8478_v12 = vshll.u32 %v7727_v63, 16  ;;  %v8484_v62 = vshll.u32 %v7728_v2, 16  ;;  %v8488_v54 = vshrl.u32 %v7728_v2, 16  ;;  %v13038_v53 = vld [vmem:[#allocation2 + $0x20] sm:$0x1] }
 0x2ab   :  { %v8457_v33 = vor.u32 %v8456_v6, %v8453_v51  ;;  %v8467_v39 = vor.u32 %v8466_v47, %v8462_v46  ;;  %v8470_v22 = vshll.u32 %v7726_v21, 16  ;;  %v11168_v27 = vcombine.low %v8391_v55, %v8401_v10  ;;  %v9049_v6 = vld [vmem:[#allocation2 + $0x24] sm:$0xe]  ;;  %v9050_v2 = vld [vmem:[#allocation2 + $0x30] sm:$0xe]  ;;  %v12892_v10 = vld [vmem:[#allocation2 + $0xa8] sm:$0xff]  }
 0x2ac   :  { %12240 = vmatmul.mubr.msk.bf16.gmra.mrb[48].mxu0 %vm2150_vm12, %v11166_v37  ;;  %v11169_v31 = vcombine.low %v8415_v5, %v8425_v41  ;;  %v8434_v30 = vrot.slane %v8433_v59, 4  ;;  %v8444_v57 = vrot.slane %v8443_v19, 4  ;;  %v8448_v9 = vrot.slane %v8446_v38, 5  ;;  %v13041_v59 = vld [vmem:[#allocation2 + $0x2c] sm:$0x1]  ;;  %v12893_v38 = vld [vmem:[#allocation2 + $0xb4] sm:$0xff]  }
 0x2ad   :  { %12243 = vmatprep.mubr.msk.bf16.mxu0 %vm2150_vm12, %v11167_v24  ;;  %v8477_v36 = vrot.slane %v8475_v13, 4  ;;  %v8480_v61 = vrot.slane %v8478_v12, 5  ;;  %v8486_v43 = vrot.slane %v8484_v62, 5  ;;  %v8490_v37 = vrot.slane %v8488_v54, 4  ;;  %v13039_v24 = vld [vmem:[#allocation2 + $0x28] sm:$0xf] }
 0x2ae   :  { %11940 = vmatmul.mubr.msk.bf16.gmra.mrb[12].mxu1 %vm2150_vm12, %v12886_v49  ;;  %v8458_v52 = vrot.slane %v8457_v33, 4  ;;  %v8468_v58 = vrot.slane %v8467_v39, 4  ;;  %v8472_v3 = vrot.slane %v8470_v22, 5  ;;  %v8439_v8 = vsel %vm13312_vm13, %v8434_v30, %v8438_v23  ;;  %v13042_v62 = vld [vmem:[#allocation2 + $0x38] sm:$0x1] }
 0x2af   :  { %11943 = vmatprep.mubr.msk.bf16.mxu1 %vm2150_vm12, %v12887_v18  ;;  %v8449_v14 = vsel %vm13312_vm13, %v8444_v57, %v8448_v9  ;;  %v8481_v7 = vor.u32 %v8480_v61, %v8477_v36  ;;  %v8491_v34 = vor.u32 %v8490_v37, %v8486_v43  ;;  %v8494_v11 = vshll.u32 %v7729_v4, 16  ;;  %v13043_v33 = vld [vmem:[#allocation2 + $0x40] sm:$0xf]  ;;  %v9052_v9 = vld [vmem:[#allocation2 + $0x48] sm:$0xe] }
 0x2b0   :  { %v8463_v20 = vsel %vm13312_vm13, %v8458_v52, %v8462_v46  ;;  %v8473_v16 = vsel %vm13312_vm13, %v8468_v58, %v8472_v3  ;;  %v9178_v29 = vrot.slane %v13037_v45, 5  ;;  %v11170_v60 = vcombine.low %v8439_v8, %v8449_v14  ;;  %v13040_v46 = vld [vmem:[#allocation2 + $0x34] sm:$0xf]  ;;  %v12894_v58 = vld [vmem:[#allocation2 + $0xc0] sm:$0xff]   ;;  %v13046_v14 = vld [vmem:[#allocation2 + $0x58] sm:$0xf] }
 0x2b1   :  { %v11171_v32 = vcombine.low %v8463_v20, %v8473_v16  ;;  %v8482_v42 = vrot.slane %v8481_v7, 4  ;;  %v8492_v50 = vrot.slane %v8491_v34, 4  ;;  %v8496_v40 = vrot.slane %v8494_v11, 5  ;;  %v9053_v8 = vld [vmem:[#allocation2 + $0x54] sm:$0xe]  ;;  %v12895_v34 = vld [vmem:[#allocation2 + $0xe4] sm:$0xff]  }
 0x2b2   :  { %v11205_v49 = vrot.slane %v9048_v25, 9  ;;  %v9180_v0 = vrot.slane %v9178_v29, 4  ;;  %v9181_v23 = vrot.slane %v13038_v53, 5  ;;  %v9185_v44 = vrot.slane %v13039_v24, 5  ;;  %v13047_v20 = vld [vmem:[#allocation2 + $0x50] sm:$0x1] }
 0x2b3   :  { %v8487_v26 = vsel %vm13312_vm13, %v8482_v42, %v8486_v43  ;;  %v8497_v18 = vsel %vm13312_vm13, %v8492_v50, %v8496_v40  ;;  %v9192_v47 = vrot.slane %v13040_v46, 5  ;;  %v11206_v21 = vrot.slane %v9049_v6, 9  ;;  %v9054_v45 = vld [vmem:[#allocation2 + $0x60] sm:$0xe]  ;;  %v13049_v40 = vld [vmem:[#allocation2 + $0x5c] sm:$0x1] }
 0x2b4   :  { %12244 = vmatmul.mubr.msk.bf16.gmra.mrb[52].mxu0 %vm2150_vm12, %v11168_v27  ;;  %v9179_v63 = vsel %vm13822_vm2, %v11205_v49, %v9178_v29  ;;  %v9182_v51 = vsel %vm13822_vm2, %v9180_v0, %v9181_v23  ;;  %v11172_v55 = vcombine.low %v8487_v26, %v8497_v18  ;;  %v9187_v41 = vrot.slane %v9185_v44, 4  ;;  %v13048_v29 = vld [vmem:[#allocation2 + $0x64] sm:$0xf]  ;;  %v13050_v23 = vld [vmem:[#allocation2 + $0x68] sm:$0x1] }
 0x2b5   :  { %12247 = vmatprep.mubr.msk.bf16.mxu0 %vm2150_vm12, %v11169_v31  ;;  %v11238_v5 = vcombine.low %v9179_v63, %v9182_v51  ;;  %v9188_v19 = vrot.slane %v13041_v59, 5  ;;  %v11207_v13 = vrot.slane %v9050_v2, 9  ;;  %v9194_v12 = vrot.slane %v9192_v47, 4  ;;  %v9051_v31 = vld [vmem:[#allocation2 + $0x3c] sm:$0xe]  ;;  %v12896_v51 = vld [vmem:[#allocation2 + $0xf0] sm:$0xff]  }
 0x2b6   :  { %11944 = vmatmul.mubr.msk.bf16.gmra.mrb[16].mxu1 %vm2150_vm12, %v12888_v28  ;;  %v9195_v54 = vrot.slane %v13042_v62, 5  ;;  %v9199_v39 = vrot.slane %v13043_v33, 5  ;;  %v9186_v22 = vsel %vm13822_vm2, %v11206_v21, %v9185_v44  ;;  %v13044_v28 = vld [vmem:[#allocation2 + $0x4c] sm:$0xf]  ;;  %v11208_v43 = vrot.slane %v9051_v31, 9 }
 0x2b7   :  { %11947 = vmatprep.mubr.msk.bf16.mxu1 %vm2150_vm12, %v12889_v56  ;;  %v9189_v27 = vsel %vm13822_vm2, %v9187_v41, %v9188_v19  ;;  %v9193_v30 = vsel %vm13822_vm2, %v11207_v13, %v9192_v47  ;;  %v9206_v36 = vrot.slane %v13044_v28, 5  ;;  %v13045_v56 = vld [vmem:[#allocation2 + $0x44] sm:$0x1]  ;;  %v11209_v4 = vrot.slane %v9052_v9, 9  ;;  %v9055_v18 = vld [vmem:[#allocation2 + $0x6c] sm:$0xe] }
 0x2b8   :  { %v9196_v57 = vsel %vm13822_vm2, %v9194_v12, %v9195_v54  ;;  %v11239_v61 = vcombine.low %v9186_v22, %v9189_v27  ;;  %v9201_v37 = vrot.slane %v9199_v39, 4  ;;  %v9202_v52 = vrot.slane %v13045_v56, 5  ;;  %v13051_v24 = vld [vmem:[#allocation2 + $0x70] sm:$0xf]  ;;  %v13052_v41 = vld [vmem:[#allocation2 + $0x74] sm:$0x1] }
 0x2b9   :  { %v11240_v3 = vcombine.low %v9193_v30, %v9196_v57  ;;  %v9213_v7 = vrot.slane %v13046_v14, 5  ;;  %v9208_v11 = vrot.slane %v9206_v36, 4  ;;  %v9209_v16 = vrot.slane %v13047_v20, 5  ;;  %v9056_v19 = vld [vmem:[#allocation2 + $0x78] sm:$0xe] }
 0x2ba   :  { %v9220_v25 = vrot.slane %v13048_v29, 5  ;;  %v9207_v42 = vsel %vm13822_vm2, %v11209_v4, %v9206_v36  ;;  %v11211_v49 = vrot.slane %v9054_v45, 9  ;;  %v9223_v26 = vrot.slane %v13050_v23, 5  ;;  %v9057_v12 = vld [vmem:[#allocation2 + $0x84] sm:$0xe]  ;;  %v12898_v29 = vld [vmem:[#allocation2 + $0x108] sm:$0xff]  }
 0x2bb   :  { %v9215_v50 = vrot.slane %v9213_v7, 4  ;;  %v9210_v0 = vsel %vm13822_vm2, %v9208_v11, %v9209_v16  ;;  %v9227_v44 = vrot.slane %v13051_v24, 5  ;;  %v11212_v2 = vrot.slane %v9055_v18, 9  ;;  %v13054_v62 = vld [vmem:[#allocation2 + $0x88] sm:$0xf] }
 0x2bc   :  { %12248 = vmatmul.mubr.msk.bf16.gmra.mrb[56].mxu0 %vm2150_vm12, %v11170_v60  ;;  %v9200_v60 = vsel %vm13822_vm2, %v11208_v43, %v9199_v39  ;;  %v9222_v53 = vrot.slane %v9220_v25, 4  ;;  %v11242_v6 = vcombine.low %v9207_v42, %v9210_v0  ;;  %v15548_v47 = vsel %vm13822_vm2, %v11211_v49, %v9220_v25  ;;  %v9058_v33 = vld [vmem:[#allocation2 + $0x90] sm:$0xe]  ;;  %v13055_v39 = vld [vmem:[#allocation2 + $0x94] sm:$0xf] }
 0x2bd   :  { %12251 = vmatprep.mubr.msk.bf16.mxu0 %vm2150_vm12, %v11171_v32  ;;  %v11210_v32 = vrot.slane %v9053_v8, 9  ;;  %v9229_v21 = vrot.slane %v9227_v44, 4  ;;  %v9230_v59 = vrot.slane %v13052_v41, 5  ;;  %v9241_v54 = vrot.slane %v13054_v62, 5  ;;  %v9059_v57 = vld [vmem:[#allocation2 + $0x9c] sm:$0xe] }
 0x2be   :  { %11948 = vmatmul.mubr.msk.bf16.gmra.mrb[20].mxu1 %vm2150_vm12, %v12890_v15  ;;  %v9203_v15 = vsel %vm13822_vm2, %v9201_v37, %v9202_v52  ;;  %v9248_v22 = vrot.slane %v13055_v39, 5  ;;  %v11213_v30 = vrot.slane %v9056_v19, 9  ;;  %v13056_v9 = vld [vmem:[#allocation2 + $0xa0] sm:$0xf]  ;;  %v15568_v36 = vsel %vm13822_vm2, %v11212_v2, %v9227_v44  ;;  %v9060_v52 = vld [vmem:[#allocation2 + $0xa8] sm:$0xe] }
 0x2bf   :  { %11951 = vmatprep.mubr.msk.bf16.mxu1 %vm2150_vm12, %v12891_v35  ;;  %v9216_v35 = vrot.slane %v13049_v40, 5  ;;  %v11241_v63 = vcombine.low %v9200_v60, %v9203_v15  ;;  %v15544_v46 = vsel %vm13822_vm2, %v11210_v32, %v9213_v7  ;;  %v9255_v28 = vrot.slane %v13056_v9, 5  ;;  %v13057_v43 = vld [vmem:[#allocation2 + $0x80] sm:$0x1]  ;;  %v13059_v14 = vld [vmem:[#allocation2 + $0xac] sm:$0xf] }
 0x2c0   :  { %v9237_v37 = vrot.slane %v13057_v43, 5  ;;  %v11214_v56 = vrot.slane %v9057_v12, 9  ;;  %v11215_v8 = vrot.slane %v9058_v33, 9  ;;  %v9262_v7 = vrot.slane %v13059_v14, 5  ;;  %v13060_v20 = vld [vmem:[#allocation2 + $0x98] sm:$0x1] }
 0x2c1   :  { %v9250_v11 = vrot.slane %v9248_v22, 4  ;;  %v9251_v16 = vrot.slane %v13060_v20, 5  ;;  %v11216_v45 = vrot.slane %v9059_v57, 9  ;;  %v9257_v60 = vrot.slane %v9255_v28, 4  ;;  %v13061_v15 = vld [vmem:[#allocation2 + $0xa4] sm:$0x1] }
 0x2c2   :  { %v9258_v32 = vrot.slane %v13061_v15, 5  ;;  %v11217_v42 = vrot.slane %v9060_v52, 9  ;;  %v13062_v49 = vld [vmem:[#allocation2 + $0xb0] sm:$0x1]  ;;  %v13063_v23 = vld [vmem:[#allocation2 + $0xb8] sm:$0xf]  ;;  %v15588_v24 = vsel %vm13822_vm2, %v11215_v8, %v9248_v22 }
 0x2c3   :  { %v9265_v0 = vrot.slane %v13062_v49, 5  ;;  %v9264_v44 = vrot.slane %v9262_v7, 4  ;;  %v15597_v2 = vsel %vm13822_vm2, %v9250_v11, %v9251_v16  ;;  %v13068_v9 = vld [vmem:[#allocation2 + $0xd4] sm:$0x1]  ;;  %v13069_v43 = vld [vmem:[#allocation2 + $0xe8] sm:$0xf] }
 0x2c4   :  { %12252 = vmatmul.mubr.msk.bf16.gmra.mrb[60].mxu0 %vm2150_vm12, %v11172_v55  ;;  %v12897_v55 = vld [vmem:[#allocation2 + $0xfc] sm:$0xff]   ;;  %v15607_v41 = vsel %vm13822_vm2, %v9257_v60, %v9258_v32  ;;  %v12901_v8 = vld [vmem:[#allocation2 + $0x12c] sm:$0xff]   ;;  %v4696_v15 = vld [vmem:[#allocation2 + $0x108] sm:$0xf]  ;;  %vm10600_vm0 = vcmask 1040384  }
 0x2c5   :  { %12257 = vmatprep.mubr.msk.bf16.mxu0 %vm2150_vm12, %v11238_v5  ;;  %v15556_v5 = vsel %vm13822_vm2, %v9222_v53, %v9223_v26  ;;  %v9061_v53 = vld [vmem:[#allocation2 + $0xb4] sm:$0xe]  ;;  %v9269_v26 = vrot.slane %v13063_v23, 5  ;;  %v15616_v39 = vsel %vm13822_vm2, %v9264_v44, %v9265_v0  ;;  %v12900_v52 = vld [vmem:[#allocation2 + $0x120] sm:$0xff]   ;;  %v4693_v20 = vld [vmem:[#allocation2 + $0xfc] sm:$0xf] }
 0x2c6   :  { %11952 = vmatmul.mubr.msk.bf16.gmra.mrb[24].mxu1 %vm2150_vm12, %v12892_v10  ;;  %v15552_v10 = vsel %vm13822_vm2, %v9215_v50, %v9216_v35  ;;  %v11244_v31 = vcombine.low %v15548_v47, %v15556_v5  ;;  %v12899_v50 = vld [vmem:[#allocation2 + $0x114] sm:$0xff]   ;;  %v15582_v35 = vsel %vm13822_vm2, %v11214_v56, %v9241_v54  ;;  %v13065_v5 = vld [vmem:[#allocation2 + $0xd0] sm:$0xf]  ;;  %v11218_v19 = vrot.slane %v9061_v53, 9 }
 0x2c7   :  { %11955 = vmatprep.mubr.msk.bf16.mxu1 %vm2150_vm12, %v12893_v38  ;;  %v13053_v38 = vld [vmem:[#allocation2 + $0x7c] sm:$0xf]  ;;  %v11243_v27 = vcombine.low %v15544_v46, %v15552_v10  ;;  %v4687_v46 = vld [vmem:[#allocation2 + $0xe4] sm:$0xf]  ;;  %v9063_v10 = vld [vmem:[#allocation2 + $0xcc] sm:$0xe] }
 0x2c8   :  { %v9234_v13 = vrot.slane %v13053_v38, 5  ;;  %v13066_v38 = vld [vmem:[#allocation2 + $0xbc] sm:$0x1]  ;;  %v9271_v12 = vrot.slane %v9269_v26, 4  ;;  %v5123_v33 = vshll.u32 %v4687_v46, 16  ;;  %v5133_v56 = vshrl.u32 %v13069_v43, 16 }
 0x2c9   :  { %v5168_v49 = vshrl.u32 %v4693_v20, 16 }
 0x2ca   :  { %v15578_v40 = vsel %vm13822_vm2, %v11213_v30, %v9234_v13  ;;  %v11220_v30 = vrot.slane %v9063_v10, 9  ;;  %v5125_v11 = vrot.slane %v5123_v33, 5  ;;  %v12902_v10 = vld [vmem:[#allocation2 + $0x138] sm:$0xff]  }
 0x2cc   :  { %12258 = vmatmul.mubr.msk.bf16.vlgmr.msra.gmra.mrb[0].mxu0 %vm2150_vm12, %v11239_v61  ;;  %v15572_v61 = vsel %vm13822_vm2, %v9229_v21, %v9230_v59  ;;  %v9283_v21 = vrot.slane %v13065_v5, 5  ;;  %v15611_v59 = vsel %vm13822_vm2, %v11217_v42, %v9262_v7  ;;  %v15627_v7 = vsel %vm13822_vm2, %v11218_v19, %v9269_v26  ;;  %v13073_v19 = vld [vmem:[#allocation2 + $0xec] sm:$0x1] }
 0x2cd   :  { %12261 = vmatprep.mubr.msk.bf16.mxu0 %vm2150_vm12, %v11240_v3  ;;  %v13058_v3 = vld [vmem:[#allocation2 + $0x8c] sm:$0x1]  ;;  %v11245_v25 = vcombine.low %v15568_v36, %v15572_v61  ;;  %v11250_v16 = vcombine.low %v15611_v59, %v15616_v39  ;;  %v5171_v36 = vshll.u32 %v4693_v20, 16  ;;  %v13070_v61 = vld [vmem:[#allocation2 + $0x100] sm:$0xf]  ;;  %v5192_v26 = vshrl.u32 %v4696_v15, 16 }
 0x2ce   :  { %11956 = vmatmul.mubr.msk.bf16.gmra.mrb[28].mxu1 %vm2150_vm12, %v12894_v58  ;;  %v9236_v58 = vrot.slane %v9234_v13, 4  ;;  %v9244_v4 = vrot.slane %v13058_v3, 5  ;;  %v9272_v13 = vrot.slane %v13066_v38, 5  ;;  %v9285_v57 = vrot.slane %v9283_v21, 4  ;;  %v13076_v20 = vld [vmem:[#allocation2 + $0x104] sm:$0x1] }
 0x2cf   :  { %11959 = vmatprep.mubr.msk.bf16.mxu1 %vm2150_vm12, %v12895_v34  ;;  %v9243_v34 = vrot.slane %v9241_v54, 4  ;;  %v5120_v54 = vshrl.u32 %v4687_v46, 16  ;;  %v15649_v32 = vsel %vm13822_vm2, %v11220_v30, %v9283_v21  ;;  %v5181_v0 = vshrl.u32 %v13070_v61, 16  ;;  %v13074_v30 = vld [vmem:[#allocation2 + $0xf8] sm:$0x1] }
 0x2d0   :  { %v9238_v18 = vsel %vm13822_vm2, %v9236_v58, %v9237_v37  ;;  %v5129_v37 = vshll.u32 %v13069_v43, 16  ;;  %v5139_v38 = vshll.u32 %v13073_v19, 16  ;;  %v12904_v19 = vld [vmem:[#allocation2 + $0x150] sm:$0xff]  }
 0x2d1   :  { %v15593_v47 = vsel %vm13822_vm2, %v9243_v34, %v9244_v4  ;;  %v11246_v58 = vcombine.low %v15578_v40, %v9238_v18  ;;  %v11248_v4 = vcombine.low %v15588_v24, %v15597_v2  ;;  %v5122_v34 = vrot.slane %v5120_v54, 4  ;;  %v9066_v24 = vld [vmem:[#allocation2 + $0x108] sm:$0xe]  ;;  %v13078_v2 = vld [vmem:[#allocation2 + $0x10c] sm:$0xf] }
 0x2d2   :  { %v11247_v3 = vcombine.low %v15582_v35, %v15593_v47  ;;  %v5135_v40 = vrot.slane %v5133_v56, 4  ;;  %v9064_v35 = vld [vmem:[#allocation2 + $0xf0] sm:$0xe]  ;;  %v5195_v18 = vshll.u32 %v4696_v15, 16  ;;  %v5173_v54 = vrot.slane %v5171_v36, 5 }
 0x2d3   :  { %v5126_v23 = vor.u32 %v5125_v11, %v5122_v34  ;;  %v15676_v34 = vrot.slane %v5139_v38, 5  ;;  %v5187_v15 = vshll.u32 %v13076_v20, 16  ;;  %v13077_v36 = vld [vmem:[#allocation2 + $0x104] sm:$0x1] }
 0x2d4   :  { %12262 = vmatmul.mubr.msk.bf16.gmra.mrb[4].mxu0 %vm2150_vm12, %v11241_v63  ;;  %v9062_v63 = vld [vmem:[#allocation2 + $0xc0] sm:$0xe] }
 0x2d5   :  { %12265 = vmatprep.mubr.msk.bf16.mxu0 %vm2150_vm12, %v11242_v6  ;;  %v11219_v62 = vrot.slane %v9062_v63, 9  ;;  %v13071_v63 = vld [vmem:[#allocation2 + $0xf4] sm:$0xf] }
 0x2d6   :  { %11960 = vmatmul.mubr.msk.bf16.gmra.mrb[32].mxu1 %vm2150_vm12, %v12896_v51  ;;  %v13064_v51 = vld [vmem:[#allocation2 + $0xc4] sm:$0xf] }
 0x2d7   :  { %11963 = vmatprep.mubr.msk.bf16.mxu1 %vm2150_vm12, %v12897_v55  ;;  %v9276_v6 = vrot.slane %v13064_v51, 5  ;;  %v15601_v55 = vsel %vm13822_vm2, %v11216_v45, %v9255_v28  ;;  %v9286_v28 = vrot.slane %v13068_v9, 5  ;;  %v15633_v45 = vsel %vm13822_vm2, %v9271_v12, %v9272_v13  ;;  %v9065_v12 = vld [vmem:[#allocation2 + $0xfc] sm:$0xe] }
 0x2d8   :  { %v11249_v14 = vcombine.low %v15601_v55, %v15607_v41  ;;  %v11251_v53 = vcombine.low %v15627_v7, %v15633_v45  ;;  %v9290_v51 = vrot.slane %v13071_v63, 5  ;;  %v11221_v13 = vrot.slane %v9064_v35, 9  ;;  %v13088_v7 = vld [vmem:[#allocation2 + $0x130] sm:$0xf] }
 0x2d9   :  { %v9278_v22 = vrot.slane %v9276_v6, 4  ;;  %v15653_v42 = vsel %vm13822_vm2, %v9285_v57, %v9286_v28  ;;  %v9293_v57 = vrot.slane %v13074_v30, 5  ;;  %v5194_v9 = vrot.slane %v5192_v26, 4 }
 0x2da   :  { %v11253_v5 = vcombine.low %v15649_v32, %v15653_v42  ;;  %v5197_v28 = vrot.slane %v5195_v18, 5  ;;  %v9292_v43 = vrot.slane %v9290_v51, 4  ;;  %v11222_v11 = vrot.slane %v9065_v12, 9  ;;  %v13079_v18 = vld [vmem:[#allocation2 + $0x110] sm:$0x1] }
 0x2db   :  { %v5211_v63 = vshll.u32 %v13079_v18, 16  ;;  %v11223_v12 = vrot.slane %v9066_v24, 9  ;;  %v5273_v45 = vshll.u32 %v13088_v7, 16 }
 0x2dc   :  { %12266 = vmatmul.mubr.msk.bf16.gmra.mrb[8].mxu0 %vm2150_vm12, %v11243_v27  ;;  %v13067_v27 = vld [vmem:[#allocation2 + $0xc8] sm:$0x1] }
 0x2dd   :  { %12269 = vmatprep.mubr.msk.bf16.mxu0 %vm2150_vm12, %v11244_v31  ;;  %v9279_v31 = vrot.slane %v13067_v27, 5  ;;  %v12903_v27 = vld [vmem:[#allocation2 + $0x144] sm:$0xff]  }
 0x2de   :  { %11964 = vmatmul.mubr.msk.bf16.gmra.mrb[36].mxu1 %vm2150_vm12, %v12898_v29  ;;  %v15637_v29 = vsel %vm13822_vm2, %v11219_v62, %v9276_v6  ;;  %v13072_v6 = vld [vmem:[#allocation2 + $0x10c] sm:$0xf]  ;;  %v5170_v62 = vrot.slane %v5168_v49, 4 }
 0x2df   :  { %11967 = vmatprep.mubr.msk.bf16.mxu1 %vm2150_vm12, %v12899_v50  ;;  %v15641_v60 = vsel %vm13822_vm2, %v9278_v22, %v9279_v31  ;;  %v15655_v50 = vrot.slane %v5129_v37, 5  ;;  %v5201_v46 = vshll.u32 %v13072_v6, 16  ;;  %v5205_v47 = vshrl.u32 %v13072_v6, 16  ;;  %v13075_v37 = vld [vmem:[#allocation2 + $0x100] sm:$0xf] }
 0x2e0   :  { %v11252_v44 = vcombine.low %v15637_v29, %v15641_v60  ;;  %v5183_v22 = vrot.slane %v5181_v0, 4  ;;  %v15669_v31 = vrot.slane %v5126_v23, 4  ;;  %v9297_v56 = vrot.slane %v13075_v37, 5 }
 0x2e1   :  { %v5136_v21 = vor.u32 %v5135_v40, %v15655_v50  ;;  %v15685_v40 = vsel %vm13822_vm2, %v11221_v13, %v9290_v51  ;;  %v5174_v35 = vor.u32 %v5173_v54, %v5170_v62  ;;  %v15695_v0 = vsel %vm13822_vm2, %v9292_v43, %v9293_v57  ;;  %v4699_v51 = vld [vmem:[#allocation2 + $0x114] sm:$0xf]  ;;  %v13081_v62 = vld [vmem:[#allocation2 + $0x110] sm:$0x1] }
 0x2e2   :  { %v5132_v49 = vsel %vm13312_vm13, %v15669_v31, %v15655_v50  ;;  %v9299_v23 = vrot.slane %v9297_v56, 4  ;;  %v15704_v6 = vsel %vm13822_vm2, %v11222_v11, %v9297_v56  ;;  %v9307_v54 = vrot.slane %v13081_v62, 5 }
 0x2e3   :  { %v5175_v38 = vrot.slane %v5174_v35, 4  ;;  %v5216_v30 = vshrl.u32 %v4699_v51, 16  ;;  %v5219_v57 = vshll.u32 %v4699_v51, 16  ;;  %v5213_v43 = vrot.slane %v5211_v63, 5 }
 0x2e4   :  { %12270 = vmatmul.mubr.msk.bf16.gmra.mrb[12].mxu0 %vm2150_vm12, %v11245_v25  ;;  %v5177_v25 = vshll.u32 %v13070_v61, 16  ;;  %v9300_v61 = vrot.slane %v13077_v36, 5  ;;  %v13084_v36 = vld [vmem:[#allocation2 + $0x11c] sm:$0x1]  ;;  %v11254_v18 = vcombine.low %v15685_v40, %v15695_v0 }
 0x2e5   :  { %12273 = vmatprep.mubr.msk.bf16.mxu0 %vm2150_vm12, %v11246_v58  ;;  %v5207_v58 = vrot.slane %v5205_v47, 4  ;;  %v9067_v47 = vld [vmem:[#allocation2 + $0x114] sm:$0xe]  ;;  %v5218_v39 = vrot.slane %v5216_v30, 4  ;;  %v13095_v40 = vld [vmem:[#allocation2 + $0x13c] sm:$0xf] }
 0x2e6   :  { %11968 = vmatmul.mubr.msk.bf16.gmra.mrb[40].mxu1 %vm2150_vm12, %v12900_v52  ;;  %v15667_v33 = vrot.slane %v5177_v25, 5  ;;  %v15671_v52 = vrot.slane %v5201_v46, 5  ;;  %v5198_v25 = vor.u32 %v5197_v28, %v5194_v9  ;;  %v5189_v46 = vrot.slane %v5187_v15, 5  ;;  %v4702_v15 = vld [vmem:[#allocation2 + $0x120] sm:$0xf] }
 0x2e7   :  { %11971 = vmatprep.mubr.msk.bf16.mxu1 %vm2150_vm12, %v12901_v8  ;;  %v15674_v8 = vrot.slane %v5136_v21, 4  ;;  %v15708_v9 = vsel %vm13822_vm2, %v9299_v23, %v9300_v61  ;;  %v11224_v37 = vrot.slane %v9067_v47, 9  ;;  %v5235_v61 = vshll.u32 %v13084_v36, 16  ;;  %v12906_v23 = vld [vmem:[#allocation2 + $0x168] sm:$0xff]  }
 0x2e8   :  { %v5208_v26 = vor.u32 %v5207_v58, %v15671_v52  ;;  %v13082_v58 = vld [vmem:[#allocation2 + $0x11c] sm:$0x1]  ;;  %v5180_v55 = vsel %vm13312_vm13, %v5175_v38, %v15667_v33  ;;  %v11255_v63 = vcombine.low %v15704_v6, %v15708_v9  ;;  %v9332_v0 = vrot.slane %v13095_v40, 5 }
 0x2e9   :  { %v5142_v50 = vsel %vm13312_vm13, %v15674_v8, %v15676_v34  ;;  %v9314_v8 = vrot.slane %v13082_v58, 5  ;;  %v13083_v34 = vld [vmem:[#allocation2 + $0x118] sm:$0xf] }
 0x2ea   :  { %v5209_v28 = vrot.slane %v5208_v26, 4  ;;  %v5225_v11 = vshll.u32 %v13083_v34, 16  ;;  %v5229_v20 = vshrl.u32 %v13083_v34, 16  ;;  %v15748_v26 = vcombine.low %v5132_v49, %v5142_v50 }
 0x2eb   :  { %v15762_v50 = vrot.slane %v5235_v61, 5 }
 0x2ec   :  { %12274 = vmatmul.mubr.msk.bf16.gmra.mrb[16].mxu0 %vm2150_vm12, %v11247_v3  ;;  %v5184_v3 = vor.u32 %v5183_v22, %v15667_v33  ;;  %v12905_v22 = vld [vmem:[#allocation2 + $0x15c] sm:$0xff]   ;;  %v5214_v33 = vsel %vm13312_vm13, %v5209_v28, %v5213_v43  ;;  %v4708_v43 = vld [vmem:[#allocation2 + $0x138] sm:$0xf] }
 0x2ed   :  { %12277 = vmatprep.mubr.msk.bf16.mxu0 %vm2150_vm12, %v11248_v4  ;;  %v9304_v4 = vrot.slane %v13078_v2, 5  ;;  %v5231_v2 = vrot.slane %v5229_v20, 4  ;;  %v5288_v20 = vshrl.u32 %v4708_v43, 16 }
 0x2ee   :  { %11972 = vmatmul.mubr.msk.bf16.gmra.mrb[44].mxu1 %vm2150_vm12, %v12902_v10  ;;  %v13080_v10 = vld [vmem:[#allocation2 + $0x118] sm:$0xf]  ;;  %v5185_v13 = vrot.slane %v5184_v3, 4 }
 0x2ef   :  { %11975 = vmatprep.mubr.msk.bf16.mxu1 %vm2150_vm12, %v12903_v27  ;;  %v9311_v21 = vrot.slane %v13080_v10, 5  ;;  %v5199_v27 = vrot.slane %v5198_v25, 4  ;;  %v9306_v31 = vrot.slane %v9304_v4, 4  ;;  %v5240_v25 = vshrl.u32 %v4702_v15, 16 }
 0x2f0   :  { %v5190_v41 = vsel %vm13312_vm13, %v5185_v13, %v5189_v46  ;;  %v12907_v46 = vld [vmem:[#allocation2 + $0x174] sm:$0xff]   ;;  %v4705_v13 = vld [vmem:[#allocation2 + $0x12c] sm:$0xf] }
 0x2f1   :  { %v9313_v56 = vrot.slane %v9311_v21, 4  ;;  %v5204_v35 = vsel %vm13312_vm13, %v5199_v27, %v15671_v52  ;;  %v15734_v59 = vsel %vm13822_vm2, %v9306_v31, %v9307_v54  ;;  %v15740_v3 = vsel %vm13822_vm2, %v11224_v37, %v9311_v21  ;;  %v13085_v21 = vld [vmem:[#allocation2 + $0x124] sm:$0xf]  ;;  %v9068_v54 = vld [vmem:[#allocation2 + $0x120] sm:$0xe] }
 0x2f2   :  { %v15746_v52 = vrot.slane %v5225_v11, 5  ;;  %v15754_v51 = vcombine.low %v5180_v55, %v5190_v41  ;;  %v5253_v38 = vshrl.u32 %v13085_v21, 16  ;;  %v5242_v62 = vrot.slane %v5240_v25, 4  ;;  %v13086_v31 = vld [vmem:[#allocation2 + $0x128] sm:$0x1] }
 0x2f3   :  { %v15744_v24 = vsel %vm13822_vm2, %v9313_v56, %v9314_v8  ;;  %v5259_v30 = vshll.u32 %v13086_v31, 16  ;;  %v5264_v37 = vshrl.u32 %v4705_v13, 16  ;;  %v5267_v56 = vshll.u32 %v4705_v13, 16  ;;  %v13089_v55 = vld [vmem:[#allocation2 + $0x13c] sm:$0xf] }
 0x2f4   :  { %12278 = vmatmul.mubr.msk.bf16.gmra.mrb[20].mxu0 %vm2150_vm12, %v11249_v14  ;;  %v15726_v14 = vsel %vm13822_vm2, %v11223_v12, %v9304_v4  ;;  %v5243_v4 = vshll.u32 %v4702_v15, 16  ;;  %v15758_v12 = vcombine.low %v5204_v35, %v5214_v33  ;;  %v11257_v49 = vcombine.low %v15740_v3, %v15744_v24  ;;  %v12908_v33 = vld [vmem:[#allocation2 + $0x180] sm:$0xff]   ;;  %v13091_v31 = vld [vmem:[#allocation2 + $0x130] sm:$0xf] }
 0x2f5   :  { %12281 = vmatprep.mubr.msk.bf16.mxu0 %vm2150_vm12, %v11250_v16  ;;  %v5221_v16 = vrot.slane %v5219_v57, 5  ;;  %v11256_v47 = vcombine.low %v15726_v14, %v15734_v59  ;;  %v13087_v57 = vld [vmem:[#allocation2 + $0x124] sm:$0xf]  ;;  %v5255_v34 = vrot.slane %v5253_v38, 4  ;;  %v11225_v11 = vrot.slane %v9068_v54, 9 }
 0x2f6   :  { %11976 = vmatmul.mubr.msk.bf16.gmra.mrb[48].mxu1 %vm2150_vm12, %v12904_v19  ;;  %v5249_v19 = vshll.u32 %v13085_v21, 16  ;;  %v5245_v27 = vrot.slane %v5243_v4, 5  ;;  %v9318_v28 = vrot.slane %v13087_v57, 5  ;;  %v5291_v15 = vshll.u32 %v4708_v43, 16  ;;  %v12909_v4 = vld [vmem:[#allocation2 + $0x18c] sm:$0xff]  }
 0x2f7   :  { %11979 = vmatprep.mubr.msk.bf16.mxu1 %vm2150_vm12, %v12905_v22  ;;  %v5222_v10 = vor.u32 %v5221_v16, %v5218_v39  ;;  %v5232_v22 = vor.u32 %v5231_v2, %v15746_v52  ;;  %v5297_v41 = vshll.u32 %v13089_v55, 16  ;;  %v5301_v29 = vshrl.u32 %v13089_v55, 16  ;;  %v13090_v39 = vld [vmem:[#allocation2 + $0x128] sm:$0x1]  ;;  %v13092_v57 = vld [vmem:[#allocation2 + $0x134] sm:$0x1] }
 0x2f8   :  { %v15777_v8 = vrot.slane %v5249_v19, 5  ;;  %v9320_v35 = vrot.slane %v9318_v28, 4  ;;  %v9321_v16 = vrot.slane %v13090_v39, 5  ;;  %v5266_v36 = vrot.slane %v5264_v37, 4  ;;  %v9069_v19 = vld [vmem:[#allocation2 + $0x12c] sm:$0xe] }
 0x2f9   :  { %v15775_v58 = vrot.slane %v5222_v10, 4  ;;  %v15779_v60 = vrot.slane %v5232_v22, 4  ;;  %v5269_v61 = vrot.slane %v5267_v56, 5  ;;  %v15781_v25 = vrot.slane %v5273_v45, 5  ;;  %v4711_v43 = vld [vmem:[#allocation2 + $0x144] sm:$0xf] }
 0x2fa   :  { %v15788_v10 = vrot.slane %v5259_v30, 5  ;;  %v15792_v21 = vsel %vm13822_vm2, %v11225_v11, %v9318_v28  ;;  %v5290_v38 = vrot.slane %v5288_v20, 4  ;;  %v5293_v13 = vrot.slane %v5291_v15, 5  ;;  %v9070_v56 = vld [vmem:[#allocation2 + $0x138] sm:$0xe] }
 0x2fb   :  { %v5303_v54 = vrot.slane %v5301_v29, 4  ;;  %v5238_v22 = vsel %vm13312_vm13, %v15779_v60, %v15762_v50  ;;  %v9325_v30 = vrot.slane %v13091_v31, 5  ;;  %v5283_v28 = vshll.u32 %v13092_v57, 16  ;;  %v13093_v45 = vld [vmem:[#allocation2 + $0x134] sm:$0x1] }
 0x2fc   :  { %12282 = vmatmul.mubr.msk.bf16.gmra.mrb[24].mxu0 %vm2150_vm12, %v11251_v53  ;;  %v5277_v53 = vshrl.u32 %v13088_v7, 16  ;;  %v15813_v32 = vsel %vm13822_vm2, %v9320_v35, %v9321_v16  ;;  %v11226_v42 = vrot.slane %v9069_v19, 9  ;;  %v9071_v15 = vld [vmem:[#allocation2 + $0x144] sm:$0xe]  ;;  %v5312_v55 = vshrl.u32 %v4711_v43, 16 }
 0x2fd   :  { %12285 = vmatprep.mubr.msk.bf16.mxu0 %vm2150_vm12, %v11252_v44  ;;  %v5246_v44 = vor.u32 %v5245_v27, %v5242_v62  ;;  %v15794_v62 = vrot.slane %v5297_v41, 5  ;;  %v5315_v41 = vshll.u32 %v4711_v43, 16  ;;  %v9327_v29 = vrot.slane %v9325_v30, 4  ;;  %v13096_v39 = vld [vmem:[#allocation2 + $0x148] sm:$0xf] }
 0x2fe   :  { %11980 = vmatmul.mubr.msk.bf16.gmra.mrb[52].mxu1 %vm2150_vm12, %v12906_v23  ;;  %v5279_v2 = vrot.slane %v5277_v53, 4  ;;  %v5228_v23 = vsel %vm13312_vm13, %v15775_v58, %v15746_v52  ;;  %v9328_v53 = vrot.slane %v13093_v45, 5  ;;  %v11227_v35 = vrot.slane %v9070_v56, 9  ;;  %v13098_v57 = vld [vmem:[#allocation2 + $0x140] sm:$0x1] }
 0x2ff   :  { %11983 = vmatprep.mubr.msk.bf16.mxu1 %vm2150_vm12, %v12907_v46  ;;  %v5256_v46 = vor.u32 %v5255_v34, %v15777_v8  ;;  %v15804_v27 = vrot.slane %v5246_v44, 4  ;;  %v13094_v34 = vld [vmem:[#allocation2 + $0x140] sm:$0x1]  ;;  %v5304_v20 = vor.u32 %v5303_v54, %v15794_v62  ;;  %v5285_v44 = vrot.slane %v5283_v28, 5  ;;  %v13099_v56 = vld [vmem:[#allocation2 + $0x14c] sm:$0x1] }
 0x300   :  { %v5280_v37 = vor.u32 %v5279_v2, %v15781_v25  ;;  %v5307_v11 = vshll.u32 %v13094_v34, 16  ;;  %v9339_v16 = vrot.slane %v13096_v39, 5  ;;  %v13097_v2 = vld [vmem:[#allocation2 + $0x148] sm:$0xf]  ;;  %v9334_v31 = vrot.slane %v9332_v0, 4 }
 0x301   :  { %v15817_v7 = vrot.slane %v5256_v46, 4  ;;  %v5325_v46 = vshrl.u32 %v13097_v2, 16  ;;  %v5305_v45 = vrot.slane %v5304_v20, 4  ;;  %v5314_v34 = vrot.slane %v5312_v55, 4  ;;  %v13101_v55 = vld [vmem:[#allocation2 + $0x154] sm:$0xf] }
 0x302   :  { %v5309_v19 = vrot.slane %v5307_v11, 5  ;;  %v5317_v43 = vrot.slane %v5315_v41, 5  ;;  %v5252_v28 = vsel %vm13312_vm13, %v15804_v27, %v15777_v8  ;;  %v9342_v11 = vrot.slane %v13099_v56, 5  ;;  %v4714_v27 = vld [vmem:[#allocation2 + $0x150] sm:$0xf] }
 0x303   :  { %v5262_v6 = vsel %vm13312_vm13, %v15817_v7, %v15788_v10  ;;  %v15843_v9 = vsel %vm13822_vm2, %v9327_v29, %v9328_v53  ;;  %v5327_v8 = vrot.slane %v5325_v46, 4  ;;  %v13100_v53 = vld [vmem:[#allocation2 + $0x14c] sm:$0x1]  ;;  %v11258_v20 = vcombine.low %v15792_v21, %v15813_v32  ;;  %v9072_v52 = vld [vmem:[#allocation2 + $0x150] sm:$0xe] }
 0x304   :  { %12286 = vmatmul.mubr.msk.bf16.gmra.mrb[28].mxu0 %vm2150_vm12, %v11253_v5  ;;  %v5270_v5 = vor.u32 %v5269_v61, %v5266_v36  ;;  %v5281_v61 = vrot.slane %v5280_v37, 4  ;;  %v9341_v37 = vrot.slane %v9339_v16, 4  ;;  %v5331_v40 = vshll.u32 %v13100_v53, 16  ;;  %v4717_v32 = vld [vmem:[#allocation2 + $0x15c] sm:$0xf] }
 0x305   :  { %12289 = vmatprep.mubr.msk.bf16.mxu0 %vm2150_vm12, %v11254_v18  ;;  %v5294_v18 = vor.u32 %v5293_v13, %v5290_v38  ;;  %v9335_v38 = vrot.slane %v13098_v57, 5  ;;  %v11228_v13 = vrot.slane %v9071_v15, 9  ;;  %v5345_v41 = vshll.u32 %v13101_v55, 16 }
 0x306   :  { %11984 = vmatmul.mubr.msk.bf16.gmra.mrb[56].mxu1 %vm2150_vm12, %v12908_v33  ;;  %v12910_v33 = vld [vmem:[#allocation2 + $0x198] sm:$0xff]   ;;  %v5271_v36 = vrot.slane %v5270_v5, 4  ;;  %v15830_v5 = vsel %vm13822_vm2, %v11226_v42, %v9325_v30  ;;  %v5286_v59 = vsel %vm13312_vm13, %v5281_v61, %v5285_v44  ;;  %v5318_v42 = vor.u32 %v5317_v43, %v5314_v34  ;;  %v4720_v61 = vld [vmem:[#allocation2 + $0x168] sm:$0xf] }
 0x307   :  { %11987 = vmatprep.mubr.msk.bf16.mxu1 %vm2150_vm12, %v12909_v4  ;;  %v5321_v4 = vshll.u32 %v13097_v2, 16  ;;  %v5295_v54 = vrot.slane %v5294_v18, 4  ;;  %v15860_v10 = vsel %vm13822_vm2, %v9334_v31, %v9335_v38  ;;  %v15873_v7 = vsel %vm13822_vm2, %v9341_v37, %v9342_v11 }
 0x308   :  { %v5276_v14 = vsel %vm13312_vm13, %v5271_v36, %v15781_v25  ;;  %v15869_v25 = vsel %vm13822_vm2, %v11228_v13, %v9339_v16  ;;  %v5339_v18 = vshll.u32 %v4714_v27, 16  ;;  %v15890_v29 = vcombine.low %v5252_v28, %v5262_v6  ;;  %v9073_v28 = vld [vmem:[#allocation2 + $0x15c] sm:$0xe]  ;;  %v13106_v6 = vld [vmem:[#allocation2 + $0x158] sm:$0x1] }
 0x309   :  { %v5300_v30 = vsel %vm13312_vm13, %v5295_v54, %v15794_v62  ;;  %v15885_v62 = vcombine.low %v5228_v23, %v5238_v22  ;;  %v11259_v44 = vcombine.low %v15830_v5, %v15843_v9  ;;  %v15894_v50 = vcombine.low %v5276_v14, %v5286_v59  ;;  %v13105_v5 = vld [vmem:[#allocation2 + $0x16c] sm:$0xf] }
 0x30a   :  { %v11261_v23 = vcombine.low %v15869_v25, %v15873_v7  ;;  %v5319_v21 = vrot.slane %v5318_v42, 4  ;;  %v5349_v22 = vshrl.u32 %v13101_v55, 16  ;;  %v5341_v16 = vrot.slane %v5339_v18, 5  ;;  %v9074_v18 = vld [vmem:[#allocation2 + $0x168] sm:$0xe] }
 0x30b   :  { %v11229_v46 = vrot.slane %v9072_v52, 9  ;;  %v5360_v3 = vshrl.u32 %v4717_v32, 16  ;;  %v5363_v24 = vshll.u32 %v4717_v32, 16  ;;  %v5384_v54 = vshrl.u32 %v4720_v61, 16  ;;  %v13109_v52 = vld [vmem:[#allocation2 + $0x164] sm:$0x1] }
 0x30c   :  { %12290 = vmatmul.mubr.msk.bf16.gmra.mrb[32].mxu0 %vm2150_vm12, %v11255_v63  ;;  %v15845_v63 = vrot.slane %v5321_v4, 5  ;;  %v15909_v4 = vrot.slane %v5345_v41, 5  ;;  %v5351_v13 = vrot.slane %v5349_v22, 4  ;;  %v5393_v37 = vshll.u32 %v13105_v5, 16 }
 0x30d   :  { %12293 = vmatprep.mubr.msk.bf16.mxu0 %vm2150_vm12, %v11256_v47  ;;  %v15856_v47 = vsel %vm13822_vm2, %v11227_v35, %v9332_v0  ;;  %v5336_v0 = vshrl.u32 %v4714_v27, 16  ;;  %v5333_v35 = vrot.slane %v5331_v40, 5  ;;  %v5397_v56 = vshrl.u32 %v13105_v5, 16 }
 0x30e   :  { %11988 = vmatmul.mubr.msk.bf16.gmra.mrb[60].mxu1 %vm2150_vm12, %v12910_v33  ;;  %v5328_v15 = vor.u32 %v5327_v8, %v15845_v63  ;;  %v11260_v60 = vcombine.low %v15856_v47, %v15860_v10  ;;  %v13102_v33 = vld [vmem:[#allocation2 + $0x158] sm:$0x1]  ;;  %v9349_v9 = vrot.slane %v13106_v6, 5  ;;  %v13107_v8 = vld [vmem:[#allocation2 + $0x160] sm:$0xf]  ;;  %v5362_v14 = vrot.slane %v5360_v3, 4 }
 0x30f   :  { %12025 = vmatprep.mubr.msk.bf16.mxu1 %vm2150_vm12, %v15748_v26  ;;  %v5310_v26 = vsel %vm13312_vm13, %v5305_v45, %v5309_v19  ;;  %v5338_v39 = vrot.slane %v5336_v0, 4  ;;  %v5355_v36 = vshll.u32 %v13102_v33, 16  ;;  %v13103_v19 = vld [vmem:[#allocation2 + $0x154] sm:$0xf]  ;;  %v5387_v45 = vshll.u32 %v4720_v61, 16 }
 0x310   :  { %v15898_v58 = vcombine.low %v5300_v30, %v5310_v26  ;;  %v5329_v2 = vrot.slane %v5328_v15, 4  ;;  %v9346_v31 = vrot.slane %v13103_v19, 5  ;;  %v9353_v27 = vrot.slane %v13107_v8, 5 }
 0x311   :  { %v5342_v34 = vor.u32 %v5341_v16, %v5338_v39  ;;  %v15916_v43 = vrot.slane %v5355_v36, 5  ;;  %v5352_v10 = vor.u32 %v5351_v13, %v15909_v4  ;;  %v11230_v30 = vrot.slane %v9073_v28, 9  ;;  %v13110_v39 = vld [vmem:[#allocation2 + $0x164] sm:$0x1]  ;;  %v4723_v16 = vld [vmem:[#allocation2 + $0x174] sm:$0xf] }
 0x312   :  { %v9348_v11 = vrot.slane %v9346_v31, 4  ;;  %v5386_v26 = vrot.slane %v5384_v54, 4  ;;  %v5389_v42 = vrot.slane %v5387_v45, 5  ;;  %v9347_v53 = vsel %vm13822_vm2, %v11229_v46, %v9346_v31  ;;  %v13111_v36 = vld [vmem:[#allocation2 + $0x170] sm:$0x1] }
 0x313   :  { %v15926_v40 = vrot.slane %v5393_v37, 5  ;;  %v5399_v0 = vrot.slane %v5397_v56, 4  ;;  %v15933_v41 = vrot.slane %v5342_v34, 4  ;;  %v9355_v22 = vrot.slane %v9353_v27, 4 }
 0x314   :  { %12294 = vmatmul.mubr.msk.bf16.gmra.mrb[36].mxu0 %vm2150_vm12, %v11257_v49  ;;  %v13104_v49 = vld [vmem:[#allocation2 + $0x160] sm:$0xf]  ;;  %v5390_v33 = vor.u32 %v5389_v42, %v5386_v26  ;;  %v5403_v61 = vshll.u32 %v13111_v36, 16  ;;  %v9354_v46 = vsel %vm13822_vm2, %v11230_v30, %v9353_v27  ;;  %v5411_v13 = vshll.u32 %v4723_v16, 16  ;;  %v13116_v26 = vld [vmem:[#allocation2 + $0x184] sm:$0xf] }
 0x315   :  { %12297 = vmatprep.mubr.msk.bf16.mxu0 %vm2150_vm12, %v11258_v20  ;;  %v5369_v57 = vshll.u32 %v13104_v49, 16  ;;  %v5373_v38 = vshrl.u32 %v13104_v49, 16  ;;  %v13108_v20 = vld [vmem:[#allocation2 + $0x16c] sm:$0xf]  ;;  %v5400_v19 = vor.u32 %v5399_v0, %v15926_v40  ;;  %v5348_v25 = vsel %vm13312_vm13, %v15933_v41, %v15909_v4 }
 0x316   :  { %12026 = vmatmul.mubr.msk.bf16.vlgmr.msra.gmra.mrb[32].mxu1 %vm2150_vm12, %v15431_v48  ;;  %v5324_v48 = vsel %vm13312_vm13, %v5319_v21, %v15845_v63  ;;  %v5365_v63 = vrot.slane %v5363_v24, 5  ;;  %v9360_v15 = vrot.slane %v13108_v20, 5  ;;  %v9356_v21 = vrot.slane %v13109_v52, 5  ;;  %v9075_v24 = vld [vmem:[#allocation2 + $0x174] sm:$0xe] }
 0x317   :  { %12029 = vmatprep.mubr.msk.bf16.mxu1 %vm2150_vm12, %v15754_v51  ;;  %v5334_v51 = vsel %vm13312_vm13, %v5329_v2, %v5333_v35  ;;  %v15920_v59 = vrot.slane %v5369_v57, 5  ;;  %v5375_v47 = vrot.slane %v5373_v38, 4  ;;  %v11231_v2 = vrot.slane %v9074_v18, 9  ;;  %v13113_v57 = vld [vmem:[#allocation2 + $0x178] sm:$0xf] }
 0x318   :  { %v15931_v55 = vcombine.low %v5324_v48, %v5334_v51  ;;  %v5366_v32 = vor.u32 %v5365_v63, %v5362_v14  ;;  %v9362_v31 = vrot.slane %v9360_v15, 4  ;;  %v9367_v38 = vrot.slane %v13113_v57, 5  ;;  %v13115_v63 = vld [vmem:[#allocation2 + $0x17c] sm:$0x1]  ;;  %v9076_v18 = vld [vmem:[#allocation2 + $0x180] sm:$0xe] }
 0x319   :  { %v5376_v35 = vor.u32 %v5375_v47, %v15920_v59  ;;  %v5408_v48 = vshrl.u32 %v4723_v16, 16  ;;  %v9357_v54 = vsel %vm13822_vm2, %v9355_v22, %v9356_v21  ;;  %v5391_v5 = vrot.slane %v5390_v33, 4  ;;  %v13117_v52 = vld [vmem:[#allocation2 + $0x17c] sm:$0x1]  ;;  %v13120_v57 = vld [vmem:[#allocation2 + $0x190] sm:$0xf] }
 0x31a   :  { %v5367_v45 = vrot.slane %v5366_v32, 4  ;;  %v5405_v37 = vrot.slane %v5403_v61, 5  ;;  %v9361_v56 = vsel %vm13822_vm2, %v11231_v2, %v9360_v15  ;;  %v11232_v51 = vrot.slane %v9075_v24, 9  ;;  %v13119_v2 = vld [vmem:[#allocation2 + $0x184] sm:$0xf] }
 0x31b   :  { %v5377_v34 = vrot.slane %v5376_v35, 4  ;;  %v9369_v14 = vrot.slane %v9367_v38, 4  ;;  %v9370_v47 = vrot.slane %v13115_v63, 5  ;;  %v5413_v30 = vrot.slane %v5411_v13, 5 }
 0x31c   :  { %12298 = vmatmul.mubr.msk.bf16.gmra.mrb[40].mxu0 %vm2150_vm12, %v11259_v44  ;;  %v9350_v44 = vsel %vm13822_vm2, %v9348_v11, %v9349_v9  ;;  %v5401_v11 = vrot.slane %v5400_v19, 4  ;;  %v13114_v9 = vld [vmem:[#allocation2 + $0x178] sm:$0xf]  ;;  %v9374_v42 = vrot.slane %v13116_v26, 5  ;;  %v5396_v4 = vsel %vm13312_vm13, %v5391_v5, %v15926_v40  ;;  %v13122_v5 = vld [vmem:[#allocation2 + $0x190] sm:$0xf] }
 0x31d   :  { %12301 = vmatprep.mubr.msk.bf16.mxu0 %vm2150_vm12, %v11260_v60  ;;  %v15940_v60 = vrot.slane %v5352_v10, 4  ;;  %v11262_v49 = vcombine.low %v9347_v53, %v9350_v44  ;;  %v5417_v8 = vshll.u32 %v13114_v9, 16  ;;  %v5421_v27 = vshrl.u32 %v13114_v9, 16 }
 0x31e   :  { %12030 = vmatmul.mubr.msk.bf16.gmra.mrb[36].mxu1 %vm2150_vm12, %v15758_v12  ;;  %v5379_v12 = vshll.u32 %v13110_v39, 16  ;;  %v5410_v10 = vrot.slane %v5408_v48, 4  ;;  %v5372_v53 = vsel %vm13312_vm13, %v5367_v45, %v15920_v59  ;;  %v15980_v20 = vsel %vm13822_vm2, %v11232_v51, %v9367_v38  ;;  %v13118_v39 = vld [vmem:[#allocation2 + $0x188] sm:$0x1]  ;;  %v9078_v51 = vld [vmem:[#allocation2 + $0x198] sm:$0xe] }
 0x31f   :  { %12033 = vmatprep.mubr.msk.bf16.mxu1 %vm2150_vm12, %v15885_v62  ;;  %v13112_v62 = vld [vmem:[#allocation2 + $0x170] sm:$0x1]  ;;  %v5358_v7 = vsel %vm13312_vm13, %v15940_v60, %v15916_v43  ;;  %v5406_v43 = vsel %vm13312_vm13, %v5401_v11, %v5405_v37  ;;  %v15982_v15 = vrot.slane %v5417_v8, 5  ;;  %v5423_v41 = vrot.slane %v5421_v27, 4  ;;  %v13123_v8 = vld [vmem:[#allocation2 + $0x188] sm:$0x1] }
 0x320   :  { %v9363_v3 = vrot.slane %v13112_v62, 5  ;;  %v5381_v28 = vrot.slane %v5379_v12, 5  ;;  %v9371_v59 = vsel %vm13822_vm2, %v9369_v14, %v9370_v47  ;;  %v5414_v44 = vor.u32 %v5413_v30, %v5410_v10  ;;  %v13124_v47 = vld [vmem:[#allocation2 + $0x194] sm:$0x1] }
 0x321   :  { %v5427_v21 = vshll.u32 %v13117_v52, 16  ;;  %v11233_v32 = vrot.slane %v9076_v18, 9  ;;  %v9376_v35 = vrot.slane %v9374_v42, 4  ;;  %v9377_v12 = vrot.slane %v13118_v39, 5  ;;  %v9079_v39 = vld [vmem:[#allocation2 + $0x1a4] sm:$0xe] }
 0x322   :  { %v9364_v6 = vsel %vm13822_vm2, %v9362_v31, %v9363_v3  ;;  %v10939_v16 = vcombine.low %v5348_v25, %v5358_v7  ;;  %v15986_v33 = vcombine.low %v5396_v4, %v5406_v43  ;;  %v11265_v36 = vcombine.low %v15980_v20, %v9371_v59  ;;  %v4729_v31 = vld [vmem:[#allocation2 + $0x18c] sm:$0xf]  ;;  %v4732_v25 = vld [vmem:[#allocation2 + $0x198] sm:$0xf] }
 0x323   :  { %v11264_v0 = vcombine.low %v9361_v56, %v9364_v6  ;;  %v5424_v61 = vor.u32 %v5423_v41, %v15982_v15  ;;  %v5445_v19 = vshrl.u32 %v13119_v2, 16  ;;  %v15994_v62 = vrot.slane %v5414_v44, 4  ;;  %v13126_v44 = vld [vmem:[#allocation2 + $0x1a8] sm:$0xf] }
 0x324   :  { %12302 = vmatmul.mubr.msk.bf16.gmra.mrb[44].mxu0 %vm2150_vm12, %v11261_v23  ;;  %v4726_v23 = vld [vmem:[#allocation2 + $0x180] sm:$0xf]  ;;  %v5429_v3 = vrot.slane %v5427_v21, 5  ;;  %v9381_v38 = vrot.slane %v13120_v57, 5  ;;  %v9375_v13 = vsel %vm13822_vm2, %v11233_v32, %v9374_v42  ;;  %v5465_v37 = vshll.u32 %v13122_v5, 16 }
 0x325   :  { %12305 = vmatprep.mubr.msk.bf16.mxu0 %vm2150_vm12, %v11262_v49  ;;  %v5432_v22 = vshrl.u32 %v4726_v23, 16  ;;  %v5435_v40 = vshll.u32 %v4726_v23, 16  ;;  %v9077_v49 = vld [vmem:[#allocation2 + $0x18c] sm:$0xe]  ;;  %v5469_v56 = vshrl.u32 %v13122_v5, 16  ;;  %v5425_v11 = vrot.slane %v5424_v61, 4 }
 0x326   :  { %12034 = vmatmul.mubr.msk.bf16.gmra.mrb[40].mxu1 %vm2150_vm12, %v15890_v29  ;;  %v11263_v29 = vcombine.low %v9354_v46, %v9357_v54  ;;  %v5441_v46 = vshll.u32 %v13119_v2, 16  ;;  %v9378_v54 = vsel %vm13822_vm2, %v9376_v35, %v9377_v12  ;;  %v5447_v9 = vrot.slane %v5445_v19, 4  ;;  %v13125_v23 = vld [vmem:[#allocation2 + $0x1a0] sm:$0x1]  ;;  %v13127_v21 = vld [vmem:[#allocation2 + $0x19c] sm:$0xf] }
 0x327   :  { %12037 = vmatprep.mubr.msk.bf16.mxu1 %vm2150_vm12, %v15894_v50  ;;  %v5382_v50 = vsel %vm13312_vm13, %v5377_v34, %v5381_v28  ;;  %v5434_v24 = vrot.slane %v5432_v22, 4  ;;  %v5437_v48 = vrot.slane %v5435_v40, 5  ;;  %v5456_v34 = vshrl.u32 %v4729_v31, 16  ;;  %v13128_v61 = vld [vmem:[#allocation2 + $0x194] sm:$0x1] }
 0x328   :  { %v10940_v60 = vcombine.low %v5372_v53, %v5382_v50  ;;  %v5459_v28 = vshll.u32 %v4729_v31, 16  ;;  %v16002_v6 = vrot.slane %v5441_v46, 5  ;;  %v5451_v27 = vshll.u32 %v13123_v8, 16 }
 0x329   :  { %v11266_v14 = vcombine.low %v9375_v13, %v9378_v54  ;;  %v9383_v63 = vrot.slane %v9381_v38, 4  ;;  %v9384_v10 = vrot.slane %v13124_v47, 5  ;;  %v5420_v30 = vsel %vm13312_vm13, %v15994_v62, %v15982_v15 }
 0x32a   :  { %v11235_v7 = vrot.slane %v9078_v51, 9  ;;  %v9391_v26 = vrot.slane %v13125_v23, 5  ;;  %v5458_v42 = vrot.slane %v5456_v34, 4  ;;  %v5461_v53 = vrot.slane %v5459_v28, 5 }
 0x32b   :  { %v5467_v50 = vrot.slane %v5465_v37, 5  ;;  %v5471_v4 = vrot.slane %v5469_v56, 4  ;;  %v5438_v18 = vor.u32 %v5437_v48, %v5434_v24  ;;  %v5448_v43 = vor.u32 %v5447_v9, %v16002_v6 }
 0x32c   :  { %12306 = vmatmul.mubr.msk.bf16.gmra.mrb[48].mxu0 %vm2150_vm12, %v11263_v29  ;;  %v9385_v15 = vsel %vm13822_vm2, %v9383_v63, %v9384_v10  ;;  %v5480_v41 = vshrl.u32 %v4732_v25, 16  ;;  %v5483_v59 = vshll.u32 %v4732_v25, 16  ;;  %v9395_v52 = vrot.slane %v13126_v44, 5 }
 0x32d   :  { %12309 = vmatprep.mubr.msk.bf16.mxu0 %vm2150_vm12, %v11264_v0  ;;  %v5430_v0 = vsel %vm13312_vm13, %v5425_v11, %v5429_v3  ;;  %v5489_v22 = vshll.u32 %v13127_v21, 16  ;;  %v5493_v40 = vshrl.u32 %v13127_v21, 16  ;;  %v5453_v12 = vrot.slane %v5451_v27, 5 }
 0x32e   :  { %12038 = vmatmul.mubr.msk.bf16.gmra.mrb[44].mxu1 %vm2150_vm12, %v15898_v58  ;;  %v13121_v58 = vld [vmem:[#allocation2 + $0x19c] sm:$0xf]  ;;  %v5475_v2 = vshll.u32 %v13128_v61, 16  ;;  %v10942_v46 = vcombine.low %v5420_v30, %v5430_v0  ;;  %v5439_v19 = vrot.slane %v5438_v18, 4  ;;  %v5449_v31 = vrot.slane %v5448_v43, 4 }
 0x32f   :  { %12041 = vmatprep.mubr.msk.bf16.mxu1 %vm2150_vm12, %v15931_v55  ;;  %v9388_v45 = vrot.slane %v13121_v58, 5  ;;  %v11234_v55 = vrot.slane %v9077_v49, 9  ;;  %v11236_v3 = vrot.slane %v9079_v39, 9  ;;  %v9397_v24 = vrot.slane %v9395_v52, 4  ;;  %v13129_v49 = vld [vmem:[#allocation2 + $0x1ac] sm:$0x1] }
 0x330   :  { %v9398_v57 = vrot.slane %v13129_v49, 5  ;;  %v5485_v48 = vrot.slane %v5483_v59, 5  ;;  %v5491_v13 = vrot.slane %v5489_v22, 5  ;;  %v5495_v54 = vrot.slane %v5493_v40, 4 }
 0x331   :  { %v9390_v29 = vrot.slane %v9388_v45, 4  ;;  %v9382_v20 = vsel %vm13822_vm2, %v11234_v55, %v9381_v38  ;;  %v9389_v32 = vsel %vm13822_vm2, %v11235_v7, %v9388_v45  ;;  %v5482_v38 = vrot.slane %v5480_v41, 4 }
 0x332   :  { %v11267_v62 = vcombine.low %v9382_v20, %v9385_v15  ;;  %v5477_v34 = vrot.slane %v5475_v2, 5  ;;  %v5444_v28 = vsel %vm13312_vm13, %v5439_v19, %v16002_v6  ;;  %v9396_v5 = vsel %vm13822_vm2, %v11236_v3, %v9395_v52 }
 0x333   :  { %v9392_v35 = vsel %vm13822_vm2, %v9390_v29, %v9391_v26  ;;  %v9399_v37 = vsel %vm13822_vm2, %v9397_v24, %v9398_v57  ;;  %v5454_v56 = vsel %vm13312_vm13, %v5449_v31, %v5453_v12  ;;  %v5486_v51 = vor.u32 %v5485_v48, %v5482_v38 }
 0x334   :  { %12310 = vmatmul.mubr.msk.bf16.gmra.mrb[52].mxu0 %vm2150_vm12, %v11265_v36  ;;  %v5472_v36 = vor.u32 %v5471_v4, %v5467_v50  ;;  %v5496_v11 = vor.u32 %v5495_v54, %v5491_v13  ;;  %v11269_v8 = vcombine.low %v9396_v5, %v9399_v37  ;;  %v10943_v27 = vcombine.low %v5444_v28, %v5454_v56 }
 0x335   :  { %12313 = vmatprep.mubr.msk.bf16.mxu0 %vm2150_vm12, %v11266_v14  ;;  %v5487_v1 = vrot.slane %v5486_v51, 4 }
 0x336   :  { %12042 = vmatmul.mubr.msk.bf16.gmra.mrb[48].mxu1 %vm2150_vm12, %v10939_v16  ;;  %v5462_v16 = vor.u32 %v5461_v53, %v5458_v42  ;;  %v5473_v45 = vrot.slane %v5472_v36, 4  ;;  %v5497_v63 = vrot.slane %v5496_v11, 4 }
 0x337   :  { %12045 = vmatprep.mubr.msk.bf16.mxu1 %vm2150_vm12, %v10940_v60  ;;  %v11268_v60 = vcombine.low %v9389_v32, %v9392_v35  ;;  %v5492_v10 = vsel %vm13312_vm13, %v5487_v1, %v5491_v13 }
 0x338   :  { %v5463_v58 = vrot.slane %v5462_v16, 4  ;;  %v5478_v55 = vsel %vm13312_vm13, %v5473_v45, %v5477_v34 }
 0x33a   :  { %v5468_v6 = vsel %vm13312_vm13, %v5463_v58, %v5467_v50 }
 0x33b   :  { %v10944_v14 = vcombine.low %v5468_v6, %v5478_v55 }
 0x33c   :  { %12314 = vmatmul.mubr.msk.bf16.gmra.mrb[56].mxu0 %vm2150_vm12, %v11267_v62 }
 0x33d   :  { %12317 = vmatprep.mubr.msk.bf16.mxu0 %vm2150_vm12, %v11268_v60 }
 0x33e   :  { %12046 = vmatmul.mubr.msk.bf16.gmra.mrb[52].mxu1 %vm2150_vm12, %v15986_v33  ;;  %v13130_v33 = vld [vmem:[#allocation2 + $0x1a0] sm:$0x1] }
 0x33f   :  { %12049 = vmatprep.mubr.msk.bf16.mxu1 %vm2150_vm12, %v10942_v46  ;;  %v5499_v9 = vshll.u32 %v13130_v33, 16 }
 0x341   :  { %v5501_v47 = vrot.slane %v5499_v9, 5 }
 0x343   :  { %v5502_v30 = vsel %vm13312_vm13, %v5497_v63, %v5501_v47 }
 0x344   :  { %12318 = vmatmul.mubr.msk.bf16.gmra.mrb[60].mxu0 %vm2150_vm12, %v11269_v8  ;;  %v10945_v25 = vcombine.low %v5492_v10, %v5502_v30 }
 0x346   :  { %12050 = vmatmul.mubr.msk.bf16.gmra.mrb[56].mxu1 %vm2150_vm12, %v10943_v27 }
 0x347   :  { %12053 = vmatprep.mubr.msk.bf16.mxu1 %vm2150_vm12, %v10944_v14 }
 0x34e   :  { %12054 = vmatmul.mubr.msk.bf16.gmra.mrb[60].mxu1 %vm2150_vm12, %v10945_v25 }
 0x369   :  { %v11929_v7 = vpop.f32.mrb[0].mxu1 }
 0x36a   :  { %v4320_v29 = vpop.f32.mrb[1].mxu1 }
 0x36b   :  { %v11930_v23 = vpop.f32.mrb[2].mxu1 }
 0x36c   :  { %v4323_v26 = vpop.f32.mrb[3].mxu1 }
 0x371   :  { %v11933_v42 = vpop.f32.mrb[4].mxu1 }
 0x372   :  { %v4336_v53 = vpop.f32.mrb[5].mxu1 }
 0x373   :  { %v16049_v50 = vpop.f32.mrb[6].mxu1 }
 0x374   :  { %v16051_v4 = vpop.f32.mrb[7].mxu1 }
 0x379   :  { %v16053_v0 = vpop.f32.mrb[8].mxu1 }
 0x37a   :  { %v16055_v18 = vpop.f32.mrb[9].mxu1 }
 0x37b   :  { %v16057_v43 = vpop.f32.mrb[10].mxu1 }
 0x37c   :  { %v16059_v17 = vpop.f32.mrb[11].mxu1 }
 0x381   :  { %v16061_v20 = vpop.f32.mrb[12].mxu1 }
 0x382   :  { %v16063_v15 = vpop.f32.mrb[13].mxu1 }
 0x383   :  { %v16065_v41 = vpop.f32.mrb[14].mxu1 }
 0x384   :  { %v16067_v59 = vpop.f32.mrb[15].mxu1 }
 0x389   :  { %v16069_v44 = vpop.f32.mrb[16].mxu1 }
 0x38a   :  { %v16071_v52 = vpop.f32.mrb[17].mxu1 }
 0x38b   :  { %v16073_v21 = vpop.f32.mrb[18].mxu1 }
 0x38c   :  { %v16075_v22 = vpop.f32.mrb[19].mxu1 }
 0x391   :  { %v16077_v40 = vpop.f32.mrb[20].mxu1 }
 0x392   :  { %v16079_v32 = vpop.f32.mrb[21].mxu1 }
 0x393   :  { %v16081_v35 = vpop.f32.mrb[22].mxu1 }
 0x394   :  { %v16083_v39 = vpop.f32.mrb[23].mxu1 }
 0x399   :  { %v16085_v12 = vpop.f32.mrb[24].mxu1 }
 0x39a   :  { %v16087_v16 = vpop.f32.mrb[25].mxu1 }
 0x39b   :  { %v16089_v36 = vpop.f32.mrb[26].mxu1 }
 0x39c   :  { %v16091_v61 = vpop.f32.mrb[27].mxu1 }
 0x39f   :  { %v12259_v2 = vpop.f32.mrb[0].mxu0 }
 0x3a0   :  { %v12323_v19 = vadd.f32 %v12259_v2, %v11929_v7  ;;  %v9631_v31 = vpop.f32.mrb[1].mxu0 }
 0x3a1   :  { %v16093_v46 = vpop.f32.mrb[28].mxu1  ;;  %v12324_v60 = vadd.f32 %v9631_v31, %v4320_v29  ;;  %v12260_v3 = vpop.f32.mrb[2].mxu0 }
 0x3a2   :  { %v16095_v62 = vpop.f32.mrb[29].mxu1  ;;  %v11368_v49 = vpack.c.bf16 %v12323_v19, %v12323_v19  ;;  %v12325_v57 = vadd.f32 %v12260_v3, %v11930_v23  ;;  %v9634_v38 = vpop.f32.mrb[3].mxu0  ;;  %v10405_v45 = vmul.f32 %v12323_v19, %v12323_v19  ;;  %v10273_v33 = vsel %vm2150_vm12, %v12323_v19, 0.0 }
 0x3a3   :  { %v16097_v24 = vpop.f32.mrb[30].mxu1  ;;  %v11366_v13 = vpack.c.bf16 %v12324_v60, %v12324_v60  ;;  %v10403_v54 = vmul.f32 %v12324_v60, %v12324_v60  ;;  %v12326_v58 = vadd.f32 %v9634_v38, %v4323_v26  ;;  %v10270_v28 = vsel %vm2150_vm12, %v12324_v60, 0.0 }
 0x3a4   :  { %v16099_v48 = vpop.f32.mrb[31].mxu1  ;;  %10208 = vst.msk [vmem:[%s16525_s2 + $0x8] sm:$0xf] %vm15_vm1, %v11368_v49  ;;  %v11369_v34 = vpack.c.bf16 %v12325_v57, %v12325_v57  ;;  %v10406_v51 = vmul.f32 %v12325_v57, %v12325_v57  ;;  %v10470_v63 = vsel %vm2150_vm12, %v10405_v45, 0.0  ;;  %v10275_v30 = vsel %vm2150_vm12, %v12325_v57, 0.0 }
 0x3a5   :  { %10206 = vst.msk [vmem:[%s16525_s2] sm:$0xf] %vm15_vm1, %v11366_v13  ;;  %v11367_v5 = vpack.c.bf16 %v12326_v58, %v12326_v58  ;;  %v10271_v37 = vsel %vm2150_vm12, %v12326_v58, 0.0  ;;  %v10404_v56 = vmul.f32 %v12326_v58, %v12326_v58  ;;  %v10467_v9 = vsel %vm2150_vm12, %v10403_v54, 0.0 }
 0x3a6   :  { %10209 = vst.msk [vmem:[%s16525_s2 + $0xc] sm:$0xf] %vm15_vm1, %v11369_v34  ;;  %v10272_v11 = vadd.f32 %v10271_v37, %v10270_v28  ;;  %v10472_v25 = vsel %vm2150_vm12, %v10406_v51, 0.0 }
 0x3a7   :  { %10207 = vst.msk [vmem:[%s16525_s2 + $0x4] sm:$0xf] %vm15_vm1, %v11367_v5  ;;  %v10468_v6 = vsel %vm2150_vm12, %v10404_v56, 0.0  ;;  %v12263_v55 = vpop.f32.mrb[4].mxu0 }
 0x3a8   :  { %v10274_v8 = vadd.f32 %v10273_v33, %v10272_v11  ;;  %v10469_v27 = vadd.f32 %v10468_v6, %v10467_v9  ;;  %v12327_v14 = vadd.f32 %v12263_v55, %v11933_v42  ;;  %v9647_v1 = vpop.f32.mrb[5].mxu0 }
 0x3a9   :  { %v12328_v47 = vadd.f32 %v9647_v1, %v4336_v53  ;;  %v12264_v10 = vpop.f32.mrb[6].mxu0 }
 0x3aa   :  { %v10471_v7 = vadd.f32 %v10470_v63, %v10469_v27  ;;  %v11372_v29 = vpack.c.bf16 %v12327_v14, %v12327_v14  ;;  %v9650_v23 = vpop.f32.mrb[7].mxu0  ;;  %v10276_v2 = vadd.f32 %v10275_v30, %v10274_v8  ;;  %v12329_v53 = vadd.f32 %v12264_v10, %v16049_v50 }
 0x3ab   :  { %v11370_v26 = vpack.c.bf16 %v12328_v47, %v12328_v47  ;;  %v10277_v19 = vsel %vm2150_vm12, %v12328_v47, 0.0  ;;  %v10407_v31 = vmul.f32 %v12328_v47, %v12328_v47  ;;  %v12330_v60 = vadd.f32 %v9650_v23, %v16051_v4 }
 0x3ac   :  { %10212 = vst.msk [vmem:[%s16525_s2 + $0x18] sm:$0xf] %vm15_vm1, %v11372_v29  ;;  %v10473_v42 = vadd.f32 %v10472_v25, %v10471_v7  ;;  %v10278_v3 = vadd.f32 %v10277_v19, %v10276_v2  ;;  %v10409_v57 = vmul.f32 %v12327_v14, %v12327_v14  ;;  %v11373_v13 = vpack.c.bf16 %v12329_v53, %v12329_v53 }
 0x3ad   :  { %10210 = vst.msk [vmem:[%s16525_s2 + $0x10] sm:$0xf] %vm15_vm1, %v11370_v26  ;;  %v10474_v49 = vsel %vm2150_vm12, %v10407_v31, 0.0  ;;  %v11371_v54 = vpack.c.bf16 %v12330_v60, %v12330_v60  ;;  %v10279_v58 = vsel %vm2150_vm12, %v12330_v60, 0.0  ;;  %v10408_v45 = vmul.f32 %v12330_v60, %v12330_v60 }
 0x3ae   :  { %v10475_v38 = vadd.f32 %v10474_v49, %v10473_v42  ;;  %10213 = vst.msk [vmem:[%s16525_s2 + $0x1c] sm:$0xf] %vm15_vm1, %v11373_v13  ;;  %v10280_v50 = vadd.f32 %v10279_v58, %v10278_v3  ;;  %v10281_v5 = vsel %vm2150_vm12, %v12327_v14, 0.0  ;;  %v10410_v37 = vmul.f32 %v12329_v53, %v12329_v53 }
 0x3af   :  { %v12267_v34 = vpop.f32.mrb[8].mxu0  ;;  %10211 = vst.msk [vmem:[%s16525_s2 + $0x14] sm:$0xf] %vm15_vm1, %v11371_v54  ;;  %v10476_v56 = vsel %vm2150_vm12, %v10408_v45, 0.0  ;;  %v10478_v33 = vsel %vm2150_vm12, %v10409_v57, 0.0  ;;  %v10283_v8 = vsel %vm2150_vm12, %v12329_v53, 0.0 }
 0x3b0   :  { %v12331_v4 = vadd.f32 %v12267_v34, %v16053_v0  ;;  %v9663_v28 = vpop.f32.mrb[9].mxu0  ;;  %v10282_v9 = vadd.f32 %v10281_v5, %v10280_v50  ;;  %v10477_v6 = vadd.f32 %v10476_v56, %v10475_v38  ;;  %v10480_v30 = vsel %vm2150_vm12, %v10410_v37, 0.0 }
 0x3b1   :  { %v12332_v51 = vadd.f32 %v9663_v28, %v16055_v18  ;;  %v12268_v11 = vpop.f32.mrb[10].mxu0 }
 0x3b2   :  { %v11376_v55 = vpack.c.bf16 %v12331_v4, %v12331_v4  ;;  %v9666_v0 = vpop.f32.mrb[11].mxu0  ;;  %v10479_v63 = vadd.f32 %v10478_v33, %v10477_v6  ;;  %v10284_v18 = vadd.f32 %v10283_v8, %v10282_v9  ;;  %v12333_v47 = vadd.f32 %v12268_v11, %v16057_v43 }
 0x3b3   :  { %v11374_v27 = vpack.c.bf16 %v12332_v51, %v12332_v51  ;;  %v10285_v14 = vsel %vm2150_vm12, %v12332_v51, 0.0  ;;  %v10411_v1 = vmul.f32 %v12332_v51, %v12332_v51  ;;  %v12334_v10 = vadd.f32 %v9666_v0, %v16059_v17 }
 0x3b4   :  { %10216 = vst.msk [vmem:[%s16525_s2 + $0x28] sm:$0xf] %vm15_vm1, %v11376_v55  ;;  %v10413_v7 = vmul.f32 %v12331_v4, %v12331_v4  ;;  %v10286_v29 = vadd.f32 %v10285_v14, %v10284_v18  ;;  %v10481_v23 = vadd.f32 %v10480_v30, %v10479_v63  ;;  %v11377_v26 = vpack.c.bf16 %v12333_v47, %v12333_v47 }
 0x3b5   :  { %10214 = vst.msk [vmem:[%s16525_s2 + $0x20] sm:$0xf] %vm15_vm1, %v11374_v27  ;;  %v10482_v25 = vsel %vm2150_vm12, %v10411_v1, 0.0  ;;  %v11375_v2 = vpack.c.bf16 %v12334_v10, %v12334_v10  ;;  %v10287_v19 = vsel %vm2150_vm12, %v12334_v10, 0.0  ;;  %v10412_v31 = vmul.f32 %v12334_v10, %v12334_v10 }
 0x3b6   :  { %v10483_v42 = vadd.f32 %v10482_v25, %v10481_v23  ;;  %10217 = vst.msk [vmem:[%s16525_s2 + $0x2c] sm:$0xf] %vm15_vm1, %v11377_v26  ;;  %v10288_v17 = vadd.f32 %v10287_v19, %v10286_v29  ;;  %v10289_v3 = vsel %vm2150_vm12, %v12331_v4, 0.0  ;;  %v10414_v49 = vmul.f32 %v12333_v47, %v12333_v47 }
 0x3b7   :  { %v12271_v43 = vpop.f32.mrb[12].mxu0  ;;  %10215 = vst.msk [vmem:[%s16525_s2 + $0x24] sm:$0xf] %vm15_vm1, %v11375_v2  ;;  %v10484_v57 = vsel %vm2150_vm12, %v10412_v31, 0.0  ;;  %v10486_v54 = vsel %vm2150_vm12, %v10413_v7, 0.0  ;;  %v10291_v50 = vsel %vm2150_vm12, %v12333_v47, 0.0 }
 0x3b8   :  { %v12335_v53 = vadd.f32 %v12271_v43, %v16061_v20  ;;  %v9679_v60 = vpop.f32.mrb[13].mxu0  ;;  %v10290_v58 = vadd.f32 %v10289_v3, %v10288_v17  ;;  %v10485_v45 = vadd.f32 %v10484_v57, %v10483_v42  ;;  %v10488_v11 = vsel %vm2150_vm12, %v10414_v49, 0.0 }
 0x3b9   :  { %v12336_v38 = vadd.f32 %v9679_v60, %v16063_v15  ;;  %v12272_v13 = vpop.f32.mrb[14].mxu0 }
 0x3ba   :  { %v11380_v34 = vpack.c.bf16 %v12335_v53, %v12335_v53  ;;  %v9682_v20 = vpop.f32.mrb[15].mxu0  ;;  %v10487_v37 = vadd.f32 %v10486_v54, %v10485_v45  ;;  %v10292_v15 = vadd.f32 %v10291_v50, %v10290_v58  ;;  %v12337_v56 = vadd.f32 %v12272_v13, %v16065_v41 }
 0x3bb   :  { %v11378_v4 = vpack.c.bf16 %v12336_v38, %v12336_v38  ;;  %v10293_v28 = vsel %vm2150_vm12, %v12336_v38, 0.0  ;;  %v10415_v5 = vmul.f32 %v12336_v38, %v12336_v38  ;;  %v12338_v51 = vadd.f32 %v9682_v20, %v16067_v59 }
 0x3bc   :  { %10220 = vst.msk [vmem:[%s16525_s2 + $0x38] sm:$0xf] %vm15_vm1, %v11380_v34  ;;  %v10417_v9 = vmul.f32 %v12335_v53, %v12335_v53  ;;  %v10294_v6 = vadd.f32 %v10293_v28, %v10292_v15  ;;  %v10489_v55 = vadd.f32 %v10488_v11, %v10487_v37  ;;  %v11381_v0 = vpack.c.bf16 %v12337_v56, %v12337_v56 }
 0x3bd   :  { %10218 = vst.msk [vmem:[%s16525_s2 + $0x30] sm:$0xf] %vm15_vm1, %v11378_v4  ;;  %v10490_v33 = vsel %vm2150_vm12, %v10415_v5, 0.0  ;;  %v11379_v8 = vpack.c.bf16 %v12338_v51, %v12338_v51  ;;  %v10295_v27 = vsel %vm2150_vm12, %v12338_v51, 0.0  ;;  %v10416_v14 = vmul.f32 %v12338_v51, %v12338_v51 }
 0x3be   :  { %v10491_v1 = vadd.f32 %v10490_v33, %v10489_v55  ;;  %10221 = vst.msk [vmem:[%s16525_s2 + $0x3c] sm:$0xf] %vm15_vm1, %v11381_v0  ;;  %v10296_v59 = vadd.f32 %v10295_v27, %v10294_v6  ;;  %v10297_v47 = vsel %vm2150_vm12, %v12335_v53, 0.0  ;;  %v10418_v10 = vmul.f32 %v12337_v56, %v12337_v56 }
 0x3bf   :  { %v12275_v41 = vpop.f32.mrb[16].mxu0  ;;  %10219 = vst.msk [vmem:[%s16525_s2 + $0x34] sm:$0xf] %vm15_vm1, %v11379_v8  ;;  %v10492_v30 = vsel %vm2150_vm12, %v10416_v14, 0.0  ;;  %v10494_v29 = vsel %vm2150_vm12, %v10417_v9, 0.0  ;;  %v10299_v19 = vsel %vm2150_vm12, %v12337_v56, 0.0 }
 0x3c0   :  { %v12339_v63 = vadd.f32 %v12275_v41, %v16069_v44  ;;  %v9695_v18 = vpop.f32.mrb[17].mxu0  ;;  %v10298_v23 = vadd.f32 %v10297_v47, %v10296_v59  ;;  %v10493_v26 = vadd.f32 %v10492_v30, %v10491_v1  ;;  %v10496_v3 = vsel %vm2150_vm12, %v10418_v10, 0.0 }
 0x3c1   :  { %v12340_v25 = vadd.f32 %v9695_v18, %v16071_v52  ;;  %v12276_v7 = vpop.f32.mrb[18].mxu0 }
 0x3c2   :  { %v11384_v2 = vpack.c.bf16 %v12339_v63, %v12339_v63  ;;  %v9698_v44 = vpop.f32.mrb[19].mxu0  ;;  %v10495_v17 = vadd.f32 %v10494_v29, %v10493_v26  ;;  %v10300_v52 = vadd.f32 %v10299_v19, %v10298_v23  ;;  %v12341_v53 = vadd.f32 %v12276_v7, %v16073_v21 }
 0x3c3   :  { %v11382_v31 = vpack.c.bf16 %v12340_v25, %v12340_v25  ;;  %v10301_v43 = vsel %vm2150_vm12, %v12340_v25, 0.0  ;;  %v10419_v42 = vmul.f32 %v12340_v25, %v12340_v25  ;;  %v12342_v60 = vadd.f32 %v9698_v44, %v16075_v22 }
 0x3c4   :  { %10224 = vst.msk [vmem:[%s16525_s2 + $0x48] sm:$0xf] %vm15_vm1, %v11384_v2  ;;  %v10421_v57 = vmul.f32 %v12339_v63, %v12339_v63  ;;  %v10302_v38 = vadd.f32 %v10301_v43, %v10300_v52  ;;  %v10497_v13 = vadd.f32 %v10496_v3, %v10495_v17  ;;  %v11385_v54 = vpack.c.bf16 %v12341_v53, %v12341_v53 }
 0x3c5   :  { %10222 = vst.msk [vmem:[%s16525_s2 + $0x40] sm:$0xf] %vm15_vm1, %v11382_v31  ;;  %v10498_v49 = vsel %vm2150_vm12, %v10419_v42, 0.0  ;;  %v11383_v58 = vpack.c.bf16 %v12342_v60, %v12342_v60  ;;  %v10303_v45 = vsel %vm2150_vm12, %v12342_v60, 0.0  ;;  %v10420_v34 = vmul.f32 %v12342_v60, %v12342_v60 }
 0x3c6   :  { %v10499_v20 = vadd.f32 %v10498_v49, %v10497_v13  ;;  %10225 = vst.msk [vmem:[%s16525_s2 + $0x4c] sm:$0xf] %vm15_vm1, %v11385_v54  ;;  %v10304_v22 = vadd.f32 %v10303_v45, %v10302_v38  ;;  %v10305_v28 = vsel %vm2150_vm12, %v12339_v63, 0.0  ;;  %v10422_v5 = vmul.f32 %v12341_v53, %v12341_v53 }
 0x3c7   :  { %v12279_v21 = vpop.f32.mrb[20].mxu0  ;;  %10223 = vst.msk [vmem:[%s16525_s2 + $0x44] sm:$0xf] %vm15_vm1, %v11383_v58  ;;  %v10500_v37 = vsel %vm2150_vm12, %v10420_v34, 0.0  ;;  %v10502_v51 = vsel %vm2150_vm12, %v10421_v57, 0.0  ;;  %v10307_v6 = vsel %vm2150_vm12, %v12341_v53, 0.0 }
 0x3c8   :  { %v12343_v50 = vadd.f32 %v12279_v21, %v16077_v40  ;;  %v9711_v4 = vpop.f32.mrb[21].mxu0  ;;  %v10306_v11 = vadd.f32 %v10305_v28, %v10304_v22  ;;  %v10501_v33 = vadd.f32 %v10500_v37, %v10499_v20  ;;  %v10504_v1 = vsel %vm2150_vm12, %v10422_v5, 0.0 }
 0x3c9   :  { %v12344_v15 = vadd.f32 %v9711_v4, %v16079_v32  ;;  %v12280_v56 = vpop.f32.mrb[22].mxu0 }
 0x3ca   :  { %v11388_v9 = vpack.c.bf16 %v12343_v50, %v12343_v50  ;;  %v9714_v40 = vpop.f32.mrb[23].mxu0  ;;  %v10503_v27 = vadd.f32 %v10502_v51, %v10501_v33  ;;  %v10308_v32 = vadd.f32 %v10307_v6, %v10306_v11  ;;  %v12345_v14 = vadd.f32 %v12280_v56, %v16081_v35 }
 0x3cb   :  { %v11386_v55 = vpack.c.bf16 %v12344_v15, %v12344_v15  ;;  %v10309_v0 = vsel %vm2150_vm12, %v12344_v15, 0.0  ;;  %v10423_v8 = vmul.f32 %v12344_v15, %v12344_v15  ;;  %v12346_v41 = vadd.f32 %v9714_v40, %v16083_v39 }
 0x3cc   :  { %10228 = vst.msk [vmem:[%s16525_s2 + $0x58] sm:$0xf] %vm15_vm1, %v11388_v9  ;;  %v10425_v63 = vmul.f32 %v12343_v50, %v12343_v50  ;;  %v10310_v18 = vadd.f32 %v10309_v0, %v10308_v32  ;;  %v10505_v47 = vadd.f32 %v10504_v1, %v10503_v27  ;;  %v11389_v10 = vpack.c.bf16 %v12345_v14, %v12345_v14 }
 0x3cd   :  { %10226 = vst.msk [vmem:[%s16525_s2 + $0x50] sm:$0xf] %vm15_vm1, %v11386_v55  ;;  %v10506_v59 = vsel %vm2150_vm12, %v10423_v8, 0.0  ;;  %v11387_v30 = vpack.c.bf16 %v12346_v41, %v12346_v41  ;;  %v10311_v25 = vsel %vm2150_vm12, %v12346_v41, 0.0  ;;  %v10424_v7 = vmul.f32 %v12346_v41, %v12346_v41 }
 0x3ce   :  { %v10507_v29 = vadd.f32 %v10506_v59, %v10505_v47  ;;  %10229 = vst.msk [vmem:[%s16525_s2 + $0x5c] sm:$0xf] %vm15_vm1, %v11389_v10  ;;  %v10312_v39 = vadd.f32 %v10311_v25, %v10310_v18  ;;  %v10313_v2 = vsel %vm2150_vm12, %v12343_v50, 0.0  ;;  %v10426_v44 = vmul.f32 %v12345_v14, %v12345_v14 }
 0x3cf   :  { %v12283_v35 = vpop.f32.mrb[24].mxu0  ;;  %10227 = vst.msk [vmem:[%s16525_s2 + $0x54] sm:$0xf] %vm15_vm1, %v11387_v30  ;;  %v10508_v19 = vsel %vm2150_vm12, %v10424_v7, 0.0  ;;  %v10510_v42 = vsel %vm2150_vm12, %v10425_v63, 0.0  ;;  %v10315_v60 = vsel %vm2150_vm12, %v12345_v14, 0.0 }
 0x3d0   :  { %v12347_v23 = vadd.f32 %v12283_v35, %v16085_v12  ;;  %v9727_v26 = vpop.f32.mrb[25].mxu0  ;;  %v10314_v17 = vadd.f32 %v10313_v2, %v10312_v39  ;;  %v10509_v52 = vadd.f32 %v10508_v19, %v10507_v29  ;;  %v10512_v58 = vsel %vm2150_vm12, %v10426_v44, 0.0 }
 0x3d1   :  { %v12348_v31 = vadd.f32 %v9727_v26, %v16087_v16  ;;  %v12284_v43 = vpop.f32.mrb[26].mxu0 }
 0x3d2   :  { %v11392_v53 = vpack.c.bf16 %v12347_v23, %v12347_v23  ;;  %v9730_v12 = vpop.f32.mrb[27].mxu0  ;;  %v10511_v38 = vadd.f32 %v10510_v42, %v10509_v52  ;;  %v10316_v16 = vadd.f32 %v10315_v60, %v10314_v17  ;;  %v12349_v13 = vadd.f32 %v12284_v43, %v16089_v36 }
 0x3d3   :  { %v11390_v3 = vpack.c.bf16 %v12348_v31, %v12348_v31  ;;  %v10317_v49 = vsel %vm2150_vm12, %v12348_v31, 0.0  ;;  %v10427_v57 = vmul.f32 %v12348_v31, %v12348_v31  ;;  %v12350_v54 = vadd.f32 %v9730_v12, %v16091_v61 }
 0x3d4   :  { %10232 = vst.msk [vmem:[%s16525_s2 + $0x68] sm:$0xf] %vm15_vm1, %v11392_v53  ;;  %v10429_v34 = vmul.f32 %v12347_v23, %v12347_v23  ;;  %v10318_v21 = vadd.f32 %v10317_v49, %v10316_v16  ;;  %v10513_v20 = vadd.f32 %v10512_v58, %v10511_v38  ;;  %v11393_v22 = vpack.c.bf16 %v12349_v13, %v12349_v13 }
 0x3d5   :  { %10230 = vst.msk [vmem:[%s16525_s2 + $0x60] sm:$0xf] %vm15_vm1, %v11390_v3  ;;  %v10514_v45 = vsel %vm2150_vm12, %v10427_v57, 0.0  ;;  %v11391_v50 = vpack.c.bf16 %v12350_v54, %v12350_v54  ;;  %v10319_v4 = vsel %vm2150_vm12, %v12350_v54, 0.0  ;;  %v10428_v28 = vmul.f32 %v12350_v54, %v12350_v54 }
 0x3d6   :  { %v10515_v5 = vadd.f32 %v10514_v45, %v10513_v20  ;;  %10233 = vst.msk [vmem:[%s16525_s2 + $0x6c] sm:$0xf] %vm15_vm1, %v11393_v22  ;;  %v10320_v61 = vadd.f32 %v10319_v4, %v10318_v21  ;;  %v10321_v56 = vsel %vm2150_vm12, %v12347_v23, 0.0  ;;  %v10430_v51 = vmul.f32 %v12349_v13, %v12349_v13 }
 0x3d7   :  { %v12287_v36 = vpop.f32.mrb[28].mxu0  ;;  %10231 = vst.msk [vmem:[%s16525_s2 + $0x64] sm:$0xf] %vm15_vm1, %v11391_v50  ;;  %v10516_v11 = vsel %vm2150_vm12, %v10428_v28, 0.0  ;;  %v10518_v40 = vsel %vm2150_vm12, %v10429_v34, 0.0  ;;  %v10323_v8 = vsel %vm2150_vm12, %v12349_v13, 0.0 }
 0x3d8   :  { %v12351_v37 = vadd.f32 %v12287_v36, %v16093_v46  ;;  %v9743_v15 = vpop.f32.mrb[29].mxu0  ;;  %v10322_v6 = vadd.f32 %v10321_v56, %v10320_v61  ;;  %v10517_v55 = vadd.f32 %v10516_v11, %v10515_v5  ;;  %v10520_v63 = vsel %vm2150_vm12, %v10430_v51, 0.0 }
 0x3d9   :  { %v12352_v33 = vadd.f32 %v9743_v15, %v16095_v62  ;;  %v12288_v9 = vpop.f32.mrb[30].mxu0 }
 0x3da   :  { %v11396_v0 = vpack.c.bf16 %v12351_v37, %v12351_v37  ;;  %v9746_v46 = vpop.f32.mrb[31].mxu0  ;;  %v10519_v41 = vadd.f32 %v10518_v40, %v10517_v55  ;;  %v10324_v62 = vadd.f32 %v10323_v8, %v10322_v6  ;;  %v12353_v1 = vadd.f32 %v12288_v9, %v16097_v24 }
 0x3db   :  { %v11394_v27 = vpack.c.bf16 %v12352_v33, %v12352_v33  ;;  %v10325_v32 = vsel %vm2150_vm12, %v12352_v33, 0.0  ;;  %v10431_v14 = vmul.f32 %v12352_v33, %v12352_v33  ;;  %v12354_v59 = vadd.f32 %v9746_v46, %v16099_v48 }
 0x3dc   :  { %10236 = vst.msk [vmem:[%s16525_s2 + $0x78] sm:$0xf] %vm15_vm1, %v11396_v0  ;;  %v10326_v47 = vadd.f32 %v10325_v32, %v10324_v62  ;;  %v10521_v10 = vadd.f32 %v10520_v63, %v10519_v41  ;;  %v11397_v30 = vpack.c.bf16 %v12353_v1, %v12353_v1  ;;  %v10433_v25 = vmul.f32 %v12351_v37, %v12351_v37 }
 0x3dd   :  { %10234 = vst.msk [vmem:[%s16525_s2 + $0x70] sm:$0xf] %vm15_vm1, %v11394_v27  ;;  %v10522_v18 = vsel %vm2150_vm12, %v10431_v14, 0.0  ;;  %v11395_v7 = vpack.c.bf16 %v12354_v59, %v12354_v59  ;;  %v10327_v35 = vsel %vm2150_vm12, %v12354_v59, 0.0  ;;  %v10432_v29 = vmul.f32 %v12354_v59, %v12354_v59 }
 0x3de   :  { %v10523_v39 = vadd.f32 %v10522_v18, %v10521_v10  ;;  %10237 = vst.msk [vmem:[%s16525_s2 + $0x7c] sm:$0xf] %vm15_vm1, %v11397_v30  ;;  %v10328_v48 = vadd.f32 %v10327_v35, %v10326_v47  ;;  %v10329_v26 = vsel %vm2150_vm12, %v12351_v37, 0.0  ;;  %v10434_v2 = vmul.f32 %v12353_v1, %v12353_v1 }
 0x3df   :  { %v12291_v24 = vpop.f32.mrb[32].mxu0  ;;  %10235 = vst.msk [vmem:[%s16525_s2 + $0x74] sm:$0xf] %vm15_vm1, %v11395_v7  ;;  %v10524_v44 = vsel %vm2150_vm12, %v10432_v29, 0.0  ;;  %v10526_v17 = vsel %vm2150_vm12, %v10433_v25, 0.0  ;;  %v10331_v52 = vsel %vm2150_vm12, %v12353_v1, 0.0 }
 0x3e0   :  { %v9759_v23 = vpop.f32.mrb[33].mxu0  ;;  %v10330_v31 = vadd.f32 %v10329_v26, %v10328_v48  ;;  %v10525_v43 = vadd.f32 %v10524_v44, %v10523_v39  ;;  %v10528_v60 = vsel %vm2150_vm12, %v10434_v2, 0.0 }
 0x3e1   :  { %v12292_v19 = vpop.f32.mrb[34].mxu0 }
 0x3e2   :  { %v9762_v42 = vpop.f32.mrb[35].mxu0  ;;  %v10527_v53 = vadd.f32 %v10526_v17, %v10525_v43  ;;  %v10332_v12 = vadd.f32 %v10331_v52, %v10330_v31 }
 0x3e4   :  { %v10529_v3 = vadd.f32 %v10528_v60, %v10527_v53 }
 0x3e7   :  { %v12295_v49 = vpop.f32.mrb[36].mxu0 }
 0x3e8   :  { %v9775_v38 = vpop.f32.mrb[37].mxu0 }
 0x3e9   :  { %v12027_v57 = vpop.f32.mrb[32].mxu1  ;;  %v12296_v54 = vpop.f32.mrb[38].mxu0 }
 0x3ea   :  { %v5862_v16 = vpop.f32.mrb[33].mxu1  ;;  %v12355_v13 = vadd.f32 %v12291_v24, %v12027_v57  ;;  %v9778_v34 = vpop.f32.mrb[39].mxu0 }
 0x3eb   :  { %v12028_v58 = vpop.f32.mrb[34].mxu1  ;;  %v12356_v45 = vadd.f32 %v9759_v23, %v5862_v16 }
 0x3ec   :  { %v11400_v21 = vpack.c.bf16 %v12355_v13, %v12355_v13  ;;  %v5865_v20 = vpop.f32.mrb[35].mxu1  ;;  %v12357_v22 = vadd.f32 %v12292_v19, %v12028_v58  ;;  %v10437_v51 = vmul.f32 %v12355_v13, %v12355_v13  ;;  %v10337_v6 = vsel %vm2150_vm12, %v12355_v13, 0.0 }
 0x3ed   :  { %v11398_v50 = vpack.c.bf16 %v12356_v45, %v12356_v45  ;;  %v10333_v4 = vsel %vm2150_vm12, %v12356_v45, 0.0  ;;  %v10435_v28 = vmul.f32 %v12356_v45, %v12356_v45  ;;  %v12358_v36 = vadd.f32 %v9762_v42, %v5865_v20 }
 0x3ee   :  { %10240 = vst.msk [vmem:[%s16525_s2 + $0x88] sm:$0xf] %vm15_vm1, %v11400_v21  ;;  %v10334_v5 = vadd.f32 %v10333_v4, %v10332_v12  ;;  %v11401_v61 = vpack.c.bf16 %v12357_v22, %v12357_v22  ;;  %v10438_v46 = vmul.f32 %v12357_v22, %v12357_v22  ;;  %v10339_v62 = vsel %vm2150_vm12, %v12357_v22, 0.0 }
 0x3ef   :  { %10238 = vst.msk [vmem:[%s16525_s2 + $0x80] sm:$0xf] %vm15_vm1, %v11398_v50  ;;  %v10530_v37 = vsel %vm2150_vm12, %v10435_v28, 0.0  ;;  %v11399_v15 = vpack.c.bf16 %v12358_v36, %v12358_v36  ;;  %v10335_v56 = vsel %vm2150_vm12, %v12358_v36, 0.0  ;;  %v10436_v9 = vmul.f32 %v12358_v36, %v12358_v36  ;;  %v12299_v40 = vpop.f32.mrb[40].mxu0 }
 0x3f0   :  { %v10531_v11 = vadd.f32 %v10530_v37, %v10529_v3  ;;  %10241 = vst.msk [vmem:[%s16525_s2 + $0x8c] sm:$0xf] %vm15_vm1, %v11401_v61  ;;  %v10336_v33 = vadd.f32 %v10335_v56, %v10334_v5  ;;  %v9791_v0 = vpop.f32.mrb[41].mxu0  ;;  %v10534_v47 = vsel %vm2150_vm12, %v10437_v51, 0.0  ;;  %v10536_v39 = vsel %vm2150_vm12, %v10438_v46, 0.0 }
 0x3f1   :  { %10239 = vst.msk [vmem:[%s16525_s2 + $0x84] sm:$0xf] %vm15_vm1, %v11399_v15  ;;  %v12031_v55 = vpop.f32.mrb[36].mxu1  ;;  %v10532_v27 = vsel %vm2150_vm12, %v10436_v9, 0.0  ;;  %v12300_v41 = vpop.f32.mrb[42].mxu0 }
 0x3f2   :  { %v10338_v8 = vadd.f32 %v10337_v6, %v10336_v33  ;;  %v5878_v32 = vpop.f32.mrb[37].mxu1  ;;  %v12359_v14 = vadd.f32 %v12295_v49, %v12031_v55  ;;  %v10533_v1 = vadd.f32 %v10532_v27, %v10531_v11  ;;  %v9794_v18 = vpop.f32.mrb[43].mxu0 }
 0x3f3   :  { %v12032_v59 = vpop.f32.mrb[38].mxu1  ;;  %v12360_v63 = vadd.f32 %v9775_v38, %v5878_v32 }
 0x3f4   :  { %v11404_v10 = vpack.c.bf16 %v12359_v14, %v12359_v14  ;;  %v10340_v30 = vadd.f32 %v10339_v62, %v10338_v8  ;;  %v5881_v25 = vpop.f32.mrb[39].mxu1  ;;  %v10535_v7 = vadd.f32 %v10534_v47, %v10533_v1  ;;  %v12361_v23 = vadd.f32 %v12296_v54, %v12032_v59 }
 0x3f5   :  { %v11402_v35 = vpack.c.bf16 %v12360_v63, %v12360_v63  ;;  %v10341_v29 = vsel %vm2150_vm12, %v12360_v63, 0.0  ;;  %v10439_v24 = vmul.f32 %v12360_v63, %v12360_v63  ;;  %v12362_v26 = vadd.f32 %v9778_v34, %v5881_v25 }
 0x3f6   :  { %10244 = vst.msk [vmem:[%s16525_s2 + $0x98] sm:$0xf] %vm15_vm1, %v11404_v10  ;;  %v10342_v48 = vadd.f32 %v10341_v29, %v10340_v30  ;;  %v10537_v2 = vadd.f32 %v10536_v39, %v10535_v7  ;;  %v10441_v19 = vmul.f32 %v12359_v14, %v12359_v14  ;;  %v11405_v31 = vpack.c.bf16 %v12361_v23, %v12361_v23 }
 0x3f7   :  { %10242 = vst.msk [vmem:[%s16525_s2 + $0x90] sm:$0xf] %vm15_vm1, %v11402_v35  ;;  %v10538_v44 = vsel %vm2150_vm12, %v10439_v24, 0.0  ;;  %v11403_v43 = vpack.c.bf16 %v12362_v26, %v12362_v26  ;;  %v12303_v42 = vpop.f32.mrb[44].mxu0  ;;  %v10343_v52 = vsel %vm2150_vm12, %v12362_v26, 0.0  ;;  %v10440_v53 = vmul.f32 %v12362_v26, %v12362_v26 }
 0x3f8   :  { %v10539_v17 = vadd.f32 %v10538_v44, %v10537_v2  ;;  %v9807_v60 = vpop.f32.mrb[45].mxu0  ;;  %10245 = vst.msk [vmem:[%s16525_s2 + $0x9c] sm:$0xf] %vm15_vm1, %v11405_v31  ;;  %v10344_v3 = vadd.f32 %v10343_v52, %v10342_v48  ;;  %v10345_v16 = vsel %vm2150_vm12, %v12359_v14, 0.0  ;;  %v10442_v13 = vmul.f32 %v12361_v23, %v12361_v23 }
 0x3f9   :  { %v12035_v12 = vpop.f32.mrb[40].mxu1  ;;  %10243 = vst.msk [vmem:[%s16525_s2 + $0x94] sm:$0xf] %vm15_vm1, %v11403_v43  ;;  %v12304_v38 = vpop.f32.mrb[46].mxu0  ;;  %v10540_v54 = vsel %vm2150_vm12, %v10440_v53, 0.0  ;;  %v10542_v21 = vsel %vm2150_vm12, %v10441_v19, 0.0 }
 0x3fa   :  { %v5894_v49 = vpop.f32.mrb[41].mxu1  ;;  %v12363_v57 = vadd.f32 %v12299_v40, %v12035_v12  ;;  %v9810_v34 = vpop.f32.mrb[47].mxu0  ;;  %v10346_v20 = vadd.f32 %v10345_v16, %v10344_v3  ;;  %v10541_v22 = vadd.f32 %v10540_v54, %v10539_v17  ;;  %v10347_v28 = vsel %vm2150_vm12, %v12361_v23, 0.0 }
 0x3fb   :  { %v12036_v58 = vpop.f32.mrb[42].mxu1  ;;  %v12364_v45 = vadd.f32 %v9791_v0, %v5894_v49  ;;  %v10544_v11 = vsel %vm2150_vm12, %v10442_v13, 0.0 }
 0x3fc   :  { %v11408_v50 = vpack.c.bf16 %v12363_v57, %v12363_v57  ;;  %v5897_v4 = vpop.f32.mrb[43].mxu1  ;;  %v10543_v37 = vadd.f32 %v10542_v21, %v10541_v22  ;;  %v10348_v15 = vadd.f32 %v10347_v28, %v10346_v20  ;;  %v12365_v56 = vadd.f32 %v12300_v41, %v12036_v58 }
 0x3fd   :  { %v11406_v36 = vpack.c.bf16 %v12364_v45, %v12364_v45  ;;  %v10349_v5 = vsel %vm2150_vm12, %v12364_v45, 0.0  ;;  %v10443_v61 = vmul.f32 %v12364_v45, %v12364_v45  ;;  %v12366_v51 = vadd.f32 %v9794_v18, %v5897_v4 }
 0x3fe   :  { %10248 = vst.msk [vmem:[%s16525_s2 + $0xa8] sm:$0xf] %vm15_vm1, %v11408_v50  ;;  %v10445_v9 = vmul.f32 %v12363_v57, %v12363_v57  ;;  %v10350_v40 = vadd.f32 %v10349_v5, %v10348_v15  ;;  %v10545_v6 = vadd.f32 %v10544_v11, %v10543_v37  ;;  %v11409_v55 = vpack.c.bf16 %v12365_v56, %v12365_v56 }
 0x3ff   :  { %10246 = vst.msk [vmem:[%s16525_s2 + $0xa0] sm:$0xf] %vm15_vm1, %v11406_v36  ;;  %v10546_v33 = vsel %vm2150_vm12, %v10443_v61, 0.0  ;;  %v12307_v0 = vpop.f32.mrb[48].mxu0  ;;  %v11407_v46 = vpack.c.bf16 %v12366_v51, %v12366_v51  ;;  %v10351_v8 = vsel %vm2150_vm12, %v12366_v51, 0.0  ;;  %v10444_v27 = vmul.f32 %v12366_v51, %v12366_v51 }
 0x400   :  { %v9823_v14 = vpop.f32.mrb[49].mxu0  ;;  %v10547_v41 = vadd.f32 %v10546_v33, %v10545_v6  ;;  %10249 = vst.msk [vmem:[%s16525_s2 + $0xac] sm:$0xf] %vm15_vm1, %v11409_v55  ;;  %v10352_v62 = vadd.f32 %v10351_v8, %v10350_v40  ;;  %v10353_v18 = vsel %vm2150_vm12, %v12363_v57, 0.0  ;;  %v10446_v47 = vmul.f32 %v12365_v56, %v12365_v56 }
 0x401   :  { %v12039_v32 = vpop.f32.mrb[44].mxu1  ;;  %v12308_v63 = vpop.f32.mrb[50].mxu0  ;;  %10247 = vst.msk [vmem:[%s16525_s2 + $0xa4] sm:$0xf] %vm15_vm1, %v11407_v46  ;;  %v10548_v10 = vsel %vm2150_vm12, %v10444_v27, 0.0  ;;  %v10550_v35 = vsel %vm2150_vm12, %v10445_v9, 0.0 }
 0x402   :  { %v5910_v1 = vpop.f32.mrb[45].mxu1  ;;  %v12367_v59 = vadd.f32 %v12303_v42, %v12039_v32  ;;  %v9826_v7 = vpop.f32.mrb[51].mxu0  ;;  %v10354_v29 = vadd.f32 %v10353_v18, %v10352_v62  ;;  %v10549_v24 = vadd.f32 %v10548_v10, %v10547_v41  ;;  %v10355_v23 = vsel %vm2150_vm12, %v12365_v56, 0.0 }
 0x403   :  { %v12040_v30 = vpop.f32.mrb[46].mxu1  ;;  %v12368_v25 = vadd.f32 %v9807_v60, %v5910_v1  ;;  %v10552_v17 = vsel %vm2150_vm12, %v10446_v47, 0.0 }
 0x404   :  { %v11412_v39 = vpack.c.bf16 %v12367_v59, %v12367_v59  ;;  %v5913_v48 = vpop.f32.mrb[47].mxu1  ;;  %v10551_v19 = vadd.f32 %v10550_v35, %v10549_v24  ;;  %v10356_v31 = vadd.f32 %v10355_v23, %v10354_v29  ;;  %v12369_v43 = vadd.f32 %v12304_v38, %v12040_v30 }
 0x405   :  { %v11410_v26 = vpack.c.bf16 %v12368_v25, %v12368_v25  ;;  %v10357_v2 = vsel %vm2150_vm12, %v12368_v25, 0.0  ;;  %v10447_v44 = vmul.f32 %v12368_v25, %v12368_v25  ;;  %v12370_v42 = vadd.f32 %v9810_v34, %v5913_v48 }
 0x406   :  { %10252 = vst.msk [vmem:[%s16525_s2 + $0xb8] sm:$0xf] %vm15_vm1, %v11412_v39  ;;  %v10449_v53 = vmul.f32 %v12367_v59, %v12367_v59  ;;  %v10358_v12 = vadd.f32 %v10357_v2, %v10356_v31  ;;  %v10553_v60 = vadd.f32 %v10552_v17, %v10551_v19  ;;  %v11413_v3 = vpack.c.bf16 %v12369_v43, %v12369_v43 }
 0x407   :  { %10250 = vst.msk [vmem:[%s16525_s2 + $0xb0] sm:$0xf] %vm15_vm1, %v11410_v26  ;;  %v10554_v52 = vsel %vm2150_vm12, %v10447_v44, 0.0  ;;  %v12311_v49 = vpop.f32.mrb[52].mxu0  ;;  %v11411_v57 = vpack.c.bf16 %v12370_v42, %v12370_v42  ;;  %v10359_v16 = vsel %vm2150_vm12, %v12370_v42, 0.0  ;;  %v10448_v13 = vmul.f32 %v12370_v42, %v12370_v42 }
 0x408   :  { %v9839_v54 = vpop.f32.mrb[53].mxu0  ;;  %v10555_v58 = vadd.f32 %v10554_v52, %v10553_v60  ;;  %10253 = vst.msk [vmem:[%s16525_s2 + $0xbc] sm:$0xf] %vm15_vm1, %v11413_v3  ;;  %v10360_v45 = vadd.f32 %v10359_v16, %v10358_v12  ;;  %v10361_v22 = vsel %vm2150_vm12, %v12367_v59, 0.0  ;;  %v10450_v50 = vmul.f32 %v12369_v43, %v12369_v43 }
 0x409   :  { %v12043_v38 = vpop.f32.mrb[48].mxu1  ;;  %v12312_v20 = vpop.f32.mrb[54].mxu0  ;;  %10251 = vst.msk [vmem:[%s16525_s2 + $0xb4] sm:$0xf] %vm15_vm1, %v11411_v57  ;;  %v10556_v4 = vsel %vm2150_vm12, %v10448_v13, 0.0  ;;  %v10558_v61 = vsel %vm2150_vm12, %v10449_v53, 0.0 }
 0x40a   :  { %v5926_v34 = vpop.f32.mrb[49].mxu1  ;;  %v12371_v21 = vadd.f32 %v12307_v0, %v12043_v38  ;;  %v9842_v5 = vpop.f32.mrb[55].mxu0  ;;  %v10362_v37 = vadd.f32 %v10361_v22, %v10360_v45  ;;  %v10557_v15 = vadd.f32 %v10556_v4, %v10555_v58  ;;  %v10363_v11 = vsel %vm2150_vm12, %v12369_v43, 0.0 }
 0x40b   :  { %v12044_v28 = vpop.f32.mrb[50].mxu1  ;;  %v12372_v36 = vadd.f32 %v9823_v14, %v5926_v34  ;;  %v10560_v8 = vsel %vm2150_vm12, %v10450_v50, 0.0 }
 0x40c   :  { %v11416_v56 = vpack.c.bf16 %v12371_v21, %v12371_v21  ;;  %v5929_v51 = vpop.f32.mrb[51].mxu1  ;;  %v10559_v6 = vadd.f32 %v10558_v61, %v10557_v15  ;;  %v10364_v55 = vadd.f32 %v10363_v11, %v10362_v37  ;;  %v12373_v0 = vadd.f32 %v12308_v63, %v12044_v28 }
 0x40d   :  { %v11414_v33 = vpack.c.bf16 %v12372_v36, %v12372_v36  ;;  %v10365_v9 = vsel %vm2150_vm12, %v12372_v36, 0.0  ;;  %v10451_v40 = vmul.f32 %v12372_v36, %v12372_v36  ;;  %v12374_v46 = vadd.f32 %v9826_v7, %v5929_v51 }
 0x40e   :  { %10256 = vst.msk [vmem:[%s16525_s2 + $0xc8] sm:$0xf] %vm15_vm1, %v11416_v56  ;;  %v10453_v32 = vmul.f32 %v12371_v21, %v12371_v21  ;;  %v10366_v14 = vadd.f32 %v10365_v9, %v10364_v55  ;;  %v10561_v41 = vadd.f32 %v10560_v8, %v10559_v6  ;;  %v11417_v62 = vpack.c.bf16 %v12373_v0, %v12373_v0 }
 0x40f   :  { %10254 = vst.msk [vmem:[%s16525_s2 + $0xc0] sm:$0xf] %vm15_vm1, %v11414_v33  ;;  %v10562_v27 = vsel %vm2150_vm12, %v10451_v40, 0.0  ;;  %v12315_v1 = vpop.f32.mrb[56].mxu0  ;;  %v11415_v59 = vpack.c.bf16 %v12374_v46, %v12374_v46  ;;  %v10367_v18 = vsel %vm2150_vm12, %v12374_v46, 0.0  ;;  %v10452_v47 = vmul.f32 %v12374_v46, %v12374_v46 }
 0x410   :  { %v9855_v10 = vpop.f32.mrb[57].mxu0  ;;  %v10563_v30 = vadd.f32 %v10562_v27, %v10561_v41  ;;  %10257 = vst.msk [vmem:[%s16525_s2 + $0xcc] sm:$0xf] %vm15_vm1, %v11417_v62  ;;  %v10368_v25 = vadd.f32 %v10367_v18, %v10366_v14  ;;  %v10369_v24 = vsel %vm2150_vm12, %v12371_v21, 0.0  ;;  %v10454_v39 = vmul.f32 %v12373_v0, %v12373_v0 }
 0x411   :  { %v12047_v63 = vpop.f32.mrb[52].mxu1  ;;  %v12316_v29 = vpop.f32.mrb[58].mxu0  ;;  %10255 = vst.msk [vmem:[%s16525_s2 + $0xc4] sm:$0xf] %vm15_vm1, %v11415_v59  ;;  %v10564_v48 = vsel %vm2150_vm12, %v10452_v47, 0.0  ;;  %v10566_v44 = vsel %vm2150_vm12, %v10453_v32, 0.0 }
 0x412   :  { %v5942_v7 = vpop.f32.mrb[53].mxu1  ;;  %v12375_v35 = vadd.f32 %v12311_v49, %v12047_v63  ;;  %v9858_v2 = vpop.f32.mrb[59].mxu0  ;;  %v10370_v19 = vadd.f32 %v10369_v24, %v10368_v25  ;;  %v10565_v31 = vadd.f32 %v10564_v48, %v10563_v30  ;;  %v10371_v17 = vsel %vm2150_vm12, %v12373_v0, 0.0 }
 0x413   :  { %v12048_v23 = vpop.f32.mrb[54].mxu1  ;;  %v12376_v26 = vadd.f32 %v9839_v54, %v5942_v7  ;;  %v10568_v16 = vsel %vm2150_vm12, %v10454_v39, 0.0 }
 0x414   :  { %v11420_v43 = vpack.c.bf16 %v12375_v35, %v12375_v35  ;;  %v5945_v42 = vpop.f32.mrb[55].mxu1  ;;  %v10567_v60 = vadd.f32 %v10566_v44, %v10565_v31  ;;  %v10372_v3 = vadd.f32 %v10371_v17, %v10370_v19  ;;  %v12377_v49 = vadd.f32 %v12312_v20, %v12048_v23 }
 0x415   :  { %v11418_v52 = vpack.c.bf16 %v12376_v26, %v12376_v26  ;;  %v10373_v53 = vsel %vm2150_vm12, %v12376_v26, 0.0  ;;  %v10455_v12 = vmul.f32 %v12376_v26, %v12376_v26  ;;  %v12378_v57 = vadd.f32 %v9842_v5, %v5945_v42 }
 0x416   :  { %10260 = vst.msk [vmem:[%s16525_s2 + $0xd8] sm:$0xf] %vm15_vm1, %v11420_v43  ;;  %v10457_v38 = vmul.f32 %v12375_v35, %v12375_v35  ;;  %v10374_v54 = vadd.f32 %v10373_v53, %v10372_v3  ;;  %v10569_v58 = vadd.f32 %v10568_v16, %v10567_v60  ;;  %v11421_v45 = vpack.c.bf16 %v12377_v49, %v12377_v49 }
 0x417   :  { %10258 = vst.msk [vmem:[%s16525_s2 + $0xd0] sm:$0xf] %vm15_vm1, %v11418_v52  ;;  %v10570_v13 = vsel %vm2150_vm12, %v10455_v12, 0.0  ;;  %v12319_v34 = vpop.f32.mrb[60].mxu0  ;;  %v11419_v21 = vpack.c.bf16 %v12378_v57, %v12378_v57  ;;  %v10375_v22 = vsel %vm2150_vm12, %v12378_v57, 0.0  ;;  %v10456_v50 = vmul.f32 %v12378_v57, %v12378_v57 }
 0x418   :  { %v9871_v4 = vpop.f32.mrb[61].mxu0  ;;  %v10571_v28 = vadd.f32 %v10570_v13, %v10569_v58  ;;  %10261 = vst.msk [vmem:[%s16525_s2 + $0xdc] sm:$0xf] %vm15_vm1, %v11421_v45  ;;  %v10376_v36 = vadd.f32 %v10375_v22, %v10374_v54  ;;  %v10377_v15 = vsel %vm2150_vm12, %v12375_v35, 0.0  ;;  %v10458_v56 = vmul.f32 %v12377_v49, %v12377_v49 }
 0x419   :  { %v12051_v20 = vpop.f32.mrb[56].mxu1  ;;  %v12320_v37 = vpop.f32.mrb[62].mxu0  ;;  %10259 = vst.msk [vmem:[%s16525_s2 + $0xd4] sm:$0xf] %vm15_vm1, %v11419_v21  ;;  %v10572_v51 = vsel %vm2150_vm12, %v10456_v50, 0.0  ;;  %v10574_v40 = vsel %vm2150_vm12, %v10457_v38, 0.0 }
 0x41a   :  { %v5958_v5 = vpop.f32.mrb[57].mxu1  ;;  %v12379_v61 = vadd.f32 %v12315_v1, %v12051_v20  ;;  %v9874_v9 = vpop.f32.mrb[63].mxu0  ;;  %v10378_v6 = vadd.f32 %v10377_v15, %v10376_v36  ;;  %v10573_v55 = vadd.f32 %v10572_v51, %v10571_v28  ;;  %v10379_v8 = vsel %vm2150_vm12, %v12377_v49, 0.0 }
 0x41b   :  { %v12052_v11 = vpop.f32.mrb[58].mxu1  ;;  %v12380_v33 = vadd.f32 %v9855_v10, %v5958_v5  ;;  %v10576_v18 = vsel %vm2150_vm12, %v10458_v56, 0.0 }
 0x41c   :  { %v11424_v0 = vpack.c.bf16 %v12379_v61, %v12379_v61  ;;  %v5961_v46 = vpop.f32.mrb[59].mxu1  ;;  %v10575_v41 = vadd.f32 %v10574_v40, %v10573_v55  ;;  %v10380_v62 = vadd.f32 %v10379_v8, %v10378_v6  ;;  %v12381_v1 = vadd.f32 %v12316_v29, %v12052_v11 }
 0x41d   :  { %v11422_v27 = vpack.c.bf16 %v12380_v33, %v12380_v33  ;;  %v10381_v32 = vsel %vm2150_vm12, %v12380_v33, 0.0  ;;  %v10459_v14 = vmul.f32 %v12380_v33, %v12380_v33  ;;  %v12382_v59 = vadd.f32 %v9858_v2, %v5961_v46 }
 0x41e   :  { %10264 = vst.msk [vmem:[%s16525_s2 + $0xe8] sm:$0xf] %vm15_vm1, %v11424_v0  ;;  %v10461_v63 = vmul.f32 %v12379_v61, %v12379_v61  ;;  %v10382_v10 = vadd.f32 %v10381_v32, %v10380_v62  ;;  %v10577_v30 = vadd.f32 %v10576_v18, %v10575_v41  ;;  %v11425_v25 = vpack.c.bf16 %v12381_v1, %v12381_v1 }
 0x41f   :  { %10262 = vst.msk [vmem:[%s16525_s2 + $0xe0] sm:$0xf] %vm15_vm1, %v11422_v27  ;;  %v10578_v47 = vsel %vm2150_vm12, %v10459_v14, 0.0  ;;  %v11423_v7 = vpack.c.bf16 %v12382_v59, %v12382_v59  ;;  %v10383_v35 = vsel %vm2150_vm12, %v12382_v59, 0.0  ;;  %v10460_v24 = vmul.f32 %v12382_v59, %v12382_v59 }
 0x420   :  { %v10579_v29 = vadd.f32 %v10578_v47, %v10577_v30  ;;  %10265 = vst.msk [vmem:[%s16525_s2 + $0xec] sm:$0xf] %vm15_vm1, %v11425_v25  ;;  %v10384_v48 = vadd.f32 %v10383_v35, %v10382_v10  ;;  %v10385_v2 = vsel %vm2150_vm12, %v12379_v61, 0.0  ;;  %v10462_v44 = vmul.f32 %v12381_v1, %v12381_v1 }
 0x421   :  { %v12055_v39 = vpop.f32.mrb[60].mxu1  ;;  %10263 = vst.msk [vmem:[%s16525_s2 + $0xe4] sm:$0xf] %vm15_vm1, %v11423_v7  ;;  %v10580_v19 = vsel %vm2150_vm12, %v10460_v24, 0.0  ;;  %v10582_v42 = vsel %vm2150_vm12, %v10461_v63, 0.0  ;;  %v10387_v60 = vsel %vm2150_vm12, %v12381_v1, 0.0 }
 0x422   :  { %v5974_v23 = vpop.f32.mrb[61].mxu1  ;;  %v12383_v26 = vadd.f32 %v12319_v34, %v12055_v39  ;;  %v10386_v17 = vadd.f32 %v10385_v2, %v10384_v48  ;;  %v10581_v52 = vadd.f32 %v10580_v19, %v10579_v29  ;;  %v10584_v58 = vsel %vm2150_vm12, %v10462_v44, 0.0 }
 0x423   :  { %v12056_v31 = vpop.f32.mrb[62].mxu1  ;;  %v12384_v43 = vadd.f32 %v9871_v4, %v5974_v23 }
 0x424   :  { %v11428_v53 = vpack.c.bf16 %v12383_v26, %v12383_v26  ;;  %v5977_v12 = vpop.f32.mrb[63].mxu1  ;;  %v10583_v16 = vadd.f32 %v10582_v42, %v10581_v52  ;;  %v10388_v13 = vadd.f32 %v10387_v60, %v10386_v17  ;;  %v12385_v38 = vadd.f32 %v12320_v37, %v12056_v31 }
 0x425   :  { %v11426_v3 = vpack.c.bf16 %v12384_v43, %v12384_v43  ;;  %v10389_v49 = vsel %vm2150_vm12, %v12384_v43, 0.0  ;;  %v10463_v57 = vmul.f32 %v12384_v43, %v12384_v43  ;;  %v12386_v54 = vadd.f32 %v9874_v9, %v5977_v12 }
 0x426   :  { %10268 = vst.msk [vmem:[%s16525_s2 + $0xf8] sm:$0xf] %vm15_vm1, %v11428_v53  ;;  %v10390_v34 = vadd.f32 %v10389_v49, %v10388_v13  ;;  %v10585_v21 = vadd.f32 %v10584_v58, %v10583_v16  ;;  %v11429_v22 = vpack.c.bf16 %v12385_v38, %v12385_v38  ;;  %v10465_v50 = vmul.f32 %v12383_v26, %v12383_v26 }
 0x427   :  { %10266 = vst.msk [vmem:[%s16525_s2 + $0xf0] sm:$0xf] %vm15_vm1, %v11426_v3  ;;  %v10586_v45 = vsel %vm2150_vm12, %v10463_v57, 0.0  ;;  %v11427_v20 = vpack.c.bf16 %v12386_v54, %v12386_v54  ;;  %v10391_v4 = vsel %vm2150_vm12, %v12386_v54, 0.0  ;;  %v10464_v28 = vmul.f32 %v12386_v54, %v12386_v54 }
 0x428   :  { %v10587_v36 = vadd.f32 %v10586_v45, %v10585_v21  ;;  %10269 = vst.msk [vmem:[%s16525_s2 + $0xfc] sm:$0xf] %vm15_vm1, %v11429_v22  ;;  %v10392_v5 = vadd.f32 %v10391_v4, %v10390_v34  ;;  %v10393_v61 = vsel %vm2150_vm12, %v12383_v26, 0.0  ;;  %v10466_v37 = vmul.f32 %v12385_v38, %v12385_v38 }
 0x429   :  { %10267 = vst.msk [vmem:[%s16525_s2 + $0xf4] sm:$0xf] %vm15_vm1, %v11427_v20  ;;  %v10588_v15 = vsel %vm2150_vm12, %v10464_v28, 0.0  ;;  %v10590_v11 = vsel %vm2150_vm12, %v10465_v50, 0.0  ;;  %v10395_v33 = vsel %vm2150_vm12, %v12385_v38, 0.0  ;;  %s13156_s2 = smov [#allocation3]  }
 0x42a   :  { %v10394_v56 = vadd.f32 %v10393_v61, %v10392_v5  ;;  %v10589_v51 = vadd.f32 %v10588_v15, %v10587_v36  ;;  %v10592_v6 = vsel %vm2150_vm12, %v10466_v37, 0.0  ;;  %s10612_s14 = sshll.u32 %s13156_s2, 4  ;;  %vm10602_vm1 = vcmask 25600   ;;  %s10613_s14 = int_to_ptr.vmem [resolvable:$true] %s10612_s14 }
 0x42b   :  { %s13131_s15 = scalar_lea.vmem %s10613_s14, 32  ;;  %p13136_p1 = scmp.lt.s32.totalorder %s10613_s14, %s10613_s14 }
 0x42c   :  { %v10396_v9 = vadd.f32 %v10395_v33, %v10394_v56  ;;  %v10591_v40 = vadd.f32 %v10590_v11, %v10589_v51  ;;  %p13132_p0 = scmp.ne.s32.totalorder %s10613_s14, %s13131_s15  ;;  %p13137_p2 = scmp.lt.s32.totalorder %s13131_s15, %s13131_s15 }
 0x42e   :  { %v10397_v55 = vrot.slane %v10396_v9, 4  ;;  %v10593_v0 = vadd.f32 %v10592_v6, %v10591_v40  ;;  %p13138_p3 = por %p13137_p2, %p13136_p1 }
 0x430   :  { %v10398_v46 = vadd.f32 %v10397_v55, %v10396_v9  ;;  %v10594_v8 = vrot.slane %v10593_v0, 4  ;;  %p13139_p4 = pnand %p13138_p3, %p13132_p0 }
 0x432   :  { %v10399_v27 = vrot.slane %v10398_v46, 2  ;;  %v10595_v32 = vadd.f32 %v10594_v8, %v10593_v0 }
 0x434   :  { %v10400_v14 = vadd.f32 %v10399_v27, %v10398_v46  ;;  %v10596_v41 = vrot.slane %v10595_v32, 2 }
 0x436   :  { %v10401_v62 = vrot.slane %v10400_v14, 1  ;;  %v10597_v1 = vadd.f32 %v10596_v41, %v10595_v32 }
 0x438   :  { %v10598_v59 = vrot.slane %v10597_v1, 1  ;;  %v10402_v18 = vadd.f32 %v10401_v62, %v10400_v14 }
 0x43a   :  { %v10599_v47 = vadd.f32 %v10598_v59, %v10597_v1 }
 0x43c   :  { %v10601_v63 = vsel %vm10600_vm0, %v10402_v18, %v10599_v47 }
 0x43d   :  { %10603 = vst.msk [vmem:[#allocation3] sm:$0x3] %vm10602_vm1, %v10601_v63 }
 0x43e   :  { %13142 = shalt.err (!%p13139_p4)
}
 0x43f   :  { %s13143_s18 = scalar_lea.hbm %s16526_s3, 32 }
 0x440   :  { %p13144_p5 = scmp.ne.s32.totalorder %s16526_s3, %s13143_s18  ;;  %p13147_p6 = scmp.lt.u32.totalorder %s13143_s18, %s16526_s3 }
 0x442   :  { %p13149_p7 = pnand %p13147_p6, %p13144_p5 }
 0x444   :  { %13152 = shalt.err (!%p13149_p7)
}
 0x445   :  { %10615 = dma.vmem_to_hbm [thread:$0]  %s10613_s14, 32, %s16526_s3, [#allocation4]  }
 0x446   :  { %13153 = dma.done.wait [#allocation4], 32  }
 0x447   :  { %13154 = vsyncadd [#allocation4], 4294967264 }
 0x448   :  { %10621 = vsyncpa [#allocation4], 1 }

</bundles_post_ra>
